<compile_context>
chip_gen: v7x
topology: tpu7x:2x2x1
jax: 0.10.0
libtpu: 0.0.40
codegen_flags: <defaults>
</compile_context>

<pallas_src>
import math

import jax
import jax.numpy as jnp
from jax.experimental import pallas as pl
from jax.experimental.pallas import tpu as pltpu

# ----------------------------- configuration --------------------------------
DIM = 32            # in_channels / dim
GAT_HEADS = 4       # attn_heads for GATv2Conv
PAIR_HEADS = 2      # PairwiseAttention heads
PAIR_DIM_HEAD = 64  # PairwiseAttention dim_head
RATIO = 0.5         # SelectTopK ratio
MULTIPLIER = 1.0
DEPTH = 2
N_NODES = 16
LN_EPS = 1e-5


def _vmem_spec():
    # whole-array block resident in VMEM (shapes here are tiny)
    return pl.BlockSpec(memory_space=pltpu.MemorySpace.VMEM)


def _cparams():
    return pltpu.CompilerParams(vmem_limit_bytes=32 * 1024 * 1024)


# ----------------------------- shared pair-attention core --------------------
def _pair_core(z, mask, pe, wqkv, wo, bo, ws, bs):
    """PairwiseAttention (masked per-row MHA) + pair_to_score + pair_edge acc.

    z    : [n*n, d]  pair representation (row-major over (i, j)), f32
    mask : [n, n]    1.0 where an edge exists
    pe   : [n, n]    accumulated pair_edge score
    returns (attn_out [n*n, d], pe_new [n, n])
    """
    n = mask.shape[0]
    d = z.shape[-1]
    hd = PAIR_HEADS * PAIR_DIM_HEAD              # 128
    scale = 1.0 / math.sqrt(PAIR_DIM_HEAD)

    # merged Q/K/V projection: one bf16 [n*n, d] @ [d, 3*H*DH] MXU matmul
    qkv = jnp.dot(z.astype(jnp.bfloat16), wqkv,
                  preferred_element_type=jnp.float32)            # [n*n, 3*hd] f32
    # key-side mask per pair-row i (rows with no edges fall back to uniform
    # attention, matching a masked_fill(-large) + softmax torch reference)
    neg_bias = (1.0 - mask) * (-1e9)                             # [n, n]

    # TODO(synk): with H=2 / DH=64 full head-batching needs head-axis
    # transposes (vreg relayout) that cost more than two 64-lane slices at
    # this size; for a scaled version merge (i, h) into one batch axis and
    # use a single 'bqc,bkc->bqk' einsum.
    head_outs = []
    for h in range(PAIR_HEADS):
        q = qkv[:, h * PAIR_DIM_HEAD:(h + 1) * PAIR_DIM_HEAD].reshape(n, n, PAIR_DIM_HEAD)
        k = qkv[:, hd + h * PAIR_DIM_HEAD:hd + (h + 1) * PAIR_DIM_HEAD].reshape(n, n, PAIR_DIM_HEAD)
        v = qkv[:, 2 * hd + h * PAIR_DIM_HEAD:2 * hd + (h + 1) * PAIR_DIM_HEAD].reshape(n, n, PAIR_DIM_HEAD)
        logits = jnp.einsum('iac,ibc->iab',
                            q.astype(jnp.bfloat16), k.astype(jnp.bfloat16),
                            preferred_element_type=jnp.float32) * scale
        logits = logits + neg_bias[:, None, :]
        m = jnp.max(logits, axis=-1, keepdims=True)
        e = jnp.exp(logits - m)
        p_attn = e * pl.reciprocal(jnp.sum(e, axis=-1, keepdims=True), approx=True)
        oh = jnp.einsum('iab,ibc->iac',
                        p_attn.astype(jnp.bfloat16), v.astype(jnp.bfloat16),
                        preferred_element_type=jnp.float32)
        head_outs.append(oh.reshape(n * n, PAIR_DIM_HEAD))

    # heads concatenated along lanes -> ONE [n*n, 128] @ [128, d] W_o matmul
    # (K=128 exactly fills the v5e MXU contraction dim)
    o_cat = jnp.concatenate(head_outs, axis=-1)                  # [n*n, 128]
    attn_out = jnp.dot(o_cat.astype(jnp.bfloat16), wo,
                       preferred_element_type=jnp.float32) + bo  # [n*n, d]

    # pair_to_score fused; lane-reduce over d; accumulate pair_edge (f32 VPU)
    s = jnp.sum(attn_out.reshape(n, n, d) * ws[None, :, :], axis=-1) + bs
    pe_new = pe + jax.nn.sigmoid(s)
    # TODO(synk): attn_out [n*n, 32] / pe [n, 16] are masked partial stores;
    # at scale emit a lane-dense ([*, multiple-of-128]) output layout instead.
    return attn_out, pe_new


# ----------------------------- Pallas kernels --------------------------------
def pair_from_x_kernel(x_ref, mask_ref, pe_ref, g_ref, b_ref, w1_ref, b1_ref,
                       w2_ref, b2_ref, wqkv_ref, wo_ref, bo_ref, ws_ref, bs_ref,
                       attn_out_ref, pe_out_ref):
    """Fused: LayerNorm -> Linear(d,4d) -> ReLU -> Linear(4d,2d) -> outer-sum
    pair construction -> PairwiseAttention -> pair_to_score (+ pair_edge)."""
    x = x_ref[...]                                               # [n, d] f32
    n, d = x.shape
    mu = jnp.mean(x, axis=-1, keepdims=True)
    var = jnp.mean(jnp.square(x - mu), axis=-1, keepdims=True)
    xn = (x - mu) * jax.lax.rsqrt(var + LN_EPS) * g_ref[...] + b_ref[...]
    h = jnp.dot(xn.astype(jnp.bfloat16), w1_ref[...],
                preferred_element_type=jnp.float32) + b1_ref[...]
    h = jnp.maximum(h, 0.0)
    io = jnp.dot(h.astype(jnp.bfloat16), w2_ref[...],
                 preferred_element_type=jnp.float32) + b2_ref[...]
    ingoing = io[:, :d]
    outgoing = io[:, d:]
    z = (ingoing[:, None, :] + outgoing[None, :, :]).reshape(n * n, d)
    attn_out, pe_new = _pair_core(z, mask_ref[...], pe_ref[...], wqkv_ref[...],
                                  wo_ref[...], bo_ref[...], ws_ref[...], bs_ref[...])
    attn_out_ref[...] = attn_out
    pe_out_ref[...] = pe_new


def pair_from_pair_kernel(pair_ref, mask_ref, pe_ref, wqkv_ref, wo_ref, bo_ref,
                          ws_ref, bs_ref, attn_out_ref, pe_out_ref):
    """Fused PairwiseAttention + pair_to_score for a recycled pair tensor."""
    attn_out, pe_new = _pair_core(pair_ref[...], mask_ref[...], pe_ref[...],
                                  wqkv_ref[...], wo_ref[...], bo_ref[...],
                                  ws_ref[...], bs_ref[...])
    attn_out_ref[...] = attn_out
    pe_out_ref[...] = pe_new


def gatv2_kernel(x_ref, adjv_ref, adjm_ref, wlr_ref, blr_ref, we_ref, att_ref,
                 bias_ref, out_ref):
    """Dense GATv2 (heads=GAT_HEADS, concat=False, edge_dim=1) fused with
    residual + multiplier + skip:  out = MULTIPLIER*(x + GAT(x)) + x_skip.

    No concatenates / per-head lane slices / transposes: per-head reductions
    and broadcasts go through tiny 0/1-selector MXU matmuls.
    """
    x = x_ref[...]                                               # [n, d]
    adjv = adjv_ref[...]                                         # [n(dst), n(src)] edge attr
    adjm = adjm_ref[...]                                         # [n(dst), n(src)] mask
    n, d = x.shape
    H = GAT_HEADS
    hd = H * d                                                   # 128

    # fused lin_l | lin_r projection (one bf16 [n, d] @ [d, 2*H*d] matmul)
    xlr = jnp.dot(x.astype(jnp.bfloat16), wlr_ref[...],
                  preferred_element_type=jnp.float32) + blr_ref[...]
    xl = xlr[:, :hd]                                             # source transform [n, hd]
    xr = xlr[:, hd:]                                             # target transform [n, hd]

    # all heads at once: e[i, j, :] = xl[j] + xr[i] + adjv[i, j] * W_e
    # (one broadcast chain + one LeakyReLU pass on full 128-lane vregs)
    e = xl[None, :, :] + xr[:, None, :] + adjv[:, :, None] * we_ref[...][None, :, :]
    e = jnp.where(e > 0, e, 0.2 * e)                             # LeakyReLU(0.2)
    ew = e * att_ref[...][None, :, :]                            # [n, n, hd]

    # 0/1 selector matrices (exact in bf16), built with 2-D iota
    sel = (jax.lax.broadcasted_iota(jnp.int32, (hd, H), 0) // d ==
           jax.lax.broadcasted_iota(jnp.int32, (hd, H), 1)).astype(jnp.bfloat16)   # [hd, H]
    selT = (jax.lax.broadcasted_iota(jnp.int32, (H, hd), 1) // d ==
            jax.lax.broadcasted_iota(jnp.int32, (H, hd), 0)).astype(jnp.bfloat16)  # [H, hd]
    mean_sel = ((jax.lax.broadcasted_iota(jnp.int32, (hd, d), 0) % d ==
                 jax.lax.broadcasted_iota(jnp.int32, (hd, d), 1))
                .astype(jnp.bfloat16) * (1.0 / H))                                  # [hd, d]

    # per-head logit: one [n*n, hd] @ [hd, H] matmul (blocked lane reduce)
    logits = jnp.dot(ew.reshape(n * n, hd).astype(jnp.bfloat16), sel,
                     preferred_element_type=jnp.float32).reshape(n, n, H)  # [dst, src, H]

    # masked softmax over the source axis, mask broadcast over heads (f32)
    maskb = adjm[:, :, None]                                     # [dst, src, 1]
    logits = jnp.where(maskb > 0, logits, -1e30)
    m = jnp.max(logits, axis=1, keepdims=True)
    ex = jnp.exp(logits - m) * maskb
    den = jnp.sum(ex, axis=1, keepdims=True)
    alpha = ex * pl.reciprocal(jnp.maximum(den, 1e-20), approx=True)  # rows w/o edges -> 0

    # broadcast each head's weight across its d-lane block: [n*n, H] @ [H, hd]
    alpha_exp = jnp.dot(alpha.reshape(n * n, H).astype(jnp.bfloat16), selT,
                        preferred_element_type=jnp.float32).reshape(n, n, hd)
    # aggregate messages for all heads in one elementwise + sublane reduce
    msg = jnp.sum(alpha_exp * xl[None, :, :], axis=1)            # [dst, hd]

    # concat=False -> head mean, folded into one [n, hd] @ [hd, d] matmul
    gat = jnp.dot(msg.astype(jnp.bfloat16), mean_sel,
                  preferred_element_type=jnp.float32) + bias_ref[...]
    out_ref[...] = MULTIPLIER * (x + gat) + x                    # +propagate, *mult, +skip


# ----------------------------- cost estimates --------------------------------
def _pair_cost(n, d):
    hd = PAIR_HEADS * PAIR_DIM_HEAD
    flops = 2 * n * n * d * 3 * hd                               # fused QKV
    flops += 2 * PAIR_HEADS * n * n * n * PAIR_DIM_HEAD * 2      # QK^T + PV
    flops += 2 * n * n * hd * d                                  # fused W_o
    flops += 2 * n * d * 4 * d + 2 * n * 4 * d * 2 * d           # edge_attention MLP (upper bound)
    trans = PAIR_HEADS * n * n * n + 2 * n * n                   # softmax exps + sigmoid
    bytes_acc = 4 * (2 * n * n * d + 3 * n * n) + 2 * (d * 3 * hd + hd * d)
    return pl.CostEstimate(flops=int(flops), transcendentals=int(trans),
                           bytes_accessed=int(bytes_acc))


def _gat_cost(n, d):
    hd = GAT_HEADS * d
    flops = 2 * n * d * 2 * hd + 2 * n * n * hd * GAT_HEADS      # lin_l|lin_r + logit reduce
    flops += 2 * n * n * GAT_HEADS * hd + 2 * n * hd * d         # alpha expand + head mean
    flops += 8 * n * n * hd                                      # broadcast / leaky / weight VPU
    trans = 2 * n * n * GAT_HEADS
    bytes_acc = 4 * (2 * n * d + 2 * n * n) + 2 * d * 2 * hd
    return pl.CostEstimate(flops=int(flops), transcendentals=int(trans),
                           bytes_accessed=int(bytes_acc))


# ----------------------------- kernel wrappers --------------------------------
def run_pair_from_x(x, mask, pair_edge, p):
    n, d = x.shape
    return pl.pallas_call(
        pair_from_x_kernel,
        out_shape=(jax.ShapeDtypeStruct((n * n, d), jnp.float32),
                   jax.ShapeDtypeStruct((n, n), jnp.float32)),
        in_specs=[_vmem_spec()] * 14,
        out_specs=(_vmem_spec(), _vmem_spec()),
        input_output_aliases={2: 1},          # pair_edge accumulated in place
        cost_estimate=_pair_cost(n, d),
        compiler_params=_cparams(),
    )(x, mask, pair_edge, p['ln_g'], p['ln_b'], p['w1'], p['b1'], p['w2'], p['b2'],
      p['wqkv'], p['wo'], p['bo'], p['ws'], p['bs'])


def run_pair_from_pair(pair_flat, mask, pair_edge, p):
    nn_, d = pair_flat.shape
    n = mask.shape[0]
    return pl.pallas_call(
        pair_from_pair_kernel,
        out_shape=(jax.ShapeDtypeStruct((nn_, d), jnp.float32),
                   jax.ShapeDtypeStruct((n, n), jnp.float32)),
        in_specs=[_vmem_spec()] * 8,
        out_specs=(_vmem_spec(), _vmem_spec()),
        input_output_aliases={2: 1},          # pair_edge accumulated in place
        cost_estimate=_pair_cost(n, d),
        compiler_params=_cparams(),
    )(pair_flat, mask, pair_edge, p['wqkv'], p['wo'], p['bo'], p['ws'], p['bs'])


def run_gatv2(x, adjv, adjm, p):
    n, d = x.shape
    return pl.pallas_call(
        gatv2_kernel,
        out_shape=jax.ShapeDtypeStruct((n, d), jnp.float32),
        in_specs=[_vmem_spec()] * 8,
        out_specs=_vmem_spec(),
        cost_estimate=_gat_cost(n, d),
        compiler_params=_cparams(),
    )(x, adjv, adjm, p['wlr'], p['blr'], p['we'], p['att'], p['bias'])


# ----------------------------- forward (glue) --------------------------------
def edge_pool_block_forward(p, x, edge_index, edge_attr, pair_edge, pair_attn_flat):
    n, d = x.shape

    # dense edge mask  (mask[src, dst] = 1)
    # TODO(synk): for the scaled version, scalar-prefetch edge_index and build
    # the mask/adjacency inside the kernels instead of XLA scatters here.
    mask = jnp.zeros((n, n), jnp.float32).at[edge_index[0], edge_index[1]].set(1.0)
    if pair_edge is None:
        pair_edge = jnp.zeros((n, n), jnp.float32)

    if pair_attn_flat is None:
        attn_flat, pair_edge = run_pair_from_x(x, mask, pair_edge, p)
    else:
        attn_flat, pair_edge = run_pair_from_pair(pair_attn_flat, mask, pair_edge, p)

    # filtered_pair_edges = pair_edge[mask]; gathered in edge order
    # TODO(synk): assumes edge_index columns are unique & row-major sorted so this
    # matches torch boolean-mask indexing order (true for the synthetic input).
    filtered = pair_edge[edge_index[0], edge_index[1]]           # [E]

    # SelectTopK(1, ratio, min_score=None, act='tanh')
    w = p['select_w']
    s = jnp.tanh(filtered * w[0] / jnp.linalg.norm(w))           # [E]
    E = filtered.shape[0]
    k = int(math.ceil(RATIO * E))
    values_top, perm = jax.lax.top_k(s, k)
    values = values_top[:, None]                                 # [k, 1]
    new_edge_index = edge_index[:, perm]

    # dense adjacency for GATv2 (rows = dst, cols = src), selected edges only
    adjm = jnp.zeros((n, n), jnp.float32).at[new_edge_index[1], new_edge_index[0]].set(1.0)
    adjv = jnp.zeros((n, n), jnp.float32).at[new_edge_index[1], new_edge_index[0]].set(values_top)
    x_new = run_gatv2(x, adjv, adjm, p)

    return x_new, new_edge_index, values, perm, values, pair_edge, attn_flat


def edge_pool_forward(params, x, edge_index, edge_attr):
    n, d = x.shape
    E0 = edge_index.shape[1]
    depth = len(params)
    scores = jnp.full((depth, E0), -jnp.inf, dtype=jnp.float32)
    list_edges = []
    pair_attn_flat = None
    pair_edge = None
    out_pooling = x
    cur_edge_index = edge_index
    cur_edge_attr = edge_attr
    for i, p in enumerate(params):
        (out_pooling, cur_edge_index, cur_edge_attr, edge_map, values,
         pair_edge, pair_attn_flat) = edge_pool_block_forward(
            p, out_pooling, cur_edge_index, cur_edge_attr, pair_edge, pair_attn_flat)
        list_edges.append(edge_map)
        # NOTE: mirrors the reference module (perm indexes the *current* edge list).
        scores = scores.at[i, edge_map].set(values[:, 0])
    pair_attn = pair_attn_flat.reshape(n, n, d)
    return x, cur_edge_index, scores, list_edges, pair_attn


# ----------------------------- parameter init --------------------------------
def init_block_params(key, d):
    ks = jax.random.split(key, 10)

    def w(k, shape, scale=None, dtype=jnp.float32):
        scale = (1.0 / math.sqrt(shape[0])) if scale is None else scale
        return (jax.random.normal(k, shape, jnp.float32) * scale).astype(dtype)

    hd = PAIR_HEADS * PAIR_DIM_HEAD
    gd = GAT_HEADS * d
    bf = jnp.bfloat16
    return dict(
        # edge_attention: LayerNorm + MLP  (MXU weights stored bf16)
        ln_g=jnp.ones((1, d), jnp.float32),
        ln_b=jnp.zeros((1, d), jnp.float32),
        w1=w(ks[0], (d, 4 * d), dtype=bf), b1=jnp.zeros((1, 4 * d), jnp.float32),
        w2=w(ks[1], (4 * d, 2 * d), dtype=bf), b2=jnp.zeros((1, 2 * d), jnp.float32),
        # PairwiseAttention: merged Q|K|V projection (heads within each block)
        wqkv=w(ks[2], (d, 3 * hd), dtype=bf),
        wo=w(ks[3], (hd, d), dtype=bf), bo=jnp.zeros((1, d), jnp.float32),
        # pair_to_score (stored as a [1, d] row for the fused lane-reduce)
        ws=w(ks[4], (1, d), scale=1.0 / math.sqrt(d)),
        bs=jnp.zeros((1, 1), jnp.float32),
        # SelectTopK weight (in_channels=1)
        select_w=jnp.array([0.8], jnp.float32),
        # GATv2Conv: fused lin_l|lin_r, edge proj, attention vectors (heads concat)
        wlr=w(ks[5], (d, 2 * gd), dtype=bf), blr=jnp.zeros((1, 2 * gd), jnp.float32),
        we=w(ks[6], (1, gd), scale=1.0),
        att=w(ks[7], (1, gd), scale=1.0 / math.sqrt(d)),
        bias=jnp.zeros((1, d), jnp.float32),
    )


# ----------------------------- main ------------------------------------------
if __name__ == "__main__":
    key = jax.random.PRNGKey(0)
    kx, kp = jax.random.split(key)
    n, d = N_NODES, DIM

    x = jax.random.normal(kx, (n, d), jnp.float32)
    # edge_index: [2, n] unique edges, one per source node, row-major sorted
    src = jnp.arange(n, dtype=jnp.int32)
    dst = (src * 5 + 3) % n
    edge_index = jnp.stack([src, dst], axis=0)
    edge_attr = jnp.ones((n, 1), jnp.float32)

    params = [init_block_params(k, d) for k in jax.random.split(kp, DEPTH)]

    fwd = jax.jit(edge_pool_forward)
    x_out, ei_out, scores, list_edges, pair_attn = fwd(params, x, edge_index, edge_attr)

    jax.tree_util.tree_map(jax.block_until_ready,
                           (x_out, ei_out, scores, list_edges, pair_attn))
    print("KERNEL_OK")
</pallas_src>

<mosaic_0001>
module attributes {stable_mosaic.version = 11 : i64} {
  func.func @pair_from_x_kernel(%arg0: memref<16x32xf32, #tpu.memory_space<vmem>>, %arg1: memref<16x16xf32, #tpu.memory_space<vmem>>, %arg2: memref<16x16xf32, #tpu.memory_space<vmem>>, %arg3: memref<1x32xf32, #tpu.memory_space<vmem>>, %arg4: memref<1x32xf32, #tpu.memory_space<vmem>>, %arg5: memref<32x128xbf16, #tpu.memory_space<vmem>>, %arg6: memref<1x128xf32, #tpu.memory_space<vmem>>, %arg7: memref<128x64xbf16, #tpu.memory_space<vmem>>, %arg8: memref<1x64xf32, #tpu.memory_space<vmem>>, %arg9: memref<32x384xbf16, #tpu.memory_space<vmem>>, %arg10: memref<128x32xbf16, #tpu.memory_space<vmem>>, %arg11: memref<1x32xf32, #tpu.memory_space<vmem>>, %arg12: memref<1x32xf32, #tpu.memory_space<vmem>>, %arg13: memref<1x1xf32, #tpu.memory_space<vmem>>, %arg14: memref<256x32xf32, #tpu.memory_space<vmem>>, %arg15: memref<16x16xf32, #tpu.memory_space<vmem>>) attributes {dimension_semantics = [], scalar_prefetch = 0 : i64, scratch_operands = 0 : i64, tpu.core_type = #tpu.core_type<tc>} {
    %c0 = arith.constant 0 : index
    %c0_0 = arith.constant 0 : index
    %0 = vector.load %arg0[%c0, %c0_0] : memref<16x32xf32, #tpu.memory_space<vmem>>, vector<16x32xf32>
    %cst = arith.constant dense<0.000000e+00> : vector<16xf32>
    %1 = vector.multi_reduction <add>, %0, %cst [1] : vector<16x32xf32> to vector<16xf32>
    %2 = vector.shape_cast %1 : vector<16xf32> to vector<16x1xf32>
    %cst_1 = arith.constant 3.200000e+01 : f32
    %3 = vector.broadcast %cst_1 : f32 to vector<16x1xf32>
    %4 = arith.divf %2, %3 : vector<16x1xf32>
    %5 = vector.broadcast %4 : vector<16x1xf32> to vector<16x32xf32>
    %6 = arith.subf %0, %5 : vector<16x32xf32>
    %7 = arith.mulf %6, %6 : vector<16x32xf32>
    %cst_2 = arith.constant dense<0.000000e+00> : vector<16xf32>
    %8 = vector.multi_reduction <add>, %7, %cst_2 [1] : vector<16x32xf32> to vector<16xf32>
    %9 = vector.shape_cast %8 : vector<16xf32> to vector<16x1xf32>
    %cst_3 = arith.constant 3.200000e+01 : f32
    %10 = vector.broadcast %cst_3 : f32 to vector<16x1xf32>
    %11 = arith.divf %9, %10 : vector<16x1xf32>
    %12 = vector.broadcast %4 : vector<16x1xf32> to vector<16x32xf32>
    %13 = arith.subf %0, %12 : vector<16x32xf32>
    %cst_4 = arith.constant 9.99999974E-6 : f32
    %14 = vector.broadcast %cst_4 : f32 to vector<16x1xf32>
    %15 = arith.addf %11, %14 : vector<16x1xf32>
    %16 = math.rsqrt %15 : vector<16x1xf32>
    %17 = vector.broadcast %16 : vector<16x1xf32> to vector<16x32xf32>
    %18 = arith.mulf %13, %17 : vector<16x32xf32>
    %c0_5 = arith.constant 0 : index
    %c0_6 = arith.constant 0 : index
    %19 = vector.load %arg3[%c0_5, %c0_6] : memref<1x32xf32, #tpu.memory_space<vmem>>, vector<1x32xf32>
    %20 = vector.broadcast %19 : vector<1x32xf32> to vector<16x32xf32>
    %21 = arith.mulf %18, %20 : vector<16x32xf32>
    %c0_7 = arith.constant 0 : index
    %c0_8 = arith.constant 0 : index
    %22 = vector.load %arg4[%c0_7, %c0_8] : memref<1x32xf32, #tpu.memory_space<vmem>>, vector<1x32xf32>
    %23 = vector.broadcast %22 : vector<1x32xf32> to vector<16x32xf32>
    %24 = arith.addf %21, %23 : vector<16x32xf32>
    %25 = arith.truncf %24 : vector<16x32xf32> to vector<16x32xbf16>
    %c0_9 = arith.constant 0 : index
    %c0_10 = arith.constant 0 : index
    %26 = vector.load %arg5[%c0_9, %c0_10] : memref<32x128xbf16, #tpu.memory_space<vmem>>, vector<32x128xbf16>
    %cst_11 = arith.constant dense<0.000000e+00> : vector<16x128xf32>
    %27 = tpu.matmul %25, %26, %cst_11 {dimension_numbers = #tpu.dot_dimension_numbers<[1], [0], [0], [1], [0, 0, 1, 1], [], []>} : vector<16x32xbf16>, vector<32x128xbf16>, vector<16x128xf32> -> vector<16x128xf32>
    %c0_12 = arith.constant 0 : index
    %c0_13 = arith.constant 0 : index
    %28 = vector.load %arg6[%c0_12, %c0_13] : memref<1x128xf32, #tpu.memory_space<vmem>>, vector<1x128xf32>
    %29 = vector.broadcast %28 : vector<1x128xf32> to vector<16x128xf32>
    %30 = arith.addf %27, %29 : vector<16x128xf32>
    %cst_14 = arith.constant 0.000000e+00 : f32
    %31 = vector.broadcast %cst_14 : f32 to vector<16x128xf32>
    %32 = arith.maximumf %30, %31 : vector<16x128xf32>
    %33 = arith.truncf %32 : vector<16x128xf32> to vector<16x128xbf16>
    %c0_15 = arith.constant 0 : index
    %c0_16 = arith.constant 0 : index
    %34 = vector.load %arg7[%c0_15, %c0_16] : memref<128x64xbf16, #tpu.memory_space<vmem>>, vector<128x64xbf16>
    %cst_17 = arith.constant dense<0.000000e+00> : vector<16x64xf32>
    %35 = tpu.matmul %33, %34, %cst_17 {dimension_numbers = #tpu.dot_dimension_numbers<[1], [0], [0], [1], [0, 0, 1, 1], [], []>} : vector<16x128xbf16>, vector<128x64xbf16>, vector<16x64xf32> -> vector<16x64xf32>
    %c0_18 = arith.constant 0 : index
    %c0_19 = arith.constant 0 : index
    %36 = vector.load %arg8[%c0_18, %c0_19] : memref<1x64xf32, #tpu.memory_space<vmem>>, vector<1x64xf32>
    %37 = vector.broadcast %36 : vector<1x64xf32> to vector<16x64xf32>
    %38 = arith.addf %35, %37 : vector<16x64xf32>
    %39 = vector.extract_strided_slice %38 {offsets = [0, 0], sizes = [16, 32], strides = [1, 1]} : vector<16x64xf32> to vector<16x32xf32>
    %40 = vector.extract_strided_slice %38 {offsets = [0, 32], sizes = [16, 32], strides = [1, 1]} : vector<16x64xf32> to vector<16x32xf32>
    %41 = vector.shape_cast %39 : vector<16x32xf32> to vector<16x1x32xf32>
    %42 = vector.shape_cast %40 : vector<16x32xf32> to vector<1x16x32xf32>
    %43 = vector.broadcast %41 : vector<16x1x32xf32> to vector<16x16x32xf32>
    %44 = vector.broadcast %42 : vector<1x16x32xf32> to vector<16x16x32xf32>
    %45 = arith.addf %43, %44 : vector<16x16x32xf32>
    %46 = vector.shape_cast %45 : vector<16x16x32xf32> to vector<256x32xf32>
    %c0_20 = arith.constant 0 : index
    %c0_21 = arith.constant 0 : index
    %47 = vector.load %arg1[%c0_20, %c0_21] : memref<16x16xf32, #tpu.memory_space<vmem>>, vector<16x16xf32>
    %c0_22 = arith.constant 0 : index
    %c0_23 = arith.constant 0 : index
    %48 = vector.load %arg2[%c0_22, %c0_23] : memref<16x16xf32, #tpu.memory_space<vmem>>, vector<16x16xf32>
    %c0_24 = arith.constant 0 : index
    %c0_25 = arith.constant 0 : index
    %49 = vector.load %arg9[%c0_24, %c0_25] : memref<32x384xbf16, #tpu.memory_space<vmem>>, vector<32x384xbf16>
    %c0_26 = arith.constant 0 : index
    %c0_27 = arith.constant 0 : index
    %50 = vector.load %arg10[%c0_26, %c0_27] : memref<128x32xbf16, #tpu.memory_space<vmem>>, vector<128x32xbf16>
    %c0_28 = arith.constant 0 : index
    %c0_29 = arith.constant 0 : index
    %51 = vector.load %arg11[%c0_28, %c0_29] : memref<1x32xf32, #tpu.memory_space<vmem>>, vector<1x32xf32>
    %c0_30 = arith.constant 0 : index
    %c0_31 = arith.constant 0 : index
    %52 = vector.load %arg12[%c0_30, %c0_31] : memref<1x32xf32, #tpu.memory_space<vmem>>, vector<1x32xf32>
    %c0_32 = arith.constant 0 : index
    %c0_33 = arith.constant 0 : index
    %53 = vector.load %arg13[%c0_32, %c0_33] : memref<1x1xf32, #tpu.memory_space<vmem>>, vector<1x1xf32>
    %54 = arith.truncf %46 : vector<256x32xf32> to vector<256x32xbf16>
    %cst_34 = arith.constant dense<0.000000e+00> : vector<256x384xf32>
    %55 = tpu.matmul %54, %49, %cst_34 {dimension_numbers = #tpu.dot_dimension_numbers<[1], [0], [0], [1], [0, 0, 1, 1], [], []>} : vector<256x32xbf16>, vector<32x384xbf16>, vector<256x384xf32> -> vector<256x384xf32>
    %cst_35 = arith.constant 1.000000e+00 : f32
    %56 = vector.broadcast %cst_35 : f32 to vector<16x16xf32>
    %57 = arith.subf %56, %47 : vector<16x16xf32>
    %cst_36 = arith.constant -1.000000e+09 : f32
    %58 = vector.broadcast %cst_36 : f32 to vector<16x16xf32>
    %59 = arith.mulf %57, %58 : vector<16x16xf32>
    %60 = vector.extract_strided_slice %55 {offsets = [0, 0], sizes = [256, 64], strides = [1, 1]} : vector<256x384xf32> to vector<256x64xf32>
    %61 = vector.shape_cast %60 : vector<256x64xf32> to vector<16x16x64xf32>
    %62 = vector.extract_strided_slice %55 {offsets = [0, 128], sizes = [256, 64], strides = [1, 1]} : vector<256x384xf32> to vector<256x64xf32>
    %63 = vector.shape_cast %62 : vector<256x64xf32> to vector<16x16x64xf32>
    %64 = vector.extract_strided_slice %55 {offsets = [0, 256], sizes = [256, 64], strides = [1, 1]} : vector<256x384xf32> to vector<256x64xf32>
    %65 = vector.shape_cast %64 : vector<256x64xf32> to vector<16x16x64xf32>
    %66 = arith.truncf %61 : vector<16x16x64xf32> to vector<16x16x64xbf16>
    %67 = arith.truncf %63 : vector<16x16x64xf32> to vector<16x16x64xbf16>
    "tpu.trace_start"() <{level = 10 : i32, message = "iac,ibc->iab"}> : () -> ()
    %cst_37 = arith.constant dense<0.000000e+00> : vector<16x16x16xf32>
    %68 = tpu.matmul %66, %67, %cst_37 {dimension_numbers = #tpu.dot_dimension_numbers<[2], [2], [1], [1], [0, 0, 0, 1, 1, 1], [0], [0]>} : vector<16x16x64xbf16>, vector<16x16x64xbf16>, vector<16x16x16xf32> -> vector<16x16x16xf32>
    "tpu.trace_stop"() : () -> ()
    %cst_38 = arith.constant 1.250000e-01 : f32
    %69 = vector.broadcast %cst_38 : f32 to vector<16x16x16xf32>
    %70 = arith.mulf %68, %69 : vector<16x16x16xf32>
    %71 = vector.shape_cast %59 : vector<16x16xf32> to vector<16x1x16xf32>
    %72 = vector.broadcast %71 : vector<16x1x16xf32> to vector<16x16x16xf32>
    %73 = arith.addf %70, %72 : vector<16x16x16xf32>
    %cst_39 = arith.constant dense<0xFF800000> : vector<16x16xf32>
    %74 = vector.multi_reduction <maximumf>, %73, %cst_39 [2] : vector<16x16x16xf32> to vector<16x16xf32>
    %75 = vector.shape_cast %74 : vector<16x16xf32> to vector<16x16x1xf32>
    %76 = vector.broadcast %75 : vector<16x16x1xf32> to vector<16x16x16xf32>
    %77 = arith.subf %73, %76 : vector<16x16x16xf32>
    %78 = math.exp %77 : vector<16x16x16xf32>
    %cst_40 = arith.constant dense<0.000000e+00> : vector<16x16xf32>
    %79 = vector.multi_reduction <add>, %78, %cst_40 [2] : vector<16x16x16xf32> to vector<16x16xf32>
    %80 = vector.shape_cast %79 : vector<16x16xf32> to vector<16x16x1xf32>
    %81 = tpu.reciprocal %80 {approx = true} : vector<16x16x1xf32> -> vector<16x16x1xf32>
    %82 = vector.broadcast %81 : vector<16x16x1xf32> to vector<16x16x16xf32>
    %83 = arith.mulf %78, %82 : vector<16x16x16xf32>
    %84 = arith.truncf %83 : vector<16x16x16xf32> to vector<16x16x16xbf16>
    %85 = arith.truncf %65 : vector<16x16x64xf32> to vector<16x16x64xbf16>
    "tpu.trace_start"() <{level = 10 : i32, message = "iab,ibc->iac"}> : () -> ()
    %cst_41 = arith.constant dense<0.000000e+00> : vector<16x16x64xf32>
    %86 = tpu.matmul %84, %85, %cst_41 {dimension_numbers = #tpu.dot_dimension_numbers<[2], [1], [1], [2], [0, 0, 0, 1, 1, 2], [0], [0]>} : vector<16x16x16xbf16>, vector<16x16x64xbf16>, vector<16x16x64xf32> -> vector<16x16x64xf32>
    "tpu.trace_stop"() : () -> ()
    %87 = vector.shape_cast %86 : vector<16x16x64xf32> to vector<256x64xf32>
    %88 = vector.extract_strided_slice %55 {offsets = [0, 64], sizes = [256, 64], strides = [1, 1]} : vector<256x384xf32> to vector<256x64xf32>
    %89 = vector.shape_cast %88 : vector<256x64xf32> to vector<16x16x64xf32>
    %90 = vector.extract_strided_slice %55 {offsets = [0, 192], sizes = [256, 64], strides = [1, 1]} : vector<256x384xf32> to vector<256x64xf32>
    %91 = vector.shape_cast %90 : vector<256x64xf32> to vector<16x16x64xf32>
    %92 = vector.extract_strided_slice %55 {offsets = [0, 320], sizes = [256, 64], strides = [1, 1]} : vector<256x384xf32> to vector<256x64xf32>
    %93 = vector.shape_cast %92 : vector<256x64xf32> to vector<16x16x64xf32>
    %94 = arith.truncf %89 : vector<16x16x64xf32> to vector<16x16x64xbf16>
    %95 = arith.truncf %91 : vector<16x16x64xf32> to vector<16x16x64xbf16>
    "tpu.trace_start"() <{level = 10 : i32, message = "iac,ibc->iab"}> : () -> ()
    %cst_42 = arith.constant dense<0.000000e+00> : vector<16x16x16xf32>
    %96 = tpu.matmul %94, %95, %cst_42 {dimension_numbers = #tpu.dot_dimension_numbers<[2], [2], [1], [1], [0, 0, 0, 1, 1, 1], [0], [0]>} : vector<16x16x64xbf16>, vector<16x16x64xbf16>, vector<16x16x16xf32> -> vector<16x16x16xf32>
    "tpu.trace_stop"() : () -> ()
    %cst_43 = arith.constant 1.250000e-01 : f32
    %97 = vector.broadcast %cst_43 : f32 to vector<16x16x16xf32>
    %98 = arith.mulf %96, %97 : vector<16x16x16xf32>
    %99 = vector.shape_cast %59 : vector<16x16xf32> to vector<16x1x16xf32>
    %100 = vector.broadcast %99 : vector<16x1x16xf32> to vector<16x16x16xf32>
    %101 = arith.addf %98, %100 : vector<16x16x16xf32>
    %cst_44 = arith.constant dense<0xFF800000> : vector<16x16xf32>
    %102 = vector.multi_reduction <maximumf>, %101, %cst_44 [2] : vector<16x16x16xf32> to vector<16x16xf32>
    %103 = vector.shape_cast %102 : vector<16x16xf32> to vector<16x16x1xf32>
    %104 = vector.broadcast %103 : vector<16x16x1xf32> to vector<16x16x16xf32>
    %105 = arith.subf %101, %104 : vector<16x16x16xf32>
    %106 = math.exp %105 : vector<16x16x16xf32>
    %cst_45 = arith.constant dense<0.000000e+00> : vector<16x16xf32>
    %107 = vector.multi_reduction <add>, %106, %cst_45 [2] : vector<16x16x16xf32> to vector<16x16xf32>
    %108 = vector.shape_cast %107 : vector<16x16xf32> to vector<16x16x1xf32>
    %109 = tpu.reciprocal %108 {approx = true} : vector<16x16x1xf32> -> vector<16x16x1xf32>
    %110 = vector.broadcast %109 : vector<16x16x1xf32> to vector<16x16x16xf32>
    %111 = arith.mulf %106, %110 : vector<16x16x16xf32>
    %112 = arith.truncf %111 : vector<16x16x16xf32> to vector<16x16x16xbf16>
    %113 = arith.truncf %93 : vector<16x16x64xf32> to vector<16x16x64xbf16>
    "tpu.trace_start"() <{level = 10 : i32, message = "iab,ibc->iac"}> : () -> ()
    %cst_46 = arith.constant dense<0.000000e+00> : vector<16x16x64xf32>
    %114 = tpu.matmul %112, %113, %cst_46 {dimension_numbers = #tpu.dot_dimension_numbers<[2], [1], [1], [2], [0, 0, 0, 1, 1, 2], [0], [0]>} : vector<16x16x16xbf16>, vector<16x16x64xbf16>, vector<16x16x64xf32> -> vector<16x16x64xf32>
    "tpu.trace_stop"() : () -> ()
    %115 = vector.shape_cast %114 : vector<16x16x64xf32> to vector<256x64xf32>
    %116 = tpu.concatenate %87, %115 in 1 : vector<256x64xf32>, vector<256x64xf32> -> vector<256x128xf32>
    %117 = arith.truncf %116 : vector<256x128xf32> to vector<256x128xbf16>
    %cst_47 = arith.constant dense<0.000000e+00> : vector<256x32xf32>
    %118 = tpu.matmul %117, %50, %cst_47 {dimension_numbers = #tpu.dot_dimension_numbers<[1], [0], [0], [1], [0, 0, 1, 1], [], []>} : vector<256x128xbf16>, vector<128x32xbf16>, vector<256x32xf32> -> vector<256x32xf32>
    %119 = vector.broadcast %51 : vector<1x32xf32> to vector<256x32xf32>
    %120 = arith.addf %118, %119 : vector<256x32xf32>
    %121 = vector.shape_cast %120 : vector<256x32xf32> to vector<16x16x32xf32>
    %122 = vector.shape_cast %52 : vector<1x32xf32> to vector<1x1x32xf32>
    %123 = vector.broadcast %122 : vector<1x1x32xf32> to vector<16x16x32xf32>
    %124 = arith.mulf %121, %123 : vector<16x16x32xf32>
    %cst_48 = arith.constant dense<0.000000e+00> : vector<16x16xf32>
    %125 = vector.multi_reduction <add>, %124, %cst_48 [2] : vector<16x16x32xf32> to vector<16x16xf32>
    %126 = vector.broadcast %53 : vector<1x1xf32> to vector<16x16xf32>
    %127 = arith.addf %125, %126 : vector<16x16xf32>
    %128 = arith.negf %127 : vector<16x16xf32>
    %129 = math.exp %128 : vector<16x16xf32>
    %cst_49 = arith.constant 1.000000e+00 : f32
    %130 = vector.broadcast %cst_49 : f32 to vector<16x16xf32>
    %131 = arith.addf %130, %129 : vector<16x16xf32>
    %132 = arith.divf %130, %131 : vector<16x16xf32>
    %133 = arith.addf %48, %132 : vector<16x16xf32>
    %c0_50 = arith.constant 0 : index
    %c0_51 = arith.constant 0 : index
    %134 = vector.load %arg14[%c0_50, %c0_51] : memref<256x32xf32, #tpu.memory_space<vmem>>, vector<256x32xf32>
    tpu.vector_store %arg14[%c0_50, %c0_51], %120 {strides = array<i32>} : memref<256x32xf32, #tpu.memory_space<vmem>>, vector<256x32xf32>,
    %c0_52 = arith.constant 0 : index
    %c0_53 = arith.constant 0 : index
    %135 = vector.load %arg15[%c0_52, %c0_53] : memref<16x16xf32, #tpu.memory_space<vmem>>, vector<16x16xf32>
    tpu.vector_store %arg15[%c0_52, %c0_53], %133 {strides = array<i32>} : memref<16x16xf32, #tpu.memory_space<vmem>>, vector<16x16xf32>,
    return
  }
}

module attributes {stable_mosaic.version = 11 : i64} {
  func.func @pair_from_pair_kernel(%arg0: memref<256x32xf32, #tpu.memory_space<vmem>>, %arg1: memref<16x16xf32, #tpu.memory_space<vmem>>, %arg2: memref<16x16xf32, #tpu.memory_space<vmem>>, %arg3: memref<32x384xbf16, #tpu.memory_space<vmem>>, %arg4: memref<128x32xbf16, #tpu.memory_space<vmem>>, %arg5: memref<1x32xf32, #tpu.memory_space<vmem>>, %arg6: memref<1x32xf32, #tpu.memory_space<vmem>>, %arg7: memref<1x1xf32, #tpu.memory_space<vmem>>, %arg8: memref<256x32xf32, #tpu.memory_space<vmem>>, %arg9: memref<16x16xf32, #tpu.memory_space<vmem>>) attributes {dimension_semantics = [], scalar_prefetch = 0 : i64, scratch_operands = 0 : i64, tpu.core_type = #tpu.core_type<tc>} {
    %c0 = arith.constant 0 : index
    %c0_0 = arith.constant 0 : index
    %0 = vector.load %arg0[%c0, %c0_0] : memref<256x32xf32, #tpu.memory_space<vmem>>, vector<256x32xf32>
    %c0_1 = arith.constant 0 : index
    %c0_2 = arith.constant 0 : index
    %1 = vector.load %arg1[%c0_1, %c0_2] : memref<16x16xf32, #tpu.memory_space<vmem>>, vector<16x16xf32>
    %c0_3 = arith.constant 0 : index
    %c0_4 = arith.constant 0 : index
    %2 = vector.load %arg2[%c0_3, %c0_4] : memref<16x16xf32, #tpu.memory_space<vmem>>, vector<16x16xf32>
    %c0_5 = arith.constant 0 : index
    %c0_6 = arith.constant 0 : index
    %3 = vector.load %arg3[%c0_5, %c0_6] : memref<32x384xbf16, #tpu.memory_space<vmem>>, vector<32x384xbf16>
    %c0_7 = arith.constant 0 : index
    %c0_8 = arith.constant 0 : index
    %4 = vector.load %arg4[%c0_7, %c0_8] : memref<128x32xbf16, #tpu.memory_space<vmem>>, vector<128x32xbf16>
    %c0_9 = arith.constant 0 : index
    %c0_10 = arith.constant 0 : index
    %5 = vector.load %arg5[%c0_9, %c0_10] : memref<1x32xf32, #tpu.memory_space<vmem>>, vector<1x32xf32>
    %c0_11 = arith.constant 0 : index
    %c0_12 = arith.constant 0 : index
    %6 = vector.load %arg6[%c0_11, %c0_12] : memref<1x32xf32, #tpu.memory_space<vmem>>, vector<1x32xf32>
    %c0_13 = arith.constant 0 : index
    %c0_14 = arith.constant 0 : index
    %7 = vector.load %arg7[%c0_13, %c0_14] : memref<1x1xf32, #tpu.memory_space<vmem>>, vector<1x1xf32>
    %8 = arith.truncf %0 : vector<256x32xf32> to vector<256x32xbf16>
    %cst = arith.constant dense<0.000000e+00> : vector<256x384xf32>
    %9 = tpu.matmul %8, %3, %cst {dimension_numbers = #tpu.dot_dimension_numbers<[1], [0], [0], [1], [0, 0, 1, 1], [], []>} : vector<256x32xbf16>, vector<32x384xbf16>, vector<256x384xf32> -> vector<256x384xf32>
    %cst_15 = arith.constant 1.000000e+00 : f32
    %10 = vector.broadcast %cst_15 : f32 to vector<16x16xf32>
    %11 = arith.subf %10, %1 : vector<16x16xf32>
    %cst_16 = arith.constant -1.000000e+09 : f32
    %12 = vector.broadcast %cst_16 : f32 to vector<16x16xf32>
    %13 = arith.mulf %11, %12 : vector<16x16xf32>
    %14 = vector.extract_strided_slice %9 {offsets = [0, 0], sizes = [256, 64], strides = [1, 1]} : vector<256x384xf32> to vector<256x64xf32>
    %15 = vector.shape_cast %14 : vector<256x64xf32> to vector<16x16x64xf32>
    %16 = vector.extract_strided_slice %9 {offsets = [0, 128], sizes = [256, 64], strides = [1, 1]} : vector<256x384xf32> to vector<256x64xf32>
    %17 = vector.shape_cast %16 : vector<256x64xf32> to vector<16x16x64xf32>
    %18 = vector.extract_strided_slice %9 {offsets = [0, 256], sizes = [256, 64], strides = [1, 1]} : vector<256x384xf32> to vector<256x64xf32>
    %19 = vector.shape_cast %18 : vector<256x64xf32> to vector<16x16x64xf32>
    %20 = arith.truncf %15 : vector<16x16x64xf32> to vector<16x16x64xbf16>
    %21 = arith.truncf %17 : vector<16x16x64xf32> to vector<16x16x64xbf16>
    "tpu.trace_start"() <{level = 10 : i32, message = "iac,ibc->iab"}> : () -> ()
    %cst_17 = arith.constant dense<0.000000e+00> : vector<16x16x16xf32>
    %22 = tpu.matmul %20, %21, %cst_17 {dimension_numbers = #tpu.dot_dimension_numbers<[2], [2], [1], [1], [0, 0, 0, 1, 1, 1], [0], [0]>} : vector<16x16x64xbf16>, vector<16x16x64xbf16>, vector<16x16x16xf32> -> vector<16x16x16xf32>
    "tpu.trace_stop"() : () -> ()
    %cst_18 = arith.constant 1.250000e-01 : f32
    %23 = vector.broadcast %cst_18 : f32 to vector<16x16x16xf32>
    %24 = arith.mulf %22, %23 : vector<16x16x16xf32>
    %25 = vector.shape_cast %13 : vector<16x16xf32> to vector<16x1x16xf32>
    %26 = vector.broadcast %25 : vector<16x1x16xf32> to vector<16x16x16xf32>
    %27 = arith.addf %24, %26 : vector<16x16x16xf32>
    %cst_19 = arith.constant dense<0xFF800000> : vector<16x16xf32>
    %28 = vector.multi_reduction <maximumf>, %27, %cst_19 [2] : vector<16x16x16xf32> to vector<16x16xf32>
    %29 = vector.shape_cast %28 : vector<16x16xf32> to vector<16x16x1xf32>
    %30 = vector.broadcast %29 : vector<16x16x1xf32> to vector<16x16x16xf32>
    %31 = arith.subf %27, %30 : vector<16x16x16xf32>
    %32 = math.exp %31 : vector<16x16x16xf32>
    %cst_20 = arith.constant dense<0.000000e+00> : vector<16x16xf32>
    %33 = vector.multi_reduction <add>, %32, %cst_20 [2] : vector<16x16x16xf32> to vector<16x16xf32>
    %34 = vector.shape_cast %33 : vector<16x16xf32> to vector<16x16x1xf32>
    %35 = tpu.reciprocal %34 {approx = true} : vector<16x16x1xf32> -> vector<16x16x1xf32>
    %36 = vector.broadcast %35 : vector<16x16x1xf32> to vector<16x16x16xf32>
    %37 = arith.mulf %32, %36 : vector<16x16x16xf32>
    %38 = arith.truncf %37 : vector<16x16x16xf32> to vector<16x16x16xbf16>
    %39 = arith.truncf %19 : vector<16x16x64xf32> to vector<16x16x64xbf16>
    "tpu.trace_start"() <{level = 10 : i32, message = "iab,ibc->iac"}> : () -> ()
    %cst_21 = arith.constant dense<0.000000e+00> : vector<16x16x64xf32>
    %40 = tpu.matmul %38, %39, %cst_21 {dimension_numbers = #tpu.dot_dimension_numbers<[2], [1], [1], [2], [0, 0, 0, 1, 1, 2], [0], [0]>} : vector<16x16x16xbf16>, vector<16x16x64xbf16>, vector<16x16x64xf32> -> vector<16x16x64xf32>
    "tpu.trace_stop"() : () -> ()
    %41 = vector.shape_cast %40 : vector<16x16x64xf32> to vector<256x64xf32>
    %42 = vector.extract_strided_slice %9 {offsets = [0, 64], sizes = [256, 64], strides = [1, 1]} : vector<256x384xf32> to vector<256x64xf32>
    %43 = vector.shape_cast %42 : vector<256x64xf32> to vector<16x16x64xf32>
    %44 = vector.extract_strided_slice %9 {offsets = [0, 192], sizes = [256, 64], strides = [1, 1]} : vector<256x384xf32> to vector<256x64xf32>
    %45 = vector.shape_cast %44 : vector<256x64xf32> to vector<16x16x64xf32>
    %46 = vector.extract_strided_slice %9 {offsets = [0, 320], sizes = [256, 64], strides = [1, 1]} : vector<256x384xf32> to vector<256x64xf32>
    %47 = vector.shape_cast %46 : vector<256x64xf32> to vector<16x16x64xf32>
    %48 = arith.truncf %43 : vector<16x16x64xf32> to vector<16x16x64xbf16>
    %49 = arith.truncf %45 : vector<16x16x64xf32> to vector<16x16x64xbf16>
    "tpu.trace_start"() <{level = 10 : i32, message = "iac,ibc->iab"}> : () -> ()
    %cst_22 = arith.constant dense<0.000000e+00> : vector<16x16x16xf32>
    %50 = tpu.matmul %48, %49, %cst_22 {dimension_numbers = #tpu.dot_dimension_numbers<[2], [2], [1], [1], [0, 0, 0, 1, 1, 1], [0], [0]>} : vector<16x16x64xbf16>, vector<16x16x64xbf16>, vector<16x16x16xf32> -> vector<16x16x16xf32>
    "tpu.trace_stop"() : () -> ()
    %cst_23 = arith.constant 1.250000e-01 : f32
    %51 = vector.broadcast %cst_23 : f32 to vector<16x16x16xf32>
    %52 = arith.mulf %50, %51 : vector<16x16x16xf32>
    %53 = vector.shape_cast %13 : vector<16x16xf32> to vector<16x1x16xf32>
    %54 = vector.broadcast %53 : vector<16x1x16xf32> to vector<16x16x16xf32>
    %55 = arith.addf %52, %54 : vector<16x16x16xf32>
    %cst_24 = arith.constant dense<0xFF800000> : vector<16x16xf32>
    %56 = vector.multi_reduction <maximumf>, %55, %cst_24 [2] : vector<16x16x16xf32> to vector<16x16xf32>
    %57 = vector.shape_cast %56 : vector<16x16xf32> to vector<16x16x1xf32>
    %58 = vector.broadcast %57 : vector<16x16x1xf32> to vector<16x16x16xf32>
    %59 = arith.subf %55, %58 : vector<16x16x16xf32>
    %60 = math.exp %59 : vector<16x16x16xf32>
    %cst_25 = arith.constant dense<0.000000e+00> : vector<16x16xf32>
    %61 = vector.multi_reduction <add>, %60, %cst_25 [2] : vector<16x16x16xf32> to vector<16x16xf32>
    %62 = vector.shape_cast %61 : vector<16x16xf32> to vector<16x16x1xf32>
    %63 = tpu.reciprocal %62 {approx = true} : vector<16x16x1xf32> -> vector<16x16x1xf32>
    %64 = vector.broadcast %63 : vector<16x16x1xf32> to vector<16x16x16xf32>
    %65 = arith.mulf %60, %64 : vector<16x16x16xf32>
    %66 = arith.truncf %65 : vector<16x16x16xf32> to vector<16x16x16xbf16>
    %67 = arith.truncf %47 : vector<16x16x64xf32> to vector<16x16x64xbf16>
    "tpu.trace_start"() <{level = 10 : i32, message = "iab,ibc->iac"}> : () -> ()
    %cst_26 = arith.constant dense<0.000000e+00> : vector<16x16x64xf32>
    %68 = tpu.matmul %66, %67, %cst_26 {dimension_numbers = #tpu.dot_dimension_numbers<[2], [1], [1], [2], [0, 0, 0, 1, 1, 2], [0], [0]>} : vector<16x16x16xbf16>, vector<16x16x64xbf16>, vector<16x16x64xf32> -> vector<16x16x64xf32>
    "tpu.trace_stop"() : () -> ()
    %69 = vector.shape_cast %68 : vector<16x16x64xf32> to vector<256x64xf32>
    %70 = tpu.concatenate %41, %69 in 1 : vector<256x64xf32>, vector<256x64xf32> -> vector<256x128xf32>
    %71 = arith.truncf %70 : vector<256x128xf32> to vector<256x128xbf16>
    %cst_27 = arith.constant dense<0.000000e+00> : vector<256x32xf32>
    %72 = tpu.matmul %71, %4, %cst_27 {dimension_numbers = #tpu.dot_dimension_numbers<[1], [0], [0], [1], [0, 0, 1, 1], [], []>} : vector<256x128xbf16>, vector<128x32xbf16>, vector<256x32xf32> -> vector<256x32xf32>
    %73 = vector.broadcast %5 : vector<1x32xf32> to vector<256x32xf32>
    %74 = arith.addf %72, %73 : vector<256x32xf32>
    %75 = vector.shape_cast %74 : vector<256x32xf32> to vector<16x16x32xf32>
    %76 = vector.shape_cast %6 : vector<1x32xf32> to vector<1x1x32xf32>
    %77 = vector.broadcast %76 : vector<1x1x32xf32> to vector<16x16x32xf32>
    %78 = arith.mulf %75, %77 : vector<16x16x32xf32>
    %cst_28 = arith.constant dense<0.000000e+00> : vector<16x16xf32>
    %79 = vector.multi_reduction <add>, %78, %cst_28 [2] : vector<16x16x32xf32> to vector<16x16xf32>
    %80 = vector.broadcast %7 : vector<1x1xf32> to vector<16x16xf32>
    %81 = arith.addf %79, %80 : vector<16x16xf32>
    %82 = arith.negf %81 : vector<16x16xf32>
    %83 = math.exp %82 : vector<16x16xf32>
    %cst_29 = arith.constant 1.000000e+00 : f32
    %84 = vector.broadcast %cst_29 : f32 to vector<16x16xf32>
    %85 = arith.addf %84, %83 : vector<16x16xf32>
    %86 = arith.divf %84, %85 : vector<16x16xf32>
    %87 = arith.addf %2, %86 : vector<16x16xf32>
    %c0_30 = arith.constant 0 : index
    %c0_31 = arith.constant 0 : index
    %88 = vector.load %arg8[%c0_30, %c0_31] : memref<256x32xf32, #tpu.memory_space<vmem>>, vector<256x32xf32>
    tpu.vector_store %arg8[%c0_30, %c0_31], %74 {strides = array<i32>} : memref<256x32xf32, #tpu.memory_space<vmem>>, vector<256x32xf32>,
    %c0_32 = arith.constant 0 : index
    %c0_33 = arith.constant 0 : index
    %89 = vector.load %arg9[%c0_32, %c0_33] : memref<16x16xf32, #tpu.memory_space<vmem>>, vector<16x16xf32>
    tpu.vector_store %arg9[%c0_32, %c0_33], %87 {strides = array<i32>} : memref<16x16xf32, #tpu.memory_space<vmem>>, vector<16x16xf32>,
    return
  }
}

</mosaic_0001>

<bundles_post_ra>
// kernel: edge_pool_forward.3
= control target key start
LH: loop header
LB: loop body
LE: loop exit
PB: predicated region body
PF: predicated region fallthrough
CT: control target
= control target key end

     0   :  { %s9129_s0 = inlined_call_operand.vmem [shape: f32[256,32], index: 0, kind: input, shape index: {}]   ;;  %s9130_s1 = inlined_call_operand.vmem [shape: f32[16,16], index: 1, kind: input, shape index: {}]   ;;  %s9131_s2 = inlined_call_operand.vmem [shape: f32[16,16], index: 2, kind: input, shape index: {}, may-alias: {2,9}]   ;;  %s9132_s3 = inlined_call_operand.vmem [shape: bf16[32,384], index: 3, kind: input, shape index: {}]   ;;  %s9133_s4 = inlined_call_operand.vmem [shape: bf16[128,32], index: 4, kind: input, shape index: {}]   ;;  %s9134_s5 = inlined_call_operand.vmem [shape: f32[1,32], index: 5, kind: input, shape index: {}]   ;;  %s9135_s6 = inlined_call_operand.vmem [shape: f32[1,32], index: 6, kind: input, shape index: {}]   ;;  %s9136_s7 = inlined_call_operand.<no memory space> [shape: f32[1,1], index: 7, kind: input, shape index: {}]   ;;  %s9137_s8 = inlined_call_operand.hbm [shape: f32[256,32], index: 8, kind: output, shape index: {0}]   ;;  %s9138_s9 = inlined_call_operand.vmem [shape: f32[16,16], index: 9, kind: output, shape index: {1}, may-alias: {2,9}]  }
   0x1   :  { %v15_v0 = vstv %s9136_s7 }
   0x2   :  { %16 = vst [vmem:[#allocation2] sm:$0x1] %v15_v0 }
   0x3   :  { %v6612_v1 = vld [vmem:[%s9132_s3 + $0x4] ss:$12 sps:$4 sm:$0xff]   ;;  %v6614_v2 = vld [vmem:[%s9132_s3] ss:$12 sps:$4 sm:$0xff]   ;;  %v7036_v3 = vmov 0   ;;  %vm146_vm0 = vcmask 261120  }
   0x4   :  { %227 = vmatprep.mubr.bf16.mxu0 %v7036_v3  ;;  %337 = vmatprep.mubr.bf16.mxu1 %v7036_v3  ;;  %v6615_v4 = vld [vmem:[%s9132_s3 + $0x1c] ss:$12 sps:$4 sm:$0xff]   ;;  %v6617_v5 = vld [vmem:[%s9132_s3 + $0x18] ss:$12 sps:$4 sm:$0xff]   ;;  %v57_v9 = vld [vmem:[%s9129_s0 + $0xb0] sm:$0xff] }
   0x5   :  { %195 = vmatprep.subr.bf16.mxu0 %v6612_v1  ;;  %6519 = vmatprep.subr.bf16.mxu1 %v6612_v1  ;;  %v35_v6 = vld [vmem:[%s9129_s0] sm:$0xff]  ;;  %v36_v7 = vld [vmem:[%s9129_s0 + $0x8] sm:$0xff]  ;;  %v58_v10 = vld [vmem:[%s9129_s0 + $0xb8] sm:$0xff] }
   0x6   :  { %196 = vmatpush1.bf16.msra.mxu0 %v6614_v2  ;;  %6521 = vmatpush1.bf16.msra.mxu1 %v6614_v2  ;;  %v98_v8 = vpack.c.bf16 %v36_v7, %v35_v6  ;;  %v7125_v11 = vpack.c.bf16 %v58_v10, %v57_v9  ;;  %v37_v12 = vld [vmem:[%s9129_s0 + $0x10] sm:$0xff]  ;;  %v38_v13 = vld [vmem:[%s9129_s0 + $0x18] sm:$0xff]  ;;  %v59_v14 = vld [vmem:[%s9129_s0 + $0xc0] sm:$0xff] }
   0x7   :  { %197 = vmatprep.subr.bf16.mxu0 %v6615_v4  ;;  %6520 = vmatprep.subr.bf16.mxu1 %v6615_v4  ;;  %v60_v15 = vld [vmem:[%s9129_s0 + $0xc8] sm:$0xff]  ;;  %v99_v16 = vpack.c.bf16 %v38_v13, %v37_v12  ;;  %v39_v20 = vld [vmem:[%s9129_s0 + $0x20] sm:$0xff] }
   0x8   :  { %6611 = vset.pattern.permute.xlu0 %v7036_v3  ;;  %v6618_v17 = vld [vmem:[%s9132_s3 + $0x8] ss:$12 sps:$4 sm:$0xff]   ;;  %v6619_v18 = vld [vmem:[%s9132_s3 + $0x20] ss:$12 sps:$4 sm:$0xff]   ;;  %v7149_v19 = vpack.c.bf16 %v60_v15, %v59_v14 }
   0x9   :  { %v40_v21 = vld [vmem:[%s9129_s0 + $0x28] sm:$0xff] }
   0xa   :  { %198 = vmatpush1.bf16.msra.mxu0 %v6617_v5  ;;  %6522 = vmatpush1.bf16.msra.mxu1 %v6617_v5 }
   0xb   :  { %6051 = vmatprep.subr.bf16.mxu1 %v6618_v17 }
   0xd   :  { %5742 = vmatmul.mubr.msk.bf16.vlgmr.msra.gmra.mrb[0].mxu0 %vm146_vm0, %v98_v8  ;;  %5753 = vmatmul.mubr.msk.bf16.vlgmr.msra.gmra.mrb[0].mxu1 %vm146_vm0, %v7125_v11 }
   0xe   :  { %237 = vmatprep.mubr.bf16.mxu0 %v7036_v3  ;;  %347 = vmatprep.mubr.bf16.mxu1 %v7036_v3 }
   0xf   :  { %6052 = vmatpush3.bf16.msra.mxu1 %v6618_v17 }
  0x10   :  { %6053 = vmatprep.subr.bf16.mxu1 %v6619_v18 }
  0x15   :  { %5743 = vmatmul.mubr.msk.bf16.gmra.mrb[4].mxu0 %vm146_vm0, %v99_v16  ;;  %5754 = vmatmul.mubr.msk.bf16.gmra.mrb[4].mxu1 %vm146_vm0, %v7149_v19 }
  0x16   :  { %247 = vmatprep.mubr.bf16.mxu0 %v7036_v3 }
  0x17   :  { %17 = vsyncpa [#allocation4], 0  ;;  %357 = vmatprep.mubr.bf16.mxu1 %v7036_v3  ;;  %v61_v22 = vld [vmem:[%s9129_s0 + $0xd0] sm:$0xff]  ;;  %v62_v23 = vld [vmem:[%s9129_s0 + $0xd8] sm:$0xff]  ;;  %6054 = vmatpush3.bf16.msra.mxu1 %v6619_v18  ;;  %v100_v24 = vpack.c.bf16 %v40_v21, %v39_v20  ;;  %v9139_v56 = vmov 0.0   ;;  %vm7038_vm1 = vmmov 0  }
  0x18   :  { %v7168_v25 = vpack.c.bf16 %v62_v23, %v61_v22  ;;  %v41_v26 = vld [vmem:[%s9129_s0 + $0x30] sm:$0xff]  ;;  %v42_v27 = vld [vmem:[%s9129_s0 + $0x38] sm:$0xff]  ;;  %v63_v28 = vld [vmem:[%s9129_s0 + $0xe0] sm:$0xff]  ;;  %6087 = vmatprep.subr.bf16.mxu1 %v9139_v56  ;;  %6135 = vmatprep.subr.bf16.mxu0 %v9139_v56  ;;  %vm585_vm2 = vcmask 523264   ;;  %vm1582_vm3 = vcmask 130048  }
  0x19   :  { %v64_v29 = vld [vmem:[%s9129_s0 + $0xe8] sm:$0xff]  ;;  %v101_v30 = vpack.c.bf16 %v42_v27, %v41_v26  ;;  %v43_v32 = vld [vmem:[%s9129_s0 + $0x40] sm:$0xff]  ;;  %v65_v34 = vld [vmem:[%s9129_s0 + $0xf0] sm:$0xff] }
  0x1a   :  { %v112_v31 = vpack.c.bf16 %v64_v29, %v63_v28  ;;  %v44_v33 = vld [vmem:[%s9129_s0 + $0x48] sm:$0xff]  ;;  %v66_v35 = vld [vmem:[%s9129_s0 + $0xf8] sm:$0xff]  ;;  %v45_v38 = vld [vmem:[%s9129_s0 + $0x50] sm:$0xff] }
  0x1b   :  { %v102_v36 = vpack.c.bf16 %v44_v33, %v43_v32  ;;  %v113_v37 = vpack.c.bf16 %v66_v35, %v65_v34  ;;  %v46_v39 = vld [vmem:[%s9129_s0 + $0x58] sm:$0xff]  ;;  %v47_v41 = vld [vmem:[%s9129_s0 + $0x60] sm:$0xff]  ;;  %v48_v42 = vld [vmem:[%s9129_s0 + $0x68] sm:$0xff] }
  0x1c   :  { %v103_v40 = vpack.c.bf16 %v46_v39, %v45_v38  ;;  %v104_v43 = vpack.c.bf16 %v48_v42, %v47_v41  ;;  %v49_v44 = vld [vmem:[%s9129_s0 + $0x70] sm:$0xff]  ;;  %v50_v45 = vld [vmem:[%s9129_s0 + $0x78] sm:$0xff]  ;;  %v51_v47 = vld [vmem:[%s9129_s0 + $0x80] sm:$0xff] }
  0x1d   :  { %5744 = vmatmul.mubr.msk.bf16.gmra.mrb[8].mxu0 %vm146_vm0, %v100_v24  ;;  %5755 = vmatmul.mubr.msk.bf16.gmra.mrb[8].mxu1 %vm146_vm0, %v7168_v25  ;;  %v105_v46 = vpack.c.bf16 %v50_v45, %v49_v44  ;;  %v52_v48 = vld [vmem:[%s9129_s0 + $0x88] sm:$0xff]  ;;  %v53_v50 = vld [vmem:[%s9129_s0 + $0x90] sm:$0xff]  ;;  %v54_v51 = vld [vmem:[%s9129_s0 + $0x98] sm:$0xff] }
  0x1e   :  { %257 = vmatprep.mubr.bf16.mxu0 %v7036_v3  ;;  %367 = vmatprep.mubr.bf16.mxu1 %v7036_v3  ;;  %v106_v49 = vpack.c.bf16 %v52_v48, %v51_v47  ;;  %v107_v52 = vpack.c.bf16 %v54_v51, %v53_v50  ;;  %v55_v53 = vld [vmem:[%s9129_s0 + $0xa0] sm:$0xff]  ;;  %v56_v54 = vld [vmem:[%s9129_s0 + $0xa8] sm:$0xff] }
  0x1f   :  { %v108_v55 = vpack.c.bf16 %v56_v54, %v55_v53 }
  0x25   :  { %5745 = vmatmul.mubr.msk.bf16.gmra.mrb[12].mxu0 %vm146_vm0, %v101_v30  ;;  %5756 = vmatmul.mubr.msk.bf16.gmra.mrb[12].mxu1 %vm146_vm0, %v112_v31 }
  0x26   :  { %267 = vmatprep.mubr.bf16.mxu0 %v7036_v3  ;;  %377 = vmatprep.mubr.bf16.mxu1 %v7036_v3 }
  0x2d   :  { %5746 = vmatmul.mubr.msk.bf16.gmra.mrb[16].mxu0 %vm146_vm0, %v102_v36  ;;  %5757 = vmatmul.mubr.msk.bf16.gmra.mrb[16].mxu1 %vm146_vm0, %v113_v37 }
  0x2e   :  { %277 = vmatprep.mubr.bf16.mxu0 %v7036_v3  ;;  %6055 = vmatprep.mubr.msk.bf16.mxu1 %vm146_vm0, %v98_v8 }
  0x35   :  { %5747 = vmatmul.mubr.msk.bf16.gmra.mrb[20].mxu0 %vm146_vm0, %v103_v40  ;;  %6056 = vmatmul.mubr.msk.bf16.vlgmr.msra.gmra.mrb[20].mxu1 %vm146_vm0, %v99_v16 }
  0x36   :  { %287 = vmatprep.mubr.bf16.mxu0 %v7036_v3  ;;  %6059 = vmatprep.mubr.msk.bf16.mxu1 %vm146_vm0, %v100_v24 }
  0x3d   :  { %5748 = vmatmul.mubr.msk.bf16.gmra.mrb[24].mxu0 %vm146_vm0, %v104_v43  ;;  %6060 = vmatmul.mubr.msk.bf16.gmra.mrb[24].mxu1 %vm146_vm0, %v101_v30 }
  0x3e   :  { %297 = vmatprep.mubr.bf16.mxu0 %v7036_v3  ;;  %6063 = vmatprep.mubr.msk.bf16.mxu1 %vm146_vm0, %v102_v36 }
  0x45   :  { %5749 = vmatmul.mubr.msk.bf16.gmra.mrb[28].mxu0 %vm146_vm0, %v105_v46  ;;  %6064 = vmatmul.mubr.msk.bf16.gmra.mrb[28].mxu1 %vm146_vm0, %v103_v40 }
  0x46   :  { %307 = vmatprep.mubr.bf16.mxu0 %v7036_v3  ;;  %6067 = vmatprep.mubr.msk.bf16.mxu1 %vm146_vm0, %v104_v43 }
  0x4d   :  { %5750 = vmatmul.mubr.msk.bf16.gmra.mrb[32].mxu0 %vm146_vm0, %v106_v49  ;;  %6068 = vmatmul.mubr.msk.bf16.gmra.mrb[32].mxu1 %vm146_vm0, %v105_v46 }
  0x4e   :  { %317 = vmatprep.mubr.bf16.mxu0 %v7036_v3  ;;  %6071 = vmatprep.mubr.msk.bf16.mxu1 %vm146_vm0, %v106_v49 }
  0x55   :  { %5751 = vmatmul.mubr.msk.bf16.gmra.mrb[36].mxu0 %vm146_vm0, %v107_v52  ;;  %6072 = vmatmul.mubr.msk.bf16.gmra.mrb[36].mxu1 %vm146_vm0, %v107_v52 }
  0x56   :  { %327 = vmatprep.mubr.bf16.mxu0 %v7036_v3  ;;  %6075 = vmatprep.mubr.msk.bf16.mxu1 %vm146_vm0, %v108_v55 }
  0x5d   :  { %5752 = vmatmul.mubr.msk.bf16.gmra.mrb[40].mxu0 %vm146_vm0, %v108_v55  ;;  %6076 = vmatmul.mubr.msk.bf16.gmra.mrb[40].mxu1 %vm146_vm0, %v7125_v11 }
  0x5e   :  { %6079 = vmatprep.mubr.msk.bf16.mxu1 %vm146_vm0, %v7149_v19  ;;  %6137 = vmatprep.mubr.msk.bf16.mxu0 %vm7038_vm1, %v9139_v56 }
  0x65   :  { %6080 = vmatmul.mubr.msk.bf16.gmra.mrb[44].mxu1 %vm146_vm0, %v7168_v25 }
  0x66   :  { %6083 = vmatprep.mubr.msk.bf16.mxu1 %vm146_vm0, %v112_v31 }
  0x6d   :  { %6084 = vmatmul.mubr.msk.bf16.gmra.mrb[48].mxu1 %vm146_vm0, %v113_v37 }
  0x6e   :  { %6089 = vmatprep.mubr.msk.bf16.mxu1 %vm7038_vm1, %v9139_v56 }
  0xe0   :  { %v229_v57 = vpop.f32.mrb[0].mxu0  ;;  %v339_v60 = vpop.f32.mrb[0].mxu1 }
  0xe1   :  { %v231_v58 = vpop.f32.mrb[1].mxu0  ;;  %v341_v63 = vpop.f32.mrb[1].mxu1 }
  0xe2   :  { %v233_v59 = vpop.f32.mrb[2].mxu0  ;;  %v343_v1 = vpop.f32.mrb[2].mxu1 }
  0xe3   :  { %v7278_v61 = vpack.c.bf16 %v233_v59, %v229_v57  ;;  %v235_v62 = vpop.f32.mrb[3].mxu0  ;;  %v7282_v2 = vpack.c.bf16 %v343_v1, %v339_v60  ;;  %v345_v3 = vpop.f32.mrb[3].mxu1 }
  0xe4   :  { %v7280_v0 = vpack.c.bf16 %v235_v62, %v231_v58  ;;  %v7286_v5 = vpack.c.bf16 %v345_v3, %v341_v63 }
  0xe6   :  { %v590_v4 = vsel %vm585_vm2, %v7280_v0, 0  ;;  %9205 = vst [vmem:[#allocation6_spill] sm:$0xff] %v7286_v5 }
  0xe7   :  { %6088 = vmatpush3.bf16.xpose.msra.mxu1 %v590_v4 }
  0xe8   :  { %v239_v6 = vpop.f32.mrb[4].mxu0  ;;  %6093 = vmatprep.subr.bf16.mxu1 %v9139_v56  ;;  %v349_v9 = vpop.f32.mrb[4].mxu1 }
  0xe9   :  { %v241_v7 = vpop.f32.mrb[5].mxu0  ;;  %v351_v12 = vpop.f32.mrb[5].mxu1 }
  0xea   :  { %v243_v8 = vpop.f32.mrb[6].mxu0  ;;  %v353_v14 = vpop.f32.mrb[6].mxu1 }
  0xeb   :  { %v7289_v10 = vpack.c.bf16 %v243_v8, %v239_v6  ;;  %v245_v11 = vpop.f32.mrb[7].mxu0  ;;  %v7293_v15 = vpack.c.bf16 %v353_v14, %v349_v9  ;;  %v355_v16 = vpop.f32.mrb[7].mxu1 }
  0xec   :  { %v7291_v13 = vpack.c.bf16 %v245_v11, %v241_v7  ;;  %v7299_v18 = vpack.c.bf16 %v355_v16, %v351_v12 }
  0xee   :  { %v637_v17 = vsel %vm585_vm2, %v7291_v13, 0  ;;  %6090 = vmatmul.mubr.msk.bf16.vlgmr.msra.gmra.mrb[52].mxu1 %vm585_vm2, %v7278_v61  ;;  %9206 = vst [vmem:[#allocation7_spill] sm:$0xff] %v7299_v18 }
  0xef   :  { %6094 = vmatpush3.bf16.xpose.msra.mxu1 %v637_v17  ;;  %6095 = vmatprep.mubr.msk.bf16.mxu1 %vm7038_vm1, %v9139_v56 }
  0xf0   :  { %v249_v19 = vpop.f32.mrb[8].mxu0  ;;  %6099 = vmatprep.subr.bf16.mxu1 %v9139_v56  ;;  %v359_v22 = vpop.f32.mrb[8].mxu1 }
  0xf1   :  { %v251_v20 = vpop.f32.mrb[9].mxu0  ;;  %v361_v25 = vpop.f32.mrb[9].mxu1 }
  0xf2   :  { %v253_v21 = vpop.f32.mrb[10].mxu0  ;;  %v363_v27 = vpop.f32.mrb[10].mxu1 }
  0xf3   :  { %v7304_v23 = vpack.c.bf16 %v253_v21, %v249_v19  ;;  %v255_v24 = vpop.f32.mrb[11].mxu0  ;;  %v7308_v28 = vpack.c.bf16 %v363_v27, %v359_v22  ;;  %v365_v29 = vpop.f32.mrb[11].mxu1 }
  0xf4   :  { %v7306_v26 = vpack.c.bf16 %v255_v24, %v251_v20  ;;  %v7314_v31 = vpack.c.bf16 %v365_v29, %v361_v25 }
  0xf5   :  { %9207 = vst [vmem:[#allocation8_spill] sm:$0xff] %v7308_v28 }
  0xf6   :  { %v684_v30 = vsel %vm585_vm2, %v7306_v26, 0  ;;  %6096 = vmatmul.mubr.msk.bf16.vlgmr.msra.gmra.mrb[56].mxu1 %vm585_vm2, %v7289_v10  ;;  %9208 = vst [vmem:[#allocation9_spill] sm:$0xff] %v7314_v31 }
  0xf7   :  { %6100 = vmatpush3.bf16.xpose.msra.mxu1 %v684_v30  ;;  %6101 = vmatprep.mubr.msk.bf16.mxu1 %vm7038_vm1, %v9139_v56 }
  0xf8   :  { %v259_v32 = vpop.f32.mrb[12].mxu0  ;;  %6105 = vmatprep.subr.bf16.mxu1 %v9139_v56  ;;  %v369_v35 = vpop.f32.mrb[12].mxu1 }
  0xf9   :  { %v261_v33 = vpop.f32.mrb[13].mxu0  ;;  %v371_v38 = vpop.f32.mrb[13].mxu1 }
  0xfa   :  { %v263_v34 = vpop.f32.mrb[14].mxu0  ;;  %v373_v40 = vpop.f32.mrb[14].mxu1 }
  0xfb   :  { %v7319_v36 = vpack.c.bf16 %v263_v34, %v259_v32  ;;  %v265_v37 = vpop.f32.mrb[15].mxu0  ;;  %v7323_v41 = vpack.c.bf16 %v373_v40, %v369_v35  ;;  %v375_v42 = vpop.f32.mrb[15].mxu1 }
  0xfc   :  { %v7321_v39 = vpack.c.bf16 %v265_v37, %v261_v33  ;;  %v7329_v44 = vpack.c.bf16 %v375_v42, %v371_v38 }
  0xfd   :  { %9210 = vst [vmem:[#allocation11_spill] sm:$0xff] %v7323_v41 }
  0xfe   :  { %9209 = vst [vmem:[#allocation10_spill] sm:$0xff] %v7321_v39  ;;  %v731_v43 = vsel %vm585_vm2, %v7321_v39, 0  ;;  %6102 = vmatmul.mubr.msk.bf16.vlgmr.msra.gmra.mrb[60].mxu1 %vm585_vm2, %v7304_v23  ;;  %9211 = vst [vmem:[#allocation12_spill] sm:$0xff] %v7329_v44 }
  0xff   :  { %6106 = vmatpush3.bf16.xpose.msra.mxu1 %v731_v43  ;;  %6107 = vmatprep.mubr.msk.bf16.mxu1 %vm7038_vm1, %v9139_v56 }
 0x100   :  { %v269_v45 = vpop.f32.mrb[16].mxu0  ;;  %6111 = vmatprep.subr.bf16.mxu1 %v9139_v56  ;;  %v379_v48 = vpop.f32.mrb[16].mxu1 }
 0x101   :  { %v271_v46 = vpop.f32.mrb[17].mxu0  ;;  %v381_v51 = vpop.f32.mrb[17].mxu1 }
 0x102   :  { %v273_v47 = vpop.f32.mrb[18].mxu0  ;;  %v383_v53 = vpop.f32.mrb[18].mxu1 }
 0x103   :  { %v7334_v49 = vpack.c.bf16 %v273_v47, %v269_v45  ;;  %v275_v50 = vpop.f32.mrb[19].mxu0  ;;  %v7338_v54 = vpack.c.bf16 %v383_v53, %v379_v48  ;;  %v385_v55 = vpop.f32.mrb[19].mxu1 }
 0x104   :  { %v7336_v52 = vpack.c.bf16 %v275_v50, %v271_v46  ;;  %v7344_v58 = vpack.c.bf16 %v385_v55, %v381_v51 }
 0x105   :  { %9213 = vst [vmem:[#allocation14_spill] sm:$0xff] %v7338_v54 }
 0x106   :  { %9212 = vst [vmem:[#allocation13_spill] sm:$0xff] %v7336_v52  ;;  %v778_v57 = vsel %vm585_vm2, %v7336_v52, 0  ;;  %6108 = vmatmul.mubr.msk.bf16.vlgmr.msra.gmra.mrb[64].mxu1 %vm585_vm2, %v7319_v36  ;;  %9214 = vst [vmem:[#allocation15_spill] sm:$0xff] %v7344_v58 }
 0x107   :  { %6112 = vmatpush3.bf16.xpose.msra.mxu1 %v778_v57  ;;  %6113 = vmatprep.mubr.msk.bf16.mxu1 %vm7038_vm1, %v9139_v56 }
 0x108   :  { %v279_v59 = vpop.f32.mrb[20].mxu0  ;;  %6117 = vmatprep.subr.bf16.mxu1 %v9139_v56  ;;  %v6057_v63 = vpop.f32.mrb[20].mxu1 }
 0x109   :  { %v281_v60 = vpop.f32.mrb[21].mxu0  ;;  %v422_v4 = vpop.f32.mrb[21].mxu1 }
 0x10a   :  { %v283_v62 = vpop.f32.mrb[22].mxu0  ;;  %v6058_v7 = vpop.f32.mrb[22].mxu1 }
 0x10b   :  { %v7349_v1 = vpack.c.bf16 %v283_v62, %v279_v59  ;;  %v285_v3 = vpop.f32.mrb[23].mxu0  ;;  %v7353_v8 = vpack.c.bf16 %v6058_v7, %v6057_v63  ;;  %v425_v9 = vpop.f32.mrb[23].mxu1 }
 0x10c   :  { %v7351_v6 = vpack.c.bf16 %v285_v3, %v281_v60  ;;  %v7359_v12 = vpack.c.bf16 %v425_v9, %v422_v4 }
 0x10d   :  { %9216 = vst [vmem:[#allocation17_spill] sm:$0xff] %v7353_v8 }
 0x10e   :  { %9215 = vst [vmem:[#allocation16_spill] sm:$0xff] %v7351_v6  ;;  %v825_v11 = vsel %vm585_vm2, %v7351_v6, 0  ;;  %6114 = vmatmul.mubr.msk.bf16.vlgmr.msra.gmra.mrb[68].mxu1 %vm585_vm2, %v7334_v49  ;;  %9217 = vst [vmem:[#allocation18_spill] sm:$0xff] %v7359_v12 }
 0x10f   :  { %6118 = vmatpush3.bf16.xpose.msra.mxu1 %v825_v11  ;;  %6119 = vmatprep.mubr.msk.bf16.mxu1 %vm7038_vm1, %v9139_v56 }
 0x110   :  { %v289_v14 = vpop.f32.mrb[24].mxu0  ;;  %6123 = vmatprep.subr.bf16.mxu1 %v9139_v56  ;;  %v6061_v19 = vpop.f32.mrb[24].mxu1 }
 0x111   :  { %v291_v16 = vpop.f32.mrb[25].mxu0  ;;  %v438_v22 = vpop.f32.mrb[25].mxu1 }
 0x112   :  { %v293_v17 = vpop.f32.mrb[26].mxu0  ;;  %v6062_v25 = vpop.f32.mrb[26].mxu1 }
 0x113   :  { %v7364_v20 = vpack.c.bf16 %v293_v17, %v289_v14  ;;  %v295_v21 = vpop.f32.mrb[27].mxu0  ;;  %v7368_v27 = vpack.c.bf16 %v6062_v25, %v6061_v19  ;;  %v441_v29 = vpop.f32.mrb[27].mxu1 }
 0x114   :  { %v7366_v24 = vpack.c.bf16 %v295_v21, %v291_v16  ;;  %v7374_v32 = vpack.c.bf16 %v441_v29, %v438_v22 }
 0x116   :  { %9218 = vst [vmem:[#allocation19_spill] sm:$0xff] %v7366_v24  ;;  %v872_v30 = vsel %vm585_vm2, %v7366_v24, 0  ;;  %6120 = vmatmul.mubr.msk.bf16.vlgmr.msra.gmra.mrb[72].mxu1 %vm585_vm2, %v7349_v1 }
 0x117   :  { %6124 = vmatpush3.bf16.xpose.msra.mxu1 %v872_v30  ;;  %6125 = vmatprep.mubr.msk.bf16.mxu1 %vm7038_vm1, %v9139_v56 }
 0x118   :  { %v299_v33 = vpop.f32.mrb[28].mxu0  ;;  %6129 = vmatprep.subr.bf16.mxu1 %v9139_v56  ;;  %v6065_v37 = vpop.f32.mrb[28].mxu1 }
 0x119   :  { %v301_v34 = vpop.f32.mrb[29].mxu0  ;;  %v454_v42 = vpop.f32.mrb[29].mxu1 }
 0x11a   :  { %v303_v35 = vpop.f32.mrb[30].mxu0  ;;  %v6066_v45 = vpop.f32.mrb[30].mxu1 }
 0x11b   :  { %v7379_v38 = vpack.c.bf16 %v303_v35, %v299_v33  ;;  %v305_v40 = vpop.f32.mrb[31].mxu0  ;;  %v7383_v46 = vpack.c.bf16 %v6066_v45, %v6065_v37  ;;  %v457_v47 = vpop.f32.mrb[31].mxu1 }
 0x11c   :  { %v7381_v43 = vpack.c.bf16 %v305_v40, %v301_v34  ;;  %v7389_v50 = vpack.c.bf16 %v457_v47, %v454_v42 }
 0x11d   :  { %9220 = vst [vmem:[#allocation21_spill] sm:$0xff] %v7383_v46 }
 0x11e   :  { %9219 = vst [vmem:[#allocation20_spill] sm:$0xff] %v7381_v43  ;;  %v919_v48 = vsel %vm585_vm2, %v7381_v43, 0  ;;  %6126 = vmatmul.mubr.msk.bf16.vlgmr.msra.gmra.mrb[76].mxu1 %vm585_vm2, %v7364_v20  ;;  %9221 = vst [vmem:[#allocation22_spill] sm:$0xff] %v7389_v50 }
 0x11f   :  { %6130 = vmatpush3.bf16.xpose.msra.mxu1 %v919_v48  ;;  %6131 = vmatprep.mubr.msk.bf16.mxu1 %vm7038_vm1, %v9139_v56 }
 0x120   :  { %v309_v51 = vpop.f32.mrb[32].mxu0  ;;  %6141 = vmatprep.subr.bf16.mxu1 %v9139_v56  ;;  %v6069_v57 = vpop.f32.mrb[32].mxu1 }
 0x121   :  { %v311_v53 = vpop.f32.mrb[33].mxu0  ;;  %v470_v62 = vpop.f32.mrb[33].mxu1 }
 0x122   :  { %v313_v55 = vpop.f32.mrb[34].mxu0  ;;  %v6070_v3 = vpop.f32.mrb[34].mxu1 }
 0x123   :  { %v7394_v59 = vpack.c.bf16 %v313_v55, %v309_v51  ;;  %v315_v60 = vpop.f32.mrb[35].mxu0  ;;  %v7398_v4 = vpack.c.bf16 %v6070_v3, %v6069_v57  ;;  %v473_v7 = vpop.f32.mrb[35].mxu1 }
 0x124   :  { %v7396_v63 = vpack.c.bf16 %v315_v60, %v311_v53  ;;  %v7404_v11 = vpack.c.bf16 %v473_v7, %v470_v62  ;;  %v1107_v7 = vsel %vm585_vm2, %v7286_v5, 0 }
 0x125   :  { %9223 = vst [vmem:[#allocation24_spill] sm:$0xff] %v7398_v4 }
 0x126   :  { %9222 = vst [vmem:[#allocation23_spill] sm:$0xff] %v7396_v63  ;;  %v966_v9 = vsel %vm585_vm2, %v7396_v63, 0  ;;  %6132 = vmatmul.mubr.msk.bf16.vlgmr.msra.gmra.mrb[80].mxu1 %vm585_vm2, %v7379_v38  ;;  %9224 = vst [vmem:[#allocation25_spill] sm:$0xff] %v7404_v11 }
 0x127   :  { %6136 = vmatpush3.bf16.xpose.msra.mxu0 %v966_v9  ;;  %6143 = vmatprep.mubr.msk.bf16.mxu1 %vm7038_vm1, %v9139_v56 }
 0x128   :  { %v319_v14 = vpop.f32.mrb[36].mxu0  ;;  %6147 = vmatprep.subr.bf16.mxu0 %v9139_v56  ;;  %v6073_v19 = vpop.f32.mrb[36].mxu1 }
 0x129   :  { %v321_v16 = vpop.f32.mrb[37].mxu0  ;;  %v486_v25 = vpop.f32.mrb[37].mxu1 }
 0x12a   :  { %v323_v17 = vpop.f32.mrb[38].mxu0  ;;  %v6074_v30 = vpop.f32.mrb[38].mxu1 }
 0x12b   :  { %v7409_v21 = vpack.c.bf16 %v323_v17, %v319_v14  ;;  %v325_v22 = vpop.f32.mrb[39].mxu0  ;;  %v7413_v33 = vpack.c.bf16 %v6074_v30, %v6073_v19  ;;  %v489_v34 = vpop.f32.mrb[39].mxu1  ;;  %v1201_v17 = vsel %vm585_vm2, %v7314_v31, 0  ;;  %v1154_v30 = vsel %vm585_vm2, %v7299_v18, 0 }
 0x12c   :  { %v7411_v29 = vpack.c.bf16 %v325_v22, %v321_v16  ;;  %v7419_v37 = vpack.c.bf16 %v489_v34, %v486_v25 }
 0x12d   :  { %9226 = vst [vmem:[#allocation27_spill] sm:$0xff] %v7413_v33 }
 0x12e   :  { %9225 = vst [vmem:[#allocation26_spill] sm:$0xff] %v7411_v29  ;;  %v1013_v35 = vsel %vm585_vm2, %v7411_v29, 0  ;;  %6138 = vmatmul.mubr.msk.bf16.vlgmr.msra.gmra.mrb[44].mxu0 %vm585_vm2, %v7394_v59  ;;  %9227 = vst [vmem:[#allocation28_spill] sm:$0xff] %v7419_v37 }
 0x12f   :  { %6142 = vmatpush3.bf16.xpose.msra.mxu1 %v1013_v35  ;;  %6149 = vmatprep.mubr.msk.bf16.mxu0 %vm7038_vm1, %v9139_v56 }
 0x130   :  { %v329_v40 = vpop.f32.mrb[40].mxu0  ;;  %6153 = vmatprep.subr.bf16.mxu1 %v9139_v56  ;;  %v6077_v47 = vpop.f32.mrb[40].mxu1 }
 0x131   :  { %v331_v42 = vpop.f32.mrb[41].mxu0  ;;  %v502_v53 = vpop.f32.mrb[41].mxu1 }
 0x132   :  { %v333_v45 = vpop.f32.mrb[42].mxu0  ;;  %v6078_v57 = vpop.f32.mrb[42].mxu1 }
 0x133   :  { %v7424_v48 = vpack.c.bf16 %v333_v45, %v329_v40  ;;  %v335_v51 = vpop.f32.mrb[43].mxu0  ;;  %v7428_v60 = vpack.c.bf16 %v6078_v57, %v6077_v47  ;;  %v505_v62 = vpop.f32.mrb[43].mxu1  ;;  %v1376_v40 = vlaneseq  ;;  %v1248_v45 = vsel %vm585_vm2, %v7329_v44, 0 }
 0x134   :  { %v7426_v55 = vpack.c.bf16 %v335_v51, %v331_v42  ;;  %v7436_v9 = vpack.c.bf16 %v505_v62, %v502_v53  ;;  %v1295_v47 = vsel %vm585_vm2, %v7344_v58, 0 }
 0x135   :  { %9229 = vst [vmem:[#allocation30_spill] sm:$0xff] %v7428_v60 }
 0x136   :  { %9228 = vst [vmem:[#allocation29_spill] sm:$0xff] %v7426_v55  ;;  %v1060_v3 = vsel %vm585_vm2, %v7426_v55, 0  ;;  %6144 = vmatmul.mubr.msk.bf16.vlgmr.msra.gmra.mrb[84].mxu1 %vm585_vm2, %v7409_v21  ;;  %9230 = vst [vmem:[#allocation31_spill] sm:$0xff] %v7436_v9 }
 0x137   :  { %6148 = vmatpush3.bf16.xpose.msra.mxu0 %v1060_v3  ;;  %6154 = vmatpush3.bf16.xpose.msra.mxu1 %v1107_v7  ;;  %v1377_v3 = vshrl.u32 %v1376_v40, 7  ;;  %v5510_v7 = vand.u32 127, %v1376_v40 }
 0x138   :  { %6159 = vmatprep.subr.bf16.mxu0 %v9139_v56  ;;  %6155 = vmatprep.mubr.msk.bf16.mxu1 %vm7038_vm1, %v9139_v56  ;;  %v6081_v14 = vpop.f32.mrb[44].mxu1 }
 0x139   :  { %6165 = vmatprep.subr.bf16.mxu1 %v9139_v56  ;;  %v518_v16 = vpop.f32.mrb[45].mxu1 }
 0x13a   :  { %v6082_v19 = vpop.f32.mrb[46].mxu1 }
 0x13b   :  { %v7444_v22 = vpack.c.bf16 %v6082_v19, %v6081_v14  ;;  %v521_v25 = vpop.f32.mrb[47].mxu1  ;;  %v7476_v14 = vsub.s32 %v5510_v7, %v1377_v3  ;;  %v7039_v19 = vmov 1966171168  }
 0x13c   :  { %v7452_v34 = vpack.c.bf16 %v521_v25, %v518_v16  ;;  %v5515_v16 = vadd.s32 4294967288, %v5510_v7  ;;  %v1374_v25 = vunpack.c.l.s4 %v7039_v19 }
 0x13d   :  { %9231 = vst [vmem:[#allocation32_spill] sm:$0xff] %v7444_v22  ;;  %9235 = vst [vmem:[#allocation36_spill] sm:$0xff] %v7476_v14 }
 0x13e   :  { %6150 = vmatmul.mubr.msk.bf16.vlgmr.msra.gmra.mrb[48].mxu0 %vm585_vm2, %v7424_v48  ;;  %6156 = vmatmul.mubr.msk.bf16.vlgmr.msra.gmra.mrb[88].mxu1 %vm585_vm2, %v7282_v2  ;;  %9232 = vst [vmem:[#allocation33_spill] sm:$0xff] %v7452_v34  ;;  %v1375_v40 = vunpack.c.0.s8 %v1374_v25 }
 0x13f   :  { %6160 = vmatpush3.bf16.xpose.msra.mxu0 %v1154_v30  ;;  %6166 = vmatpush3.bf16.xpose.msra.mxu1 %v1201_v17  ;;  %v7480_v17 = vsub.s32 %v5515_v16, %v1377_v3  ;;  %v67_v30 = vld [vmem:[%s9130_s1] sm:$0xff] }
 0x140   :  { %6161 = vmatprep.mubr.msk.bf16.mxu0 %vm7038_vm1, %v9139_v56  ;;  %6171 = vmatprep.subr.bf16.mxu0 %v9139_v56  ;;  %v6085_v35 = vpop.f32.mrb[48].mxu1 }
 0x141   :  { %6167 = vmatprep.mubr.msk.bf16.mxu1 %vm7038_vm1, %v9139_v56  ;;  %6177 = vmatprep.subr.bf16.mxu1 %v9139_v56  ;;  %v534_v42 = vpop.f32.mrb[49].mxu1  ;;  %9236 = vst [vmem:[#allocation37_spill] sm:$0xff] %v7480_v17 }
 0x142   :  { %v6086_v51 = vpop.f32.mrb[50].mxu1 }
 0x143   :  { %v7464_v53 = vpack.c.bf16 %v6086_v51, %v6085_v35  ;;  %v537_v57 = vpop.f32.mrb[51].mxu1  ;;  %v549_v35 = vsub.f32 1.0, %v67_v30 }
 0x144   :  { %v7470_v62 = vpack.c.bf16 %v537_v57, %v534_v42  ;;  %v7501_v57 = vsub.s32 0, %v1377_v3 }
 0x145   :  { %9233 = vst [vmem:[#allocation34_spill] sm:$0xff] %v7464_v53  ;;  %v551_v42 = vmul.f32 -1e+09, %v549_v35 }
 0x146   :  { %6162 = vmatmul.mubr.msk.bf16.vlgmr.msra.gmra.mrb[52].mxu0 %vm585_vm2, %v7293_v15  ;;  %6168 = vmatmul.mubr.msk.bf16.vlgmr.msra.gmra.mrb[92].mxu1 %vm585_vm2, %v7308_v28  ;;  %9234 = vst [vmem:[#allocation35_spill] sm:$0xff] %v7470_v62 }
 0x147   :  { %6172 = vmatpush3.bf16.xpose.msra.mxu0 %v1248_v45  ;;  %6178 = vmatpush3.bf16.xpose.msra.mxu1 %v1295_v47  ;;  %v7497_v45 = vsub.s32 %v1375_v40, %v1377_v3 }
 0x148   :  { %6173 = vmatprep.mubr.msk.bf16.mxu0 %vm7038_vm1, %v9139_v56  ;;  %6179 = vmatprep.mubr.msk.bf16.mxu1 %vm7038_vm1, %v9139_v56 }
 0x149   :  { %6183 = vmatprep.subr.bf16.mxu0 %v9139_v56  ;;  %6189 = vmatprep.subr.bf16.mxu1 %v9139_v56  ;;  %v1379_v47 = vrot.slane %v551_v42, %v7497_v45 }
 0x14b   :  { %v1395_v51 = vrot.slane %v1379_v47, %v7497_v45  ;;  %v1387_v16 = vcombine.high %v1379_v47, %v1379_v47 }
 0x14d   :  { %v7504_v7 = vrot.slane %v1395_v51, %v7501_v57  ;;  %v1409_v40 = vrot.slane %v1387_v16, %v7497_v45  ;;  %v1417_v34 = vcombine.high %v1395_v51, %v1395_v51 }
 0x14e   :  { %6174 = vmatmul.mubr.msk.bf16.vlgmr.msra.gmra.mrb[56].mxu0 %vm585_vm2, %v7323_v41  ;;  %6180 = vmatmul.mubr.msk.bf16.vlgmr.msra.gmra.mrb[96].mxu1 %vm585_vm2, %v7338_v54 }
 0x14f   :  { %6184 = vmatpush3.bf16.msra.mxu0 %v7359_v12  ;;  %6190 = vmatpush3.bf16.msra.mxu1 %v7353_v8  ;;  %9237 = vst [vmem:[#allocation38_spill] sm:$0xff] %v7504_v7  ;;  %v7516_v47 = vrot.slane %v1409_v40, %v7501_v57  ;;  %v1419_v60 = vcombine.high %v1409_v40, %v1409_v40 }
 0x150   :  { %6185 = vmatprep.mubr.msk.bf16.mxu0 %vm7038_vm1, %v9139_v56  ;;  %6195 = vmatprep.subr.bf16.mxu0 %v9139_v56 }
 0x151   :  { %6191 = vmatprep.mubr.msk.bf16.mxu1 %vm7038_vm1, %v9139_v56  ;;  %6201 = vmatprep.subr.bf16.mxu1 %v9139_v56  ;;  %9238 = vst [vmem:[#allocation39_spill] sm:$0xff] %v7516_v47 }
 0x1c1   :  { %v626_v19 = vpop.f32.mrb[52].mxu1 }
 0x1c2   :  { %v1338_v56 = vmul.f32 0.125, %v626_v19  ;;  %v6091_v17 = vpop.f32.mrb[53].mxu1 }
 0x1c3   :  { %v629_v14 = vpop.f32.mrb[54].mxu1 }
 0x1c4   :  { %v1339_v30 = vmul.f32 0.125, %v629_v14  ;;  %v6092_v25 = vpop.f32.mrb[55].mxu1  ;;  %v7507_v35 = vadd.f32 %v7504_v7, %v1338_v56 }
 0x1c6   :  { %v1583_v3 = vsel %vm1582_vm3, %v7507_v35, -inf  ;;  %v7513_v53 = vadd.f32 %v7504_v7, %v1339_v30 }
 0x1c7   :  { %1584 = vmax.xlane.f32.xlu0 %v1583_v3 }
 0x1c8   :  { %v1586_v14 = vsel %vm1582_vm3, %v7513_v53, -inf }
 0x1c9   :  { %v673_v17 = vpop.f32.mrb[56].mxu1 }
 0x1ca   :  { %v1340_v19 = vmul.f32 0.125, %v673_v17  ;;  %v6097_v62 = vpop.f32.mrb[57].mxu1 }
 0x1cb   :  { %1587 = vmax.xlane.f32.xlu0 %v1586_v14  ;;  %v676_v56 = vpop.f32.mrb[58].mxu1  ;;  %v7529_v62 = vrot.slane %v1417_v34, %v7501_v57 }
 0x1cc   :  { %v1341_v25 = vmul.f32 0.125, %v676_v56  ;;  %v6098_v16 = vpop.f32.mrb[59].mxu1  ;;  %v7521_v22 = vadd.f32 %v7516_v47, %v1340_v19 }
 0x1cd   :  { %9239 = vst [vmem:[#allocation40_spill] sm:$0xff] %v7529_v62 }
 0x1ce   :  { %v1589_v30 = vsel %vm1582_vm3, %v7521_v22, -inf  ;;  %v7526_v3 = vadd.f32 %v7516_v47, %v1341_v25  ;;  %v1372_v25 = vcombine.high %v551_v42, %v551_v42 }
 0x1cf   :  { %1590 = vmax.xlane.f32.xlu1 %v1589_v30 }
 0x1d0   :  { %v1592_v56 = vsel %vm1582_vm3, %v7526_v3, -inf }
 0x1d1   :  { %v720_v17 = vpop.f32.mrb[60].mxu1 }
 0x1d2   :  { %v1342_v7 = vmul.f32 0.125, %v720_v17  ;;  %v6103_v14 = vpop.f32.mrb[61].mxu1 }
 0x1d3   :  { %1593 = vmax.xlane.f32.xlu1 %v1592_v56  ;;  %v723_v19 = vpop.f32.mrb[62].mxu1  ;;  %v7544_v14 = vrot.slane %v1419_v60, %v7501_v57  ;;  %v1386_v56 = vrot.slane %v1372_v25, %v7497_v45 }
 0x1d4   :  { %v1343_v16 = vmul.f32 0.125, %v723_v19  ;;  %v6104_v51 = vpop.f32.mrb[63].mxu1  ;;  %v7534_v8 = vadd.f32 %v7529_v62, %v1342_v7 }
 0x1d5   :  { %9240 = vst [vmem:[#allocation41_spill] sm:$0xff] %v7544_v14 }
 0x1d6   :  { %v1595_v30 = vsel %vm1582_vm3, %v7534_v8, -inf  ;;  %v7539_v34 = vadd.f32 %v7529_v62, %v1343_v16  ;;  %v1402_v16 = vrot.slane %v1386_v56, %v7497_v45 }
 0x1d7   :  { %1596 = vmax.xlane.f32.xlu0 %v1595_v30 }
 0x1d8   :  { %v1598_v17 = vsel %vm1582_vm3, %v7539_v34, -inf  ;;  %v1418_v31 = vcombine.high %v1402_v16, %v1402_v16 }
 0x1d9   :  { %1599 = vmax.xlane.f32.xlu1 %v1598_v17  ;;  %v767_v7 = vpop.f32.mrb[64].mxu1  ;;  %v7559_v17 = vrot.slane %v1402_v16, %v7501_v57 }
 0x1da   :  { %v1344_v19 = vmul.f32 0.125, %v767_v7  ;;  %v6109_v40 = vpop.f32.mrb[65].mxu1  ;;  %v1388_v7 = vcombine.high %v1386_v56, %v1386_v56 }
 0x1db   :  { %v770_v42 = vpop.f32.mrb[66].mxu1  ;;  %9241 = vst [vmem:[#allocation42_spill] sm:$0xff] %v7559_v17 }
 0x1dc   :  { %v1345_v51 = vmul.f32 0.125, %v770_v42  ;;  %v6110_v47 = vpop.f32.mrb[67].mxu1  ;;  %v7548_v54 = vadd.f32 %v7544_v14, %v1344_v19 }
 0x1de   :  { %v1601_v30 = vsel %vm1582_vm3, %v7548_v54, -inf  ;;  %v7554_v60 = vadd.f32 %v7544_v14, %v1345_v51  ;;  %v1416_v51 = vrot.slane %v1388_v7, %v7497_v45 }
 0x1df   :  { %1602 = vmax.xlane.f32.xlu0 %v1601_v30 }
 0x1e0   :  { %v1604_v25 = vsel %vm1582_vm3, %v7554_v60, -inf }
 0x1e1   :  { %1605 = vmax.xlane.f32.xlu1 %v1604_v25  ;;  %v814_v47 = vpop.f32.mrb[68].mxu1  ;;  %v7573_v25 = vrot.slane %v1416_v51, %v7501_v57 }
 0x1e2   :  { %v1346_v19 = vmul.f32 0.125, %v814_v47  ;;  %v6115_v40 = vpop.f32.mrb[69].mxu1 }
 0x1e3   :  { %v817_v42 = vpop.f32.mrb[70].mxu1  ;;  %9242 = vst [vmem:[#allocation43_spill] sm:$0xff] %v7573_v25 }
 0x1e4   :  { %v1347_v62 = vmul.f32 0.125, %v817_v42  ;;  %v6116_v58 = vpop.f32.mrb[71].mxu1  ;;  %v7562_v9 = vadd.f32 %v7559_v17, %v1346_v19 }
 0x1e6   :  { %v1607_v30 = vsel %vm1582_vm3, %v7562_v9, -inf  ;;  %v7568_v14 = vadd.f32 %v7559_v17, %v1347_v62  ;;  %v68_v62 = vld [vmem:[%s9130_s1 + $0x8] sm:$0xff]  ;;  %s7040_s1 = smov 64  }
 0x1e7   :  { %1608 = vmax.xlane.f32.xlu0 %v1607_v30 }
 0x1e8   :  { %v1610_v56 = vsel %vm1582_vm3, %v7568_v14, -inf }
 0x1e9   :  { %1611 = vmax.xlane.f32.xlu1 %v1610_v56  ;;  %v861_v58 = vpop.f32.mrb[72].mxu1 }
 0x1ea   :  { %v1348_v47 = vmul.f32 0.125, %v861_v58  ;;  %v6121_v19 = vpop.f32.mrb[73].mxu1  ;;  %v7589_v58 = vrot.slane %v1418_v31, %v7501_v57 }
 0x1eb   :  { %v864_v40 = vpop.f32.mrb[74].mxu1 }
 0x1ec   :  { %v1349_v42 = vmul.f32 0.125, %v864_v40  ;;  %v6122_v7 = vpop.f32.mrb[75].mxu1  ;;  %v7576_v44 = vadd.f32 %v7573_v25, %v1348_v47  ;;  %9243 = vst [vmem:[#allocation44_spill] sm:$0xff] %v7589_v58  ;;  %v550_v47 = vsub.f32 1.0, %v68_v62 }
 0x1ee   :  { %v1613_v30 = vsel %vm1582_vm3, %v7576_v44, -inf  ;;  %v7584_v17 = vadd.f32 %v7573_v25, %v1349_v42  ;;  %v1420_v42 = vcombine.high %v1416_v51, %v1416_v51  ;;  %v552_v25 = vmul.f32 -1e+09, %v550_v47 }
 0x1ef   :  { %1614 = vmax.xlane.f32.xlu0 %v1613_v30 }
 0x1f0   :  { %v1616_v56 = vsel %vm1582_vm3, %v7584_v17, -inf  ;;  %v7602_v62 = vrot.slane %v1420_v42, %v7501_v57 }
 0x1f1   :  { %1617 = vmax.xlane.f32.xlu1 %v1616_v56  ;;  %v908_v16 = vpop.f32.mrb[76].mxu1 }
 0x1f2   :  { %v1350_v19 = vmul.f32 0.125, %v908_v16  ;;  %v6127_v40 = vpop.f32.mrb[77].mxu1  ;;  %9244 = vst [vmem:[#allocation45_spill] sm:$0xff] %v7602_v62 }
 0x1f3   :  { %v911_v7 = vpop.f32.mrb[78].mxu1 }
 0x1f4   :  { %v1351_v33 = vmul.f32 0.125, %v911_v7  ;;  %v6128_v18 = vpop.f32.mrb[79].mxu1  ;;  %v7592_v5 = vadd.f32 %v7589_v58, %v1350_v19 }
 0x1f5   :  { %v1428_v18 = vrot.slane %v552_v25, %v7497_v45 }
 0x1f6   :  { %v1619_v30 = vsel %vm1582_vm3, %v7592_v5, -inf  ;;  %v7597_v55 = vadd.f32 %v7589_v58, %v1351_v33 }
 0x1f7   :  { %1620 = vmax.xlane.f32.xlu0 %v1619_v30  ;;  %v1444_v33 = vrot.slane %v1428_v18, %v7497_v45 }
 0x1f8   :  { %v1622_v31 = vsel %vm1582_vm3, %v7597_v55, -inf }
 0x1f9   :  { %1623 = vmax.xlane.f32.xlu1 %v1622_v31  ;;  %v955_v56 = vpop.f32.mrb[80].mxu1 }
 0x1fa   :  { %v1352_v16 = vmul.f32 0.125, %v955_v56  ;;  %v6133_v51 = vpop.f32.mrb[81].mxu1  ;;  %v7617_v56 = vrot.slane %v1444_v33, %v7501_v57 }
 0x1fb   :  { %v958_v47 = vpop.f32.mrb[82].mxu1  ;;  %v1436_v51 = vcombine.high %v1428_v18, %v1428_v18 }
 0x1fc   :  { %v1353_v19 = vmul.f32 0.125, %v958_v47  ;;  %v6134_v40 = vpop.f32.mrb[83].mxu1  ;;  %v7606_v7 = vadd.f32 %v7602_v62, %v1352_v16  ;;  %9245 = vst [vmem:[#allocation46_spill] sm:$0xff] %v7617_v56 }
 0x1fe   :  { %v1625_v30 = vsel %vm1582_vm3, %v7606_v7, -inf  ;;  %v7612_v42 = vadd.f32 %v7602_v62, %v1353_v19  ;;  %v1458_v19 = vrot.slane %v1436_v51, %v7497_v45 }
 0x1ff   :  { %1626 = vmax.xlane.f32.xlu0 %v1625_v30 }
 0x200   :  { %v1628_v31 = vsel %vm1582_vm3, %v7612_v42, -inf  ;;  %v1468_v11 = vcombine.high %v1458_v19, %v1458_v19 }
 0x201   :  { %1629 = vmax.xlane.f32.xlu1 %v1628_v31  ;;  %v1002_v47 = vpop.f32.mrb[44].mxu0  ;;  %v7631_v31 = vrot.slane %v1458_v19, %v7501_v57 }
 0x202   :  { %v1354_v16 = vmul.f32 0.125, %v1002_v47  ;;  %v6139_v40 = vpop.f32.mrb[45].mxu0 }
 0x203   :  { %v1005_v58 = vpop.f32.mrb[46].mxu0  ;;  %9246 = vst [vmem:[#allocation47_spill] sm:$0xff] %v7631_v31 }
 0x204   :  { %v1355_v29 = vmul.f32 0.125, %v1005_v58  ;;  %v6140_v4 = vpop.f32.mrb[47].mxu0  ;;  %v7620_v37 = vadd.f32 %v7617_v56, %v1354_v16  ;;  %v1421_v16 = vcombine.high %v552_v25, %v552_v25 }
 0x206   :  { %v1631_v30 = vsel %vm1582_vm3, %v7620_v37, -inf  ;;  %v7626_v62 = vadd.f32 %v7617_v56, %v1355_v29  ;;  %v1466_v29 = vcombine.high %v1444_v33, %v1444_v33  ;;  %v1435_v24 = vrot.slane %v1421_v16, %v7497_v45 }
 0x207   :  { %1632 = vmax.xlane.f32.xlu0 %v1631_v30 }
 0x208   :  { %v1634_v18 = vsel %vm1582_vm3, %v7626_v62, -inf  ;;  %v1437_v19 = vcombine.high %v1435_v24, %v1435_v24 }
 0x209   :  { %v1049_v58 = vpop.f32.mrb[84].mxu1  ;;  %1635 = vmax.xlane.f32.xlu1 %v1634_v18  ;;  %v7645_v18 = vrot.slane %v1466_v29, %v7501_v57 }
 0x20a   :  { %v1356_v4 = vmul.f32 0.125, %v1049_v58  ;;  %v6145_v47 = vpop.f32.mrb[85].mxu1 }
 0x20b   :  { %v1052_v40 = vpop.f32.mrb[86].mxu1  ;;  %9247 = vst [vmem:[#allocation48_spill] sm:$0xff] %v7645_v18 }
 0x20c   :  { %v1357_v51 = vmul.f32 0.125, %v1052_v40  ;;  %v7634_v63 = vadd.f32 %v7631_v31, %v1356_v4  ;;  %v6146_v43 = vpop.f32.mrb[87].mxu1 }
 0x20e   :  { %v1637_v30 = vsel %vm1582_vm3, %v7634_v63, -inf  ;;  %v7639_v56 = vadd.f32 %v7631_v31, %v1357_v51  ;;  %v7648_v51 = vrot.slane %v1468_v11, %v7501_v57 }
 0x20f   :  { %1638 = vmax.xlane.f32.xlu0 %v1637_v30 }
 0x210   :  { %v1640_v25 = vsel %vm1582_vm3, %v7639_v56, -inf  ;;  %9248 = vst [vmem:[#allocation49_spill] sm:$0xff] %v7648_v51 }
 0x211   :  { %1641 = vmax.xlane.f32.xlu1 %v1640_v25  ;;  %v1096_v58 = vpop.f32.mrb[48].mxu0  ;;  %v1143_v43 = vpop.f32.mrb[88].mxu1  ;;  %v1451_v25 = vrot.slane %v1435_v24, %v7497_v45 }
 0x212   :  { %v1358_v33 = vmul.f32 0.125, %v1096_v58  ;;  %v6151_v4 = vpop.f32.mrb[49].mxu0  ;;  %v1360_v47 = vmul.f32 0.125, %v1143_v43  ;;  %v6157_v40 = vpop.f32.mrb[89].mxu1 }
 0x213   :  { %v1099_v31 = vpop.f32.mrb[50].mxu0  ;;  %v1146_v16 = vpop.f32.mrb[90].mxu1  ;;  %v1465_v4 = vrot.slane %v1437_v19, %v7497_v45 }
 0x214   :  { %v1359_v30 = vmul.f32 0.125, %v1099_v31  ;;  %v1361_v6 = vmul.f32 0.125, %v1146_v16  ;;  %v7651_v46 = vadd.f32 %v7645_v18, %v1358_v33  ;;  %v6152_v29 = vpop.f32.mrb[51].mxu0  ;;  %v6158_v12 = vpop.f32.mrb[91].mxu1  ;;  %v7660_v11 = vadd.f32 %v7648_v51, %v1360_v47 }
 0x215   :  { %v7669_v12 = vrot.slane %v1451_v25, %v7501_v57  ;;  %v7674_v19 = vrot.slane %v1465_v4, %v7501_v57 }
 0x216   :  { %v1643_v58 = vsel %vm1582_vm3, %v7651_v46, -inf  ;;  %v7657_v43 = vadd.f32 %v7645_v18, %v1359_v30  ;;  %v7666_v33 = vadd.f32 %v7648_v51, %v1361_v6  ;;  %v1649_v47 = vsel %vm1582_vm3, %v7660_v11, -inf }
 0x217   :  { %1644 = vmax.xlane.f32.xlu0 %v1643_v58  ;;  %9249 = vst [vmem:[#allocation50_spill] sm:$0xff] %v7669_v12  ;;  %9250 = vst [vmem:[#allocation51_spill] sm:$0xff] %v7674_v19  ;;  %v1467_v51 = vcombine.high %v1451_v25, %v1451_v25  ;;  %v1469_v18 = vcombine.high %v1465_v4, %v1465_v4 }
 0x218   :  { %v1646_v31 = vsel %vm1582_vm3, %v7657_v43, -inf }
 0x219   :  { %1647 = vmax.xlane.f32.xlu1 %v1646_v31  ;;  %v1190_v24 = vpop.f32.mrb[52].mxu0  ;;  %v1237_v40 = vpop.f32.mrb[92].mxu1  ;;  %v1652_v31 = vsel %vm1582_vm3, %v7666_v33, -inf }
 0x21a   :  { %v1362_v16 = vmul.f32 0.125, %v1190_v24  ;;  %v6163_v30 = vpop.f32.mrb[53].mxu0  ;;  %v1364_v29 = vmul.f32 0.125, %v1237_v40  ;;  %v6169_v45 = vpop.f32.mrb[93].mxu1 }
 0x21b   :  { %1650 = vmax.xlane.f32.xlu0 %v1649_v47  ;;  %v1193_v58 = vpop.f32.mrb[54].mxu0  ;;  %v1240_v6 = vpop.f32.mrb[94].mxu1  ;;  %v7695_v45 = vrot.slane %v1467_v51, %v7501_v57 }
 0x21c   :  { %v1363_v52 = vmul.f32 0.125, %v1193_v58  ;;  %v1365_v41 = vmul.f32 0.125, %v1240_v6  ;;  %v7679_v24 = vadd.f32 %v7669_v12, %v1362_v16  ;;  %v6164_v30 = vpop.f32.mrb[55].mxu0  ;;  %v6170_v39 = vpop.f32.mrb[95].mxu1  ;;  %v7687_v25 = vadd.f32 %v7674_v19, %v1364_v29 }
 0x21d   :  { %1653 = vmax.xlane.f32.xlu1 %v1652_v31  ;;  %9251 = vst [vmem:[#allocation52_spill] sm:$0xff] %v7695_v45  ;;  %v7698_v39 = vrot.slane %v1469_v18, %v7501_v57 }
 0x21e   :  { %v1655_v40 = vsel %vm1582_vm3, %v7679_v24, -inf  ;;  %v7684_v47 = vadd.f32 %v7669_v12, %v1363_v52  ;;  %v7690_v4 = vadd.f32 %v7674_v19, %v1365_v41  ;;  %v1661_v29 = vsel %vm1582_vm3, %v7687_v25, -inf }
 0x21f   :  { %1656 = vmax.xlane.f32.xlu0 %v1655_v40  ;;  %9252 = vst [vmem:[#allocation53_spill] sm:$0xff] %v7698_v39 }
 0x220   :  { %v1658_v16 = vsel %vm1582_vm3, %v7684_v47, -inf  ;;  %v1664_v19 = vsel %vm1582_vm3, %v7690_v4, -inf }
 0x221   :  { %1659 = vmax.xlane.f32.xlu1 %v1658_v16  ;;  %v1284_v58 = vpop.f32.mrb[56].mxu0  ;;  %v1331_v52 = vpop.f32.mrb[96].mxu1 }
 0x222   :  { %v1366_v6 = vmul.f32 0.125, %v1284_v58  ;;  %v6175_v31 = vpop.f32.mrb[57].mxu0  ;;  %v1368_v30 = vmul.f32 0.125, %v1331_v52  ;;  %v6181_v41 = vpop.f32.mrb[97].mxu1 }
 0x223   :  { %1662 = vmax.xlane.f32.xlu0 %v1661_v29  ;;  %v1287_v40 = vpop.f32.mrb[58].mxu0  ;;  %v1334_v51 = vpop.f32.mrb[98].mxu1 }
 0x224   :  { %v1367_v12 = vmul.f32 0.125, %v1287_v40  ;;  %v1369_v50 = vmul.f32 0.125, %v1334_v51  ;;  %v7705_v57 = vadd.f32 %v7695_v45, %v1366_v6  ;;  %v7708_v18 = vadd.f32 %v7698_v39, %v1368_v30  ;;  %v6176_v16 = vpop.f32.mrb[59].mxu0  ;;  %v6182_v58 = vpop.f32.mrb[99].mxu1 }
 0x225   :  { %1665 = vmax.xlane.f32.xlu1 %v1664_v19 }
 0x226   :  { %v1667_v52 = vsel %vm1582_vm3, %v7705_v57, -inf  ;;  %v7713_v31 = vadd.f32 %v7695_v45, %v1367_v12  ;;  %v7716_v29 = vadd.f32 %v7698_v39, %v1369_v50  ;;  %v1673_v30 = vsel %vm1582_vm3, %v7708_v18, -inf }
 0x227   :  { %1668 = vmax.xlane.f32.xlu0 %v1667_v52 }
 0x228   :  { %v1670_v6 = vsel %vm1582_vm3, %v7713_v31, -inf  ;;  %v1676_v19 = vsel %vm1582_vm3, %v7716_v29, -inf }
 0x229   :  { %1671 = vmax.xlane.f32.xlu1 %v1670_v6 }
 0x22b   :  { %1674 = vmax.xlane.f32.xlu0 %v1673_v30 }
 0x22d   :  { %1677 = vmax.xlane.f32.xlu1 %v1676_v19 }
 0x254   :  { %v1585_v41 = vpop.xlane.xlu0 %1584 }
 0x255   :  { %v1679_v12 = vsub.f32 %v7507_v35, %v1585_v41 }
 0x257   :  { %v1711_v40 = vmul.f32 1.442695, %v1679_v12 }
 0x258   :  { %v1588_v51 = vpop.xlane.xlu0 %1587 }
 0x259   :  { %6628 = vpow2.f32 %v1711_v40  ;;  %v1680_v50 = vsub.f32 %v7513_v53, %v1588_v51 }
 0x25b   :  { %v1713_v16 = vmul.f32 1.442695, %v1680_v50 }
 0x25c   :  { %v1591_v58 = vpop.xlane.xlu1 %1590 }
 0x25d   :  { %6630 = vpow2.f32 %v1713_v16  ;;  %v1681_v52 = vsub.f32 %v7521_v22, %v1591_v58 }
 0x25f   :  { %v1715_v39 = vmul.f32 1.442695, %v1681_v52 }
 0x260   :  { %v1594_v6 = vpop.xlane.xlu1 %1593 }
 0x261   :  { %6632 = vpow2.f32 %v1715_v39  ;;  %v1682_v45 = vsub.f32 %v7526_v3, %v1594_v6 }
 0x263   :  { %v7728_v30 = vpop.eup %6628  ;;  %v1717_v19 = vmul.f32 1.442695, %v1682_v45 }
 0x264   :  { %v1597_v28 = vpop.xlane.xlu0 %1596  ;;  %v1775_v35 = vsel %vm1582_vm3, %v7728_v30, 0.0 }
 0x265   :  { %6634 = vpow2.f32 %v1717_v19  ;;  %v1683_v53 = vsub.f32 %v7534_v8, %v1597_v28  ;;  %1776 = vadd.xlane.f32.xlu0 %v1775_v35 }
 0x266   :  { %v1600_v41 = vpop.xlane.xlu1 %1599 }
 0x267   :  { %v7733_v12 = vpop.eup %6630  ;;  %v1719_v22 = vmul.f32 1.442695, %v1683_v53  ;;  %v1684_v40 = vsub.f32 %v7539_v34, %v1600_v41 }
 0x268   :  { %v1778_v3 = vsel %vm1582_vm3, %v7733_v12, 0.0 }
 0x269   :  { %6636 = vpow2.f32 %v1719_v22  ;;  %v1721_v39 = vmul.f32 1.442695, %v1684_v40  ;;  %1779 = vadd.xlane.f32.xlu1 %v1778_v3 }
 0x26b   :  { %v7738_v45 = vpop.eup %6632  ;;  %6638 = vpow2.f32 %v1721_v39 }
 0x26c   :  { %v1603_v51 = vpop.xlane.xlu0 %1602  ;;  %v1781_v28 = vsel %vm1582_vm3, %v7738_v45, 0.0 }
 0x26d   :  { %v1685_v8 = vsub.f32 %v7548_v54, %v1603_v51  ;;  %1782 = vadd.xlane.f32.xlu0 %v1781_v28 }
 0x26e   :  { %v1606_v50 = vpop.xlane.xlu1 %1605 }
 0x26f   :  { %v7743_v16 = vpop.eup %6634  ;;  %v1723_v34 = vmul.f32 1.442695, %v1685_v8  ;;  %v1686_v58 = vsub.f32 %v7554_v60, %v1606_v50 }
 0x270   :  { %v1784_v52 = vsel %vm1582_vm3, %v7743_v16, 0.0 }
 0x271   :  { %6640 = vpow2.f32 %v1723_v34  ;;  %v1725_v6 = vmul.f32 1.442695, %v1686_v58  ;;  %1785 = vadd.xlane.f32.xlu1 %v1784_v52 }
 0x273   :  { %v7748_v19 = vpop.eup %6636  ;;  %6642 = vpow2.f32 %v1725_v6 }
 0x274   :  { %v1609_v35 = vpop.xlane.xlu0 %1608  ;;  %v1787_v54 = vsel %vm1582_vm3, %v7748_v19, 0.0 }
 0x275   :  { %v7752_v53 = vpop.eup %6638  ;;  %v1687_v41 = vsub.f32 %v7562_v9, %v1609_v35  ;;  %1788 = vadd.xlane.f32.xlu0 %v1787_v54 }
 0x276   :  { %v1612_v22 = vpop.xlane.xlu1 %1611  ;;  %v1790_v60 = vsel %vm1582_vm3, %v7752_v53, 0.0 }
 0x277   :  { %v1727_v40 = vmul.f32 1.442695, %v1687_v41  ;;  %v1688_v3 = vsub.f32 %v7568_v14, %v1612_v22  ;;  %1791 = vadd.xlane.f32.xlu1 %v1790_v60 }
 0x279   :  { %6644 = vpow2.f32 %v1727_v40  ;;  %v1729_v39 = vmul.f32 1.442695, %v1688_v3 }
 0x27b   :  { %v7758_v51 = vpop.eup %6640  ;;  %6646 = vpow2.f32 %v1729_v39 }
 0x27c   :  { %v1615_v28 = vpop.xlane.xlu0 %1614  ;;  %v1793_v8 = vsel %vm1582_vm3, %v7758_v51, 0.0 }
 0x27d   :  { %v7762_v50 = vpop.eup %6642  ;;  %v1689_v9 = vsub.f32 %v7576_v44, %v1615_v28  ;;  %1794 = vadd.xlane.f32.xlu0 %v1793_v8 }
 0x27e   :  { %v1618_v34 = vpop.xlane.xlu1 %1617  ;;  %v1796_v58 = vsel %vm1582_vm3, %v7762_v50, 0.0 }
 0x27f   :  { %v1731_v14 = vmul.f32 1.442695, %v1689_v9  ;;  %v1690_v52 = vsub.f32 %v7584_v17, %v1618_v34  ;;  %1797 = vadd.xlane.f32.xlu1 %v1796_v58 }
 0x281   :  { %6648 = vpow2.f32 %v1731_v14  ;;  %v1733_v6 = vmul.f32 1.442695, %v1690_v52 }
 0x283   :  { %v7768_v35 = vpop.eup %6644  ;;  %6650 = vpow2.f32 %v1733_v6 }
 0x284   :  { %v1621_v54 = vpop.xlane.xlu0 %1620  ;;  %v1799_v41 = vsel %vm1582_vm3, %v7768_v35, 0.0 }
 0x285   :  { %v7772_v22 = vpop.eup %6646  ;;  %v1691_v44 = vsub.f32 %v7592_v5, %v1621_v54  ;;  %1800 = vadd.xlane.f32.xlu0 %v1799_v41 }
 0x286   :  { %v1624_v60 = vpop.xlane.xlu1 %1623  ;;  %v1802_v40 = vsel %vm1582_vm3, %v7772_v22, 0.0 }
 0x287   :  { %v1735_v17 = vmul.f32 1.442695, %v1691_v44  ;;  %v1692_v3 = vsub.f32 %v7597_v55, %v1624_v60  ;;  %1803 = vadd.xlane.f32.xlu1 %v1802_v40 }
 0x289   :  { %6652 = vpow2.f32 %v1735_v17  ;;  %v1737_v39 = vmul.f32 1.442695, %v1692_v3 }
 0x28b   :  { %v7778_v28 = vpop.eup %6648  ;;  %6654 = vpow2.f32 %v1737_v39 }
 0x28c   :  { %v1627_v8 = vpop.xlane.xlu0 %1626  ;;  %v1805_v9 = vsel %vm1582_vm3, %v7778_v28, 0.0 }
 0x28d   :  { %v7782_v34 = vpop.eup %6650  ;;  %v1693_v5 = vsub.f32 %v7606_v7, %v1627_v8  ;;  %1806 = vadd.xlane.f32.xlu0 %v1805_v9 }
 0x28e   :  { %v1630_v58 = vpop.xlane.xlu1 %1629  ;;  %v1808_v14 = vsel %vm1582_vm3, %v7782_v34, 0.0 }
 0x28f   :  { %v1739_v55 = vmul.f32 1.442695, %v1693_v5  ;;  %v1694_v52 = vsub.f32 %v7612_v42, %v1630_v58  ;;  %1809 = vadd.xlane.f32.xlu1 %v1808_v14 }
 0x291   :  { %6656 = vpow2.f32 %v1739_v55  ;;  %v1741_v6 = vmul.f32 1.442695, %v1694_v52 }
 0x293   :  { %v7788_v54 = vpop.eup %6652  ;;  %6658 = vpow2.f32 %v1741_v6 }
 0x294   :  { %v1633_v41 = vpop.xlane.xlu0 %1632  ;;  %v1811_v44 = vsel %vm1582_vm3, %v7788_v54, 0.0 }
 0x295   :  { %v7792_v60 = vpop.eup %6654  ;;  %v1695_v7 = vsub.f32 %v7620_v37, %v1633_v41  ;;  %1812 = vadd.xlane.f32.xlu0 %v1811_v44 }
 0x296   :  { %v1636_v40 = vpop.xlane.xlu1 %1635  ;;  %v1814_v17 = vsel %vm1582_vm3, %v7792_v60, 0.0 }
 0x297   :  { %v1743_v42 = vmul.f32 1.442695, %v1695_v7  ;;  %v1696_v3 = vsub.f32 %v7626_v62, %v1636_v40  ;;  %1815 = vadd.xlane.f32.xlu1 %v1814_v17 }
 0x299   :  { %6660 = vpow2.f32 %v1743_v42  ;;  %v1745_v39 = vmul.f32 1.442695, %v1696_v3 }
 0x29b   :  { %v7798_v8 = vpop.eup %6656  ;;  %6662 = vpow2.f32 %v1745_v39 }
 0x29c   :  { %v1639_v9 = vpop.xlane.xlu0 %1638  ;;  %v1817_v5 = vsel %vm1582_vm3, %v7798_v8, 0.0 }
 0x29d   :  { %v7802_v58 = vpop.eup %6658  ;;  %v1697_v37 = vsub.f32 %v7634_v63, %v1639_v9  ;;  %1818 = vadd.xlane.f32.xlu0 %v1817_v5 }
 0x29e   :  { %v1642_v14 = vpop.xlane.xlu1 %1641  ;;  %v1820_v55 = vsel %vm1582_vm3, %v7802_v58, 0.0 }
 0x29f   :  { %v1747_v62 = vmul.f32 1.442695, %v1697_v37  ;;  %v1698_v52 = vsub.f32 %v7639_v56, %v1642_v14  ;;  %1821 = vadd.xlane.f32.xlu1 %v1820_v55 }
 0x2a1   :  { %6664 = vpow2.f32 %v1747_v62  ;;  %v1749_v6 = vmul.f32 1.442695, %v1698_v52 }
 0x2a3   :  { %v7808_v41 = vpop.eup %6660  ;;  %6666 = vpow2.f32 %v1749_v6 }
 0x2a4   :  { %v1645_v44 = vpop.xlane.xlu0 %1644  ;;  %v1823_v7 = vsel %vm1582_vm3, %v7808_v41, 0.0 }
 0x2a5   :  { %v7812_v40 = vpop.eup %6662  ;;  %v1699_v63 = vsub.f32 %v7651_v46, %v1645_v44  ;;  %1824 = vadd.xlane.f32.xlu0 %v1823_v7 }
 0x2a6   :  { %v1648_v17 = vpop.xlane.xlu1 %1647  ;;  %v1826_v42 = vsel %vm1582_vm3, %v7812_v40, 0.0 }
 0x2a7   :  { %v1751_v56 = vmul.f32 1.442695, %v1699_v63  ;;  %v1700_v3 = vsub.f32 %v7657_v43, %v1648_v17  ;;  %1827 = vadd.xlane.f32.xlu1 %v1826_v42 }
 0x2a8   :  { %v1651_v39 = vpop.xlane.xlu0 %1650 }
 0x2a9   :  { %6668 = vpow2.f32 %v1751_v56  ;;  %v1753_v9 = vmul.f32 1.442695, %v1700_v3  ;;  %v1701_v5 = vsub.f32 %v7660_v11, %v1651_v39 }
 0x2aa   :  { %v1654_v37 = vpop.xlane.xlu1 %1653 }
 0x2ab   :  { %v7819_v14 = vpop.eup %6664  ;;  %6670 = vpow2.f32 %v1753_v9  ;;  %v1755_v55 = vmul.f32 1.442695, %v1701_v5  ;;  %v1702_v46 = vsub.f32 %v7666_v33, %v1654_v37 }
 0x2ac   :  { %v1657_v62 = vpop.xlane.xlu0 %1656  ;;  %v1829_v52 = vsel %vm1582_vm3, %v7819_v14, 0.0 }
 0x2ad   :  { %v7824_v6 = vpop.eup %6666  ;;  %6672 = vpow2.f32 %v1755_v55  ;;  %v1757_v43 = vmul.f32 1.442695, %v1702_v46  ;;  %v1703_v44 = vsub.f32 %v7679_v24, %v1657_v62  ;;  %1830 = vadd.xlane.f32.xlu0 %v1829_v52 }
 0x2ae   :  { %v1660_v7 = vpop.xlane.xlu1 %1659  ;;  %v1832_v11 = vsel %vm1582_vm3, %v7824_v6, 0.0 }
 0x2af   :  { %6674 = vpow2.f32 %v1757_v43  ;;  %v1759_v63 = vmul.f32 1.442695, %v1703_v44  ;;  %v1704_v17 = vsub.f32 %v7684_v47, %v1660_v7  ;;  %1833 = vadd.xlane.f32.xlu1 %v1832_v11 }
 0x2b0   :  { %v1663_v33 = vpop.xlane.xlu0 %1662 }
 0x2b1   :  { %6676 = vpow2.f32 %v1759_v63  ;;  %v1761_v42 = vmul.f32 1.442695, %v1704_v17  ;;  %v1705_v56 = vsub.f32 %v7687_v25, %v1663_v33 }
 0x2b2   :  { %v1666_v3 = vpop.xlane.xlu1 %1665 }
 0x2b3   :  { %v7831_v39 = vpop.eup %6668  ;;  %6678 = vpow2.f32 %v1761_v42  ;;  %v1763_v24 = vmul.f32 1.442695, %v1705_v56  ;;  %v1706_v9 = vsub.f32 %v7690_v4, %v1666_v3 }
 0x2b4   :  { %v1669_v5 = vpop.xlane.xlu0 %1668  ;;  %v1835_v37 = vsel %vm1582_vm3, %v7831_v39, 0.0 }
 0x2b5   :  { %v7836_v55 = vpop.eup %6670  ;;  %6680 = vpow2.f32 %v1763_v24  ;;  %v1765_v47 = vmul.f32 1.442695, %v1706_v9  ;;  %v1707_v46 = vsub.f32 %v7705_v57, %v1669_v5  ;;  %1836 = vadd.xlane.f32.xlu0 %v1835_v37 }
 0x2b6   :  { %v1838_v25 = vsel %vm1582_vm3, %v7836_v55, 0.0 }
 0x2b7   :  { %v7841_v62 = vpop.eup %6672  ;;  %6682 = vpow2.f32 %v1765_v47  ;;  %v1767_v52 = vmul.f32 1.442695, %v1707_v46  ;;  %1839 = vadd.xlane.f32.xlu1 %v1838_v25  ;;  %v1672_v46 = vpop.xlane.xlu1 %1671 }
 0x2b8   :  { %v1675_v4 = vpop.xlane.xlu0 %1674  ;;  %v1841_v43 = vsel %vm1582_vm3, %v7841_v62, 0.0  ;;  %v1708_v25 = vsub.f32 %v7713_v31, %v1672_v46 }
 0x2b9   :  { %v7845_v44 = vpop.eup %6674  ;;  %6684 = vpow2.f32 %v1767_v52  ;;  %v1709_v7 = vsub.f32 %v7708_v18, %v1675_v4  ;;  %1842 = vadd.xlane.f32.xlu0 %v1841_v43 }
 0x2ba   :  { %v1844_v57 = vsel %vm1582_vm3, %v7845_v44, 0.0  ;;  %v1769_v4 = vmul.f32 1.442695, %v1708_v25  ;;  %v9254_v25 = vld [vmem:[#allocation8_spill] sm:$0xff] }
 0x2bb   :  { %v7850_v11 = vpop.eup %6676  ;;  %v1771_v63 = vmul.f32 1.442695, %v1709_v7  ;;  %1845 = vadd.xlane.f32.xlu1 %v1844_v57  ;;  %v1678_v52 = vpop.xlane.xlu1 %1677 }
 0x2bc   :  { %v1847_v17 = vsel %vm1582_vm3, %v7850_v11, 0.0  ;;  %v1710_v43 = vsub.f32 %v7716_v29, %v1678_v52  ;;  %v9255_v52 = vld [vmem:[#allocation22_spill] sm:$0xff] }
 0x2bd   :  { %v7854_v33 = vpop.eup %6678  ;;  %6686 = vpow2.f32 %v1771_v63  ;;  %1848 = vadd.xlane.f32.xlu0 %v1847_v17 }
 0x2be   :  { %v1850_v42 = vsel %vm1582_vm3, %v7854_v33, 0.0  ;;  %6688 = vpow2.f32 %v1769_v4  ;;  %v9257_v4 = vld [vmem:[#allocation11_spill] sm:$0xff] }
 0x2bf   :  { %v7858_v56 = vpop.eup %6680  ;;  %1851 = vadd.xlane.f32.xlu1 %v1850_v42  ;;  %v9253_v42 = vmov 0.0  }
 0x2c0   :  { %v1853_v18 = vsel %vm1582_vm3, %v7858_v56, 0.0 }
 0x2c1   :  { %v7862_v3 = vpop.eup %6682  ;;  %1854 = vadd.xlane.f32.xlu0 %v1853_v18 }
 0x2c2   :  { %v1856_v24 = vsel %vm1582_vm3, %v7862_v3, 0.0 }
 0x2c3   :  { %v7866_v9 = vpop.eup %6684  ;;  %1857 = vadd.xlane.f32.xlu1 %v1856_v24 }
 0x2c4   :  { %v1859_v5 = vsel %vm1582_vm3, %v7866_v9, 0.0 }
 0x2c5   :  { %1860 = vadd.xlane.f32.xlu0 %v1859_v5 }
 0x2c7   :  { %v7870_v37 = vpop.eup %6686 }
 0x2c8   :  { %v1865_v47 = vsel %vm1582_vm3, %v7870_v37, 0.0 }
 0x2c9   :  { %1866 = vadd.xlane.f32.xlu0 %v1865_v47 }
 0x2d4   :  { %2728 = vrot.lane.b32.xlu1 %v7291_v13, %s7040_s1  ;;  %v7894_v13 = vpop.eup %6688 }
 0x2d8   :  { %2672 = vrot.lane.b32.xlu1 %v7278_v61, %s7040_s1  ;;  %v1773_v61 = vmul.f32 1.442695, %v1710_v43 }
 0x2da   :  { %6690 = vpow2.f32 %v1773_v61 }
 0x2df   :  { %2675 = vrot.lane.b32.xlu0 %v7280_v0, %s7040_s1 }
 0x2e3   :  { %2725 = vrot.lane.b32.xlu0 %v7289_v10, %s7040_s1 }
 0x2e7   :  { %2778 = vrot.lane.b32.xlu0 %v7304_v23, %s7040_s1 }
 0x2eb   :  { %2831 = vrot.lane.b32.xlu0 %v7319_v36, %s7040_s1  ;;  %v1862_v36 = vsel %vm1582_vm3, %v7894_v13, 0.0 }
 0x2ef   :  { %2884 = vrot.lane.b32.xlu0 %v7334_v49, %s7040_s1  ;;  %v7900_v49 = vpop.eup %6690 }
 0x2f2   :  { %v1777_v0 = vpop.xlane.xlu0 %1776 }
 0x2f3   :  { %2937 = vrot.lane.b32.xlu0 %v7349_v1, %s7040_s1  ;;  %6692 = vrcp.f32 %v1777_v0  ;;  %v9258_v0 = vld [vmem:[#allocation13_spill] sm:$0xff] }
 0x2f6   :  { %v1780_v10 = vpop.xlane.xlu1 %1779 }
 0x2f7   :  { %6694 = vrcp.f32 %v1780_v10  ;;  %2990 = vrot.lane.b32.xlu0 %v7364_v20, %s7040_s1  ;;  %v1868_v20 = vsel %vm1582_vm3, %v7900_v49, 0.0 }
 0x2fa   :  { %v1783_v23 = vpop.xlane.xlu0 %1782 }
 0x2fb   :  { %3043 = vrot.lane.b32.xlu0 %v7379_v38, %s7040_s1  ;;  %6696 = vrcp.f32 %v1783_v23 }
 0x2fc   :  { %1863 = vadd.xlane.f32.xlu1 %v1862_v36  ;;  %v9259_v36 = vld [vmem:[#allocation18_spill] sm:$0xff] }
 0x2fd   :  { %v6693_v31 = vpop.eup %6692 }
 0x2fe   :  { %v1786_v1 = vpop.xlane.xlu1 %1785  ;;  %v1903_v38 = vmul.f32 %v6693_v31, %v7728_v30 }
 0x2ff   :  { %6698 = vrcp.f32 %v1786_v1  ;;  %3096 = vrot.lane.b32.xlu0 %v7394_v59, %s7040_s1 }
 0x300   :  { %1869 = vadd.xlane.f32.xlu1 %v1868_v20  ;;  %v9260_v20 = vld [vmem:[#allocation21_spill] sm:$0xff] }
 0x301   :  { %v6695_v29 = vpop.eup %6694 }
 0x302   :  { %v1904_v7 = vmul.f32 %v6695_v29, %v7733_v12  ;;  %v1789_v57 = vpop.xlane.xlu0 %1788 }
 0x303   :  { %6700 = vrcp.f32 %v1789_v57  ;;  %3149 = vrot.lane.b32.xlu0 %v7409_v21, %s7040_s1 }
 0x304   :  { %v1792_v63 = vpop.xlane.xlu1 %1791  ;;  %v1935_v17 = vpack.c.bf16 %v1904_v7, %v1903_v38  ;;  %v9262_v7 = vld [vmem:[#allocation19_spill] sm:$0xff] }
 0x305   :  { %6702 = vrcp.f32 %v1792_v63  ;;  %v6697_v59 = vpop.eup %6696 }
 0x306   :  { %6186 = vmatmul.mubr.msk.bf16.vlgmr.msra.gmra.mrb[60].mxu0 %vm1582_vm3, %v1935_v17  ;;  %v1905_v12 = vmul.f32 %v6697_v59, %v7738_v45 }
 0x307   :  { %6196 = vmatpush3.bf16.msra.mxu0 %v7374_v32  ;;  %3202 = vrot.lane.b32.xlu0 %v7424_v48, %s7040_s1 }
 0x308   :  { %6197 = vmatprep.mubr.msk.bf16.mxu0 %vm7038_vm1, %v9253_v42  ;;  %6207 = vmatprep.subr.bf16.mxu0 %v9253_v42 }
 0x309   :  { %v6699_v30 = vpop.eup %6698 }
 0x30a   :  { %v1906_v21 = vmul.f32 %v6699_v30, %v7743_v16  ;;  %v1795_v18 = vpop.xlane.xlu0 %1794  ;;  %v9263_v30 = vld [vmem:[#allocation25_spill] sm:$0xff] }
 0x30b   :  { %6704 = vrcp.f32 %v1795_v18  ;;  %3255 = vrot.lane.b32.xlu0 %v7282_v2, %s7040_s1 }
 0x30c   :  { %v1798_v24 = vpop.xlane.xlu1 %1797  ;;  %v1936_v5 = vpack.c.bf16 %v1906_v21, %v1905_v12  ;;  %v9265_v21 = vld [vmem:[#allocation23_spill] sm:$0xff] }
 0x30d   :  { %v6701_v47 = vpop.eup %6700  ;;  %6706 = vrcp.f32 %v1798_v24 }
 0x30e   :  { %6192 = vmatmul.mubr.msk.bf16.vlgmr.msra.gmra.mrb[100].mxu1 %vm1582_vm3, %v1936_v5  ;;  %v1907_v45 = vmul.f32 %v6701_v47, %v7748_v19  ;;  %v9266_v5 = vld [vmem:[#allocation28_spill] sm:$0xff] }
 0x30f   :  { %v6703_v48 = vpop.eup %6702  ;;  %6202 = vmatpush3.bf16.msra.mxu1 %v7368_v27  ;;  %3308 = vrot.lane.b32.xlu0 %v7293_v15, %s7040_s1 }
 0x310   :  { %v1908_v16 = vmul.f32 %v6703_v48, %v7752_v53  ;;  %6203 = vmatprep.mubr.msk.bf16.mxu1 %vm7038_vm1, %v9253_v42  ;;  %6213 = vmatprep.subr.bf16.mxu1 %v9253_v42  ;;  %v9256_v53 = vld [vmem:[#allocation10_spill] sm:$0xff] }
 0x311   :  { %2781 = vrot.lane.b32.xlu1 %v7306_v26, %s7040_s1 }
 0x312   :  { %v1801_v2 = vpop.xlane.xlu0 %1800  ;;  %v1937_v46 = vpack.c.bf16 %v1908_v16, %v1907_v45  ;;  %v9267_v45 = vld [vmem:[#allocation24_spill] sm:$0xff] }
 0x313   :  { %6708 = vrcp.f32 %v1801_v2  ;;  %3361 = vrot.lane.b32.xlu0 %v9254_v25, %s7040_s1 }
 0x314   :  { %6198 = vmatmul.mubr.msk.bf16.vlgmr.msra.gmra.mrb[64].mxu0 %vm1582_vm3, %v1937_v46  ;;  %v1804_v15 = vpop.xlane.xlu1 %1803  ;;  %v9269_v46 = vld [vmem:[#allocation29_spill] sm:$0xff] }
 0x315   :  { %v6705_v19 = vpop.eup %6704  ;;  %6208 = vmatpush3.bf16.msra.mxu0 %v9255_v52  ;;  %6710 = vrcp.f32 %v1804_v15  ;;  %2834 = vrot.lane.b32.xlu1 %v9256_v53, %s7040_s1  ;;  %v9270_v53 = vld [vmem:[#allocation6_spill] sm:$0xff] }
 0x316   :  { %6209 = vmatprep.mubr.msk.bf16.mxu0 %vm7038_vm1, %v9253_v42  ;;  %6219 = vmatprep.subr.bf16.mxu0 %v9253_v42  ;;  %v1909_v43 = vmul.f32 %v6705_v19, %v7758_v51  ;;  %v9261_v51 = vld [vmem:[#allocation16_spill] sm:$0xff] }
 0x317   :  { %v6707_v26 = vpop.eup %6706  ;;  %3414 = vrot.lane.b32.xlu0 %v9257_v4, %s7040_s1  ;;  %v9271_v4 = vld [vmem:[#allocation7_spill] sm:$0xff] }
 0x318   :  { %v1910_v61 = vmul.f32 %v6707_v26, %v7762_v50 }
 0x319   :  { %2887 = vrot.lane.b32.xlu1 %v9258_v0, %s7040_s1 }
 0x31a   :  { %v1807_v10 = vpop.xlane.xlu0 %1806  ;;  %v1938_v23 = vpack.c.bf16 %v1910_v61, %v1909_v43 }
 0x31b   :  { %6712 = vrcp.f32 %v1807_v10  ;;  %3952 = vrot.lane.b32.xlu0 %v9259_v36, %s7040_s1  ;;  %v9273_v36 = vld [vmem:[#allocation9_spill] sm:$0xff] }
 0x31c   :  { %6204 = vmatmul.mubr.msk.bf16.vlgmr.msra.gmra.mrb[104].mxu1 %vm1582_vm3, %v1938_v23  ;;  %v1810_v1 = vpop.xlane.xlu1 %1809  ;;  %v9272_v23 = vld [vmem:[#allocation27_spill] sm:$0xff] }
 0x31d   :  { %v6709_v31 = vpop.eup %6708  ;;  %6214 = vmatpush3.bf16.msra.mxu1 %v9260_v20  ;;  %6714 = vrcp.f32 %v1810_v1  ;;  %2940 = vrot.lane.b32.xlu1 %v9261_v51, %s7040_s1 }
 0x31e   :  { %6215 = vmatprep.mubr.msk.bf16.mxu1 %vm7038_vm1, %v9253_v42  ;;  %6225 = vmatprep.subr.bf16.mxu1 %v9253_v42  ;;  %v1911_v29 = vmul.f32 %v6709_v31, %v7768_v35  ;;  %v9274_v31 = vld [vmem:[#allocation12_spill] sm:$0xff] }
 0x31f   :  { %v6711_v50 = vpop.eup %6710  ;;  %4048 = vrot.lane.b32.xlu0 %v7374_v32, %s7040_s1  ;;  %v9264_v32 = vld [vmem:[#allocation20_spill] sm:$0xff] }
 0x320   :  { %v1912_v38 = vmul.f32 %v6711_v50, %v7772_v22 }
 0x321   :  { %2993 = vrot.lane.b32.xlu1 %v9262_v7, %s7040_s1  ;;  %v9275_v7 = vld [vmem:[#allocation31_spill] sm:$0xff] }
 0x322   :  { %v1813_v57 = vpop.xlane.xlu0 %1812  ;;  %v1939_v63 = vpack.c.bf16 %v1912_v38, %v1911_v29 }
 0x323   :  { %6716 = vrcp.f32 %v1813_v57  ;;  %4144 = vrot.lane.b32.xlu0 %v9255_v52, %s7040_s1  ;;  %v9276_v57 = vld [vmem:[#allocation15_spill] sm:$0xff] }
 0x324   :  { %6210 = vmatmul.mubr.msk.bf16.vlgmr.msra.gmra.mrb[68].mxu0 %vm1582_vm3, %v1939_v63  ;;  %v1816_v17 = vpop.xlane.xlu1 %1815 }
 0x325   :  { %v6713_v59 = vpop.eup %6712  ;;  %6220 = vmatpush3.bf16.msra.mxu0 %v9263_v30  ;;  %6718 = vrcp.f32 %v1816_v17  ;;  %3046 = vrot.lane.b32.xlu1 %v9264_v32, %s7040_s1 }
 0x326   :  { %6221 = vmatprep.mubr.msk.bf16.mxu0 %vm7038_vm1, %v9253_v42  ;;  %6231 = vmatprep.subr.bf16.mxu0 %v9253_v42  ;;  %v1913_v22 = vmul.f32 %v6713_v59, %v7778_v28  ;;  %v9268_v28 = vld [vmem:[#allocation26_spill] sm:$0xff] }
 0x327   :  { %v6715_v35 = vpop.eup %6714  ;;  %4240 = vrot.lane.b32.xlu0 %v9263_v30, %s7040_s1  ;;  %v9277_v30 = vld [vmem:[#allocation14_spill] sm:$0xff] }
 0x328   :  { %v1914_v12 = vmul.f32 %v6715_v35, %v7782_v34 }
 0x329   :  { %3099 = vrot.lane.b32.xlu1 %v9265_v21, %s7040_s1  ;;  %v9278_v21 = vld [vmem:[#allocation30_spill] sm:$0xff] }
 0x32a   :  { %v1819_v18 = vpop.xlane.xlu0 %1818  ;;  %v1940_v24 = vpack.c.bf16 %v1914_v12, %v1913_v22 }
 0x32b   :  { %6720 = vrcp.f32 %v1819_v18  ;;  %4336 = vrot.lane.b32.xlu0 %v9266_v5, %s7040_s1  ;;  %v9279_v18 = vld [vmem:[#allocation17_spill] sm:$0xff] }
 0x32c   :  { %6216 = vmatmul.mubr.msk.bf16.vlgmr.msra.gmra.mrb[108].mxu1 %vm1582_vm3, %v1940_v24  ;;  %v1822_v47 = vpop.xlane.xlu1 %1821 }
 0x32d   :  { %v6717_v48 = vpop.eup %6716  ;;  %6226 = vmatpush3.bf16.msra.mxu1 %v9267_v45  ;;  %6722 = vrcp.f32 %v1822_v47  ;;  %3152 = vrot.lane.b32.xlu1 %v9268_v28, %s7040_s1 }
 0x32e   :  { %6227 = vmatprep.mubr.msk.bf16.mxu1 %vm7038_vm1, %v9253_v42  ;;  %6237 = vmatprep.subr.bf16.mxu1 %v9253_v42  ;;  %v1915_v16 = vmul.f32 %v6717_v48, %v7788_v54 }
 0x32f   :  { %v6719_v34 = vpop.eup %6718 }
 0x330   :  { %v1916_v2 = vmul.f32 %v6719_v34, %v7792_v60 }
 0x331   :  { %3205 = vrot.lane.b32.xlu1 %v9269_v46, %s7040_s1 }
 0x332   :  { %v1825_v25 = vpop.xlane.xlu0 %1824  ;;  %v1941_v15 = vpack.c.bf16 %v1916_v2, %v1915_v16 }
 0x333   :  { %6724 = vrcp.f32 %v1825_v25  ;;  %v9280_v25 = vld [vmem:[#allocation33_spill] sm:$0xff] }
 0x334   :  { %6222 = vmatmul.mubr.msk.bf16.vlgmr.msra.gmra.mrb[72].mxu0 %vm1582_vm3, %v1941_v15  ;;  %v1828_v19 = vpop.xlane.xlu1 %1827  ;;  %v9281_v15 = vld [vmem:[#allocation32_spill] sm:$0xff] }
 0x335   :  { %v6721_v52 = vpop.eup %6720  ;;  %6232 = vmatpush3.bf16.msra.mxu0 %v9266_v5  ;;  %6726 = vrcp.f32 %v1828_v19  ;;  %3258 = vrot.lane.b32.xlu1 %v9270_v53, %s7040_s1 }
 0x336   :  { %6233 = vmatprep.mubr.msk.bf16.mxu0 %vm7038_vm1, %v9253_v42  ;;  %6243 = vmatprep.subr.bf16.mxu0 %v9253_v42  ;;  %v1917_v60 = vmul.f32 %v6721_v52, %v7798_v8 }
 0x337   :  { %v6723_v54 = vpop.eup %6722 }
 0x338   :  { %v1918_v26 = vmul.f32 %v6723_v54, %v7802_v58 }
 0x339   :  { %3311 = vrot.lane.b32.xlu1 %v9271_v4, %s7040_s1 }
 0x33a   :  { %v1831_v43 = vpop.xlane.xlu0 %1830  ;;  %v1942_v61 = vpack.c.bf16 %v1918_v26, %v1917_v60 }
 0x33b   :  { %6728 = vrcp.f32 %v1831_v43 }
 0x33c   :  { %6228 = vmatmul.mubr.msk.bf16.vlgmr.msra.gmra.mrb[112].mxu1 %vm1582_vm3, %v1942_v61  ;;  %v1834_v0 = vpop.xlane.xlu1 %1833 }
 0x33d   :  { %v6725_v10 = vpop.eup %6724  ;;  %6238 = vmatpush3.bf16.msra.mxu1 %v9272_v23  ;;  %6730 = vrcp.f32 %v1834_v0  ;;  %3364 = vrot.lane.b32.xlu1 %v9273_v36, %s7040_s1 }
 0x33e   :  { %6239 = vmatprep.mubr.msk.bf16.mxu1 %vm7038_vm1, %v9253_v42  ;;  %6249 = vmatprep.subr.bf16.mxu1 %v9253_v42  ;;  %v1919_v58 = vmul.f32 %v6725_v10, %v7808_v41 }
 0x33f   :  { %v6727_v8 = vpop.eup %6726 }
 0x340   :  { %v1920_v1 = vmul.f32 %v6727_v8, %v7812_v40 }
 0x341   :  { %3417 = vrot.lane.b32.xlu1 %v9274_v31, %s7040_s1 }
 0x342   :  { %v1837_v51 = vpop.xlane.xlu0 %1836  ;;  %v1943_v50 = vpack.c.bf16 %v1920_v1, %v1919_v58 }
 0x343   :  { %6732 = vrcp.f32 %v1837_v51 }
 0x344   :  { %6234 = vmatmul.mubr.msk.bf16.vlgmr.msra.gmra.mrb[76].mxu0 %vm1582_vm3, %v1943_v50  ;;  %v1840_v29 = vpop.xlane.xlu1 %1839 }
 0x345   :  { %v6729_v38 = vpop.eup %6728  ;;  %6244 = vmatpush3.bf16.msra.mxu0 %v9275_v7  ;;  %6734 = vrcp.f32 %v1840_v29  ;;  %3470 = vrot.lane.b32.xlu1 %v9276_v57, %s7040_s1 }
 0x346   :  { %v1843_v63 = vpop.xlane.xlu0 %1842  ;;  %6245 = vmatprep.mubr.msk.bf16.mxu0 %vm7038_vm1, %v9253_v42  ;;  %6255 = vmatprep.subr.bf16.mxu0 %v9253_v42  ;;  %v1921_v40 = vmul.f32 %v6729_v38, %v7819_v14 }
 0x347   :  { %v6731_v41 = vpop.eup %6730  ;;  %6736 = vrcp.f32 %v1843_v63 }
 0x348   :  { %v1922_v17 = vmul.f32 %v6731_v41, %v7824_v6  ;;  %v1846_v59 = vpop.xlane.xlu1 %1845 }
 0x349   :  { %6738 = vrcp.f32 %v1846_v59  ;;  %3467 = vrot.lane.b32.xlu1 %v9277_v30, %s7040_s1 }
 0x34a   :  { %v1849_v32 = vpop.xlane.xlu0 %1848  ;;  %v1944_v35 = vpack.c.bf16 %v1922_v17, %v1921_v40 }
 0x34b   :  { %6740 = vrcp.f32 %v1849_v32 }
 0x34c   :  { %6240 = vmatmul.mubr.msk.bf16.vlgmr.msra.gmra.mrb[116].mxu1 %vm1582_vm3, %v1944_v35  ;;  %v1852_v22 = vpop.xlane.xlu1 %1851 }
 0x34d   :  { %v6733_v12 = vpop.eup %6732  ;;  %6250 = vmatpush3.bf16.msra.mxu1 %v9278_v21  ;;  %6742 = vrcp.f32 %v1852_v22  ;;  %4000 = vrot.lane.b32.xlu1 %v9279_v18, %s7040_s1 }
 0x34e   :  { %v1855_v14 = vpop.xlane.xlu0 %1854  ;;  %6251 = vmatprep.mubr.msk.bf16.mxu1 %vm7038_vm1, %v9253_v42  ;;  %6261 = vmatprep.subr.bf16.mxu1 %v9253_v42  ;;  %v1923_v24 = vmul.f32 %v6733_v12, %v7831_v39 }
 0x34f   :  { %v6735_v6 = vpop.eup %6734  ;;  %6744 = vrcp.f32 %v1855_v14 }
 0x350   :  { %v1924_v5 = vmul.f32 %v6735_v6, %v7836_v55  ;;  %v1858_v47 = vpop.xlane.xlu1 %1857 }
 0x351   :  { %v6737_v48 = vpop.eup %6736  ;;  %6746 = vrcp.f32 %v1858_v47  ;;  %4096 = vrot.lane.b32.xlu1 %v7368_v27, %s7040_s1 }
 0x352   :  { %v1945_v28 = vpack.c.bf16 %v1924_v5, %v1923_v24  ;;  %v1925_v16 = vmul.f32 %v6737_v48, %v7841_v62 }
 0x353   :  { %v6739_v34 = vpop.eup %6738 }
 0x354   :  { %v1926_v2 = vmul.f32 %v6739_v34, %v7845_v44  ;;  %6246 = vmatmul.mubr.msk.bf16.vlgmr.msra.gmra.mrb[80].mxu0 %vm1582_vm3, %v1945_v28  ;;  %v2729_v54 = vpop.permute.xlu1 %2728 }
 0x355   :  { %v6741_v46 = vpop.eup %6740  ;;  %6256 = vmatpush3.bf16.msra.mxu0 %v9280_v25  ;;  %4192 = vrot.lane.b32.xlu1 %v9260_v20, %s7040_s1 }
 0x356   :  { %v1946_v39 = vpack.c.bf16 %v1926_v2, %v1925_v16  ;;  %6257 = vmatprep.mubr.msk.bf16.mxu0 %vm7038_vm1, %v9253_v42  ;;  %6267 = vmatprep.subr.bf16.mxu0 %v9253_v42  ;;  %v1927_v55 = vmul.f32 %v6741_v46, %v7850_v11 }
 0x357   :  { %v6743_v27 = vpop.eup %6742 }
 0x358   :  { %v1928_v62 = vmul.f32 %v6743_v27, %v7854_v33  ;;  %6252 = vmatmul.mubr.msk.bf16.vlgmr.msra.gmra.mrb[120].mxu1 %vm1582_vm3, %v1946_v39  ;;  %v9282_v33 = vld [vmem:[#allocation35_spill] sm:$0xff]  ;;  %v2673_v26 = vpop.permute.xlu1 %2672 }
 0x359   :  { %v6745_v44 = vpop.eup %6744  ;;  %6262 = vmatpush3.bf16.msra.mxu1 %v9281_v15  ;;  %4288 = vrot.lane.b32.xlu1 %v9267_v45, %s7040_s1  ;;  %v9283_v45 = vld [vmem:[#allocation34_spill] sm:$0xff] }
 0x35a   :  { %v1947_v20 = vpack.c.bf16 %v1928_v62, %v1927_v55  ;;  %6263 = vmatprep.mubr.msk.bf16.mxu1 %vm7038_vm1, %v9253_v42  ;;  %6273 = vmatprep.subr.bf16.mxu1 %v9253_v42  ;;  %v1929_v52 = vmul.f32 %v6745_v44, %v7858_v56  ;;  %v1861_v56 = vpop.xlane.xlu0 %1860 }
 0x35b   :  { %v6747_v19 = vpop.eup %6746  ;;  %6748 = vrcp.f32 %v1861_v56 }
 0x35c   :  { %v1930_v11 = vmul.f32 %v6747_v19, %v7862_v3  ;;  %6258 = vmatmul.mubr.msk.bf16.vlgmr.msra.gmra.mrb[84].mxu0 %vm1582_vm3, %v1947_v20 }
 0x35d   :  { %6268 = vmatpush3.bf16.msra.mxu0 %v9282_v33  ;;  %4384 = vrot.lane.b32.xlu1 %v9272_v23, %s7040_s1 }
 0x35e   :  { %v1948_v53 = vpack.c.bf16 %v1930_v11, %v1929_v52  ;;  %6269 = vmatprep.mubr.msk.bf16.mxu0 %vm7038_vm1, %v9253_v42  ;;  %6279 = vmatprep.subr.bf16.mxu0 %v9253_v42  ;;  %v1867_v3 = vpop.xlane.xlu0 %1866 }
 0x360   :  { %6264 = vmatmul.mubr.msk.bf16.vlgmr.msra.gmra.mrb[124].mxu1 %vm1582_vm3, %v1948_v53 }
 0x361   :  { %6274 = vmatpush3.bf16.msra.mxu1 %v9283_v45  ;;  %4432 = vrot.lane.b32.xlu1 %v9275_v7, %s7040_s1 }
 0x362   :  { %6275 = vmatprep.mubr.msk.bf16.mxu1 %vm7038_vm1, %v9253_v42  ;;  %6285 = vmatprep.subr.bf16.mxu1 %v9253_v42  ;;  %v2676_v60 = vpop.permute.xlu0 %2675 }
 0x363   :  { %v2681_v57 = vsel %vm585_vm2, %v2676_v60, 0 }
 0x365   :  { %4480 = vrot.lane.b32.xlu1 %v9278_v21, %s7040_s1  ;;  %v6749_v36 = vpop.eup %6748 }
 0x366   :  { %v2726_v4 = vpop.permute.xlu0 %2725  ;;  %v1931_v58 = vmul.f32 %v6749_v36, %v7866_v9 }
 0x36a   :  { %v2779_v61 = vpop.permute.xlu0 %2778 }
 0x36e   :  { %v2832_v10 = vpop.permute.xlu0 %2831 }
 0x372   :  { %v2885_v50 = vpop.permute.xlu0 %2884 }
 0x376   :  { %v2938_v40 = vpop.permute.xlu0 %2937 }
 0x37a   :  { %v2991_v59 = vpop.permute.xlu0 %2990 }
 0x37e   :  { %v3044_v35 = vpop.permute.xlu0 %3043 }
 0x382   :  { %v3097_v14 = vpop.permute.xlu0 %3096 }
 0x386   :  { %v3150_v5 = vpop.permute.xlu0 %3149 }
 0x389   :  { %v1864_v43 = vpop.xlane.xlu1 %1863 }
 0x38a   :  { %6750 = vrcp.f32 %v1864_v43  ;;  %v3203_v34 = vpop.permute.xlu0 %3202 }
 0x38b   :  { %6752 = vrcp.f32 %v1867_v3 }
 0x38d   :  { %v1870_v0 = vpop.xlane.xlu1 %1869 }
 0x38e   :  { %6754 = vrcp.f32 %v1870_v0  ;;  %v3256_v46 = vpop.permute.xlu0 %3255 }
 0x391   :  { %v2782_v23 = vpop.permute.xlu1 %2781 }
 0x392   :  { %v3309_v62 = vpop.permute.xlu0 %3308 }
 0x394   :  { %v6751_v8 = vpop.eup %6750 }
 0x395   :  { %v1932_v1 = vmul.f32 %v6751_v8, %v7894_v13  ;;  %v2835_v31 = vpop.permute.xlu1 %2834  ;;  %v6753_v51 = vpop.eup %6752  ;;  %v2734_v13 = vsel %vm585_vm2, %v2729_v54, 0 }
 0x396   :  { %v1933_v7 = vmul.f32 %v6753_v51, %v7870_v37  ;;  %v2840_v30 = vsel %vm585_vm2, %v2835_v31, 0  ;;  %v3362_v19 = vpop.permute.xlu0 %3361 }
 0x397   :  { %v1949_v29 = vpack.c.bf16 %v1932_v1, %v1931_v58 }
 0x398   :  { %v6755_v38 = vpop.eup %6754 }
 0x399   :  { %v1934_v63 = vmul.f32 %v6755_v38, %v7900_v49  ;;  %6270 = vmatmul.mubr.msk.bf16.vlgmr.msra.gmra.mrb[88].mxu0 %vm1582_vm3, %v1949_v29  ;;  %v2888_v41 = vpop.permute.xlu1 %2887  ;;  %v2787_v49 = vsel %vm585_vm2, %v2782_v23, 0 }
 0x39a   :  { %6280 = vmatpush3.bf16.xpose.msra.mxu0 %v2681_v57  ;;  %6281 = vmatprep.mubr.msk.bf16.mxu0 %vm7038_vm1, %v9253_v42  ;;  %v2893_v22 = vsel %vm585_vm2, %v2888_v41, 0  ;;  %v3415_v56 = vpop.permute.xlu0 %3414 }
 0x39b   :  { %v1950_v9 = vpack.c.bf16 %v1934_v63, %v1933_v7  ;;  %6291 = vmatprep.subr.bf16.mxu0 %v9253_v42 }
 0x39d   :  { %6276 = vmatmul.mubr.msk.bf16.vlgmr.msra.gmra.mrb[128].mxu1 %vm1582_vm3, %v1950_v9  ;;  %v2941_v37 = vpop.permute.xlu1 %2940 }
 0x39e   :  { %6286 = vmatpush3.bf16.xpose.msra.mxu1 %v2734_v13  ;;  %6287 = vmatprep.mubr.msk.bf16.mxu1 %vm7038_vm1, %v9253_v42  ;;  %v2946_v21 = vsel %vm585_vm2, %v2941_v37, 0  ;;  %v3953_v60 = vpop.permute.xlu0 %3952 }
 0x39f   :  { %6297 = vmatprep.subr.bf16.mxu1 %v9253_v42 }
 0x3a1   :  { %6282 = vmatmul.mubr.msk.bf16.vlgmr.msra.gmra.mrb[92].mxu0 %vm585_vm2, %v2673_v26  ;;  %v2994_v17 = vpop.permute.xlu1 %2993 }
 0x3a2   :  { %6292 = vmatpush3.bf16.xpose.msra.mxu0 %v2787_v49  ;;  %6293 = vmatprep.mubr.msk.bf16.mxu0 %vm7038_vm1, %v9253_v42  ;;  %v2999_v6 = vsel %vm585_vm2, %v2994_v17, 0 }
 0x3a3   :  { %6303 = vmatprep.subr.bf16.mxu0 %v9253_v42 }
 0x3a5   :  { %6288 = vmatmul.mubr.msk.bf16.vlgmr.msra.gmra.mrb[132].mxu1 %vm585_vm2, %v2726_v4  ;;  %v3047_v32 = vpop.permute.xlu1 %3046 }
 0x3a6   :  { %6298 = vmatpush3.bf16.xpose.msra.mxu1 %v2840_v30  ;;  %6299 = vmatprep.mubr.msk.bf16.mxu1 %vm7038_vm1, %v9253_v42  ;;  %v3052_v47 = vsel %vm585_vm2, %v3047_v32, 0 }
 0x3a7   :  { %6309 = vmatprep.subr.bf16.mxu1 %v9253_v42 }
 0x3a9   :  { %6294 = vmatmul.mubr.msk.bf16.vlgmr.msra.gmra.mrb[96].mxu0 %vm585_vm2, %v2779_v61  ;;  %v3100_v12 = vpop.permute.xlu1 %3099 }
 0x3aa   :  { %6304 = vmatpush3.bf16.xpose.msra.mxu0 %v2893_v22  ;;  %6305 = vmatprep.mubr.msk.bf16.mxu0 %vm7038_vm1, %v9253_v42  ;;  %v3105_v48 = vsel %vm585_vm2, %v3100_v12, 0 }
 0x3ab   :  { %6315 = vmatprep.subr.bf16.mxu0 %v9253_v42 }
 0x3ad   :  { %6300 = vmatmul.mubr.msk.bf16.vlgmr.msra.gmra.mrb[136].mxu1 %vm585_vm2, %v2832_v10  ;;  %v3153_v18 = vpop.permute.xlu1 %3152 }
 0x3ae   :  { %6310 = vmatpush3.bf16.xpose.msra.mxu1 %v2946_v21  ;;  %6311 = vmatprep.mubr.msk.bf16.mxu1 %vm7038_vm1, %v9253_v42  ;;  %v3158_v16 = vsel %vm585_vm2, %v3153_v18, 0 }
 0x3af   :  { %6321 = vmatprep.subr.bf16.mxu1 %v9253_v42 }
 0x3b1   :  { %6306 = vmatmul.mubr.msk.bf16.vlgmr.msra.gmra.mrb[100].mxu0 %vm585_vm2, %v2885_v50  ;;  %v3206_v24 = vpop.permute.xlu1 %3205 }
 0x3b2   :  { %6316 = vmatpush3.bf16.xpose.msra.mxu0 %v2999_v6  ;;  %6317 = vmatprep.mubr.msk.bf16.mxu0 %vm7038_vm1, %v9253_v42  ;;  %v3211_v39 = vsel %vm585_vm2, %v3206_v24, 0 }
 0x3b3   :  { %6327 = vmatprep.subr.bf16.mxu0 %v9253_v42 }
 0x3b5   :  { %6312 = vmatmul.mubr.msk.bf16.vlgmr.msra.gmra.mrb[140].mxu1 %vm585_vm2, %v2938_v40  ;;  %v3259_v28 = vpop.permute.xlu1 %3258 }
 0x3b6   :  { %6322 = vmatpush3.bf16.xpose.msra.mxu1 %v3052_v47  ;;  %6323 = vmatprep.mubr.msk.bf16.mxu1 %vm7038_vm1, %v9253_v42  ;;  %v3264_v27 = vsel %vm585_vm2, %v3259_v28, 0 }
 0x3b7   :  { %6333 = vmatprep.subr.bf16.mxu1 %v9253_v42 }
 0x3b9   :  { %6318 = vmatmul.mubr.msk.bf16.vlgmr.msra.gmra.mrb[104].mxu0 %vm585_vm2, %v2991_v59  ;;  %v3312_v2 = vpop.permute.xlu1 %3311 }
 0x3ba   :  { %6328 = vmatpush3.bf16.xpose.msra.mxu0 %v3105_v48  ;;  %6329 = vmatprep.mubr.msk.bf16.mxu0 %vm7038_vm1, %v9253_v42  ;;  %v3317_v44 = vsel %vm585_vm2, %v3312_v2, 0 }
 0x3bb   :  { %6339 = vmatprep.subr.bf16.mxu0 %v9253_v42 }
 0x3bd   :  { %6324 = vmatmul.mubr.msk.bf16.vlgmr.msra.gmra.mrb[144].mxu1 %vm585_vm2, %v3044_v35  ;;  %v3365_v55 = vpop.permute.xlu1 %3364 }
 0x3be   :  { %6334 = vmatpush3.bf16.xpose.msra.mxu1 %v3158_v16  ;;  %6335 = vmatprep.mubr.msk.bf16.mxu1 %vm7038_vm1, %v9253_v42  ;;  %v3370_v52 = vsel %vm585_vm2, %v3365_v55, 0 }
 0x3bf   :  { %6345 = vmatprep.subr.bf16.mxu1 %v9253_v42 }
 0x3c1   :  { %6330 = vmatmul.mubr.msk.bf16.vlgmr.msra.gmra.mrb[108].mxu0 %vm585_vm2, %v3097_v14  ;;  %v3418_v20 = vpop.permute.xlu1 %3417 }
 0x3c2   :  { %6340 = vmatpush3.bf16.xpose.msra.mxu0 %v3211_v39  ;;  %6341 = vmatprep.mubr.msk.bf16.mxu0 %vm7038_vm1, %v9253_v42  ;;  %v3423_v11 = vsel %vm585_vm2, %v3418_v20, 0 }
 0x3c3   :  { %6351 = vmatprep.subr.bf16.mxu0 %v9253_v42 }
 0x3c5   :  { %6336 = vmatmul.mubr.msk.bf16.vlgmr.msra.gmra.mrb[148].mxu1 %vm585_vm2, %v3150_v5  ;;  %v3471_v53 = vpop.permute.xlu1 %3470 }
 0x3c6   :  { %6346 = vmatpush3.bf16.xpose.msra.mxu1 %v3264_v27  ;;  %6347 = vmatprep.mubr.msk.bf16.mxu1 %vm7038_vm1, %v9253_v42  ;;  %v3476_v3 = vsel %vm585_vm2, %v3471_v53, 0 }
 0x3c7   :  { %6357 = vmatprep.subr.bf16.mxu1 %v9253_v42 }
 0x3c9   :  { %6342 = vmatmul.mubr.msk.bf16.vlgmr.msra.gmra.mrb[112].mxu0 %vm585_vm2, %v3203_v34  ;;  %v3468_v54 = vpop.permute.xlu1 %3467 }
 0x3ca   :  { %6352 = vmatpush3.bf16.xpose.msra.mxu0 %v3317_v44  ;;  %6353 = vmatprep.mubr.msk.bf16.mxu0 %vm7038_vm1, %v9253_v42 }
 0x3cb   :  { %6363 = vmatprep.subr.bf16.mxu0 %v9253_v42 }
 0x3cd   :  { %6348 = vmatmul.mubr.msk.bf16.vlgmr.msra.gmra.mrb[152].mxu1 %vm585_vm2, %v3256_v46  ;;  %v4001_v0 = vpop.permute.xlu1 %4000 }
 0x3ce   :  { %6358 = vmatpush3.bf16.xpose.msra.mxu1 %v3370_v52  ;;  %6359 = vmatprep.mubr.msk.bf16.mxu1 %vm7038_vm1, %v9253_v42 }
 0x3cf   :  { %6369 = vmatprep.subr.bf16.mxu1 %v9253_v42 }
 0x3d1   :  { %6354 = vmatmul.mubr.msk.bf16.vlgmr.msra.gmra.mrb[116].mxu0 %vm585_vm2, %v3309_v62 }
 0x3d2   :  { %6364 = vmatpush3.bf16.xpose.msra.mxu0 %v3423_v11  ;;  %6365 = vmatprep.mubr.msk.bf16.mxu0 %vm7038_vm1, %v9253_v42 }
 0x3d3   :  { %6375 = vmatprep.subr.bf16.mxu0 %v9253_v42 }
 0x3d5   :  { %6360 = vmatmul.mubr.msk.bf16.vlgmr.msra.gmra.mrb[156].mxu1 %vm585_vm2, %v3362_v19 }
 0x3d6   :  { %6370 = vmatpush3.bf16.xpose.msra.mxu1 %v3476_v3  ;;  %6371 = vmatprep.mubr.msk.bf16.mxu1 %vm7038_vm1, %v9253_v42 }
 0x3d7   :  { %6381 = vmatprep.subr.bf16.mxu1 %v9253_v42 }
 0x3d9   :  { %6366 = vmatmul.mubr.msk.bf16.vlgmr.msra.gmra.mrb[120].mxu0 %vm585_vm2, %v3415_v56  ;;  %v8155_v26 = vpop.f32.mrb[60].mxu0 }
 0x3da   :  { %6376 = vmatpush3.bf16.msra.mxu0 %v3953_v60  ;;  %v6187_v4 = vpop.f32.mrb[61].mxu0  ;;  %6377 = vmatprep.mubr.msk.bf16.mxu0 %vm7038_vm1, %v9253_v42 }
 0x3db   :  { %v8159_v43 = vpop.f32.mrb[62].mxu0  ;;  %6387 = vmatprep.subr.bf16.mxu0 %v9253_v42 }
 0x3dc   :  { %v6188_v61 = vpop.f32.mrb[63].mxu0 }
 0x3dd   :  { %6372 = vmatmul.mubr.msk.bf16.vlgmr.msra.gmra.mrb[160].mxu1 %vm585_vm2, %v3468_v54 }
 0x3de   :  { %6382 = vmatpush3.bf16.msra.mxu1 %v4001_v0  ;;  %6383 = vmatprep.mubr.msk.bf16.mxu1 %vm7038_vm1, %v9253_v42 }
 0x3df   :  { %6393 = vmatprep.subr.bf16.mxu1 %v9253_v42 }
 0x3e1   :  { %v8166_v10 = vpop.f32.mrb[100].mxu1 }
 0x3e2   :  { %v6193_v23 = vpop.f32.mrb[101].mxu1 }
 0x3e3   :  { %v8168_v36 = vpop.f32.mrb[102].mxu1 }
 0x3e4   :  { %v6194_v8 = vpop.f32.mrb[103].mxu1 }
 0x3e7   :  { %v8170_v58 = vpop.f32.mrb[64].mxu0 }
 0x3e8   :  { %v6199_v1 = vpop.f32.mrb[65].mxu0 }
 0x3e9   :  { %v8172_v31 = vpop.f32.mrb[66].mxu0 }
 0x3ea   :  { %9284 = vst [vmem:[#allocation8_spill] sm:$0xff] %v8172_v31  ;;  %v6200_v51 = vpop.f32.mrb[67].mxu0 }
 0x3ef   :  { %v8174_v50 = vpop.f32.mrb[104].mxu1 }
 0x3f0   :  { %9285 = vst [vmem:[#allocation22_spill] sm:$0xff] %v8174_v50  ;;  %v6205_v29 = vpop.f32.mrb[105].mxu1 }
 0x3f1   :  { %v8176_v38 = vpop.f32.mrb[106].mxu1 }
 0x3f2   :  { %9286 = vst [vmem:[#allocation10_spill] sm:$0xff] %v8176_v38  ;;  %v6206_v7 = vpop.f32.mrb[107].mxu1 }
 0x3f7   :  { %v8178_v57 = vpop.f32.mrb[68].mxu0 }
 0x3f8   :  { %9287 = vst [vmem:[#allocation11_spill] sm:$0xff] %v8178_v57  ;;  %v6211_v63 = vpop.f32.mrb[69].mxu0 }
 0x3f9   :  { %v8180_v41 = vpop.f32.mrb[70].mxu0 }
 0x3fa   :  { %9288 = vst [vmem:[#allocation13_spill] sm:$0xff] %v8180_v41  ;;  %v6212_v9 = vpop.f32.mrb[71].mxu0 }
 0x3fb   :  { %v9311_v9 = vld [vmem:[#allocation38_spill] sm:$0xff] }
 0x3ff   :  { %v8182_v13 = vpop.f32.mrb[108].mxu1 }
 0x400   :  { %9289 = vst [vmem:[#allocation18_spill] sm:$0xff] %v8182_v13  ;;  %v6217_v40 = vpop.f32.mrb[109].mxu1 }
 0x401   :  { %v8184_v37 = vpop.f32.mrb[110].mxu1 }
 0x402   :  { %9290 = vst [vmem:[#allocation21_spill] sm:$0xff] %v8184_v37  ;;  %v6218_v49 = vpop.f32.mrb[111].mxu1 }
 0x407   :  { %v8186_v17 = vpop.f32.mrb[72].mxu0 }
 0x408   :  { %9291 = vst [vmem:[#allocation16_spill] sm:$0xff] %v8186_v17  ;;  %v6223_v59 = vpop.f32.mrb[73].mxu0 }
 0x409   :  { %v8188_v30 = vpop.f32.mrb[74].mxu0 }
 0x40a   :  { %9292 = vst [vmem:[#allocation19_spill] sm:$0xff] %v8188_v30  ;;  %v6224_v32 = vpop.f32.mrb[75].mxu0 }
 0x40f   :  { %v8190_v35 = vpop.f32.mrb[112].mxu1 }
 0x410   :  { %9293 = vst [vmem:[#allocation25_spill] sm:$0xff] %v8190_v35  ;;  %v6229_v22 = vpop.f32.mrb[113].mxu1 }
 0x411   :  { %v8192_v12 = vpop.f32.mrb[114].mxu1 }
 0x412   :  { %9294 = vst [vmem:[#allocation20_spill] sm:$0xff] %v8192_v12  ;;  %v6230_v21 = vpop.f32.mrb[115].mxu1 }
 0x417   :  { %v8194_v18 = vpop.f32.mrb[76].mxu0 }
 0x418   :  { %9295 = vst [vmem:[#allocation23_spill] sm:$0xff] %v8194_v18  ;;  %v6235_v14 = vpop.f32.mrb[77].mxu0  ;;  %v9325_v18 = vld [vmem:[#allocation52_spill] sm:$0xff] }
 0x419   :  { %v8196_v6 = vpop.f32.mrb[78].mxu0 }
 0x41a   :  { %9296 = vst [vmem:[#allocation28_spill] sm:$0xff] %v8196_v6  ;;  %v6236_v24 = vpop.f32.mrb[79].mxu0 }
 0x41f   :  { %v8198_v5 = vpop.f32.mrb[116].mxu1 }
 0x420   :  { %9297 = vst [vmem:[#allocation24_spill] sm:$0xff] %v8198_v5  ;;  %v6241_v47 = vpop.f32.mrb[117].mxu1 }
 0x421   :  { %v8200_v48 = vpop.f32.mrb[118].mxu1 }
 0x422   :  { %9298 = vst [vmem:[#allocation26_spill] sm:$0xff] %v8200_v48  ;;  %v6242_v28 = vpop.f32.mrb[119].mxu1 }
 0x423   :  { %v9312_v28 = vld [vmem:[#allocation39_spill] sm:$0xff] }
 0x427   :  { %v8202_v34 = vpop.f32.mrb[80].mxu0 }
 0x428   :  { %9299 = vst [vmem:[#allocation29_spill] sm:$0xff] %v8202_v34  ;;  %v6247_v16 = vpop.f32.mrb[81].mxu0  ;;  %v9323_v34 = vld [vmem:[#allocation50_spill] sm:$0xff] }
 0x429   :  { %v8204_v2 = vpop.f32.mrb[82].mxu0 }
 0x42a   :  { %9300 = vst [vmem:[#allocation6_spill] sm:$0xff] %v8204_v2  ;;  %v6248_v46 = vpop.f32.mrb[83].mxu0 }
 0x42b   :  { %v8206_v39 = vpop.f32.mrb[120].mxu1 }
 0x42c   :  { %9301 = vst [vmem:[#allocation7_spill] sm:$0xff] %v8206_v39  ;;  %v6253_v27 = vpop.f32.mrb[121].mxu1  ;;  %v9324_v39 = vld [vmem:[#allocation51_spill] sm:$0xff] }
 0x42d   :  { %v8208_v55 = vpop.f32.mrb[122].mxu1 }
 0x42e   :  { %9302 = vst [vmem:[#allocation27_spill] sm:$0xff] %v8208_v55  ;;  %v6254_v62 = vpop.f32.mrb[123].mxu1 }
 0x42f   :  { %v8210_v44 = vpop.f32.mrb[84].mxu0 }
 0x430   :  { %9303 = vst [vmem:[#allocation9_spill] sm:$0xff] %v8210_v44  ;;  %v6259_v20 = vpop.f32.mrb[85].mxu0  ;;  %v9321_v44 = vld [vmem:[#allocation48_spill] sm:$0xff] }
 0x431   :  { %v8212_v19 = vpop.f32.mrb[86].mxu0 }
 0x432   :  { %9304 = vst [vmem:[#allocation12_spill] sm:$0xff] %v8212_v19  ;;  %v6260_v52 = vpop.f32.mrb[87].mxu0 }
 0x433   :  { %v8214_v11 = vpop.f32.mrb[124].mxu1 }
 0x434   :  { %9305 = vst [vmem:[#allocation31_spill] sm:$0xff] %v8214_v11  ;;  %v6265_v53 = vpop.f32.mrb[125].mxu1  ;;  %v9322_v11 = vld [vmem:[#allocation49_spill] sm:$0xff] }
 0x435   :  { %v8216_v56 = vpop.f32.mrb[126].mxu1 }
 0x436   :  { %9306 = vst [vmem:[#allocation15_spill] sm:$0xff] %v8216_v56  ;;  %v6266_v3 = vpop.f32.mrb[127].mxu1 }
 0x46c   :  { %v8218_v54 = vpop.f32.mrb[88].mxu0 }
 0x46d   :  { %9307 = vst [vmem:[#allocation14_spill] sm:$0xff] %v8218_v54  ;;  %v6271_v60 = vpop.f32.mrb[89].mxu0  ;;  %v9319_v54 = vld [vmem:[#allocation46_spill] sm:$0xff] }
 0x46e   :  { %v8220_v4 = vpop.f32.mrb[90].mxu0 }
 0x46f   :  { %9308 = vst [vmem:[#allocation30_spill] sm:$0xff] %v8220_v4  ;;  %v6272_v61 = vpop.f32.mrb[91].mxu0 }
 0x470   :  { %v8222_v0 = vpop.f32.mrb[128].mxu1 }
 0x471   :  { %9309 = vst [vmem:[#allocation17_spill] sm:$0xff] %v8222_v0  ;;  %v6277_v23 = vpop.f32.mrb[129].mxu1  ;;  %v9320_v0 = vld [vmem:[#allocation47_spill] sm:$0xff] }
 0x472   :  { %v8224_v8 = vpop.f32.mrb[130].mxu1 }
 0x473   :  { %9310 = vst [vmem:[#allocation33_spill] sm:$0xff] %v8224_v8  ;;  %v6278_v1 = vpop.f32.mrb[131].mxu1 }
 0x474   :  { %v2717_v51 = vpop.f32.mrb[92].mxu0 }
 0x475   :  { %v3519_v29 = vmul.f32 0.125, %v2717_v51  ;;  %v6283_v7 = vpop.f32.mrb[93].mxu0 }
 0x476   :  { %v2720_v63 = vpop.f32.mrb[94].mxu0 }
 0x477   :  { %v8227_v40 = vadd.f32 %v3519_v29, %v9311_v9  ;;  %v3520_v49 = vmul.f32 0.125, %v2720_v63  ;;  %v6284_v59 = vpop.f32.mrb[95].mxu0  ;;  %v9313_v29 = vld [vmem:[#allocation40_spill] sm:$0xff] }
 0x478   :  { %v2770_v32 = vpop.f32.mrb[132].mxu1 }
 0x479   :  { %v8230_v22 = vadd.f32 %v3520_v49, %v9311_v9  ;;  %v3521_v21 = vmul.f32 0.125, %v2770_v32  ;;  %v6289_v14 = vpop.f32.mrb[133].mxu1  ;;  %v3583_v24 = vsel %vm1582_vm3, %v8227_v40, -inf }
 0x47a   :  { %v2773_v47 = vpop.f32.mrb[134].mxu1  ;;  %3584 = vmax.xlane.f32.xlu0 %v3583_v24 }
 0x47b   :  { %v8235_v16 = vadd.f32 %v3521_v21, %v9312_v28  ;;  %v3522_v46 = vmul.f32 0.125, %v2773_v47  ;;  %v6290_v27 = vpop.f32.mrb[135].mxu1  ;;  %v3586_v62 = vsel %vm1582_vm3, %v8230_v22, -inf }
 0x47c   :  { %3587 = vmax.xlane.f32.xlu1 %v3586_v62  ;;  %v2823_v20 = vpop.f32.mrb[96].mxu0 }
 0x47d   :  { %v8240_v52 = vadd.f32 %v3522_v46, %v9312_v28  ;;  %v3523_v53 = vmul.f32 0.125, %v2823_v20  ;;  %v6295_v3 = vpop.f32.mrb[97].mxu0  ;;  %v3589_v60 = vsel %vm1582_vm3, %v8235_v16, -inf  ;;  %v9314_v28 = vld [vmem:[#allocation41_spill] sm:$0xff] }
 0x47e   :  { %3590 = vmax.xlane.f32.xlu0 %v3589_v60  ;;  %v2826_v61 = vpop.f32.mrb[98].mxu0 }
 0x47f   :  { %v3524_v23 = vmul.f32 0.125, %v2826_v61  ;;  %v6296_v1 = vpop.f32.mrb[99].mxu0  ;;  %v8245_v7 = vadd.f32 %v3523_v53, %v9313_v29  ;;  %v3592_v59 = vsel %vm1582_vm3, %v8240_v52, -inf }
 0x480   :  { %v2876_v51 = vpop.f32.mrb[136].mxu1 }
 0x481   :  { %v8248_v63 = vadd.f32 %v3524_v23, %v9313_v29  ;;  %v3525_v9 = vmul.f32 0.125, %v2876_v51  ;;  %v6301_v49 = vpop.f32.mrb[137].mxu1  ;;  %v3595_v53 = vsel %vm1582_vm3, %v8245_v7, -inf  ;;  %v9315_v51 = vld [vmem:[#allocation42_spill] sm:$0xff] }
 0x482   :  { %v2879_v32 = vpop.f32.mrb[138].mxu1  ;;  %3593 = vmax.xlane.f32.xlu0 %v3592_v59 }
 0x483   :  { %v3526_v21 = vmul.f32 0.125, %v2879_v32  ;;  %v6302_v14 = vpop.f32.mrb[139].mxu1  ;;  %v3598_v24 = vsel %vm1582_vm3, %v8248_v63, -inf  ;;  %v8255_v46 = vadd.f32 %v3525_v9, %v9314_v28 }
 0x484   :  { %3599 = vmax.xlane.f32.xlu1 %v3598_v24  ;;  %v2929_v47 = vpop.f32.mrb[100].mxu0 }
 0x485   :  { %v8258_v27 = vadd.f32 %v3526_v21, %v9314_v28  ;;  %v3527_v62 = vmul.f32 0.125, %v2929_v47  ;;  %v6307_v20 = vpop.f32.mrb[101].mxu0  ;;  %v3601_v32 = vsel %vm1582_vm3, %v8255_v46, -inf }
 0x486   :  { %3596 = vmax.xlane.f32.xlu0 %v3595_v53  ;;  %v2932_v3 = vpop.f32.mrb[102].mxu0  ;;  %v9316_v20 = vld [vmem:[#allocation43_spill] sm:$0xff] }
 0x487   :  { %v3528_v60 = vmul.f32 0.125, %v2932_v3  ;;  %v6308_v61 = vpop.f32.mrb[103].mxu0  ;;  %v3604_v23 = vsel %vm1582_vm3, %v8258_v27, -inf  ;;  %v8265_v29 = vadd.f32 %v3527_v62, %v9315_v51 }
 0x488   :  { %v2982_v1 = vpop.f32.mrb[140].mxu1  ;;  %3605 = vmax.xlane.f32.xlu1 %v3604_v23 }
 0x489   :  { %v8268_v9 = vadd.f32 %v3528_v60, %v9315_v51  ;;  %v3529_v49 = vmul.f32 0.125, %v2982_v1  ;;  %v6313_v59 = vpop.f32.mrb[141].mxu1  ;;  %v3607_v61 = vsel %vm1582_vm3, %v8265_v29, -inf }
 0x48a   :  { %v2985_v21 = vpop.f32.mrb[142].mxu1  ;;  %3602 = vmax.xlane.f32.xlu0 %v3601_v32 }
 0x48b   :  { %v3530_v14 = vmul.f32 0.125, %v2985_v21  ;;  %v6314_v24 = vpop.f32.mrb[143].mxu1  ;;  %v3610_v47 = vsel %vm1582_vm3, %v8268_v9, -inf  ;;  %v8275_v62 = vadd.f32 %v3529_v49, %v9316_v20  ;;  %v9317_v21 = vld [vmem:[#allocation44_spill] sm:$0xff] }
 0x48c   :  { %3611 = vmax.xlane.f32.xlu1 %v3610_v47  ;;  %v3035_v28 = vpop.f32.mrb[104].mxu0 }
 0x48d   :  { %v8278_v53 = vadd.f32 %v3530_v14, %v9316_v20  ;;  %v3531_v3 = vmul.f32 0.125, %v3035_v28  ;;  %v6319_v60 = vpop.f32.mrb[105].mxu0  ;;  %v3613_v28 = vsel %vm1582_vm3, %v8275_v62, -inf }
 0x48e   :  { %3608 = vmax.xlane.f32.xlu0 %v3607_v61  ;;  %v3038_v23 = vpop.f32.mrb[106].mxu0 }
 0x48f   :  { %v3532_v1 = vmul.f32 0.125, %v3038_v23  ;;  %v6320_v51 = vpop.f32.mrb[107].mxu0  ;;  %v3616_v59 = vsel %vm1582_vm3, %v8278_v53, -inf  ;;  %v8285_v49 = vadd.f32 %v3531_v3, %v9317_v21 }
 0x490   :  { %v3088_v32 = vpop.f32.mrb[144].mxu1  ;;  %3617 = vmax.xlane.f32.xlu1 %v3616_v59  ;;  %v9318_v59 = vld [vmem:[#allocation45_spill] sm:$0xff] }
 0x491   :  { %v8288_v14 = vadd.f32 %v3532_v1, %v9317_v21  ;;  %v3533_v24 = vmul.f32 0.125, %v3088_v32  ;;  %v6325_v47 = vpop.f32.mrb[145].mxu1 }
 0x492   :  { %v3091_v20 = vpop.f32.mrb[146].mxu1  ;;  %3614 = vmax.xlane.f32.xlu0 %v3613_v28  ;;  %v3619_v47 = vsel %vm1582_vm3, %v8285_v49, -inf }
 0x493   :  { %v3534_v60 = vmul.f32 0.125, %v3091_v20  ;;  %v6326_v61 = vpop.f32.mrb[147].mxu1  ;;  %v3622_v23 = vsel %vm1582_vm3, %v8288_v14, -inf  ;;  %v8295_v3 = vadd.f32 %v3533_v24, %v9318_v59 }
 0x494   :  { %3623 = vmax.xlane.f32.xlu1 %v3622_v23  ;;  %v3141_v51 = vpop.f32.mrb[108].mxu0 }
 0x495   :  { %v8298_v1 = vadd.f32 %v3534_v60, %v9318_v59  ;;  %v3535_v32 = vmul.f32 0.125, %v3141_v51  ;;  %v6331_v21 = vpop.f32.mrb[109].mxu0 }
 0x496   :  { %3620 = vmax.xlane.f32.xlu0 %v3619_v47  ;;  %v3144_v28 = vpop.f32.mrb[110].mxu0  ;;  %v3625_v21 = vsel %vm1582_vm3, %v8295_v3, -inf }
 0x497   :  { %v3536_v20 = vmul.f32 0.125, %v3144_v28  ;;  %v6332_v61 = vpop.f32.mrb[111].mxu0  ;;  %v3628_v4 = vsel %vm1582_vm3, %v8298_v1, -inf  ;;  %v8305_v24 = vadd.f32 %v3535_v32, %v9319_v54 }
 0x498   :  { %v3194_v23 = vpop.f32.mrb[148].mxu1  ;;  %3629 = vmax.xlane.f32.xlu1 %v3628_v4 }
 0x499   :  { %v8308_v60 = vadd.f32 %v3536_v20, %v9319_v54  ;;  %v3537_v51 = vmul.f32 0.125, %v3194_v23  ;;  %v6337_v59 = vpop.f32.mrb[149].mxu1 }
 0x49a   :  { %v3197_v47 = vpop.f32.mrb[150].mxu1  ;;  %3626 = vmax.xlane.f32.xlu0 %v3625_v21  ;;  %v3631_v59 = vsel %vm1582_vm3, %v8305_v24, -inf }
 0x49b   :  { %v3538_v28 = vmul.f32 0.125, %v3197_v47  ;;  %v6338_v61 = vpop.f32.mrb[151].mxu1  ;;  %v3634_v8 = vsel %vm1582_vm3, %v8308_v60, -inf  ;;  %v8315_v32 = vadd.f32 %v3537_v51, %v9320_v0 }
 0x49c   :  { %3635 = vmax.xlane.f32.xlu1 %v3634_v8  ;;  %v3247_v4 = vpop.f32.mrb[112].mxu0 }
 0x49d   :  { %v8318_v54 = vadd.f32 %v3538_v28, %v9320_v0  ;;  %v3539_v20 = vmul.f32 0.125, %v3247_v4  ;;  %v6343_v23 = vpop.f32.mrb[113].mxu0 }
 0x49e   :  { %3632 = vmax.xlane.f32.xlu0 %v3631_v59  ;;  %v3250_v21 = vpop.f32.mrb[114].mxu0  ;;  %v3637_v23 = vsel %vm1582_vm3, %v8315_v32, -inf }
 0x49f   :  { %v3540_v47 = vmul.f32 0.125, %v3250_v21  ;;  %v6344_v61 = vpop.f32.mrb[115].mxu0  ;;  %v3640_v19 = vsel %vm1582_vm3, %v8318_v54, -inf  ;;  %v8325_v51 = vadd.f32 %v3539_v20, %v9321_v44 }
 0x4a0   :  { %v3300_v8 = vpop.f32.mrb[152].mxu1  ;;  %3641 = vmax.xlane.f32.xlu1 %v3640_v19 }
 0x4a1   :  { %v8328_v0 = vadd.f32 %v3540_v47, %v9321_v44  ;;  %v3541_v28 = vmul.f32 0.125, %v3300_v8  ;;  %v6349_v4 = vpop.f32.mrb[153].mxu1 }
 0x4a2   :  { %v3303_v59 = vpop.f32.mrb[154].mxu1  ;;  %3638 = vmax.xlane.f32.xlu0 %v3637_v23  ;;  %v3643_v4 = vsel %vm1582_vm3, %v8325_v51, -inf }
 0x4a3   :  { %v3542_v21 = vmul.f32 0.125, %v3303_v59  ;;  %v6350_v61 = vpop.f32.mrb[155].mxu1  ;;  %v3646_v56 = vsel %vm1582_vm3, %v8328_v0, -inf  ;;  %v8335_v20 = vadd.f32 %v3541_v28, %v9322_v11 }
 0x4a4   :  { %3647 = vmax.xlane.f32.xlu1 %v3646_v56  ;;  %v3353_v19 = vpop.f32.mrb[116].mxu0 }
 0x4a5   :  { %v8338_v44 = vadd.f32 %v3542_v21, %v9322_v11  ;;  %v3543_v47 = vmul.f32 0.125, %v3353_v19  ;;  %v6355_v8 = vpop.f32.mrb[117].mxu0 }
 0x4a6   :  { %3644 = vmax.xlane.f32.xlu0 %v3643_v4  ;;  %v3356_v23 = vpop.f32.mrb[118].mxu0  ;;  %v3649_v8 = vsel %vm1582_vm3, %v8335_v20, -inf }
 0x4a7   :  { %v3544_v59 = vmul.f32 0.125, %v3356_v23  ;;  %v6356_v61 = vpop.f32.mrb[119].mxu0  ;;  %v3652_v2 = vsel %vm1582_vm3, %v8338_v44, -inf  ;;  %v8345_v28 = vadd.f32 %v3543_v47, %v9323_v34 }
 0x4a8   :  { %v3406_v56 = vpop.f32.mrb[156].mxu1  ;;  %3653 = vmax.xlane.f32.xlu1 %v3652_v2 }
 0x4a9   :  { %v8348_v11 = vadd.f32 %v3544_v59, %v9323_v34  ;;  %v3545_v21 = vmul.f32 0.125, %v3406_v56  ;;  %v6361_v19 = vpop.f32.mrb[157].mxu1 }
 0x4aa   :  { %v3409_v4 = vpop.f32.mrb[158].mxu1  ;;  %3650 = vmax.xlane.f32.xlu0 %v3649_v8  ;;  %v3655_v19 = vsel %vm1582_vm3, %v8345_v28, -inf }
 0x4ab   :  { %v3546_v23 = vmul.f32 0.125, %v3409_v4  ;;  %v6362_v61 = vpop.f32.mrb[159].mxu1  ;;  %v3658_v55 = vsel %vm1582_vm3, %v8348_v11, -inf  ;;  %v8355_v47 = vadd.f32 %v3545_v21, %v9324_v39 }
 0x4ac   :  { %3659 = vmax.xlane.f32.xlu1 %v3658_v55  ;;  %v3459_v2 = vpop.f32.mrb[120].mxu0 }
 0x4ad   :  { %v8358_v34 = vadd.f32 %v3546_v23, %v9324_v39  ;;  %v3547_v59 = vmul.f32 0.125, %v3459_v2  ;;  %v6367_v56 = vpop.f32.mrb[121].mxu0 }
 0x4ae   :  { %3656 = vmax.xlane.f32.xlu0 %v3655_v19  ;;  %v3462_v8 = vpop.f32.mrb[122].mxu0  ;;  %v3661_v56 = vsel %vm1582_vm3, %v8355_v47, -inf }
 0x4af   :  { %v3548_v4 = vmul.f32 0.125, %v3462_v8  ;;  %v6368_v61 = vpop.f32.mrb[123].mxu0  ;;  %v3664_v6 = vsel %vm1582_vm3, %v8358_v34, -inf  ;;  %v8365_v21 = vadd.f32 %v3547_v59, %v9325_v18 }
 0x4b0   :  { %v3512_v55 = vpop.f32.mrb[160].mxu1  ;;  %3665 = vmax.xlane.f32.xlu1 %v3664_v6  ;;  %v9326_v6 = vld [vmem:[#allocation53_spill] sm:$0xff] }
 0x4b1   :  { %v8368_v39 = vadd.f32 %v3548_v4, %v9325_v18  ;;  %v3549_v23 = vmul.f32 0.125, %v3512_v55  ;;  %v6373_v2 = vpop.f32.mrb[161].mxu1  ;;  %v3667_v18 = vsel %vm1582_vm3, %v8365_v21, -inf }
 0x4b2   :  { %v3515_v19 = vpop.f32.mrb[162].mxu1  ;;  %3662 = vmax.xlane.f32.xlu0 %v3661_v56  ;;  %v8394_v2 = vpop.permute.xlu0 %4048 }
 0x4b3   :  { %v3550_v8 = vmul.f32 0.125, %v3515_v19  ;;  %v6374_v61 = vpop.f32.mrb[163].mxu1  ;;  %v3670_v48 = vsel %vm1582_vm3, %v8368_v39, -inf  ;;  %v8375_v5 = vadd.f32 %v3549_v23, %v9326_v6 }
 0x4b4   :  { %3671 = vmax.xlane.f32.xlu1 %v3670_v48  ;;  %v8390_v48 = vpop.permute.xlu1 %4096 }
 0x4b5   :  { %v8378_v59 = vadd.f32 %v3550_v8, %v9326_v6  ;;  %v3673_v55 = vsel %vm1582_vm3, %v8375_v5, -inf }
 0x4b6   :  { %3668 = vmax.xlane.f32.xlu0 %v3667_v18  ;;  %v8398_v19 = vpop.permute.xlu0 %4144 }
 0x4b7   :  { %v3676_v4 = vsel %vm1582_vm3, %v8378_v59, -inf }
 0x4b8   :  { %3677 = vmax.xlane.f32.xlu1 %v3676_v4  ;;  %v8392_v23 = vpop.permute.xlu1 %4192 }
 0x4ba   :  { %3674 = vmax.xlane.f32.xlu0 %v3673_v55  ;;  %v8402_v61 = vpop.permute.xlu0 %4240 }
 0x4bc   :  { %v8396_v56 = vpop.permute.xlu1 %4288 }
 0x4c0   :  { %v8400_v8 = vpop.permute.xlu1 %4384 }
 0x4c4   :  { %v8404_v6 = vpop.permute.xlu1 %4432 }
 0x4c8   :  { %v8408_v18 = vpop.permute.xlu1 %4480 }
 0x4c9   :  { %4576 = vrot.lane.b32.xlu1 %v9281_v15, %s7040_s1  ;;  %v8406_v15 = vpop.permute.xlu0 %4336 }
 0x4d0   :  { %4528 = vrot.lane.b32.xlu0 %v9280_v25, %s7040_s1 }
 0x507   :  { %v3585_v25 = vpop.xlane.xlu0 %3584 }
 0x508   :  { %v3679_v4 = vsub.f32 %v8227_v40, %v3585_v25 }
 0x509   :  { %v3588_v55 = vpop.xlane.xlu1 %3587 }
 0x50a   :  { %v3711_v12 = vmul.f32 1.442695, %v3679_v4  ;;  %v3680_v35 = vsub.f32 %v8230_v22, %v3588_v55 }
 0x50b   :  { %v3591_v30 = vpop.xlane.xlu0 %3590 }
 0x50c   :  { %6756 = vpow2.f32 %v3711_v12  ;;  %v3713_v17 = vmul.f32 1.442695, %v3680_v35  ;;  %v3681_v37 = vsub.f32 %v8235_v16, %v3591_v30 }
 0x50e   :  { %6758 = vpow2.f32 %v3713_v17  ;;  %v3715_v13 = vmul.f32 1.442695, %v3681_v37 }
 0x50f   :  { %v3594_v41 = vpop.xlane.xlu0 %3593 }
 0x510   :  { %6760 = vpow2.f32 %v3715_v13  ;;  %v3682_v57 = vsub.f32 %v8240_v52, %v3594_v41 }
 0x511   :  { %v3600_v38 = vpop.xlane.xlu1 %3599 }
 0x512   :  { %v3717_v50 = vmul.f32 1.442695, %v3682_v57  ;;  %v3684_v31 = vsub.f32 %v8248_v63, %v3600_v38 }
 0x513   :  { %v3597_v40 = vpop.xlane.xlu0 %3596 }
 0x514   :  { %6762 = vpow2.f32 %v3717_v50  ;;  %v3721_v25 = vmul.f32 1.442695, %v3684_v31  ;;  %v3683_v22 = vsub.f32 %v8245_v7, %v3597_v40 }
 0x515   :  { %v3606_v4 = vpop.xlane.xlu1 %3605 }
 0x516   :  { %v8416_v12 = vpop.eup %6756  ;;  %6764 = vpow2.f32 %v3721_v25  ;;  %v3719_v30 = vmul.f32 1.442695, %v3683_v22  ;;  %v3686_v37 = vsub.f32 %v8258_v27, %v3606_v4 }
 0x517   :  { %v3603_v17 = vpop.xlane.xlu0 %3602  ;;  %v3775_v41 = vsel %vm1582_vm3, %v8416_v12, 0.0 }
 0x518   :  { %v8421_v13 = vpop.eup %6758  ;;  %6766 = vpow2.f32 %v3719_v30  ;;  %v3725_v38 = vmul.f32 1.442695, %v3686_v37  ;;  %v3685_v50 = vsub.f32 %v8255_v46, %v3603_v17  ;;  %3776 = vadd.xlane.f32.xlu0 %v3775_v41 }
 0x519   :  { %v3612_v31 = vpop.xlane.xlu1 %3611  ;;  %v3778_v57 = vsel %vm1582_vm3, %v8421_v13, 0.0 }
 0x51a   :  { %v8426_v35 = vpop.eup %6760  ;;  %6768 = vpow2.f32 %v3725_v38  ;;  %v3723_v16 = vmul.f32 1.442695, %v3685_v50  ;;  %v3688_v52 = vsub.f32 %v8268_v9, %v3612_v31  ;;  %3779 = vadd.xlane.f32.xlu1 %v3778_v57 }
 0x51b   :  { %v3609_v7 = vpop.xlane.xlu0 %3608  ;;  %v3781_v63 = vsel %vm1582_vm3, %v8426_v35, 0.0 }
 0x51c   :  { %6770 = vpow2.f32 %v3723_v16  ;;  %v3729_v27 = vmul.f32 1.442695, %v3688_v52  ;;  %v3687_v46 = vsub.f32 %v8265_v29, %v3609_v7  ;;  %3782 = vadd.xlane.f32.xlu0 %v3781_v63 }
 0x51d   :  { %v3618_v55 = vpop.xlane.xlu1 %3617 }
 0x51e   :  { %v8432_v40 = vpop.eup %6762  ;;  %6772 = vpow2.f32 %v3729_v27  ;;  %v3727_v25 = vmul.f32 1.442695, %v3687_v46  ;;  %v3690_v22 = vsub.f32 %v8278_v53, %v3618_v55 }
 0x51f   :  { %v3615_v4 = vpop.xlane.xlu0 %3614  ;;  %v3784_v9 = vsel %vm1582_vm3, %v8432_v40, 0.0 }
 0x520   :  { %v8437_v30 = vpop.eup %6764  ;;  %6774 = vpow2.f32 %v3727_v25  ;;  %v3733_v37 = vmul.f32 1.442695, %v3690_v22  ;;  %v3689_v17 = vsub.f32 %v8275_v62, %v3615_v4  ;;  %3785 = vadd.xlane.f32.xlu1 %v3784_v9 }
 0x521   :  { %v3624_v29 = vpop.xlane.xlu1 %3623  ;;  %v3790_v57 = vsel %vm1582_vm3, %v8437_v30, 0.0 }
 0x522   :  { %v8440_v41 = vpop.eup %6766  ;;  %6776 = vpow2.f32 %v3733_v37  ;;  %v3731_v38 = vmul.f32 1.442695, %v3689_v17  ;;  %v3692_v50 = vsub.f32 %v8288_v14, %v3624_v29 }
 0x523   :  { %v3621_v31 = vpop.xlane.xlu0 %3620  ;;  %v3787_v53 = vsel %vm1582_vm3, %v8440_v41, 0.0 }
 0x524   :  { %v8447_v16 = vpop.eup %6768  ;;  %6778 = vpow2.f32 %v3731_v38  ;;  %v3737_v52 = vmul.f32 1.442695, %v3692_v50  ;;  %v3691_v62 = vsub.f32 %v8285_v49, %v3621_v31  ;;  %3788 = vadd.xlane.f32.xlu0 %v3787_v53  ;;  %3791 = vadd.xlane.f32.xlu1 %v3790_v57 }
 0x525   :  { %v3630_v7 = vpop.xlane.xlu1 %3629  ;;  %v3796_v25 = vsel %vm1582_vm3, %v8447_v16, 0.0 }
 0x526   :  { %v8450_v63 = vpop.eup %6770  ;;  %6780 = vpow2.f32 %v3737_v52  ;;  %v3735_v14 = vmul.f32 1.442695, %v3691_v62  ;;  %v3694_v27 = vsub.f32 %v8298_v1, %v3630_v7 }
 0x527   :  { %v3627_v46 = vpop.xlane.xlu0 %3626  ;;  %v3793_v55 = vsel %vm1582_vm3, %v8450_v63, 0.0 }
 0x528   :  { %v8457_v22 = vpop.eup %6772  ;;  %6782 = vpow2.f32 %v3735_v14  ;;  %v3741_v49 = vmul.f32 1.442695, %v3694_v27  ;;  %v3693_v4 = vsub.f32 %v8295_v3, %v3627_v46  ;;  %3794 = vadd.xlane.f32.xlu0 %v3793_v55  ;;  %3797 = vadd.xlane.f32.xlu1 %v3796_v25 }
 0x529   :  { %v3636_v9 = vpop.xlane.xlu1 %3635  ;;  %v3802_v38 = vsel %vm1582_vm3, %v8457_v22, 0.0 }
 0x52a   :  { %v8460_v37 = vpop.eup %6774  ;;  %6784 = vpow2.f32 %v3741_v49  ;;  %v3739_v1 = vmul.f32 1.442695, %v3693_v4  ;;  %v3696_v57 = vsub.f32 %v8308_v60, %v3636_v9 }
 0x52b   :  { %v3633_v17 = vpop.xlane.xlu0 %3632  ;;  %v3799_v29 = vsel %vm1582_vm3, %v8460_v37, 0.0 }
 0x52c   :  { %v8466_v50 = vpop.eup %6776  ;;  %6786 = vpow2.f32 %v3739_v1  ;;  %v3695_v31 = vsub.f32 %v8305_v24, %v3633_v17  ;;  %3800 = vadd.xlane.f32.xlu0 %v3799_v29  ;;  %3803 = vadd.xlane.f32.xlu1 %v3802_v38  ;;  %v3745_v49 = vmul.f32 1.442695, %v3696_v57 }
 0x52d   :  { %v3642_v3 = vpop.xlane.xlu1 %3641  ;;  %v3808_v27 = vsel %vm1582_vm3, %v8466_v50, 0.0 }
 0x52e   :  { %v8469_v53 = vpop.eup %6778  ;;  %v3743_v52 = vmul.f32 1.442695, %v3695_v31  ;;  %v3698_v62 = vsub.f32 %v8318_v54, %v3642_v3 }
 0x52f   :  { %v3639_v7 = vpop.xlane.xlu0 %3638  ;;  %v3805_v14 = vsel %vm1582_vm3, %v8469_v53, 0.0 }
 0x530   :  { %v8477_v46 = vpop.eup %6780  ;;  %6788 = vpow2.f32 %v3743_v52  ;;  %v3749_v24 = vmul.f32 1.442695, %v3698_v62  ;;  %v3697_v55 = vsub.f32 %v8315_v32, %v3639_v7  ;;  %3806 = vadd.xlane.f32.xlu0 %v3805_v14  ;;  %3809 = vadd.xlane.f32.xlu1 %v3808_v27 }
 0x531   :  { %v3648_v25 = vpop.xlane.xlu1 %3647  ;;  %v3814_v1 = vsel %vm1582_vm3, %v8477_v46, 0.0 }
 0x532   :  { %v8480_v60 = vpop.eup %6782  ;;  %6790 = vpow2.f32 %v3749_v24  ;;  %v3747_v54 = vmul.f32 1.442695, %v3697_v55  ;;  %v3700_v31 = vsub.f32 %v8328_v0, %v3648_v25 }
 0x533   :  { %v3645_v4 = vpop.xlane.xlu0 %3644  ;;  %v3811_v9 = vsel %vm1582_vm3, %v8480_v60, 0.0 }
 0x534   :  { %v8486_v17 = vpop.eup %6784  ;;  %6792 = vpow2.f32 %v3747_v54  ;;  %v3699_v32 = vsub.f32 %v8325_v51, %v3645_v4  ;;  %3812 = vadd.xlane.f32.xlu0 %v3811_v9  ;;  %3815 = vadd.xlane.f32.xlu1 %v3814_v1  ;;  %v3753_v0 = vmul.f32 1.442695, %v3700_v31 }
 0x535   :  { %v3654_v29 = vpop.xlane.xlu1 %3653  ;;  %6794 = vpow2.f32 %v3745_v49  ;;  %v3820_v7 = vsel %vm1582_vm3, %v8486_v17, 0.0 }
 0x536   :  { %v8489_v38 = vpop.eup %6786  ;;  %v3751_v3 = vmul.f32 1.442695, %v3699_v32  ;;  %v3702_v57 = vsub.f32 %v8338_v44, %v3654_v29 }
 0x537   :  { %v3651_v52 = vpop.xlane.xlu0 %3650  ;;  %v3817_v62 = vsel %vm1582_vm3, %v8489_v38, 0.0 }
 0x538   :  { %6796 = vpow2.f32 %v3751_v3  ;;  %v3757_v51 = vmul.f32 1.442695, %v3702_v57  ;;  %v3701_v14 = vsub.f32 %v8335_v20, %v3651_v52  ;;  %3818 = vadd.xlane.f32.xlu0 %v3817_v62  ;;  %3821 = vadd.xlane.f32.xlu1 %v3820_v7 }
 0x539   :  { %v3660_v27 = vpop.xlane.xlu1 %3659 }
 0x53a   :  { %v8498_v24 = vpop.eup %6788  ;;  %6798 = vpow2.f32 %v3757_v51  ;;  %v3755_v55 = vmul.f32 1.442695, %v3701_v14  ;;  %v3704_v9 = vsub.f32 %v8348_v11, %v3660_v27 }
 0x53b   :  { %v3657_v44 = vpop.xlane.xlu0 %3656  ;;  %v3823_v25 = vsel %vm1582_vm3, %v8498_v24, 0.0 }
 0x53c   :  { %v8502_v49 = vpop.eup %6790  ;;  %6800 = vpow2.f32 %v3755_v55  ;;  %v3703_v54 = vsub.f32 %v8345_v28, %v3657_v44  ;;  %3824 = vadd.xlane.f32.xlu1 %v3823_v25  ;;  %v3761_v7 = vmul.f32 1.442695, %v3704_v9 }
 0x53d   :  { %v3666_v4 = vpop.xlane.xlu1 %3665  ;;  %6802 = vpow2.f32 %v3753_v0  ;;  %v3832_v3 = vsel %vm1582_vm3, %v8502_v49, 0.0 }
 0x53e   :  { %v8505_v20 = vpop.eup %6792  ;;  %v3759_v1 = vmul.f32 1.442695, %v3703_v54  ;;  %v3706_v32 = vsub.f32 %v8358_v34, %v3666_v4 }
 0x53f   :  { %v3663_v29 = vpop.xlane.xlu0 %3662  ;;  %v3829_v31 = vsel %vm1582_vm3, %v8505_v20, 0.0  ;;  %v8513_v57 = vpop.eup %6794 }
 0x540   :  { %6804 = vpow2.f32 %v3759_v1  ;;  %v3765_v28 = vmul.f32 1.442695, %v3706_v32  ;;  %v3705_v52 = vsub.f32 %v8355_v47, %v3663_v29  ;;  %3830 = vadd.xlane.f32.xlu0 %v3829_v31  ;;  %3833 = vadd.xlane.f32.xlu1 %v3832_v3  ;;  %v3826_v14 = vsel %vm1582_vm3, %v8513_v57, 0.0 }
 0x541   :  { %v3672_v62 = vpop.xlane.xlu1 %3671 }
 0x542   :  { %v8516_v11 = vpop.eup %6796  ;;  %6806 = vpow2.f32 %v3765_v28  ;;  %v3763_v34 = vmul.f32 1.442695, %v3705_v52  ;;  %v3708_v25 = vsub.f32 %v8368_v39, %v3672_v62 }
 0x543   :  { %v3669_v51 = vpop.xlane.xlu0 %3668  ;;  %v3835_v27 = vsel %vm1582_vm3, %v8516_v11, 0.0 }
 0x544   :  { %v8522_v0 = vpop.eup %6798  ;;  %6808 = vpow2.f32 %v3763_v34  ;;  %v3707_v47 = vsub.f32 %v8365_v21, %v3669_v51  ;;  %3827 = vadd.xlane.f32.xlu0 %v3826_v14  ;;  %3836 = vadd.xlane.f32.xlu1 %v3835_v27  ;;  %v3769_v39 = vmul.f32 1.442695, %v3708_v25 }
 0x545   :  { %v3678_v55 = vpop.xlane.xlu1 %3677  ;;  %6810 = vpow2.f32 %v3761_v7  ;;  %v3844_v32 = vsel %vm1582_vm3, %v8522_v0, 0.0 }
 0x546   :  { %v8525_v44 = vpop.eup %6800  ;;  %v3767_v54 = vmul.f32 1.442695, %v3707_v47  ;;  %v3710_v4 = vsub.f32 %v8378_v59, %v3678_v55 }
 0x547   :  { %v3675_v9 = vpop.xlane.xlu0 %3674  ;;  %v3841_v1 = vsel %vm1582_vm3, %v8525_v44, 0.0  ;;  %v8533_v29 = vpop.eup %6802 }
 0x548   :  { %6812 = vpow2.f32 %v3767_v54  ;;  %v3773_v21 = vmul.f32 1.442695, %v3710_v4  ;;  %v3709_v31 = vsub.f32 %v8375_v5, %v3675_v9  ;;  %3842 = vadd.xlane.f32.xlu0 %v3841_v1  ;;  %3845 = vadd.xlane.f32.xlu1 %v3844_v32  ;;  %v3838_v28 = vsel %vm1582_vm3, %v8533_v29, 0.0 }
 0x54a   :  { %v8536_v3 = vpop.eup %6804  ;;  %6814 = vpow2.f32 %v3773_v21  ;;  %v3771_v59 = vmul.f32 1.442695, %v3709_v31  ;;  %v8576_v21 = vpop.permute.xlu1 %4576 }
 0x54b   :  { %v3847_v52 = vsel %vm1582_vm3, %v8536_v3, 0.0  ;;  %v8574_v32 = vpop.permute.xlu0 %4528 }
 0x54c   :  { %v8542_v62 = vpop.eup %6806  ;;  %6816 = vpow2.f32 %v3771_v59  ;;  %3839 = vadd.xlane.f32.xlu0 %v3838_v28  ;;  %3848 = vadd.xlane.f32.xlu1 %v3847_v52 }
 0x54d   :  { %6818 = vpow2.f32 %v3769_v39  ;;  %v3856_v34 = vsel %vm1582_vm3, %v8542_v62, 0.0 }
 0x54e   :  { %v8544_v7 = vpop.eup %6808 }
 0x54f   :  { %v3853_v5 = vsel %vm1582_vm3, %v8544_v7, 0.0  ;;  %v8550_v51 = vpop.eup %6810 }
 0x550   :  { %3854 = vadd.xlane.f32.xlu0 %v3853_v5  ;;  %3857 = vadd.xlane.f32.xlu1 %v3856_v34  ;;  %v3850_v27 = vsel %vm1582_vm3, %v8550_v51, 0.0 }
 0x552   :  { %v8552_v14 = vpop.eup %6812 }
 0x553   :  { %v3859_v47 = vsel %vm1582_vm3, %v8552_v14, 0.0 }
 0x554   :  { %v8558_v55 = vpop.eup %6814  ;;  %3851 = vadd.xlane.f32.xlu0 %v3850_v27  ;;  %3860 = vadd.xlane.f32.xlu1 %v3859_v47 }
 0x555   :  { %v3868_v4 = vsel %vm1582_vm3, %v8558_v55, 0.0 }
 0x556   :  { %v8560_v25 = vpop.eup %6816 }
 0x557   :  { %v3865_v54 = vsel %vm1582_vm3, %v8560_v25, 0.0  ;;  %v8566_v9 = vpop.eup %6818 }
 0x558   :  { %3866 = vadd.xlane.f32.xlu0 %v3865_v54  ;;  %3869 = vadd.xlane.f32.xlu1 %v3868_v4  ;;  %v3862_v1 = vsel %vm1582_vm3, %v8566_v9, 0.0 }
 0x55c   :  { %3863 = vadd.xlane.f32.xlu0 %v3862_v1 }
 0x569   :  { %4672 = vrot.lane.b32.xlu1 %v9283_v45, %s7040_s1 }
 0x572   :  { %4624 = vrot.lane.b32.xlu0 %v9282_v33, %s7040_s1 }
 0x5a5   :  { %v3777_v31 = vpop.xlane.xlu0 %3776 }
 0x5a6   :  { %6820 = vrcp.f32 %v3777_v31 }
 0x5a7   :  { %v3780_v39 = vpop.xlane.xlu1 %3779 }
 0x5a8   :  { %6822 = vrcp.f32 %v3780_v39 }
 0x5a9   :  { %v3783_v59 = vpop.xlane.xlu0 %3782 }
 0x5aa   :  { %6824 = vrcp.f32 %v3783_v59 }
 0x5ad   :  { %v3786_v28 = vpop.xlane.xlu1 %3785 }
 0x5ae   :  { %6826 = vrcp.f32 %v3786_v28 }
 0x5b0   :  { %v6821_v52 = vpop.eup %6820 }
 0x5b1   :  { %v3789_v5 = vpop.xlane.xlu0 %3788  ;;  %v3792_v34 = vpop.xlane.xlu1 %3791  ;;  %v3903_v45 = vmul.f32 %v6821_v52, %v8416_v12 }
 0x5b2   :  { %v6823_v27 = vpop.eup %6822  ;;  %6828 = vrcp.f32 %v3789_v5 }
 0x5b3   :  { %v3904_v33 = vmul.f32 %v6823_v27, %v8421_v13  ;;  %6830 = vrcp.f32 %v3792_v34 }
 0x5b4   :  { %v6825_v1 = vpop.eup %6824 }
 0x5b5   :  { %v3795_v47 = vpop.xlane.xlu0 %3794  ;;  %v3798_v54 = vpop.xlane.xlu1 %3797  ;;  %v3935_v4 = vpack.c.bf16 %v3904_v33, %v3903_v45  ;;  %v3905_v39 = vmul.f32 %v6825_v1, %v8426_v35 }
 0x5b6   :  { %6832 = vrcp.f32 %v3795_v47 }
 0x5b7   :  { %6834 = vrcp.f32 %v3798_v54  ;;  %6378 = vmatmul.mubr.msk.bf16.vlgmr.msra.gmra.mrb[124].mxu0 %vm1582_vm3, %v3935_v4 }
 0x5b8   :  { %v6827_v31 = vpop.eup %6826  ;;  %6388 = vmatpush3.bf16.msra.mxu0 %v8394_v2  ;;  %6389 = vmatprep.mubr.msk.bf16.mxu0 %vm7038_vm1, %v9253_v42 }
 0x5b9   :  { %v3906_v12 = vmul.f32 %v6827_v31, %v8432_v40  ;;  %v3801_v13 = vpop.xlane.xlu0 %3800  ;;  %v3804_v59 = vpop.xlane.xlu1 %3803  ;;  %6399 = vmatprep.subr.bf16.mxu0 %v9253_v42 }
 0x5ba   :  { %6836 = vrcp.f32 %v3801_v13 }
 0x5bb   :  { %6838 = vrcp.f32 %v3804_v59  ;;  %v3936_v28 = vpack.c.bf16 %v3906_v12, %v3905_v39 }
 0x5bc   :  { %v6829_v52 = vpop.eup %6828 }
 0x5bd   :  { %v6831_v5 = vpop.eup %6830  ;;  %v3907_v34 = vmul.f32 %v6829_v52, %v8440_v41  ;;  %v3807_v27 = vpop.xlane.xlu0 %3806  ;;  %6384 = vmatmul.mubr.msk.bf16.vlgmr.msra.gmra.mrb[164].mxu1 %vm1582_vm3, %v3936_v28 }
 0x5be   :  { %v3810_v2 = vpop.xlane.xlu1 %3809  ;;  %v3908_v45 = vmul.f32 %v6831_v5, %v8437_v30  ;;  %6840 = vrcp.f32 %v3807_v27  ;;  %6394 = vmatpush3.bf16.msra.mxu1 %v8390_v48  ;;  %6395 = vmatprep.mubr.msk.bf16.mxu1 %vm7038_vm1, %v9253_v42 }
 0x5bf   :  { %6842 = vrcp.f32 %v3810_v2  ;;  %6405 = vmatprep.subr.bf16.mxu1 %v9253_v42 }
 0x5c0   :  { %v6833_v35 = vpop.eup %6832  ;;  %v3937_v40 = vpack.c.bf16 %v3908_v45, %v3907_v34 }
 0x5c1   :  { %v6835_v33 = vpop.eup %6834  ;;  %v3909_v41 = vmul.f32 %v6833_v35, %v8450_v63  ;;  %v3813_v47 = vpop.xlane.xlu0 %3812 }
 0x5c2   :  { %v3816_v54 = vpop.xlane.xlu1 %3815  ;;  %v3910_v4 = vmul.f32 %v6835_v33, %v8447_v16  ;;  %6844 = vrcp.f32 %v3813_v47  ;;  %6390 = vmatmul.mubr.msk.bf16.vlgmr.msra.gmra.mrb[128].mxu0 %vm1582_vm3, %v3937_v40 }
 0x5c3   :  { %6400 = vmatpush3.bf16.msra.mxu0 %v8398_v19  ;;  %6846 = vrcp.f32 %v3816_v54  ;;  %6401 = vmatprep.mubr.msk.bf16.mxu0 %vm7038_vm1, %v9253_v42 }
 0x5c4   :  { %v6837_v48 = vpop.eup %6836  ;;  %v3938_v30 = vpack.c.bf16 %v3910_v4, %v3909_v41  ;;  %6411 = vmatprep.subr.bf16.mxu0 %v9253_v42 }
 0x5c5   :  { %v6839_v1 = vpop.eup %6838  ;;  %v3911_v63 = vmul.f32 %v6837_v48, %v8460_v37  ;;  %v3819_v31 = vpop.xlane.xlu0 %3818 }
 0x5c6   :  { %v3822_v39 = vpop.xlane.xlu1 %3821  ;;  %v3912_v16 = vmul.f32 %v6839_v1, %v8457_v22  ;;  %6848 = vrcp.f32 %v3819_v31  ;;  %6396 = vmatmul.mubr.msk.bf16.vlgmr.msra.gmra.mrb[168].mxu1 %vm1582_vm3, %v3938_v30 }
 0x5c7   :  { %6406 = vmatpush3.bf16.msra.mxu1 %v8392_v23  ;;  %6850 = vrcp.f32 %v3822_v39  ;;  %6407 = vmatprep.mubr.msk.bf16.mxu1 %vm7038_vm1, %v9253_v42 }
 0x5c8   :  { %v6841_v19 = vpop.eup %6840  ;;  %v3939_v12 = vpack.c.bf16 %v3912_v16, %v3911_v63  ;;  %6417 = vmatprep.subr.bf16.mxu1 %v9253_v42 }
 0x5c9   :  { %v6843_v13 = vpop.eup %6842  ;;  %v3913_v37 = vmul.f32 %v6841_v19, %v8469_v53 }
 0x5ca   :  { %v3825_v59 = vpop.xlane.xlu1 %3824  ;;  %v3914_v28 = vmul.f32 %v6843_v13, %v8466_v50  ;;  %6402 = vmatmul.mubr.msk.bf16.vlgmr.msra.gmra.mrb[132].mxu0 %vm1582_vm3, %v3939_v12 }
 0x5cb   :  { %6412 = vmatpush3.bf16.msra.mxu0 %v8402_v61  ;;  %6413 = vmatprep.mubr.msk.bf16.mxu0 %vm7038_vm1, %v9253_v42 }
 0x5cc   :  { %v6845_v23 = vpop.eup %6844  ;;  %v3940_v22 = vpack.c.bf16 %v3914_v28, %v3913_v37  ;;  %6423 = vmatprep.subr.bf16.mxu0 %v9253_v42 }
 0x5cd   :  { %v6847_v52 = vpop.eup %6846  ;;  %v3915_v5 = vmul.f32 %v6845_v23, %v8480_v60  ;;  %v3831_v34 = vpop.xlane.xlu0 %3830 }
 0x5ce   :  { %v3834_v27 = vpop.xlane.xlu1 %3833  ;;  %v3916_v53 = vmul.f32 %v6847_v52, %v8477_v46  ;;  %6852 = vrcp.f32 %v3831_v34  ;;  %6408 = vmatmul.mubr.msk.bf16.vlgmr.msra.gmra.mrb[172].mxu1 %vm1582_vm3, %v3940_v22 }
 0x5cf   :  { %6418 = vmatpush3.bf16.msra.mxu1 %v8396_v56  ;;  %6854 = vrcp.f32 %v3834_v27  ;;  %6419 = vmatprep.mubr.msk.bf16.mxu1 %vm7038_vm1, %v9253_v42 }
 0x5d0   :  { %v6849_v61 = vpop.eup %6848  ;;  %6856 = vrcp.f32 %v3825_v59  ;;  %v3941_v50 = vpack.c.bf16 %v3916_v53, %v3915_v5  ;;  %6429 = vmatprep.subr.bf16.mxu1 %v9253_v42 }
 0x5d1   :  { %v6851_v2 = vpop.eup %6850  ;;  %v3917_v60 = vmul.f32 %v6849_v61, %v8489_v38  ;;  %v3828_v45 = vpop.xlane.xlu0 %3827 }
 0x5d2   :  { %v3837_v35 = vpop.xlane.xlu1 %3836  ;;  %v3918_v46 = vmul.f32 %v6851_v2, %v8486_v17  ;;  %6858 = vrcp.f32 %v3828_v45  ;;  %6414 = vmatmul.mubr.msk.bf16.vlgmr.msra.gmra.mrb[136].mxu0 %vm1582_vm3, %v3941_v50 }
 0x5d3   :  { %6424 = vmatpush3.bf16.msra.mxu0 %v8406_v15  ;;  %6425 = vmatprep.mubr.msk.bf16.mxu0 %vm7038_vm1, %v9253_v42 }
 0x5d4   :  { %v3942_v56 = vpack.c.bf16 %v3918_v46, %v3917_v60  ;;  %6435 = vmatprep.subr.bf16.mxu0 %v9253_v42 }
 0x5d5   :  { %v3843_v40 = vpop.xlane.xlu0 %3842 }
 0x5d6   :  { %v3846_v33 = vpop.xlane.xlu1 %3845  ;;  %6860 = vrcp.f32 %v3843_v40  ;;  %6420 = vmatmul.mubr.msk.bf16.vlgmr.msra.gmra.mrb[176].mxu1 %vm1582_vm3, %v3942_v56  ;;  %v6625_v56 = vld [vmem:[%s9133_s4 + $0x28] sm:$0xff]   ;;  %v6626_v40 = vld [vmem:[%s9133_s4 + $0x30] sm:$0xff]  }
 0x5d7   :  { %6430 = vmatpush3.bf16.msra.mxu1 %v8400_v8  ;;  %6862 = vrcp.f32 %v3846_v33  ;;  %6431 = vmatprep.mubr.msk.bf16.mxu1 %vm7038_vm1, %v9253_v42  ;;  %v6627_v33 = vld [vmem:[%s9133_s4 + $0x38] sm:$0xff]  }
 0x5d8   :  { %v6853_v17 = vpop.eup %6852  ;;  %6864 = vrcp.f32 %v3837_v35  ;;  %6441 = vmatprep.subr.bf16.mxu1 %v9253_v42 }
 0x5d9   :  { %v6855_v15 = vpop.eup %6854  ;;  %v3921_v38 = vmul.f32 %v6853_v17, %v8505_v20  ;;  %v3840_v41 = vpop.xlane.xlu0 %3839 }
 0x5da   :  { %v3849_v47 = vpop.xlane.xlu1 %3848  ;;  %v6857_v54 = vpop.eup %6856  ;;  %v3922_v4 = vmul.f32 %v6855_v15, %v8502_v49  ;;  %6866 = vrcp.f32 %v3840_v41 }
 0x5db   :  { %v3919_v8 = vmul.f32 %v6857_v54, %v8498_v24 }
 0x5dc   :  { %v6859_v48 = vpop.eup %6858  ;;  %v3944_v30 = vpack.c.bf16 %v3922_v4, %v3921_v38 }
 0x5dd   :  { %v3920_v1 = vmul.f32 %v6859_v48, %v8513_v57  ;;  %v3855_v63 = vpop.xlane.xlu0 %3854 }
 0x5de   :  { %v3858_v31 = vpop.xlane.xlu1 %3857  ;;  %6868 = vrcp.f32 %v3855_v63  ;;  %6432 = vmatmul.mubr.msk.bf16.vlgmr.msra.gmra.mrb[180].mxu1 %vm1582_vm3, %v3944_v30 }
 0x5df   :  { %6442 = vmatpush3.bf16.msra.mxu1 %v8408_v18  ;;  %6870 = vrcp.f32 %v3858_v31  ;;  %v3943_v20 = vpack.c.bf16 %v3920_v1, %v3919_v8  ;;  %6443 = vmatprep.mubr.msk.bf16.mxu1 %vm7038_vm1, %v9253_v42 }
 0x5e0   :  { %v6861_v49 = vpop.eup %6860  ;;  %6872 = vrcp.f32 %v3849_v47  ;;  %6453 = vmatprep.subr.bf16.mxu1 %v9253_v42 }
 0x5e1   :  { %v6863_v39 = vpop.eup %6862  ;;  %v3925_v24 = vmul.f32 %v6861_v49, %v8525_v44  ;;  %v3852_v57 = vpop.xlane.xlu0 %3851  ;;  %6426 = vmatmul.mubr.msk.bf16.vlgmr.msra.gmra.mrb[140].mxu0 %vm1582_vm3, %v3943_v20 }
 0x5e2   :  { %v3861_v16 = vpop.xlane.xlu1 %3860  ;;  %v6865_v19 = vpop.eup %6864  ;;  %v3926_v12 = vmul.f32 %v6863_v39, %v8522_v0  ;;  %6874 = vrcp.f32 %v3852_v57  ;;  %6436 = vmatpush3.bf16.msra.mxu0 %v8404_v6  ;;  %6437 = vmatprep.mubr.msk.bf16.mxu0 %vm7038_vm1, %v9253_v42 }
 0x5e3   :  { %6447 = vmatprep.subr.bf16.mxu0 %v9253_v42  ;;  %v3923_v37 = vmul.f32 %v6865_v19, %v8516_v11 }
 0x5e4   :  { %v6867_v18 = vpop.eup %6866  ;;  %v3946_v13 = vpack.c.bf16 %v3926_v12, %v3925_v24 }
 0x5e5   :  { %v3924_v44 = vmul.f32 %v6867_v18, %v8533_v29  ;;  %v3867_v59 = vpop.xlane.xlu0 %3866 }
 0x5e6   :  { %v3870_v28 = vpop.xlane.xlu1 %3869  ;;  %6876 = vrcp.f32 %v3867_v59  ;;  %6444 = vmatmul.mubr.msk.bf16.vlgmr.msra.gmra.mrb[184].mxu1 %vm1582_vm3, %v3946_v13 }
 0x5e7   :  { %6454 = vmatpush3.bf16.msra.mxu1 %v8576_v21  ;;  %6878 = vrcp.f32 %v3870_v28  ;;  %v3945_v6 = vpack.c.bf16 %v3924_v44, %v3923_v37  ;;  %6455 = vmatprep.mubr.msk.bf16.mxu1 %vm7038_vm1, %v9253_v42 }
 0x5e8   :  { %v6869_v0 = vpop.eup %6868  ;;  %6880 = vrcp.f32 %v3861_v16  ;;  %6465 = vmatprep.subr.bf16.mxu1 %v9253_v42 }
 0x5e9   :  { %v6871_v23 = vpop.eup %6870  ;;  %v3929_v11 = vmul.f32 %v6869_v0, %v8544_v7  ;;  %v3864_v29 = vpop.xlane.xlu0 %3863  ;;  %6438 = vmatmul.mubr.msk.bf16.vlgmr.msra.gmra.mrb[144].mxu0 %vm1582_vm3, %v3945_v6 }
 0x5ea   :  { %v6873_v22 = vpop.eup %6872  ;;  %v3930_v52 = vmul.f32 %v6871_v23, %v8542_v62  ;;  %6882 = vrcp.f32 %v3864_v29  ;;  %6448 = vmatpush3.bf16.msra.mxu0 %v8574_v32  ;;  %6449 = vmatprep.mubr.msk.bf16.mxu0 %vm7038_vm1, %v9253_v42  ;;  %v4673_v27 = vpop.permute.xlu1 %4672 }
 0x5eb   :  { %6459 = vmatprep.subr.bf16.mxu0 %v9253_v42  ;;  %v3927_v34 = vmul.f32 %v6873_v22, %v8536_v3 }
 0x5ec   :  { %v6875_v21 = vpop.eup %6874  ;;  %v3948_v5 = vpack.c.bf16 %v3930_v52, %v3929_v11 }
 0x5ed   :  { %v3928_v7 = vmul.f32 %v6875_v21, %v8550_v51  ;;  %v4625_v50 = vpop.permute.xlu0 %4624 }
 0x5ee   :  { %6456 = vmatmul.mubr.msk.bf16.vlgmr.msra.gmra.mrb[188].mxu1 %vm1582_vm3, %v3948_v5 }
 0x5ef   :  { %6466 = vmatpush3.bf16.msra.mxu1 %v4673_v27  ;;  %v3947_v53 = vpack.c.bf16 %v3928_v7, %v3927_v34  ;;  %6467 = vmatprep.mubr.msk.bf16.mxu1 %vm7038_vm1, %v9253_v42 }
 0x5f0   :  { %v6877_v62 = vpop.eup %6876 }
 0x5f1   :  { %v6879_v32 = vpop.eup %6878  ;;  %v3933_v61 = vmul.f32 %v6877_v62, %v8560_v25  ;;  %6450 = vmatmul.mubr.msk.bf16.vlgmr.msra.gmra.mrb[148].mxu0 %vm1582_vm3, %v3947_v53  ;;  %v6620_v25 = vld [vmem:[%s9133_s4] sm:$0xff]  }
 0x5f2   :  { %v6881_v2 = vpop.eup %6880  ;;  %v3934_v3 = vmul.f32 %v6879_v32, %v8558_v55  ;;  %6460 = vmatpush3.bf16.msra.mxu0 %v4625_v50  ;;  %6461 = vmatprep.mubr.msk.bf16.mxu0 %vm7038_vm1, %v9253_v42  ;;  %v6621_v55 = vld [vmem:[%s9133_s4 + $0x8] sm:$0xff]   ;;  %v6622_v42 = vld [vmem:[%s9133_s4 + $0x10] sm:$0xff]  }
 0x5f3   :  { %v3931_v45 = vmul.f32 %v6881_v2, %v8552_v14  ;;  %6471 = vmatprep.subr.bf16.mxu0 %v6620_v25  ;;  %v6623_v14 = vld [vmem:[%s9133_s4 + $0x18] sm:$0xff]  }
 0x5f4   :  { %v6883_v51 = vpop.eup %6882  ;;  %v3950_v60 = vpack.c.bf16 %v3934_v3, %v3933_v61 }
 0x5f5   :  { %v3932_v35 = vmul.f32 %v6883_v51, %v8566_v9  ;;  %v6624_v9 = vld [vmem:[%s9133_s4 + $0x20] sm:$0xff]  }
 0x5f6   :  { %6468 = vmatmul.mubr.msk.bf16.vlgmr.msra.gmra.mrb[192].mxu1 %vm1582_vm3, %v3950_v60 }
 0x5f7   :  { %v3949_v46 = vpack.c.bf16 %v3932_v35, %v3931_v45 }
 0x5f9   :  { %6462 = vmatmul.mubr.msk.bf16.vlgmr.msra.gmra.mrb[152].mxu0 %vm1582_vm3, %v3949_v46 }
 0x5fa   :  { %6472 = vmatpush3.bf16.msra.mxu0 %v6620_v25 }
 0x5fb   :  { %6473 = vmatprep.subr.bf16.mxu0 %v6621_v55 }
 0x5fe   :  { %6474 = vmatpush3.bf16.msra.mxu0 %v6621_v55 }
 0x5ff   :  { %6475 = vmatprep.subr.bf16.mxu0 %v6622_v42 }
 0x602   :  { %6476 = vmatpush3.bf16.msra.mxu0 %v6622_v42 }
 0x603   :  { %6477 = vmatprep.subr.bf16.mxu0 %v6623_v14 }
 0x606   :  { %6478 = vmatpush3.bf16.msra.mxu0 %v6623_v14 }
 0x607   :  { %6479 = vmatprep.subr.bf16.mxu0 %v6624_v9 }
 0x60a   :  { %6480 = vmatpush3.bf16.msra.mxu0 %v6624_v9 }
 0x60b   :  { %6481 = vmatprep.subr.bf16.mxu0 %v6625_v56 }
 0x60e   :  { %6482 = vmatpush3.bf16.msra.mxu0 %v6625_v56 }
 0x60f   :  { %6483 = vmatprep.subr.bf16.mxu0 %v6626_v40 }
 0x612   :  { %6484 = vmatpush3.bf16.msra.mxu0 %v6626_v40 }
 0x613   :  { %6485 = vmatprep.subr.bf16.mxu0 %v6627_v33 }
 0x616   :  { %6486 = vmatpush3.bf16.msra.mxu0 %v6627_v33 }
 0x68a   :  { %v3992_v17 = vpop.f32.mrb[124].mxu0 }
 0x68b   :  { %v6379_v15 = vpop.f32.mrb[125].mxu0 }
 0x68c   :  { %v3995_v38 = vpop.f32.mrb[126].mxu0 }
 0x68d   :  { %v6531_v41 = vpack.i.bf16 %v3995_v38, %v3992_v17  ;;  %v6380_v47 = vpop.f32.mrb[127].mxu0 }
 0x68f   :  { %6532 = vrot.lane.b32.xlu0 %v6531_v41, %s7040_s1 }
 0x690   :  { %v4040_v54 = vpop.f32.mrb[164].mxu1 }
 0x691   :  { %v6385_v4 = vpop.f32.mrb[165].mxu1 }
 0x692   :  { %v4043_v48 = vpop.f32.mrb[166].mxu1 }
 0x693   :  { %v6536_v30 = vpack.i.bf16 %v4043_v48, %v4040_v54  ;;  %v6386_v8 = vpop.f32.mrb[167].mxu1 }
 0x695   :  { %v4088_v1 = vpop.f32.mrb[128].mxu0  ;;  %6537 = vrot.lane.b32.xlu1 %v6536_v30, %s7040_s1 }
 0x696   :  { %v6391_v63 = vpop.f32.mrb[129].mxu0 }
 0x697   :  { %v4091_v31 = vpop.f32.mrb[130].mxu0 }
 0x698   :  { %v6541_v20 = vpack.i.bf16 %v4091_v31, %v4088_v1  ;;  %v6392_v49 = vpop.f32.mrb[131].mxu0 }
 0x699   :  { %v4136_v39 = vpop.f32.mrb[168].mxu1 }
 0x69a   :  { %v6397_v24 = vpop.f32.mrb[169].mxu1  ;;  %6542 = vrot.lane.b32.xlu0 %v6541_v20, %s7040_s1 }
 0x69b   :  { %v4139_v57 = vpop.f32.mrb[170].mxu1 }
 0x69c   :  { %v6546_v16 = vpack.i.bf16 %v4139_v57, %v4136_v39  ;;  %v6398_v19 = vpop.f32.mrb[171].mxu1 }
 0x69d   :  { %v4184_v12 = vpop.f32.mrb[132].mxu0 }
 0x69e   :  { %6547 = vrot.lane.b32.xlu1 %v6546_v16, %s7040_s1  ;;  %v6403_v18 = vpop.f32.mrb[133].mxu0 }
 0x69f   :  { %v4187_v13 = vpop.f32.mrb[134].mxu0 }
 0x6a0   :  { %v6551_v37 = vpack.i.bf16 %v4187_v13, %v4184_v12  ;;  %v6404_v44 = vpop.f32.mrb[135].mxu0 }
 0x6a1   :  { %v4232_v59 = vpop.f32.mrb[172].mxu1 }
 0x6a2   :  { %v6409_v28 = vpop.f32.mrb[173].mxu1  ;;  %6552 = vrot.lane.b32.xlu0 %v6551_v37, %s7040_s1 }
 0x6a3   :  { %v4235_v6 = vpop.f32.mrb[174].mxu1 }
 0x6a4   :  { %v6556_v0 = vpack.i.bf16 %v4235_v6, %v4232_v59  ;;  %v6410_v23 = vpop.f32.mrb[175].mxu1 }
 0x6a5   :  { %v4280_v11 = vpop.f32.mrb[136].mxu0 }
 0x6a6   :  { %6557 = vrot.lane.b32.xlu1 %v6556_v0, %s7040_s1  ;;  %v6415_v29 = vpop.f32.mrb[137].mxu0 }
 0x6a7   :  { %v4283_v22 = vpop.f32.mrb[138].mxu0 }
 0x6a8   :  { %v6561_v52 = vpack.i.bf16 %v4283_v22, %v4280_v11  ;;  %v6416_v21 = vpop.f32.mrb[139].mxu0 }
 0x6a9   :  { %v4328_v5 = vpop.f32.mrb[176].mxu1 }
 0x6aa   :  { %v6421_v34 = vpop.f32.mrb[177].mxu1  ;;  %6562 = vrot.lane.b32.xlu0 %v6561_v52, %s7040_s1 }
 0x6ab   :  { %v4331_v7 = vpop.f32.mrb[178].mxu1 }
 0x6ac   :  { %v6566_v27 = vpack.i.bf16 %v4331_v7, %v4328_v5  ;;  %v6422_v53 = vpop.f32.mrb[179].mxu1 }
 0x6ae   :  { %6567 = vrot.lane.b32.xlu1 %v6566_v27, %s7040_s1 }
 0x6b1   :  { %v4424_v62 = vpop.f32.mrb[180].mxu1 }
 0x6b2   :  { %v6433_v32 = vpop.f32.mrb[181].mxu1 }
 0x6b3   :  { %v4427_v61 = vpop.f32.mrb[182].mxu1 }
 0x6b4   :  { %v6576_v50 = vpack.i.bf16 %v4427_v61, %v4424_v62  ;;  %v6434_v2 = vpop.f32.mrb[183].mxu1  ;;  %v4376_v3 = vpop.f32.mrb[140].mxu0 }
 0x6b5   :  { %v6427_v51 = vpop.f32.mrb[141].mxu0 }
 0x6b6   :  { %6577 = vrot.lane.b32.xlu1 %v6576_v50, %s7040_s1  ;;  %v4379_v60 = vpop.f32.mrb[142].mxu0 }
 0x6b7   :  { %v6571_v45 = vpack.i.bf16 %v4379_v60, %v4376_v3  ;;  %v6428_v35 = vpop.f32.mrb[143].mxu0 }
 0x6b9   :  { %v4520_v46 = vpop.f32.mrb[184].mxu1  ;;  %6572 = vrot.lane.b32.xlu0 %v6571_v45, %s7040_s1  ;;  %v9331_v45 = vld [vmem:[#allocation13_spill] sm:$0xff] }
 0x6ba   :  { %v6445_v25 = vpop.f32.mrb[185].mxu1 }
 0x6bb   :  { %v4523_v55 = vpop.f32.mrb[186].mxu1 }
 0x6bc   :  { %v6586_v42 = vpack.i.bf16 %v4523_v55, %v4520_v46  ;;  %v6446_v14 = vpop.f32.mrb[187].mxu1  ;;  %v4472_v9 = vpop.f32.mrb[144].mxu0 }
 0x6bd   :  { %v6439_v56 = vpop.f32.mrb[145].mxu0  ;;  %v9332_v14 = vld [vmem:[#allocation18_spill] sm:$0xff] }
 0x6be   :  { %6587 = vrot.lane.b32.xlu1 %v6586_v42, %s7040_s1  ;;  %v4475_v40 = vpop.f32.mrb[146].mxu0  ;;  %v9333_v56 = vld [vmem:[#allocation21_spill] sm:$0xff] }
 0x6bf   :  { %v6581_v33 = vpack.i.bf16 %v4475_v40, %v4472_v9  ;;  %v6440_v17 = vpop.f32.mrb[147].mxu0 }
 0x6c1   :  { %v4616_v15 = vpop.f32.mrb[188].mxu1  ;;  %6582 = vrot.lane.b32.xlu0 %v6581_v33, %s7040_s1 }
 0x6c2   :  { %v6457_v38 = vpop.f32.mrb[189].mxu1 }
 0x6c3   :  { %v4619_v41 = vpop.f32.mrb[190].mxu1 }
 0x6c4   :  { %v6596_v47 = vpack.i.bf16 %v4619_v41, %v4616_v15  ;;  %v6458_v54 = vpop.f32.mrb[191].mxu1  ;;  %v4568_v4 = vpop.f32.mrb[148].mxu0  ;;  %v9334_v41 = vld [vmem:[#allocation16_spill] sm:$0xff] }
 0x6c5   :  { %v6451_v48 = vpop.f32.mrb[149].mxu0  ;;  %v9335_v54 = vld [vmem:[#allocation19_spill] sm:$0xff] }
 0x6c6   :  { %6597 = vrot.lane.b32.xlu1 %v6596_v47, %s7040_s1  ;;  %v4571_v30 = vpop.f32.mrb[150].mxu0 }
 0x6c7   :  { %v6591_v8 = vpack.i.bf16 %v4571_v30, %v4568_v4  ;;  %v6452_v1 = vpop.f32.mrb[151].mxu0 }
 0x6c9   :  { %v4712_v63 = vpop.f32.mrb[192].mxu1  ;;  %6592 = vrot.lane.b32.xlu0 %v6591_v8, %s7040_s1 }
 0x6ca   :  { %v6469_v31 = vpop.f32.mrb[193].mxu1 }
 0x6cb   :  { %v4715_v20 = vpop.f32.mrb[194].mxu1 }
 0x6cc   :  { %v6606_v49 = vpack.i.bf16 %v4715_v20, %v4712_v63  ;;  %v6470_v39 = vpop.f32.mrb[195].mxu1  ;;  %v4664_v24 = vpop.f32.mrb[152].mxu0  ;;  %v9336_v63 = vld [vmem:[#allocation25_spill] sm:$0xff]  ;;  %v9337_v20 = vld [vmem:[#allocation20_spill] sm:$0xff] }
 0x6cd   :  { %v6463_v57 = vpop.f32.mrb[153].mxu0 }
 0x6ce   :  { %6607 = vrot.lane.b32.xlu1 %v6606_v49, %s7040_s1  ;;  %v4667_v16 = vpop.f32.mrb[154].mxu0 }
 0x6cf   :  { %v6601_v19 = vpack.i.bf16 %v4667_v16, %v4664_v24  ;;  %v6464_v12 = vpop.f32.mrb[155].mxu0 }
 0x6d0   :  { %v9338_v12 = vld [vmem:[#allocation24_spill] sm:$0xff] }
 0x6d1   :  { %6602 = vrot.lane.b32.xlu0 %v6601_v19, %s7040_s1 }
 0x701   :  { %v6533_v18 = vpop.permute.xlu0 %6532 }
 0x702   :  { %v6535_v13 = vunpack.i.h.bf16 %v6533_v18  ;;  %v6534_v37 = vunpack.i.l.bf16 %v6533_v18 }
 0x704   :  { %v4847_v44 = vsel %vm585_vm2, %v8155_v26, %v6534_v37  ;;  %v4848_v59 = vsel %vm585_vm2, %v8159_v43, %v6535_v13  ;;  %v9327_v43 = vld [vmem:[#allocation8_spill] sm:$0xff]  ;;  %v9339_v13 = vld [vmem:[#allocation26_spill] sm:$0xff] }
 0x705   :  { %v4879_v28 = vpack.c.bf16 %v4848_v59, %v4847_v44 }
 0x707   :  { %v6538_v6 = vpop.permute.xlu1 %6537  ;;  %6487 = vmatprep.mubr.bf16.mxu0 %v4879_v28 }
 0x708   :  { %v6540_v0 = vunpack.i.h.bf16 %v6538_v6  ;;  %v6539_v23 = vunpack.i.l.bf16 %v6538_v6  ;;  %v9340_v6 = vld [vmem:[#allocation23_spill] sm:$0xff] }
 0x70a   :  { %v4850_v11 = vsel %vm585_vm2, %v8168_v36, %v6540_v0  ;;  %v4849_v29 = vsel %vm585_vm2, %v8166_v10, %v6539_v23  ;;  %v9328_v36 = vld [vmem:[#allocation22_spill] sm:$0xff]  ;;  %v9341_v23 = vld [vmem:[#allocation28_spill] sm:$0xff] }
 0x70b   :  { %v4880_v22 = vpack.c.bf16 %v4850_v11, %v4849_v29  ;;  %v9329_v10 = vld [vmem:[#allocation10_spill] sm:$0xff] }
 0x70c   :  { %v6543_v52 = vpop.permute.xlu0 %6542 }
 0x70d   :  { %v6545_v21 = vunpack.i.h.bf16 %v6543_v52  ;;  %v6544_v5 = vunpack.i.l.bf16 %v6543_v52  ;;  %6488 = vmatmul.mubr.bf16.vlgmr.msra.gmra.mrb[156].mxu0 %v4880_v22 }
 0x70f   :  { %v4851_v26 = vsel %vm585_vm2, %v8170_v58, %v6544_v5  ;;  %v4852_v34 = vsel %vm585_vm2, %v9327_v43, %v6545_v21  ;;  %v9330_v58 = vld [vmem:[#allocation11_spill] sm:$0xff] }
 0x710   :  { %v6548_v7 = vpop.permute.xlu1 %6547  ;;  %v4881_v27 = vpack.c.bf16 %v4852_v34, %v4851_v26  ;;  %v9342_v26 = vld [vmem:[#allocation7_spill] sm:$0xff] }
 0x711   :  { %v6550_v53 = vunpack.i.h.bf16 %v6548_v7  ;;  %v6549_v62 = vunpack.i.l.bf16 %v6548_v7  ;;  %v9343_v34 = vld [vmem:[#allocation27_spill] sm:$0xff] }
 0x712   :  { %6491 = vmatprep.mubr.bf16.mxu0 %v4881_v27 }
 0x713   :  { %v4853_v32 = vsel %vm585_vm2, %v9328_v36, %v6549_v62  ;;  %v4854_v61 = vsel %vm585_vm2, %v9329_v10, %v6550_v53  ;;  %v9344_v36 = vld [vmem:[#allocation29_spill] sm:$0xff]  ;;  %v9345_v10 = vld [vmem:[#allocation6_spill] sm:$0xff] }
 0x714   :  { %v6553_v50 = vpop.permute.xlu0 %6552  ;;  %v4882_v2 = vpack.c.bf16 %v4854_v61, %v4853_v32 }
 0x715   :  { %v6555_v3 = vunpack.i.h.bf16 %v6553_v50  ;;  %v6554_v51 = vunpack.i.l.bf16 %v6553_v50 }
 0x716   :  { %6492 = vmatmul.mubr.bf16.gmra.mrb[160].mxu0 %v4882_v2 }
 0x717   :  { %v4855_v60 = vsel %vm585_vm2, %v9330_v58, %v6554_v51  ;;  %v4856_v35 = vsel %vm585_vm2, %v9331_v45, %v6555_v3 }
 0x718   :  { %v6558_v46 = vpop.permute.xlu1 %6557  ;;  %v4883_v25 = vpack.c.bf16 %v4856_v35, %v4855_v60  ;;  %v9346_v60 = vld [vmem:[#allocation31_spill] sm:$0xff] }
 0x719   :  { %v6560_v55 = vunpack.i.h.bf16 %v6558_v46  ;;  %v6559_v42 = vunpack.i.l.bf16 %v6558_v46  ;;  %v9347_v35 = vld [vmem:[#allocation15_spill] sm:$0xff] }
 0x71a   :  { %6495 = vmatprep.mubr.bf16.mxu0 %v4883_v25 }
 0x71b   :  { %v4857_v9 = vsel %vm585_vm2, %v9332_v14, %v6559_v42  ;;  %v4858_v40 = vsel %vm585_vm2, %v9333_v56, %v6560_v55  ;;  %v9348_v14 = vld [vmem:[#allocation9_spill] sm:$0xff]  ;;  %v9349_v56 = vld [vmem:[#allocation12_spill] sm:$0xff] }
 0x71c   :  { %v6563_v33 = vpop.permute.xlu0 %6562  ;;  %v4884_v17 = vpack.c.bf16 %v4858_v40, %v4857_v9 }
 0x71d   :  { %v6565_v15 = vunpack.i.h.bf16 %v6563_v33  ;;  %v6564_v38 = vunpack.i.l.bf16 %v6563_v33 }
 0x71e   :  { %6496 = vmatmul.mubr.bf16.gmra.mrb[164].mxu0 %v4884_v17 }
 0x71f   :  { %v4859_v47 = vsel %vm585_vm2, %v9334_v41, %v6564_v38  ;;  %v4860_v4 = vsel %vm585_vm2, %v9335_v54, %v6565_v15 }
 0x720   :  { %v6568_v48 = vpop.permute.xlu1 %6567  ;;  %v4885_v30 = vpack.c.bf16 %v4860_v4, %v4859_v47  ;;  %v9350_v47 = vld [vmem:[#allocation17_spill] sm:$0xff] }
 0x721   :  { %v6570_v8 = vunpack.i.h.bf16 %v6568_v48  ;;  %v6569_v1 = vunpack.i.l.bf16 %v6568_v48  ;;  %v9351_v4 = vld [vmem:[#allocation33_spill] sm:$0xff] }
 0x722   :  { %6499 = vmatprep.mubr.bf16.mxu0 %v4885_v30 }
 0x723   :  { %v4861_v31 = vsel %vm585_vm2, %v9336_v63, %v6569_v1  ;;  %v4862_v49 = vsel %vm585_vm2, %v9337_v20, %v6570_v8  ;;  %v9352_v63 = vld [vmem:[#allocation14_spill] sm:$0xff] }
 0x724   :  { %v4886_v39 = vpack.c.bf16 %v4862_v49, %v4861_v31  ;;  %v9353_v20 = vld [vmem:[#allocation30_spill] sm:$0xff] }
 0x726   :  { %6500 = vmatmul.mubr.bf16.gmra.mrb[168].mxu0 %v4886_v39 }
 0x728   :  { %v6578_v24 = vpop.permute.xlu1 %6577 }
 0x729   :  { %v6580_v57 = vunpack.i.h.bf16 %v6578_v24  ;;  %v6579_v16 = vunpack.i.l.bf16 %v6578_v24  ;;  %v8785_v24 = vld [vmem:[%s9134_s5] ss:$0 sm:$0xff]  ;;  %s7041_s5 = smov [#allocation3]  }
 0x72b   :  { %v6573_v19 = vpop.permute.xlu0 %6572  ;;  %v4865_v18 = vsel %vm585_vm2, %v9338_v12, %v6579_v16  ;;  %v4866_v37 = vsel %vm585_vm2, %v9339_v13, %v6580_v57  ;;  %v8790_v57 = vld [vmem:[%s9135_s6] ss:$0 sm:$0xff]  ;;  %s5721_s6 = sshll.u32 %s7041_s5, 4  ;;  %s5722_s6 = int_to_ptr.vmem [resolvable:$true] %s5721_s6 }
 0x72c   :  { %v6575_v44 = vunpack.i.h.bf16 %v6573_v19  ;;  %v6574_v59 = vunpack.i.l.bf16 %v6573_v19  ;;  %v4888_v28 = vpack.c.bf16 %v4866_v37, %v4865_v18  ;;  %s7012_s17 = scalar_lea.vmem %s5722_s6, 4096  ;;  %p7017_p1 = scmp.lt.s32.totalorder %s5722_s6, %s5722_s6 }
 0x72d   :  { %p7013_p0 = scmp.ne.s32.totalorder %s5722_s6, %s7012_s17  ;;  %p7018_p2 = scmp.lt.s32.totalorder %s7012_s17, %s7012_s17 }
 0x72e   :  { %v4863_v0 = vsel %vm585_vm2, %v9340_v6, %v6574_v59  ;;  %v4864_v11 = vsel %vm585_vm2, %v9341_v23, %v6575_v44 }
 0x72f   :  { %v4887_v29 = vpack.c.bf16 %v4864_v11, %v4863_v0  ;;  %p7019_p3 = por %p7018_p2, %p7017_p1 }
 0x730   :  { %v6588_v22 = vpop.permute.xlu1 %6587 }
 0x731   :  { %v6590_v52 = vunpack.i.h.bf16 %v6588_v22  ;;  %v6589_v21 = vunpack.i.l.bf16 %v6588_v22  ;;  %6503 = vmatprep.mubr.bf16.mxu0 %v4887_v29  ;;  %p7020_p4 = pnand %p7019_p3, %p7013_p0 }
 0x732   :  { %6504 = vmatmul.mubr.bf16.gmra.mrb[172].mxu0 %v4888_v28 }
 0x733   :  { %v6583_v5 = vpop.permute.xlu0 %6582  ;;  %v4869_v43 = vsel %vm585_vm2, %v9342_v26, %v6589_v21  ;;  %v4870_v7 = vsel %vm585_vm2, %v9343_v34, %v6590_v52 }
 0x734   :  { %v6585_v27 = vunpack.i.h.bf16 %v6583_v5  ;;  %v6584_v53 = vunpack.i.l.bf16 %v6583_v5  ;;  %v4890_v62 = vpack.c.bf16 %v4870_v7, %v4869_v43 }
 0x736   :  { %v4867_v32 = vsel %vm585_vm2, %v9344_v36, %v6584_v53  ;;  %v4868_v61 = vsel %vm585_vm2, %v9345_v10, %v6585_v27 }
 0x737   :  { %v4889_v50 = vpack.c.bf16 %v4868_v61, %v4867_v32 }
 0x738   :  { %v6598_v2 = vpop.permute.xlu1 %6597 }
 0x739   :  { %v6600_v3 = vunpack.i.h.bf16 %v6598_v2  ;;  %v6599_v51 = vunpack.i.l.bf16 %v6598_v2  ;;  %6507 = vmatprep.mubr.bf16.mxu0 %v4889_v50 }
 0x73a   :  { %6508 = vmatmul.mubr.bf16.gmra.mrb[176].mxu0 %v4890_v62 }
 0x73b   :  { %v6593_v58 = vpop.permute.xlu0 %6592  ;;  %v4873_v45 = vsel %vm585_vm2, %v9346_v60, %v6599_v51  ;;  %v4874_v46 = vsel %vm585_vm2, %v9347_v35, %v6600_v3 }
 0x73c   :  { %v6595_v25 = vunpack.i.h.bf16 %v6593_v58  ;;  %v6594_v55 = vunpack.i.l.bf16 %v6593_v58  ;;  %v4892_v42 = vpack.c.bf16 %v4874_v46, %v4873_v45 }
 0x73e   :  { %v4871_v9 = vsel %vm585_vm2, %v9348_v14, %v6594_v55  ;;  %v4872_v40 = vsel %vm585_vm2, %v9349_v56, %v6595_v25 }
 0x73f   :  { %v4891_v33 = vpack.c.bf16 %v4872_v40, %v4871_v9 }
 0x740   :  { %v6608_v17 = vpop.permute.xlu1 %6607 }
 0x741   :  { %v6610_v15 = vunpack.i.h.bf16 %v6608_v17  ;;  %v6609_v38 = vunpack.i.l.bf16 %v6608_v17  ;;  %6511 = vmatprep.mubr.bf16.mxu0 %v4891_v33 }
 0x742   :  { %6512 = vmatmul.mubr.bf16.gmra.mrb[180].mxu0 %v4892_v42 }
 0x743   :  { %v6603_v41 = vpop.permute.xlu0 %6602  ;;  %v4877_v54 = vsel %vm585_vm2, %v9350_v47, %v6609_v38  ;;  %v4878_v48 = vsel %vm585_vm2, %v9351_v4, %v6610_v15 }
 0x744   :  { %v6605_v30 = vunpack.i.h.bf16 %v6603_v41  ;;  %v6604_v8 = vunpack.i.l.bf16 %v6603_v41  ;;  %v4894_v1 = vpack.c.bf16 %v4878_v48, %v4877_v54 }
 0x746   :  { %v4875_v31 = vsel %vm585_vm2, %v9352_v63, %v6604_v8  ;;  %v4876_v49 = vsel %vm585_vm2, %v9353_v20, %v6605_v30 }
 0x747   :  { %v4893_v39 = vpack.c.bf16 %v4876_v49, %v4875_v31 }
 0x749   :  { %6515 = vmatprep.mubr.bf16.mxu0 %v4893_v39 }
 0x74a   :  { %6516 = vmatmul.mubr.bf16.gmra.mrb[184].mxu0 %v4894_v1 }
 0x7e0   :  { %v6489_v16 = vpop.f32.mrb[156].mxu0 }
 0x7e1   :  { %v4992_v19 = vadd.f32 %v6489_v16, %v8785_v24  ;;  %v4983_v12 = vpop.f32.mrb[157].mxu0 }
 0x7e2   :  { %v4984_v18 = vadd.f32 %v8785_v24, %v4983_v12  ;;  %v6490_v13 = vpop.f32.mrb[158].mxu0 }
 0x7e3   :  { %v5118_v37 = vmul.f32 %v8790_v57, %v4992_v19  ;;  %5684 = vst.msk [vmem:[#allocation3 + $0x10] sm:$0xff] %vm146_vm0, %v4992_v19  ;;  %v4995_v44 = vadd.f32 %v6490_v13, %v8785_v24  ;;  %v4986_v59 = vpop.f32.mrb[159].mxu0 }
 0x7e4   :  { %5682 = vst.msk [vmem:[#allocation3] sm:$0xff] %vm146_vm0, %v4984_v18  ;;  %v4987_v28 = vadd.f32 %v8785_v24, %v4986_v59  ;;  %v5116_v6 = vmul.f32 %v8790_v57, %v4984_v18 }
 0x7e5   :  { %5685 = vst.msk [vmem:[#allocation3 + $0x18] sm:$0xff] %vm146_vm0, %v4995_v44  ;;  %v5154_v0 = vsel %vm146_vm0, %v5118_v37, 0.0  ;;  %v5119_v29 = vmul.f32 %v8790_v57, %v4995_v44 }
 0x7e6   :  { %v5117_v23 = vmul.f32 %v8790_v57, %v4987_v28  ;;  %5683 = vst.msk [vmem:[#allocation3 + $0x8] sm:$0xff] %vm146_vm0, %v4987_v28  ;;  %5155 = vadd.xlane.f32.xlu0 %v5154_v0  ;;  %v5148_v52 = vsel %vm146_vm0, %v5116_v6, 0.0 }
 0x7e7   :  { %v5157_v62 = vsel %vm146_vm0, %v5119_v29, 0.0 }
 0x7e8   :  { %v5151_v11 = vsel %vm146_vm0, %v5117_v23, 0.0 }
 0x7e9   :  { %v6493_v22 = vpop.f32.mrb[160].mxu0  ;;  %5152 = vadd.xlane.f32.xlu1 %v5151_v11 }
 0x7ea   :  { %v5008_v21 = vadd.f32 %v6493_v22, %v8785_v24  ;;  %v4999_v5 = vpop.f32.mrb[161].mxu0  ;;  %5149 = vadd.xlane.f32.xlu0 %v5148_v52 }
 0x7eb   :  { %v5000_v26 = vadd.f32 %v8785_v24, %v4999_v5  ;;  %v6494_v43 = vpop.f32.mrb[162].mxu0 }
 0x7ec   :  { %5688 = vst.msk [vmem:[#allocation3 + $0x30] sm:$0xff] %vm146_vm0, %v5008_v21  ;;  %v5011_v34 = vadd.f32 %v6494_v43, %v8785_v24  ;;  %v5002_v7 = vpop.f32.mrb[163].mxu0  ;;  %v5122_v27 = vmul.f32 %v8790_v57, %v5008_v21 }
 0x7ed   :  { %5686 = vst.msk [vmem:[#allocation3 + $0x20] sm:$0xff] %vm146_vm0, %v5000_v26  ;;  %v5003_v53 = vadd.f32 %v8785_v24, %v5002_v7  ;;  %v5120_v61 = vmul.f32 %v8790_v57, %v5000_v26 }
 0x7ee   :  { %v5123_v36 = vmul.f32 %v8790_v57, %v5011_v34  ;;  %5689 = vst.msk [vmem:[#allocation3 + $0x38] sm:$0xff] %vm146_vm0, %v5011_v34  ;;  %5158 = vadd.xlane.f32.xlu0 %v5157_v62  ;;  %v5166_v2 = vsel %vm146_vm0, %v5122_v27, 0.0 }
 0x7ef   :  { %5687 = vst.msk [vmem:[#allocation3 + $0x28] sm:$0xff] %vm146_vm0, %v5003_v53  ;;  %v5121_v32 = vmul.f32 %v8790_v57, %v5003_v53  ;;  %v5160_v42 = vsel %vm146_vm0, %v5120_v61, 0.0 }
 0x7f0   :  { %v5169_v10 = vsel %vm146_vm0, %v5123_v36, 0.0 }
 0x7f1   :  { %v6497_v50 = vpop.f32.mrb[164].mxu0  ;;  %5170 = vadd.xlane.f32.xlu1 %v5169_v10  ;;  %v5163_v46 = vsel %vm146_vm0, %v5121_v32, 0.0 }
 0x7f2   :  { %v5024_v3 = vadd.f32 %v6497_v50, %v8785_v24  ;;  %v5015_v51 = vpop.f32.mrb[165].mxu0  ;;  %5167 = vadd.xlane.f32.xlu0 %v5166_v2 }
 0x7f3   :  { %v5016_v58 = vadd.f32 %v8785_v24, %v5015_v51  ;;  %v6498_v60 = vpop.f32.mrb[166].mxu0 }
 0x7f4   :  { %5692 = vst.msk [vmem:[#allocation3 + $0x50] sm:$0xff] %vm146_vm0, %v5024_v3  ;;  %v5027_v45 = vadd.f32 %v6498_v60, %v8785_v24  ;;  %v5018_v35 = vpop.f32.mrb[167].mxu0  ;;  %v5126_v25 = vmul.f32 %v8790_v57, %v5024_v3 }
 0x7f5   :  { %5690 = vst.msk [vmem:[#allocation3 + $0x40] sm:$0xff] %vm146_vm0, %v5016_v58  ;;  %v5019_v55 = vadd.f32 %v8785_v24, %v5018_v35  ;;  %5164 = vadd.xlane.f32.xlu1 %v5163_v46  ;;  %v5124_v40 = vmul.f32 %v8790_v57, %v5016_v58 }
 0x7f6   :  { %v5127_v14 = vmul.f32 %v8790_v57, %v5027_v45  ;;  %5693 = vst.msk [vmem:[#allocation3 + $0x58] sm:$0xff] %vm146_vm0, %v5027_v45  ;;  %5161 = vadd.xlane.f32.xlu0 %v5160_v42  ;;  %v5178_v17 = vsel %vm146_vm0, %v5126_v25, 0.0 }
 0x7f7   :  { %5691 = vst.msk [vmem:[#allocation3 + $0x48] sm:$0xff] %vm146_vm0, %v5019_v55  ;;  %v5125_v9 = vmul.f32 %v8790_v57, %v5019_v55  ;;  %v5172_v1 = vsel %vm146_vm0, %v5124_v40, 0.0 }
 0x7f8   :  { %v5181_v56 = vsel %vm146_vm0, %v5127_v14, 0.0 }
 0x7f9   :  { %v6501_v33 = vpop.f32.mrb[168].mxu0  ;;  %5182 = vadd.xlane.f32.xlu1 %v5181_v56  ;;  %v5175_v48 = vsel %vm146_vm0, %v5125_v9, 0.0 }
 0x7fa   :  { %v5040_v15 = vadd.f32 %v6501_v33, %v8785_v24  ;;  %v5031_v38 = vpop.f32.mrb[169].mxu0  ;;  %5179 = vadd.xlane.f32.xlu0 %v5178_v17 }
 0x7fb   :  { %v5032_v41 = vadd.f32 %v8785_v24, %v5031_v38  ;;  %v6502_v47 = vpop.f32.mrb[170].mxu0 }
 0x7fc   :  { %5696 = vst.msk [vmem:[#allocation3 + $0x70] sm:$0xff] %vm146_vm0, %v5040_v15  ;;  %v5043_v54 = vadd.f32 %v6502_v47, %v8785_v24  ;;  %v5034_v4 = vpop.f32.mrb[171].mxu0  ;;  %v5130_v30 = vmul.f32 %v8790_v57, %v5040_v15 }
 0x7fd   :  { %5694 = vst.msk [vmem:[#allocation3 + $0x60] sm:$0xff] %vm146_vm0, %v5032_v41  ;;  %v5035_v8 = vadd.f32 %v8785_v24, %v5034_v4  ;;  %5176 = vadd.xlane.f32.xlu1 %v5175_v48  ;;  %v5128_v49 = vmul.f32 %v8790_v57, %v5032_v41 }
 0x7fe   :  { %v5131_v63 = vmul.f32 %v8790_v57, %v5043_v54  ;;  %5697 = vst.msk [vmem:[#allocation3 + $0x78] sm:$0xff] %vm146_vm0, %v5043_v54  ;;  %5173 = vadd.xlane.f32.xlu0 %v5172_v1  ;;  %v5190_v39 = vsel %vm146_vm0, %v5130_v30, 0.0 }
 0x7ff   :  { %5695 = vst.msk [vmem:[#allocation3 + $0x68] sm:$0xff] %vm146_vm0, %v5035_v8  ;;  %v5129_v31 = vmul.f32 %v8790_v57, %v5035_v8  ;;  %v5184_v12 = vsel %vm146_vm0, %v5128_v49, 0.0 }
 0x800   :  { %v5193_v20 = vsel %vm146_vm0, %v5131_v63, 0.0 }
 0x801   :  { %5194 = vadd.xlane.f32.xlu1 %v5193_v20  ;;  %v5187_v16 = vsel %vm146_vm0, %v5129_v31, 0.0 }
 0x802   :  { %5191 = vadd.xlane.f32.xlu0 %v5190_v39 }
 0x805   :  { %5188 = vadd.xlane.f32.xlu1 %v5187_v16  ;;  %v6505_v19 = vpop.f32.mrb[172].mxu0 }
 0x806   :  { %v5056_v18 = vadd.f32 %v6505_v19, %v8785_v24  ;;  %v5047_v13 = vpop.f32.mrb[173].mxu0  ;;  %5185 = vadd.xlane.f32.xlu0 %v5184_v12 }
 0x807   :  { %v5048_v37 = vadd.f32 %v8785_v24, %v5047_v13  ;;  %v6506_v44 = vpop.f32.mrb[174].mxu0 }
 0x808   :  { %v5134_v59 = vmul.f32 %v8790_v57, %v5056_v18  ;;  %5700 = vst.msk [vmem:[#allocation3 + $0x90] sm:$0xff] %vm146_vm0, %v5056_v18  ;;  %v5059_v28 = vadd.f32 %v6506_v44, %v8785_v24  ;;  %v5050_v6 = vpop.f32.mrb[175].mxu0  ;;  %v5848_v18 = vld [vmem:[#allocation2] ss:$0 sm:$0xff] }
 0x809   :  { %5698 = vst.msk [vmem:[#allocation3 + $0x80] sm:$0xff] %vm146_vm0, %v5048_v37  ;;  %v5051_v0 = vadd.f32 %v8785_v24, %v5050_v6  ;;  %v5132_v23 = vmul.f32 %v8790_v57, %v5048_v37 }
 0x80a   :  { %v5135_v11 = vmul.f32 %v8790_v57, %v5059_v28  ;;  %5701 = vst.msk [vmem:[#allocation3 + $0x98] sm:$0xff] %vm146_vm0, %v5059_v28  ;;  %v5202_v29 = vsel %vm146_vm0, %v5134_v59, 0.0 }
 0x80b   :  { %5699 = vst.msk [vmem:[#allocation3 + $0x88] sm:$0xff] %vm146_vm0, %v5051_v0  ;;  %5203 = vadd.xlane.f32.xlu0 %v5202_v29  ;;  %v5133_v22 = vmul.f32 %v8790_v57, %v5051_v0  ;;  %v5196_v43 = vsel %vm146_vm0, %v5132_v23, 0.0 }
 0x80c   :  { %v5205_v52 = vsel %vm146_vm0, %v5135_v11, 0.0 }
 0x80d   :  { %v6509_v21 = vpop.f32.mrb[176].mxu0  ;;  %5206 = vadd.xlane.f32.xlu1 %v5205_v52  ;;  %v5199_v36 = vsel %vm146_vm0, %v5133_v22, 0.0 }
 0x80e   :  { %v5072_v5 = vadd.f32 %v6509_v21, %v8785_v24  ;;  %v5063_v26 = vpop.f32.mrb[177].mxu0 }
 0x80f   :  { %v5064_v34 = vadd.f32 %v8785_v24, %v5063_v26  ;;  %v6510_v7 = vpop.f32.mrb[178].mxu0  ;;  %5197 = vadd.xlane.f32.xlu0 %v5196_v43 }
 0x810   :  { %v5138_v27 = vmul.f32 %v8790_v57, %v5072_v5  ;;  %5704 = vst.msk [vmem:[#allocation3 + $0xb0] sm:$0xff] %vm146_vm0, %v5072_v5  ;;  %v5075_v53 = vadd.f32 %v6510_v7, %v8785_v24  ;;  %v5066_v62 = vpop.f32.mrb[179].mxu0 }
 0x811   :  { %5702 = vst.msk [vmem:[#allocation3 + $0xa0] sm:$0xff] %vm146_vm0, %v5064_v34  ;;  %v5067_v32 = vadd.f32 %v8785_v24, %v5066_v62  ;;  %5200 = vadd.xlane.f32.xlu1 %v5199_v36  ;;  %v5136_v10 = vmul.f32 %v8790_v57, %v5064_v34 }
 0x812   :  { %v5139_v61 = vmul.f32 %v8790_v57, %v5075_v53  ;;  %5705 = vst.msk [vmem:[#allocation3 + $0xb8] sm:$0xff] %vm146_vm0, %v5075_v53  ;;  %v5214_v50 = vsel %vm146_vm0, %v5138_v27, 0.0 }
 0x813   :  { %5703 = vst.msk [vmem:[#allocation3 + $0xa8] sm:$0xff] %vm146_vm0, %v5067_v32  ;;  %5215 = vadd.xlane.f32.xlu0 %v5214_v50  ;;  %v5137_v2 = vmul.f32 %v8790_v57, %v5067_v32  ;;  %v5208_v45 = vsel %vm146_vm0, %v5136_v10, 0.0 }
 0x814   :  { %v5217_v3 = vsel %vm146_vm0, %v5139_v61, 0.0 }
 0x815   :  { %v6513_v51 = vpop.f32.mrb[180].mxu0  ;;  %5218 = vadd.xlane.f32.xlu1 %v5217_v3  ;;  %v5211_v14 = vsel %vm146_vm0, %v5137_v2, 0.0 }
 0x816   :  { %v5088_v58 = vadd.f32 %v6513_v51, %v8785_v24  ;;  %v5079_v60 = vpop.f32.mrb[181].mxu0 }
 0x817   :  { %v5080_v35 = vadd.f32 %v8785_v24, %v5079_v60  ;;  %v6514_v46 = vpop.f32.mrb[182].mxu0  ;;  %5209 = vadd.xlane.f32.xlu0 %v5208_v45 }
 0x818   :  { %v5142_v25 = vmul.f32 %v8790_v57, %v5088_v58  ;;  %5708 = vst.msk [vmem:[#allocation3 + $0xd0] sm:$0xff] %vm146_vm0, %v5088_v58  ;;  %v5091_v55 = vadd.f32 %v6514_v46, %v8785_v24  ;;  %v5082_v42 = vpop.f32.mrb[183].mxu0 }
 0x819   :  { %5706 = vst.msk [vmem:[#allocation3 + $0xc0] sm:$0xff] %vm146_vm0, %v5080_v35  ;;  %v5083_v9 = vadd.f32 %v8785_v24, %v5082_v42  ;;  %5212 = vadd.xlane.f32.xlu1 %v5211_v14  ;;  %v5140_v56 = vmul.f32 %v8790_v57, %v5080_v35 }
 0x81a   :  { %v5143_v40 = vmul.f32 %v8790_v57, %v5091_v55  ;;  %5709 = vst.msk [vmem:[#allocation3 + $0xd8] sm:$0xff] %vm146_vm0, %v5091_v55  ;;  %v5226_v33 = vsel %vm146_vm0, %v5142_v25, 0.0 }
 0x81b   :  { %5707 = vst.msk [vmem:[#allocation3 + $0xc8] sm:$0xff] %vm146_vm0, %v5083_v9  ;;  %5227 = vadd.xlane.f32.xlu0 %v5226_v33  ;;  %v5141_v17 = vmul.f32 %v8790_v57, %v5083_v9  ;;  %v5220_v54 = vsel %vm146_vm0, %v5140_v56, 0.0 }
 0x81c   :  { %v5229_v15 = vsel %vm146_vm0, %v5143_v40, 0.0 }
 0x81d   :  { %v6517_v38 = vpop.f32.mrb[184].mxu0  ;;  %5230 = vadd.xlane.f32.xlu1 %v5229_v15  ;;  %v5223_v63 = vsel %vm146_vm0, %v5141_v17, 0.0 }
 0x81e   :  { %v5104_v41 = vadd.f32 %v6517_v38, %v8785_v24  ;;  %v5095_v47 = vpop.f32.mrb[185].mxu0 }
 0x81f   :  { %v5096_v4 = vadd.f32 %v8785_v24, %v5095_v47  ;;  %v6518_v48 = vpop.f32.mrb[186].mxu0  ;;  %5221 = vadd.xlane.f32.xlu0 %v5220_v54 }
 0x820   :  { %v5146_v30 = vmul.f32 %v8790_v57, %v5104_v41  ;;  %5712 = vst.msk [vmem:[#allocation3 + $0xf0] sm:$0xff] %vm146_vm0, %v5104_v41  ;;  %v5107_v8 = vadd.f32 %v6518_v48, %v8785_v24  ;;  %v5098_v1 = vpop.f32.mrb[187].mxu0 }
 0x821   :  { %v5144_v31 = vmul.f32 %v8790_v57, %v5096_v4  ;;  %5710 = vst.msk [vmem:[#allocation3 + $0xe0] sm:$0xff] %vm146_vm0, %v5096_v4  ;;  %v5099_v20 = vadd.f32 %v8785_v24, %v5098_v1  ;;  %5224 = vadd.xlane.f32.xlu1 %v5223_v63 }
 0x822   :  { %v5147_v49 = vmul.f32 %v8790_v57, %v5107_v8  ;;  %5713 = vst.msk [vmem:[#allocation3 + $0xf8] sm:$0xff] %vm146_vm0, %v5107_v8  ;;  %v5238_v39 = vsel %vm146_vm0, %v5146_v30, 0.0 }
 0x823   :  { %v5145_v16 = vmul.f32 %v8790_v57, %v5099_v20  ;;  %5711 = vst.msk [vmem:[#allocation3 + $0xe8] sm:$0xff] %vm146_vm0, %v5099_v20  ;;  %5239 = vadd.xlane.f32.xlu0 %v5238_v39  ;;  %v5232_v12 = vsel %vm146_vm0, %v5144_v31, 0.0 }
 0x824   :  { %v5241_v24 = vsel %vm146_vm0, %v5147_v49, 0.0 }
 0x825   :  { %v5235_v19 = vsel %vm146_vm0, %v5145_v16, 0.0 }
 0x826   :  { %5236 = vadd.xlane.f32.xlu1 %v5235_v19 }
 0x827   :  { %5233 = vadd.xlane.f32.xlu0 %v5232_v12 }
 0x82a   :  { %5242 = vadd.xlane.f32.xlu1 %v5241_v24 }
 0x83d   :  { %5250 = vperm.xlu0 %6611, %v5848_v18  }
 0x873   :  { %v5156_v13 = vpop.xlane.xlu0 %5155 }
 0x876   :  { %v5153_v0 = vpop.xlane.xlu1 %5152 }
 0x877   :  { %v5150_v37 = vpop.xlane.xlu0 %5149 }
 0x87b   :  { %v5159_v44 = vpop.xlane.xlu0 %5158 }
 0x87e   :  { %v5171_v11 = vpop.xlane.xlu1 %5170 }
 0x87f   :  { %v5168_v59 = vpop.xlane.xlu0 %5167 }
 0x882   :  { %v5165_v22 = vpop.xlane.xlu1 %5164 }
 0x883   :  { %v5162_v28 = vpop.xlane.xlu0 %5161 }
 0x887   :  { %v5180_v57 = vpop.xlane.xlu0 %5179 }
 0x88b   :  { %v5174_v6 = vpop.xlane.xlu0 %5173 }
 0x88f   :  { %v8920_v23 = vpop.xlane.xlu0 %5191 }
 0x893   :  { %v5186_v29 = vpop.xlane.xlu0 %5185 }
 0x898   :  { %v8922_v52 = vpop.xlane.xlu0 %5203 }
 0x899   :  { %7023 = shalt.err (!%p7020_p4)
}
 0x89a   :  { %s7024_s19 = scalar_lea.hbm %s9137_s8, 4096 }
 0x89b   :  { %p7025_p5 = scmp.ne.s32.totalorder %s9137_s8, %s7024_s19  ;;  %p7028_p6 = scmp.lt.u32.totalorder %s7024_s19, %s9137_s8 }
 0x89d   :  { %p7030_p7 = pnand %p7028_p6, %p7025_p5 }
 0x89f   :  { %7033 = shalt.err (!%p7030_p7)
}
 0x8a0   :  { %s7042_s22 = smov 128   ;;  %s7043_s23 = smov 8   ;;  %v5198_v21 = vpop.xlane.xlu0 %5197  ;;  %v5183_v5 = vpop.xlane.xlu1 %5182  ;;  %vm5520_vm4 = vcmask 130112   ;;  %vm5657_vm5 = vcmask 1041409   ;;  %vm5659_vm6 = vcmask 1042434   ;;  %vm5661_vm7 = vcmask 1043459  }
 0x8a1   :  { %5727 = dma.vmem_to_hbm [thread:$0]  %s5722_s6, 4096, %s9137_s8, [#allocation4], %s7042_s22, %s7042_s22, %s7043_s23   ;;  %vm5663_vm8 = vcmask 1044484   ;;  %vm5665_vm9 = vcmask 1045509   ;;  %vm5667_vm10 = vcmask 1046534   ;;  %vm5669_vm11 = vcmask 1047559  }
 0x8a4   :  { %v8936_v26 = vpop.xlane.xlu0 %5215  ;;  %v5177_v43 = vpop.xlane.xlu1 %5176 }
 0x8a8   :  { %v8938_v34 = vpop.xlane.xlu0 %5209  ;;  %v5195_v27 = vpop.xlane.xlu1 %5194 }
 0x8ac   :  { %v8940_v7 = vpop.xlane.xlu0 %5227  ;;  %v5189_v62 = vpop.xlane.xlu1 %5188 }
 0x8b0   :  { %v8942_v53 = vpop.xlane.xlu0 %5221  ;;  %v5207_v36 = vpop.xlane.xlu1 %5206 }
 0x8b4   :  { %v8944_v32 = vpop.xlane.xlu0 %5239  ;;  %v5201_v10 = vpop.xlane.xlu1 %5200 }
 0x8b8   :  { %v8946_v61 = vpop.xlane.xlu0 %5233  ;;  %v8950_v2 = vpop.xlane.xlu1 %5218 }
 0x8bc   :  { %v8948_v50 = vpop.permute.xlu0 %5250  ;;  %v5213_v46 = vpop.xlane.xlu1 %5212 }
 0x8bd   :  { %v5253_v3 = vadd.f32 %v8948_v50, %v5150_v37  ;;  %v5254_v51 = vadd.f32 %v8948_v50, %v5153_v0  ;;  %v5255_v58 = vadd.f32 %v8948_v50, %v5156_v13  ;;  %v5256_v60 = vadd.f32 %v8948_v50, %v5159_v44 }
 0x8be   :  { %v5257_v45 = vadd.f32 %v8948_v50, %v5162_v28  ;;  %v5258_v35 = vadd.f32 %v8948_v50, %v5165_v22  ;;  %v5259_v25 = vadd.f32 %v8948_v50, %v5168_v59  ;;  %v5260_v9 = vadd.f32 %v8948_v50, %v5171_v11 }
 0x8bf   :  { %v5849_v55 = vmul.f32 -1.442695, %v5253_v3  ;;  %v5850_v42 = vmul.f32 -1.442695, %v5254_v51  ;;  %v5851_v14 = vmul.f32 -1.442695, %v5255_v58  ;;  %v5261_v40 = vadd.f32 %v8948_v50, %v5174_v6 }
 0x8c0   :  { %v5852_v56 = vmul.f32 -1.442695, %v5256_v60  ;;  %v5853_v33 = vmul.f32 -1.442695, %v5257_v45  ;;  %v5262_v17 = vadd.f32 %v8948_v50, %v5177_v43  ;;  %v5854_v15 = vmul.f32 -1.442695, %v5258_v35  ;;  %v5231_v4 = vpop.xlane.xlu1 %5230 }
 0x8c1   :  { %6884 = vpow2.f32 %v5849_v55  ;;  %v5263_v38 = vadd.f32 %v8948_v50, %v5180_v57  ;;  %v5855_v41 = vmul.f32 -1.442695, %v5259_v25  ;;  %v5264_v47 = vadd.f32 %v8948_v50, %v5183_v5 }
 0x8c2   :  { %6886 = vpow2.f32 %v5850_v42  ;;  %v5856_v54 = vmul.f32 -1.442695, %v5260_v9  ;;  %v5265_v48 = vadd.f32 %v8948_v50, %v5186_v29  ;;  %v5857_v30 = vmul.f32 -1.442695, %v5261_v40 }
 0x8c3   :  { %6888 = vpow2.f32 %v5851_v14  ;;  %v5266_v8 = vadd.f32 %v8948_v50, %v5189_v62  ;;  %v5858_v1 = vmul.f32 -1.442695, %v5262_v17  ;;  %v5267_v63 = vadd.f32 %v8948_v50, %v8920_v23 }
 0x8c4   :  { %6890 = vpow2.f32 %v5852_v56  ;;  %v5859_v31 = vmul.f32 -1.442695, %v5263_v38  ;;  %v5268_v20 = vadd.f32 %v8948_v50, %v5195_v27  ;;  %v5860_v49 = vmul.f32 -1.442695, %v5264_v47  ;;  %v5225_v18 = vpop.xlane.xlu1 %5224 }
 0x8c5   :  { %6892 = vpow2.f32 %v5853_v33  ;;  %v5269_v39 = vadd.f32 %v8948_v50, %v5198_v21  ;;  %v5861_v16 = vmul.f32 -1.442695, %v5265_v48  ;;  %v5270_v19 = vadd.f32 %v8948_v50, %v5201_v10 }
 0x8c6   :  { %6894 = vpow2.f32 %v5854_v15  ;;  %v5862_v12 = vmul.f32 -1.442695, %v5266_v8  ;;  %v5271_v13 = vadd.f32 %v8948_v50, %v8922_v52  ;;  %v5863_v37 = vmul.f32 -1.442695, %v5267_v63 }
 0x8c7   :  { %6896 = vpow2.f32 %v5855_v41  ;;  %v5272_v59 = vadd.f32 %v8948_v50, %v5207_v36  ;;  %v5864_v28 = vmul.f32 -1.442695, %v5268_v20  ;;  %v5273_v6 = vadd.f32 %v8948_v50, %v8938_v34 }
 0x8c8   :  { %6898 = vpow2.f32 %v5856_v54  ;;  %v5865_v0 = vmul.f32 -1.442695, %v5269_v39  ;;  %v5274_v11 = vadd.f32 %v8948_v50, %v5213_v46  ;;  %v5866_v29 = vmul.f32 -1.442695, %v5270_v19  ;;  %v5237_v62 = vpop.xlane.xlu1 %5236 }
 0x8c9   :  { %6900 = vpow2.f32 %v5857_v30  ;;  %v5275_v52 = vadd.f32 %v8948_v50, %v8936_v26  ;;  %v5867_v21 = vmul.f32 -1.442695, %v5271_v13  ;;  %v5276_v43 = vadd.f32 %v8948_v50, %v8950_v2 }
 0x8ca   :  { %6902 = vpow2.f32 %v5858_v1  ;;  %v5868_v34 = vmul.f32 -1.442695, %v5272_v59  ;;  %v5277_v36 = vadd.f32 %v8948_v50, %v8942_v53  ;;  %v5869_v10 = vmul.f32 -1.442695, %v5273_v6 }
 0x8cb   :  { %v8971_v24 = vpop.eup %6884  ;;  %6904 = vpow2.f32 %v5859_v31  ;;  %v5278_v26 = vadd.f32 %v8948_v50, %v5225_v18  ;;  %v5870_v51 = vmul.f32 -1.442695, %v5274_v11  ;;  %v5279_v60 = vadd.f32 %v8948_v50, %v8940_v7 }
 0x8cc   :  { %v8975_v44 = vpop.eup %6886  ;;  %6906 = vpow2.f32 %v5860_v49  ;;  %v5871_v2 = vmul.f32 -1.442695, %v5275_v52  ;;  %v5280_v35 = vadd.f32 %v8948_v50, %v5231_v4  ;;  %v5872_v46 = vmul.f32 -1.442695, %v5276_v43  ;;  %v5243_v7 = vpop.xlane.xlu1 %5242 }
 0x8cd   :  { %v8978_v57 = vpop.eup %6888  ;;  %6908 = vpow2.f32 %v5861_v16  ;;  %v5281_v53 = vadd.f32 %v8948_v50, %v8946_v61  ;;  %v5873_v55 = vmul.f32 -1.442695, %v5277_v36  ;;  %v5282_v14 = vadd.f32 %v8948_v50, %v5237_v62  ;;  %v9354_v36 = vld [vmem:[#allocation36_spill] sm:$0xff] }
 0x8ce   :  { %v8982_v23 = vpop.eup %6890  ;;  %6910 = vpow2.f32 %v5862_v12  ;;  %v5874_v9 = vmul.f32 -1.442695, %v5278_v26  ;;  %v5283_v40 = vadd.f32 %v8948_v50, %v8944_v32  ;;  %v5875_v33 = vmul.f32 -1.442695, %v5279_v60 }
 0x8cf   :  { %v8985_v22 = vpop.eup %6892  ;;  %6912 = vpow2.f32 %v5863_v37  ;;  %v5284_v15 = vadd.f32 %v8948_v50, %v5243_v7  ;;  %v5876_v38 = vmul.f32 -1.442695, %v5280_v35  ;;  %v5877_v41 = vmul.f32 -1.442695, %v5281_v53 }
 0x8d0   :  { %v8989_v5 = vpop.eup %6894  ;;  %6914 = vpow2.f32 %v5864_v28  ;;  %v5878_v54 = vmul.f32 -1.442695, %v5282_v14  ;;  %v5879_v48 = vmul.f32 -1.442695, %v5283_v40  ;;  %v5381_v1 = vadd.f32 1.0, %v8971_v24 }
 0x8d1   :  { %v8993_v27 = vpop.eup %6896  ;;  %6916 = vpow2.f32 %v5865_v0  ;;  %v5880_v8 = vmul.f32 -1.442695, %v5284_v15  ;;  %v5382_v50 = vadd.f32 1.0, %v8975_v44  ;;  %v5383_v20 = vadd.f32 1.0, %v8978_v57 }
 0x8d2   :  { %v6899_v3 = vpop.eup %6898  ;;  %6918 = vpow2.f32 %v5866_v29  ;;  %v5384_v39 = vadd.f32 1.0, %v8982_v23  ;;  %v5385_v19 = vadd.f32 1.0, %v8985_v22  ;;  %v5386_v24 = vadd.f32 1.0, %v8989_v5 }
 0x8d3   :  { %v6901_v58 = vpop.eup %6900  ;;  %6920 = vpow2.f32 %v5867_v21  ;;  %v5387_v13 = vadd.f32 1.0, %v8993_v27  ;;  %v5388_v44 = vadd.f32 1.0, %v6899_v3 }
 0x8d4   :  { %v6903_v45 = vpop.eup %6902  ;;  %6922 = vpow2.f32 %v5868_v34  ;;  %v5389_v28 = vadd.f32 1.0, %v6901_v58 }
 0x8d5   :  { %v6905_v25 = vpop.eup %6904  ;;  %6924 = vpow2.f32 %v5869_v10  ;;  %v5390_v6 = vadd.f32 1.0, %v6903_v45 }
 0x8d6   :  { %v6907_v42 = vpop.eup %6906  ;;  %6926 = vpow2.f32 %v5870_v51  ;;  %v5391_v23 = vadd.f32 1.0, %v6905_v25  ;;  %v9355_v51 = vld [vmem:[#allocation37_spill] sm:$0xff] }
 0x8d7   :  { %v6909_v56 = vpop.eup %6908  ;;  %6928 = vpow2.f32 %v5871_v2  ;;  %v5392_v29 = vadd.f32 1.0, %v6907_v42 }
 0x8d8   :  { %v6911_v17 = vpop.eup %6910  ;;  %6930 = vpow2.f32 %v5872_v46  ;;  %v5393_v52 = vadd.f32 1.0, %v6909_v56 }
 0x8d9   :  { %v6913_v61 = vpop.eup %6912  ;;  %6932 = vpow2.f32 %v5873_v55  ;;  %v5394_v5 = vadd.f32 1.0, %v6911_v17 }
 0x8da   :  { %v6915_v47 = vpop.eup %6914  ;;  %6934 = vpow2.f32 %v5874_v9  ;;  %v5395_v34 = vadd.f32 1.0, %v6913_v61 }
 0x8db   :  { %v6917_v4 = vpop.eup %6916  ;;  %6936 = vpow2.f32 %v5875_v33  ;;  %v5396_v62 = vadd.f32 1.0, %v6915_v47 }
 0x8dc   :  { %v6919_v30 = vpop.eup %6918  ;;  %6938 = vpow2.f32 %v5876_v38  ;;  %v5397_v26 = vadd.f32 1.0, %v6917_v4 }
 0x8dd   :  { %v6921_v32 = vpop.eup %6920  ;;  %6940 = vpow2.f32 %v5877_v41  ;;  %v5398_v2 = vadd.f32 1.0, %v6919_v30 }
 0x8de   :  { %v9008_v63 = vpop.eup %6922  ;;  %6942 = vpow2.f32 %v5878_v54  ;;  %v5399_v46 = vadd.f32 1.0, %v6921_v32 }
 0x8df   :  { %v9011_v31 = vpop.eup %6924  ;;  %6944 = vpow2.f32 %v5879_v48  ;;  %v5400_v42 = vadd.f32 1.0, %v9008_v63 }
 0x8e0   :  { %v9014_v49 = vpop.eup %6926  ;;  %6946 = vpow2.f32 %v5880_v8  ;;  %v5401_v56 = vadd.f32 1.0, %v9011_v31 }
 0x8e1   :  { %v9017_v16 = vpop.eup %6928  ;;  %6948 = vrcp.f32 %v5381_v1  ;;  %v5402_v17 = vadd.f32 1.0, %v9014_v49 }
 0x8e2   :  { %v9020_v12 = vpop.eup %6930  ;;  %6950 = vrcp.f32 %v5382_v50  ;;  %v5403_v41 = vadd.f32 1.0, %v9017_v16 }
 0x8e3   :  { %v9023_v18 = vpop.eup %6932  ;;  %6952 = vrcp.f32 %v5383_v20  ;;  %v5404_v48 = vadd.f32 1.0, %v9020_v12 }
 0x8e4   :  { %v9026_v37 = vpop.eup %6934  ;;  %6954 = vrcp.f32 %v5384_v39  ;;  %v5405_v1 = vadd.f32 1.0, %v9023_v18 }
 0x8e5   :  { %v9028_v59 = vpop.eup %6936  ;;  %6956 = vrcp.f32 %v5385_v19  ;;  %v5406_v20 = vadd.f32 1.0, %v9026_v37 }
 0x8e6   :  { %v9030_v57 = vpop.eup %6938  ;;  %6958 = vrcp.f32 %v5386_v24  ;;  %v5407_v19 = vadd.f32 1.0, %v9028_v59 }
 0x8e7   :  { %v9032_v0 = vpop.eup %6940  ;;  %6960 = vrcp.f32 %v5387_v13  ;;  %v5408_v13 = vadd.f32 1.0, %v9030_v57 }
 0x8e8   :  { %v9034_v11 = vpop.eup %6942  ;;  %6962 = vrcp.f32 %v5388_v44 }
 0x8e9   :  { %v9036_v22 = vpop.eup %6944  ;;  %6964 = vrcp.f32 %v5389_v28 }
 0x8ea   :  { %v9038_v21 = vpop.eup %6946  ;;  %6966 = vrcp.f32 %v5390_v6  ;;  %v5409_v6 = vadd.f32 1.0, %v9032_v0 }
 0x8eb   :  { %v6949_v43 = vpop.eup %6948  ;;  %6968 = vrcp.f32 %v5391_v23 }
 0x8ec   :  { %v6951_v27 = vpop.eup %6950  ;;  %6970 = vrcp.f32 %v5392_v29  ;;  %v5514_v10 = vrot.slane %v6949_v43, %v9354_v36 }
 0x8ed   :  { %v6953_v3 = vpop.eup %6952  ;;  %6972 = vrcp.f32 %v5393_v52  ;;  %v5519_v58 = vrot.slane %v6951_v27, %v9355_v51  ;;  %v5410_v52 = vadd.f32 1.0, %v9034_v11  ;;  %v5412_v11 = vadd.f32 1.0, %v9038_v21 }
 0x8ee   :  { %v6955_v60 = vpop.eup %6954  ;;  %6974 = vrcp.f32 %v5394_v5  ;;  %v5525_v45 = vrot.slane %v6953_v3, %v9354_v36 }
 0x8ef   :  { %v6957_v35 = vpop.eup %6956  ;;  %6976 = vrcp.f32 %v5395_v34  ;;  %v5521_v25 = vsel %vm5520_vm4, %v5519_v58, %v5514_v10  ;;  %v5529_v53 = vrot.slane %v6955_v60, %v9355_v51  ;;  %v5411_v34 = vadd.f32 1.0, %v9036_v22  ;;  %v69_v10 = vld [vmem:[%s9131_s2] sm:$0xff] }
 0x8f0   :  { %v6959_v55 = vpop.eup %6958  ;;  %6978 = vrcp.f32 %v5396_v62  ;;  %v5534_v14 = vrot.slane %v6957_v35, %v9354_v36 }
 0x8f1   :  { %v6961_v9 = vpop.eup %6960  ;;  %6980 = vrcp.f32 %v5397_v26  ;;  %v5530_v7 = vsel %vm5520_vm4, %v5529_v53, %v5525_v45  ;;  %v5538_v40 = vrot.slane %v6959_v55, %v9355_v51 }
 0x8f2   :  { %v6963_v33 = vpop.eup %6962  ;;  %6982 = vrcp.f32 %v5398_v2  ;;  %v5543_v15 = vrot.slane %v6961_v9, %v9354_v36  ;;  %v5658_v38 = vsel %vm5657_vm5, %v5530_v7, %v5521_v25 }
 0x8f3   :  { %v6965_v61 = vpop.eup %6964  ;;  %6984 = vrcp.f32 %v5399_v46  ;;  %v5539_v47 = vsel %vm5520_vm4, %v5538_v40, %v5534_v14  ;;  %v5547_v54 = vrot.slane %v6963_v33, %v9355_v51 }
 0x8f4   :  { %v6967_v4 = vpop.eup %6966  ;;  %6986 = vrcp.f32 %v5400_v42  ;;  %v5552_v30 = vrot.slane %v6965_v61, %v9354_v36  ;;  %v5660_v8 = vsel %vm5659_vm6, %v5539_v47, %v5658_v38 }
 0x8f5   :  { %v6969_v32 = vpop.eup %6968  ;;  %6988 = vrcp.f32 %v5401_v56  ;;  %v5548_v63 = vsel %vm5520_vm4, %v5547_v54, %v5543_v15  ;;  %v5556_v50 = vrot.slane %v6967_v4, %v9355_v51 }
 0x8f6   :  { %v6971_v31 = vpop.eup %6970  ;;  %6990 = vrcp.f32 %v5402_v17  ;;  %v5561_v49 = vrot.slane %v6969_v32, %v9354_v36  ;;  %v5662_v39 = vsel %vm5661_vm7, %v5548_v63, %v5660_v8 }
 0x8f7   :  { %v6973_v16 = vpop.eup %6972  ;;  %6992 = vrcp.f32 %v5403_v41  ;;  %v5557_v12 = vsel %vm5520_vm4, %v5556_v50, %v5552_v30  ;;  %v5565_v24 = vrot.slane %v6971_v31, %v9355_v51 }
 0x8f8   :  { %v6975_v18 = vpop.eup %6974  ;;  %6994 = vrcp.f32 %v5404_v48  ;;  %v5570_v44 = vrot.slane %v6973_v16, %v9354_v36  ;;  %v5664_v37 = vsel %vm5663_vm8, %v5557_v12, %v5662_v39 }
 0x8f9   :  { %v6977_v28 = vpop.eup %6976  ;;  %6996 = vrcp.f32 %v5405_v1  ;;  %v5566_v23 = vsel %vm5520_vm4, %v5565_v24, %v5561_v49  ;;  %v5574_v59 = vrot.slane %v6975_v18, %v9355_v51 }
 0x8fa   :  { %v6979_v29 = vpop.eup %6978  ;;  %6998 = vrcp.f32 %v5406_v20  ;;  %v5579_v5 = vrot.slane %v6977_v28, %v9354_v36  ;;  %v5666_v57 = vsel %vm5665_vm9, %v5566_v23, %v5664_v37 }
 0x8fb   :  { %v6981_v43 = vpop.eup %6980  ;;  %7000 = vrcp.f32 %v5407_v19  ;;  %v5575_v27 = vsel %vm5520_vm4, %v5574_v59, %v5570_v44  ;;  %v5583_v0 = vrot.slane %v6979_v29, %v9355_v51 }
 0x8fc   :  { %v6983_v62 = vpop.eup %6982  ;;  %7002 = vrcp.f32 %v5408_v13  ;;  %v5588_v3 = vrot.slane %v6981_v43, %v9354_v36  ;;  %v5668_v26 = vsel %vm5667_vm10, %v5575_v27, %v5666_v57 }
 0x8fd   :  { %v6985_v58 = vpop.eup %6984  ;;  %7004 = vrcp.f32 %v5409_v6  ;;  %v5584_v22 = vsel %vm5520_vm4, %v5583_v0, %v5579_v5  ;;  %v5592_v60 = vrot.slane %v6983_v62, %v9355_v51 }
 0x8fe   :  { %v6987_v2 = vpop.eup %6986  ;;  %7006 = vrcp.f32 %v5410_v52  ;;  %v5597_v45 = vrot.slane %v6985_v58, %v9354_v36  ;;  %v5670_v35 = vsel %vm5669_vm11, %v5584_v22, %v5668_v26 }
 0x8ff   :  { %v6989_v46 = vpop.eup %6988  ;;  %7008 = vrcp.f32 %v5411_v34  ;;  %v5593_v21 = vsel %vm5520_vm4, %v5592_v60, %v5588_v3  ;;  %v5601_v25 = vrot.slane %v6987_v2, %v9355_v51  ;;  %v5680_v53 = vadd.f32 %v5670_v35, %v69_v10 }
 0x900   :  { %v6991_v55 = vpop.eup %6990  ;;  %7010 = vrcp.f32 %v5412_v11  ;;  %v5606_v42 = vrot.slane %v6989_v46, %v9354_v36 }
 0x901   :  { %v6993_v14 = vpop.eup %6992  ;;  %v5602_v9 = vsel %vm5520_vm4, %v5601_v25, %v5597_v45  ;;  %v5610_v56 = vrot.slane %v6991_v55, %v9355_v51  ;;  %5714 = vst.msk [vmem:[%s9138_s9] sm:$0xff] %vm1582_vm3, %v5680_v53 }
 0x902   :  { %v6995_v7 = vpop.eup %6994  ;;  %v5615_v40 = vrot.slane %v6993_v14, %v9354_v36  ;;  %v5671_v33 = vsel %vm5657_vm5, %v5602_v9, %v5593_v21 }
 0x903   :  { %v6997_v17 = vpop.eup %6996  ;;  %v5611_v15 = vsel %vm5520_vm4, %v5610_v56, %v5606_v42  ;;  %v5619_v38 = vrot.slane %v6995_v7, %v9355_v51 }
 0x904   :  { %v6999_v61 = vpop.eup %6998  ;;  %v5624_v41 = vrot.slane %v6997_v17, %v9354_v36  ;;  %v5672_v47 = vsel %vm5659_vm6, %v5611_v15, %v5671_v33 }
 0x905   :  { %v7001_v54 = vpop.eup %7000  ;;  %v5620_v4 = vsel %vm5520_vm4, %v5619_v38, %v5615_v40  ;;  %v5628_v48 = vrot.slane %v6999_v61, %v9355_v51 }
 0x906   :  { %v7003_v30 = vpop.eup %7002  ;;  %v5633_v8 = vrot.slane %v7001_v54, %v9354_v36  ;;  %v5673_v32 = vsel %vm5661_vm7, %v5620_v4, %v5672_v47 }
 0x907   :  { %v7005_v1 = vpop.eup %7004  ;;  %v5629_v63 = vsel %vm5520_vm4, %v5628_v48, %v5624_v41  ;;  %v5637_v50 = vrot.slane %v7003_v30, %v9355_v51 }
 0x908   :  { %v7007_v31 = vpop.eup %7006  ;;  %v5642_v20 = vrot.slane %v7005_v1, %v9354_v36  ;;  %v5674_v49 = vsel %vm5663_vm8, %v5629_v63, %v5673_v32  ;;  %v70_v37 = vld [vmem:[%s9131_s2 + $0x8] sm:$0xff] }
 0x909   :  { %v7009_v39 = vpop.eup %7008  ;;  %v5638_v16 = vsel %vm5520_vm4, %v5637_v50, %v5633_v8  ;;  %v5646_v19 = vrot.slane %v7007_v31, %v9355_v51 }
 0x90a   :  { %v7011_v12 = vpop.eup %7010  ;;  %v5651_v24 = vrot.slane %v7009_v39, %v9354_v36  ;;  %v5675_v18 = vsel %vm5665_vm9, %v5638_v16, %v5674_v49 }
 0x90b   :  { %v5647_v13 = vsel %vm5520_vm4, %v5646_v19, %v5642_v20  ;;  %v5655_v44 = vrot.slane %v7011_v12, %v9355_v51 }
 0x90c   :  { %v5676_v28 = vsel %vm5667_vm10, %v5647_v13, %v5675_v18 }
 0x90d   :  { %v5656_v6 = vsel %vm5520_vm4, %v5655_v44, %v5651_v24 }
 0x90e   :  { %v5677_v23 = vsel %vm5669_vm11, %v5656_v6, %v5676_v28 }
 0x90f   :  { %v5681_v59 = vadd.f32 %v5677_v23, %v70_v37 }
 0x911   :  { %5715 = vst.msk [vmem:[%s9138_s9 + $0x8] sm:$0xff] %vm1582_vm3, %v5681_v59 }
 0x912   :  { %7034 = dma.done.wait [#allocation4], 4096  }
 0x913   :  { %7035 = vsyncadd [#allocation4], 4294963200 }
 0x914   :  { %5735 = vsyncpa [#allocation4], 1 }

// kernel: edge_pool_forward.2
= control target key start
LH: loop header
LB: loop body
LE: loop exit
PB: predicated region body
PF: predicated region fallthrough
CT: control target
= control target key end

     0   :  { %vm54_vm0 = vcmask 261120   ;;  %v9807_v14 = vmov 0.0   ;;  %vm7501_vm1 = vmmov 0   ;;  %v289_v52 = vlaneseq  ;;  %s9791_s0 = inlined_call_operand.vmem [shape: f32[16,32], index: 0, kind: input, shape index: {}]   ;;  %s9792_s5 = inlined_call_operand.vmem [shape: bf16[32,128], index: 5, kind: input, shape index: {}]   ;;  %s9793_s7 = inlined_call_operand.vmem [shape: bf16[128,64], index: 7, kind: input, shape index: {}]   ;;  %s9794_s3 = inlined_call_operand.vmem [shape: f32[1,32], index: 3, kind: input, shape index: {}]   ;;  %s9795_s4 = inlined_call_operand.vmem [shape: f32[1,32], index: 4, kind: input, shape index: {}]   ;;  %s9796_s6 = inlined_call_operand.vmem [shape: f32[1,128], index: 6, kind: input, shape index: {}]   ;;  %s9797_s9 = inlined_call_operand.vmem [shape: bf16[32,384], index: 9, kind: input, shape index: {}]   ;;  %s9798_s8 = inlined_call_operand.vmem [shape: f32[1,64], index: 8, kind: input, shape index: {}]   ;;  %s9799_s1 = inlined_call_operand.vmem [shape: f32[16,16], index: 1, kind: input, shape index: {}]   ;;  %s9800_s10 = inlined_call_operand.vmem [shape: bf16[128,32], index: 10, kind: input, shape index: {}]   ;;  %s9801_s13 = inlined_call_operand.<no memory space> [shape: f32[1,1], index: 13, kind: input, shape index: {}]   ;;  %s9802_s11 = inlined_call_operand.vmem [shape: f32[1,32], index: 11, kind: input, shape index: {}]   ;;  %s9803_s12 = inlined_call_operand.vmem [shape: f32[1,32], index: 12, kind: input, shape index: {}]   ;;  %s9804_s14 = inlined_call_operand.vmem [shape: f32[256,32], index: 14, kind: output, shape index: {0}]   ;;  %s9805_s2 = inlined_call_operand.vmem [shape: f32[16,16], index: 2, kind: input, shape index: {}, may-alias: {2,15}]   ;;  %s9806_s15 = inlined_call_operand.vmem [shape: f32[16,16], index: 15, kind: output, shape index: {1}, may-alias: {2,15}]  }
   0x1   :  { %v52_v0 = vld [vmem:[%s9791_s0] sm:$0xff]  ;;  %v53_v1 = vld [vmem:[%s9791_s0 + $0x8] sm:$0xff]  ;;  %6499 = vmatprep.subr.bf16.mxu0 %v9807_v14  ;;  %6503 = vmatprep.mubr.msk.bf16.mxu0 %vm7501_vm1, %v9807_v14  ;;  %v7090_v19 = vld [vmem:[%s9793_s7 + $0x10] sm:$0xff]   ;;  %vm1018_vm2 = vcmask 523264   ;;  %vm2015_vm3 = vcmask 130048   ;;  %vm5953_vm4 = vcmask 130112  }
   0x2   :  { %v55_v2 = vsel %vm54_vm0, %v52_v0, 0.0  ;;  %v58_v3 = vsel %vm54_vm0, %v53_v1, 0.0  ;;  %v7086_v15 = vld [vmem:[%s9792_s5] sm:$0xff]   ;;  %6507 = vmatprep.subr.bf16.mxu1 %v9807_v14  ;;  %6523 = vmatprep.mubr.msk.bf16.mxu1 %vm7501_vm1, %v9807_v14  ;;  %v7087_v16 = vld [vmem:[%s9792_s5 + $0x8] sm:$0xff]   ;;  %v7091_v20 = vld [vmem:[%s9793_s7 + $0x18] sm:$0xff]   ;;  %v290_v53 = vshrl.u32 %v289_v52, 7 }
   0x3   :  { %56 = vadd.xlane.f32.xlu0 %v55_v2  ;;  %6500 = vmatpush3.bf16.msra.mxu0 %v7086_v15  ;;  %v7088_v17 = vld [vmem:[%s9793_s7] sm:$0xff]   ;;  %v7089_v18 = vld [vmem:[%s9793_s7 + $0x8] sm:$0xff]   ;;  %v7094_v40 = vld [vmem:[%s9793_s7 + $0x30] sm:$0xff]   ;;  %v5943_v54 = vand.u32 127, %v289_v52  ;;  %vm6090_vm5 = vcmask 1041409   ;;  %vm6092_vm6 = vcmask 1042434  }
   0x4   :  { %6501 = vmatprep.subr.bf16.mxu0 %v9807_v14  ;;  %6508 = vmatpush3.bf16.msra.mxu1 %v7088_v17  ;;  %v7092_v21 = vld [vmem:[%s9793_s7 + $0x20] sm:$0xff]   ;;  %v7093_v22 = vld [vmem:[%s9793_s7 + $0x28] sm:$0xff]   ;;  %v7095_v41 = vld [vmem:[%s9793_s7 + $0x38] sm:$0xff]   ;;  %vm6094_vm7 = vcmask 1043459   ;;  %vm6096_vm8 = vcmask 1044484   ;;  %vm6098_vm9 = vcmask 1045509  }
   0x5   :  { %6509 = vmatprep.subr.bf16.mxu1 %v9807_v14  ;;  %v6157_v31 = vld [vmem:[%s9794_s3] ss:$0 sm:$0xff]  ;;  %v7650_v55 = vsub.s32 %v5943_v54, %v290_v53  ;;  %v5948_v56 = vadd.s32 4294967288, %v5943_v54  ;;  %v7098_v59 = vld [vmem:[%s9797_s9 + $0x4] ss:$12 sps:$4 sm:$0xff]   ;;  %vm6100_vm10 = vcmask 1046534  }
   0x6   :  { %v6158_v35 = vld [vmem:[%s9795_s4] ss:$0 sm:$0xff]  ;;  %v7663_v60 = vld [vmem:[%s9797_s9 + $0x8] ss:$12 sps:$4 sm:$0xff]   ;;  %v7100_v61 = vld [vmem:[%s9797_s9 + $0x18] ss:$12 sps:$4 sm:$0xff]  }
   0x7   :  { %59 = vadd.xlane.f32.xlu0 %v58_v3  ;;  %6502 = vmatpush3.bf16.msra.mxu0 %v7087_v16  ;;  %v6159_v42 = vld [vmem:[%s9796_s6] ss:$0 sm:$0xff]  ;;  %9872 = vst [vmem:[#allocation3_spill] sm:$0xff] %v7650_v55  ;;  %v7652_v57 = vsub.s32 %v5948_v56, %v290_v53  ;;  %v7102_v62 = vld [vmem:[%s9797_s9 + $0x1c] ss:$12 sps:$4 sm:$0xff]   ;;  %vm6102_vm11 = vcmask 1047559  }
   0x8   :  { %6510 = vmatpush3.bf16.msra.mxu1 %v7089_v18  ;;  %v7096_v58 = vld [vmem:[%s9797_s9] ss:$12 sps:$4 sm:$0xff]   ;;  %628 = vmatprep.subr.bf16.mxu0 %v7098_v59 }
   0x9   :  { %6511 = vmatprep.subr.bf16.mxu1 %v9807_v14  ;;  %9873 = vst [vmem:[#allocation4_spill] sm:$0xff] %v7652_v57  ;;  %v7676_v63 = vld [vmem:[%s9797_s9 + $0x20] ss:$12 sps:$4 sm:$0xff]   ;;  %s7503_s9 = smov 96  }
   0xc   :  { %6512 = vmatpush3.bf16.msra.mxu1 %v7090_v19 }
   0xd   :  { %6513 = vmatprep.subr.bf16.mxu1 %v9807_v14 }
  0x10   :  { %6514 = vmatpush3.bf16.msra.mxu1 %v7091_v20 }
  0x11   :  { %6515 = vmatprep.subr.bf16.mxu1 %v9807_v14 }
  0x14   :  { %6516 = vmatpush3.bf16.msra.mxu1 %v7092_v21  ;;  %v7703_v21 = vsub.s32 0, %v290_v53 }
  0x15   :  { %6517 = vmatprep.subr.bf16.mxu1 %v9807_v14 }
  0x18   :  { %6518 = vmatpush3.bf16.msra.mxu1 %v7093_v22 }
  0x19   :  { %6519 = vmatprep.subr.bf16.mxu1 %v9807_v14 }
  0x1c   :  { %6520 = vmatpush3.bf16.msra.mxu1 %v7094_v40 }
  0x1d   :  { %6521 = vmatprep.subr.bf16.mxu1 %v9807_v14 }
  0x20   :  { %6522 = vmatpush3.bf16.msra.mxu1 %v7095_v41 }
  0x21   :  { %6995 = vmatprep.subr.bf16.mxu1 %v7663_v60 }
  0x90   :  { %v57_v4 = vpop.xlane.xlu0 %56 }
  0x91   :  { %v62_v5 = vmul.f32 0.03125, %v57_v4 }
  0x93   :  { %v64_v6 = vsub.f32 %v52_v0, %v62_v5  ;;  %v7502_v0 = vmov 0  }
  0x94   :  { %v60_v7 = vpop.xlane.xlu0 %59  ;;  %7085 = vset.pattern.permute.xlu0 %v7502_v0 }
  0x95   :  { %v63_v8 = vmul.f32 0.03125, %v60_v7  ;;  %v66_v9 = vmul.f32 %v64_v6, %v64_v6 }
  0x97   :  { %v65_v10 = vsub.f32 %v53_v1, %v63_v8  ;;  %v68_v11 = vsel %vm54_vm0, %v66_v9, 0.0  ;;  %v6163_v1 = vld [vmem:[%s9798_s8] ss:$0 sm:$0xff]  ;;  %v7504_v8 = vmov 1966171168  }
  0x98   :  { %69 = vadd.xlane.f32.xlu1 %v68_v11  ;;  %v287_v9 = vunpack.c.l.s4 %v7504_v8 }
  0x99   :  { %v67_v12 = vmul.f32 %v65_v10, %v65_v10 }
  0x9b   :  { %v71_v13 = vsel %vm54_vm0, %v67_v12, 0.0 }
  0x9c   :  { %72 = vadd.xlane.f32.xlu1 %v71_v13 }
 0x125   :  { %v70_v23 = vpop.xlane.xlu1 %69 }
 0x126   :  { %v74_v24 = vmul.f32 0.03125, %v70_v23 }
 0x128   :  { %v76_v25 = vadd.f32 1e-05, %v74_v24 }
 0x129   :  { %v73_v26 = vpop.xlane.xlu1 %72 }
 0x12a   :  { %7112 = vrsqrt.f32 %v76_v25  ;;  %v75_v27 = vmul.f32 0.03125, %v73_v26 }
 0x12c   :  { %v77_v28 = vadd.f32 1e-05, %v75_v27 }
 0x12e   :  { %7114 = vrsqrt.f32 %v77_v28 }
 0x134   :  { %v7113_v29 = vpop.eup %7112 }
 0x135   :  { %v80_v30 = vmul.f32 %v7113_v29, %v64_v6 }
 0x137   :  { %v89_v34 = vmul.f32 %v6157_v31, %v80_v30 }
 0x138   :  { %v7115_v32 = vpop.eup %7114 }
 0x139   :  { %v81_v33 = vmul.f32 %v7115_v32, %v65_v10  ;;  %v98_v37 = vadd.f32 %v6158_v35, %v89_v34  ;;  %v288_v10 = vunpack.c.0.s8 %v287_v9 }
 0x13b   :  { %v90_v36 = vmul.f32 %v6157_v31, %v81_v33  ;;  %v7690_v11 = vsub.s32 %v288_v10, %v290_v53 }
 0x13d   :  { %v99_v38 = vadd.f32 %v6158_v35, %v90_v36 }
 0x13f   :  { %v100_v39 = vpack.c.bf16 %v99_v38, %v98_v37 }
 0x141   :  { %6504 = vmatmul.mubr.msk.bf16.vlgmr.msra.gmra.mrb[0].mxu0 %vm54_vm0, %v100_v39 }
 0x142   :  { %629 = vmatpush1.bf16.msra.mxu0 %v7096_v58  ;;  %660 = vmatprep.mubr.bf16.mxu0 %v7502_v0 }
 0x143   :  { %630 = vmatprep.subr.bf16.mxu0 %v7102_v62 }
 0x146   :  { %631 = vmatpush1.bf16.msra.mxu0 %v7100_v61 }
 0x147   :  { %6527 = vmatprep.subr.bf16.mxu0 %v7663_v60 }
 0x214   :  { %v161_v43 = vpop.f32.mrb[0].mxu0 }
 0x215   :  { %v162_v44 = vadd.f32 %v6159_v42, %v161_v43  ;;  %v6505_v45 = vpop.f32.mrb[1].mxu0 }
 0x216   :  { %v164_v46 = vpop.f32.mrb[2].mxu0 }
 0x217   :  { %v165_v47 = vadd.f32 %v6159_v42, %v164_v46  ;;  %v6506_v48 = vpop.f32.mrb[3].mxu0  ;;  %v168_v49 = vmax.f32 %v162_v44, 0.0 }
 0x219   :  { %v169_v50 = vmax.f32 %v165_v47, 0.0 }
 0x21b   :  { %v170_v51 = vpack.c.bf16 %v169_v50, %v168_v49 }
 0x21d   :  { %6524 = vmatmul.mubr.bf16.vlgmr.msra.gmra.mrb[0].mxu1 %v170_v51 }
 0x21e   :  { %6997 = vmatpush3.bf16.msra.mxu1 %v7663_v60 }
 0x21f   :  { %6996 = vmatprep.subr.bf16.mxu1 %v7676_v63 }
 0x222   :  { %6998 = vmatpush3.bf16.msra.mxu1 %v7676_v63 }
 0x223   :  { %6563 = vmatprep.subr.bf16.mxu1 %v9807_v14 }
 0x2f0   :  { %v276_v2 = vpop.f32.mrb[0].mxu1 }
 0x2f1   :  { %v7687_v3 = vadd.f32 %v6163_v1, %v276_v2  ;;  %v6525_v4 = vpop.f32.mrb[1].mxu1 }
 0x2f2   :  { %v279_v5 = vpop.f32.mrb[2].mxu1 }
 0x2f3   :  { %v280_v6 = vadd.f32 %v6163_v1, %v279_v5  ;;  %463 = vrot.lane.b32.xlu0 %v7687_v3, %s7503_s9  ;;  %v6526_v7 = vpop.f32.mrb[3].mxu1  ;;  %v292_v16 = vrot.slane %v7687_v3, %v7690_v11 }
 0x2f5   :  { %465 = vrot.lane.b32.xlu1 %v280_v6, %s7503_s9  ;;  %v341_v12 = vrot.slane %v280_v6, %v7690_v11  ;;  %v334_v15 = vcombine.high %v280_v6, %v280_v6  ;;  %v308_v20 = vrot.slane %v292_v16, %v7690_v11  ;;  %v300_v25 = vcombine.high %v292_v16, %v292_v16 }
 0x2f6   :  { %v285_v6 = vcombine.high %v7687_v3, %v7687_v3 }
 0x2f7   :  { %v349_v13 = vcombine.high %v341_v12, %v341_v12  ;;  %v7696_v17 = vrot.slane %v341_v12, %v7690_v11  ;;  %v348_v19 = vrot.slane %v334_v15, %v7690_v11  ;;  %v386_v26 = vrot.slane %v308_v20, %v7703_v21 }
 0x2f8   :  { %v322_v32 = vrot.slane %v300_v25, %v7690_v11  ;;  %v330_v53 = vcombine.high %v308_v20, %v308_v20 }
 0x2f9   :  { %v7699_v18 = vrot.slane %v349_v13, %v7690_v11  ;;  %v379_v22 = vcombine.high %v7696_v17, %v7696_v17  ;;  %v364_v24 = vrot.slane %v348_v19, %v7690_v11  ;;  %v350_v27 = vcombine.high %v348_v19, %v348_v19 }
 0x2fa   :  { %v390_v47 = vrot.slane %v322_v32, %v7703_v21  ;;  %v332_v7 = vcombine.high %v322_v32, %v322_v32  ;;  %v299_v13 = vrot.slane %v285_v6, %v7690_v11 }
 0x2fb   :  { %v381_v23 = vcombine.high %v7699_v18, %v7699_v18  ;;  %v426_v28 = vrot.slane %v379_v22, %v7703_v21  ;;  %v434_v31 = vrot.slane %v364_v24, %v7703_v21  ;;  %v378_v41 = vrot.slane %v350_v27, %v7690_v11 }
 0x2fc   :  { %v380_v42 = vcombine.high %v364_v24, %v364_v24  ;;  %v398_v15 = vrot.slane %v332_v7, %v7703_v21  ;;  %v315_v16 = vrot.slane %v299_v13, %v7690_v11  ;;  %v301_v22 = vcombine.high %v299_v13, %v299_v13 }
 0x2fd   :  { %v430_v29 = vrot.slane %v381_v23, %v7703_v21  ;;  %v438_v49 = vrot.slane %v378_v41, %v7703_v21  ;;  %v382_v58 = vcombine.high %v378_v41, %v378_v41 }
 0x2fe   :  { %v442_v51 = vrot.slane %v380_v42, %v7703_v21  ;;  %v402_v23 = vrot.slane %v315_v16, %v7703_v21  ;;  %v329_v25 = vrot.slane %v301_v22, %v7690_v11 }
 0x2ff   :  { %v446_v4 = vrot.slane %v382_v58, %v7703_v21 }
 0x365   :  { %v7713_v30 = vpop.permute.xlu0 %463 }
 0x366   :  { %v469_v34 = vadd.f32 %v7713_v30, %v386_v26  ;;  %v489_v35 = vadd.f32 %v7713_v30, %v426_v28  ;;  %v491_v36 = vadd.f32 %v7713_v30, %v430_v29  ;;  %v493_v46 = vadd.f32 %v7713_v30, %v434_v31 }
 0x367   :  { %v7717_v33 = vpop.permute.xlu1 %465  ;;  %v471_v54 = vadd.f32 %v7713_v30, %v390_v47  ;;  %v495_v59 = vadd.f32 %v7713_v30, %v438_v49  ;;  %v497_v62 = vadd.f32 %v7713_v30, %v442_v51  ;;  %v499_v9 = vadd.f32 %v7713_v30, %v446_v4 }
 0x368   :  { %v470_v37 = vadd.f32 %v7717_v33, %v386_v26  ;;  %v490_v38 = vadd.f32 %v7717_v33, %v426_v28  ;;  %v492_v39 = vadd.f32 %v7717_v33, %v430_v29  ;;  %v494_v40 = vadd.f32 %v7717_v33, %v434_v31 }
 0x369   :  { %v472_v50 = vadd.f32 %v7717_v33, %v390_v47  ;;  %v496_v52 = vadd.f32 %v7717_v33, %v438_v49  ;;  %v498_v56 = vadd.f32 %v7717_v33, %v442_v51  ;;  %v500_v5 = vadd.f32 %v7717_v33, %v446_v4 }
 0x36a   :  { %v7727_v43 = vpack.c.bf16 %v470_v37, %v469_v34  ;;  %v7729_v44 = vpack.c.bf16 %v490_v38, %v489_v35  ;;  %v7731_v45 = vpack.c.bf16 %v492_v39, %v491_v36  ;;  %v7739_v48 = vpack.c.bf16 %v494_v40, %v493_v46 }
 0x36b   :  { %v7755_v61 = vpack.c.bf16 %v472_v50, %v471_v54  ;;  %v7758_v1 = vpack.c.bf16 %v496_v52, %v495_v59  ;;  %v7764_v2 = vpack.c.bf16 %v498_v56, %v497_v62  ;;  %v7781_v12 = vpack.c.bf16 %v500_v5, %v499_v9 }
 0x36c   :  { %6178 = vmatmul.mubr.msk.bf16.vlgmr.msra.gmra.mrb[4].mxu0 %vm54_vm0, %v7727_v43  ;;  %6551 = vmatprep.mubr.msk.bf16.mxu1 %vm54_vm0, %v7729_v44  ;;  %v476_v3 = vadd.f32 %v7717_v33, %v398_v15  ;;  %v475_v19 = vadd.f32 %v7713_v30, %v398_v15  ;;  %v478_v24 = vadd.f32 %v7717_v33, %v402_v23 }
 0x36d   :  { %6552 = vmatmul.mubr.msk.bf16.vlgmr.msra.gmra.mrb[4].mxu1 %vm54_vm0, %v7731_v45  ;;  %670 = vmatprep.mubr.bf16.mxu0 %v7502_v0  ;;  %v477_v26 = vadd.f32 %v7713_v30, %v402_v23  ;;  %v406_v28 = vrot.slane %v329_v25, %v7703_v21  ;;  %v331_v31 = vcombine.high %v315_v16, %v315_v16 }
 0x36e   :  { %6555 = vmatprep.mubr.msk.bf16.mxu1 %vm54_vm0, %v7739_v48  ;;  %6528 = vmatpush3.bf16.msra.mxu0 %v7663_v60  ;;  %v394_v60 = vrot.slane %v330_v53, %v7703_v21  ;;  %v535_v20 = vpack.c.bf16 %v476_v3, %v475_v19  ;;  %v333_v37 = vcombine.high %v329_v25, %v329_v25 }
 0x36f   :  { %6529 = vmatprep.subr.bf16.mxu0 %v7676_v63  ;;  %v536_v27 = vpack.c.bf16 %v478_v24, %v477_v26  ;;  %v480_v29 = vadd.f32 %v7717_v33, %v406_v28  ;;  %v479_v32 = vadd.f32 %v7713_v30, %v406_v28  ;;  %v410_v35 = vrot.slane %v331_v31, %v7703_v21 }
 0x370   :  { %v473_v8 = vadd.f32 %v7713_v30, %v394_v60  ;;  %v414_v40 = vrot.slane %v333_v37, %v7703_v21  ;;  %v418_v47 = vrot.slane %v7696_v17, %v7703_v21  ;;  %v422_v52 = vrot.slane %v7699_v18, %v7703_v21 }
 0x371   :  { %v537_v34 = vpack.c.bf16 %v480_v29, %v479_v32  ;;  %v482_v36 = vadd.f32 %v7717_v33, %v410_v35  ;;  %v481_v38 = vadd.f32 %v7713_v30, %v410_v35 }
 0x372   :  { %6530 = vmatpush3.bf16.msra.mxu0 %v7676_v63  ;;  %v474_v63 = vadd.f32 %v7717_v33, %v394_v60  ;;  %v484_v41 = vadd.f32 %v7717_v33, %v414_v40  ;;  %v483_v42 = vadd.f32 %v7713_v30, %v414_v40  ;;  %v486_v49 = vadd.f32 %v7717_v33, %v418_v47 }
 0x373   :  { %6593 = vmatprep.subr.bf16.mxu0 %v9807_v14  ;;  %v538_v39 = vpack.c.bf16 %v482_v36, %v481_v38  ;;  %v485_v50 = vadd.f32 %v7713_v30, %v418_v47  ;;  %v488_v53 = vadd.f32 %v7717_v33, %v422_v52  ;;  %v487_v17 = vadd.f32 %v7713_v30, %v422_v52 }
 0x374   :  { %6179 = vmatmul.mubr.msk.bf16.gmra.mrb[8].mxu0 %vm54_vm0, %v7755_v61  ;;  %v7779_v10 = vpack.c.bf16 %v474_v63, %v473_v8  ;;  %v539_v46 = vpack.c.bf16 %v484_v41, %v483_v42 }
 0x375   :  { %6556 = vmatmul.mubr.msk.bf16.gmra.mrb[8].mxu1 %vm54_vm0, %v7758_v1  ;;  %680 = vmatprep.mubr.bf16.mxu0 %v7502_v0  ;;  %v540_v51 = vpack.c.bf16 %v486_v49, %v485_v50  ;;  %v541_v54 = vpack.c.bf16 %v488_v53, %v487_v17 }
 0x376   :  { %6559 = vmatprep.mubr.msk.bf16.mxu1 %vm54_vm0, %v7764_v2 }
 0x37c   :  { %6180 = vmatmul.mubr.msk.bf16.gmra.mrb[12].mxu0 %vm54_vm0, %v7779_v10 }
 0x37d   :  { %6560 = vmatmul.mubr.msk.bf16.gmra.mrb[12].mxu1 %vm54_vm0, %v7781_v12  ;;  %690 = vmatprep.mubr.bf16.mxu0 %v7502_v0 }
 0x37e   :  { %6565 = vmatprep.mubr.msk.bf16.mxu1 %vm7501_vm1, %v9807_v14 }
 0x384   :  { %6181 = vmatmul.mubr.msk.bf16.gmra.mrb[16].mxu0 %vm54_vm0, %v535_v20 }
 0x385   :  { %700 = vmatprep.mubr.bf16.mxu0 %v7502_v0 }
 0x38c   :  { %6182 = vmatmul.mubr.msk.bf16.gmra.mrb[20].mxu0 %vm54_vm0, %v536_v27 }
 0x38d   :  { %710 = vmatprep.mubr.bf16.mxu0 %v7502_v0 }
 0x394   :  { %6183 = vmatmul.mubr.msk.bf16.gmra.mrb[24].mxu0 %vm54_vm0, %v537_v34 }
 0x395   :  { %720 = vmatprep.mubr.bf16.mxu0 %v7502_v0 }
 0x39c   :  { %6184 = vmatmul.mubr.msk.bf16.gmra.mrb[28].mxu0 %vm54_vm0, %v538_v39 }
 0x39d   :  { %730 = vmatprep.mubr.bf16.mxu0 %v7502_v0 }
 0x3a4   :  { %6185 = vmatmul.mubr.msk.bf16.gmra.mrb[32].mxu0 %vm54_vm0, %v539_v46 }
 0x3a5   :  { %740 = vmatprep.mubr.bf16.mxu0 %v7502_v0 }
 0x3ac   :  { %6186 = vmatmul.mubr.msk.bf16.gmra.mrb[36].mxu0 %vm54_vm0, %v540_v51 }
 0x3ad   :  { %750 = vmatprep.mubr.bf16.mxu0 %v7502_v0 }
 0x3b4   :  { %6187 = vmatmul.mubr.msk.bf16.gmra.mrb[40].mxu0 %vm54_vm0, %v541_v54 }
 0x3b5   :  { %760 = vmatprep.mubr.bf16.mxu0 %v7502_v0 }
 0x3bc   :  { %6188 = vmatmul.mubr.msk.bf16.gmra.mrb[44].mxu0 %vm54_vm0, %v7729_v44 }
 0x3bd   :  { %770 = vmatprep.mubr.bf16.mxu0 %v7502_v0 }
 0x3c4   :  { %6189 = vmatmul.mubr.msk.bf16.gmra.mrb[48].mxu0 %vm54_vm0, %v7731_v45 }
 0x3c5   :  { %780 = vmatprep.mubr.bf16.mxu0 %v7502_v0 }
 0x3cc   :  { %6190 = vmatmul.mubr.msk.bf16.gmra.mrb[52].mxu0 %vm54_vm0, %v7739_v48 }
 0x3cd   :  { %790 = vmatprep.mubr.bf16.mxu0 %v7502_v0 }
 0x3d4   :  { %6191 = vmatmul.mubr.msk.bf16.gmra.mrb[56].mxu0 %vm54_vm0, %v7758_v1 }
 0x3d5   :  { %800 = vmatprep.mubr.bf16.mxu0 %v7502_v0 }
 0x3dc   :  { %6192 = vmatmul.mubr.msk.bf16.gmra.mrb[60].mxu0 %vm54_vm0, %v7764_v2 }
 0x3dd   :  { %810 = vmatprep.mubr.bf16.mxu0 %v7502_v0 }
 0x3e4   :  { %6193 = vmatmul.mubr.msk.bf16.gmra.mrb[64].mxu0 %vm54_vm0, %v7781_v12 }
 0x3e5   :  { %6531 = vmatprep.mubr.msk.bf16.mxu0 %vm54_vm0, %v7727_v43 }
 0x3ec   :  { %6532 = vmatmul.mubr.msk.bf16.vlgmr.msra.gmra.mrb[68].mxu0 %vm54_vm0, %v7755_v61 }
 0x3ed   :  { %6535 = vmatprep.mubr.msk.bf16.mxu0 %vm54_vm0, %v7779_v10 }
 0x3f4   :  { %6536 = vmatmul.mubr.msk.bf16.gmra.mrb[72].mxu0 %vm54_vm0, %v535_v20 }
 0x3f5   :  { %6539 = vmatprep.mubr.msk.bf16.mxu0 %vm54_vm0, %v536_v27 }
 0x3fc   :  { %6540 = vmatmul.mubr.msk.bf16.gmra.mrb[76].mxu0 %vm54_vm0, %v537_v34 }
 0x3fd   :  { %6543 = vmatprep.mubr.msk.bf16.mxu0 %vm54_vm0, %v538_v39 }
 0x404   :  { %6544 = vmatmul.mubr.msk.bf16.gmra.mrb[80].mxu0 %vm54_vm0, %v539_v46 }
 0x405   :  { %6547 = vmatprep.mubr.msk.bf16.mxu0 %vm54_vm0, %v540_v51 }
 0x40c   :  { %6548 = vmatmul.mubr.msk.bf16.gmra.mrb[84].mxu0 %vm54_vm0, %v541_v54 }
 0x40d   :  { %6595 = vmatprep.mubr.msk.bf16.mxu0 %vm7501_vm1, %v9807_v14 }
 0x43f   :  { %v662_v0 = vpop.f32.mrb[4].mxu0 }
 0x440   :  { %v664_v18 = vpop.f32.mrb[5].mxu0  ;;  %v6553_v30 = vpop.f32.mrb[4].mxu1 }
 0x441   :  { %v666_v33 = vpop.f32.mrb[6].mxu0  ;;  %v935_v43 = vpop.f32.mrb[5].mxu1 }
 0x442   :  { %v7862_v44 = vpack.c.bf16 %v666_v33, %v662_v0  ;;  %v668_v45 = vpop.f32.mrb[7].mxu0  ;;  %v6554_v48 = vpop.f32.mrb[6].mxu1 }
 0x443   :  { %v7864_v56 = vpack.c.bf16 %v668_v45, %v664_v18  ;;  %v7866_v58 = vpack.c.bf16 %v6554_v48, %v6553_v30  ;;  %v938_v59 = vpop.f32.mrb[7].mxu1 }
 0x444   :  { %v7868_v61 = vpack.c.bf16 %v938_v59, %v935_v43 }
 0x445   :  { %9874 = vst [vmem:[#allocation5_spill] sm:$0xff] %v7866_v58  ;;  %v1023_v62 = vsel %vm1018_vm2, %v7864_v56, 0 }
 0x446   :  { %9875 = vst [vmem:[#allocation6_spill] sm:$0xff] %v7868_v61  ;;  %6564 = vmatpush3.bf16.xpose.msra.mxu1 %v1023_v62 }
 0x447   :  { %v672_v1 = vpop.f32.mrb[8].mxu0  ;;  %6569 = vmatprep.subr.bf16.mxu1 %v9807_v14 }
 0x448   :  { %v674_v60 = vpop.f32.mrb[9].mxu0  ;;  %v6557_v2 = vpop.f32.mrb[8].mxu1 }
 0x449   :  { %v676_v4 = vpop.f32.mrb[10].mxu0  ;;  %v951_v63 = vpop.f32.mrb[9].mxu1 }
 0x44a   :  { %v7873_v5 = vpack.c.bf16 %v676_v4, %v672_v1  ;;  %v678_v6 = vpop.f32.mrb[11].mxu0  ;;  %v6558_v7 = vpop.f32.mrb[10].mxu1 }
 0x44b   :  { %v7875_v8 = vpack.c.bf16 %v678_v6, %v674_v60  ;;  %v7877_v9 = vpack.c.bf16 %v6558_v7, %v6557_v2  ;;  %v954_v10 = vpop.f32.mrb[11].mxu1 }
 0x44c   :  { %v7879_v12 = vpack.c.bf16 %v954_v10, %v951_v63 }
 0x44d   :  { %9876 = vst [vmem:[#allocation7_spill] sm:$0xff] %v7877_v9  ;;  %v1070_v13 = vsel %vm1018_vm2, %v7875_v8, 0  ;;  %6566 = vmatmul.mubr.msk.bf16.vlgmr.msra.gmra.mrb[16].mxu1 %vm1018_vm2, %v7862_v44 }
 0x44e   :  { %9877 = vst [vmem:[#allocation8_spill] sm:$0xff] %v7879_v12  ;;  %6570 = vmatpush3.bf16.xpose.msra.mxu1 %v1070_v13  ;;  %6571 = vmatprep.mubr.msk.bf16.mxu1 %vm7501_vm1, %v9807_v14 }
 0x44f   :  { %v682_v15 = vpop.f32.mrb[12].mxu0  ;;  %6575 = vmatprep.subr.bf16.mxu1 %v9807_v14 }
 0x450   :  { %v684_v3 = vpop.f32.mrb[13].mxu0  ;;  %v6561_v16 = vpop.f32.mrb[12].mxu1 }
 0x451   :  { %v686_v19 = vpop.f32.mrb[14].mxu0  ;;  %v967_v20 = vpop.f32.mrb[13].mxu1 }
 0x452   :  { %v7888_v22 = vpack.c.bf16 %v686_v19, %v682_v15  ;;  %v688_v23 = vpop.f32.mrb[15].mxu0  ;;  %v6562_v24 = vpop.f32.mrb[14].mxu1 }
 0x453   :  { %v7890_v25 = vpack.c.bf16 %v688_v23, %v684_v3  ;;  %v7892_v26 = vpack.c.bf16 %v6562_v24, %v6561_v16  ;;  %v970_v27 = vpop.f32.mrb[15].mxu1 }
 0x454   :  { %v7894_v28 = vpack.c.bf16 %v970_v27, %v967_v20 }
 0x455   :  { %9878 = vst [vmem:[#allocation9_spill] sm:$0xff] %v7892_v26  ;;  %v1117_v29 = vsel %vm1018_vm2, %v7890_v25, 0  ;;  %6572 = vmatmul.mubr.msk.bf16.vlgmr.msra.gmra.mrb[20].mxu1 %vm1018_vm2, %v7873_v5 }
 0x456   :  { %9879 = vst [vmem:[#allocation10_spill] sm:$0xff] %v7894_v28  ;;  %6576 = vmatpush3.bf16.xpose.msra.mxu1 %v1117_v29  ;;  %6577 = vmatprep.mubr.msk.bf16.mxu1 %vm7501_vm1, %v9807_v14 }
 0x457   :  { %v692_v31 = vpop.f32.mrb[16].mxu0  ;;  %6581 = vmatprep.subr.bf16.mxu1 %v9807_v14 }
 0x458   :  { %v694_v32 = vpop.f32.mrb[17].mxu0 }
 0x459   :  { %v696_v34 = vpop.f32.mrb[18].mxu0 }
 0x45a   :  { %v7903_v35 = vpack.c.bf16 %v696_v34, %v692_v31  ;;  %v698_v36 = vpop.f32.mrb[19].mxu0 }
 0x45b   :  { %v7905_v37 = vpack.c.bf16 %v698_v36, %v694_v32 }
 0x45d   :  { %9880 = vst [vmem:[#allocation11_spill] sm:$0xff] %v7905_v37  ;;  %v1164_v38 = vsel %vm1018_vm2, %v7905_v37, 0  ;;  %6578 = vmatmul.mubr.msk.bf16.vlgmr.msra.gmra.mrb[24].mxu1 %vm1018_vm2, %v7888_v22 }
 0x45e   :  { %6582 = vmatpush3.bf16.xpose.msra.mxu1 %v1164_v38  ;;  %6583 = vmatprep.mubr.msk.bf16.mxu1 %vm7501_vm1, %v9807_v14 }
 0x45f   :  { %v702_v39 = vpop.f32.mrb[20].mxu0  ;;  %6587 = vmatprep.subr.bf16.mxu1 %v9807_v14 }
 0x460   :  { %v704_v40 = vpop.f32.mrb[21].mxu0 }
 0x461   :  { %v706_v41 = vpop.f32.mrb[22].mxu0 }
 0x462   :  { %v7914_v42 = vpack.c.bf16 %v706_v41, %v702_v39  ;;  %v708_v46 = vpop.f32.mrb[23].mxu0 }
 0x463   :  { %v7916_v47 = vpack.c.bf16 %v708_v46, %v704_v40 }
 0x465   :  { %9881 = vst [vmem:[#allocation12_spill] sm:$0xff] %v7916_v47  ;;  %v1211_v49 = vsel %vm1018_vm2, %v7916_v47, 0  ;;  %6584 = vmatmul.mubr.msk.bf16.vlgmr.msra.gmra.mrb[28].mxu1 %vm1018_vm2, %v7903_v35 }
 0x466   :  { %6588 = vmatpush3.bf16.xpose.msra.mxu1 %v1211_v49  ;;  %6589 = vmatprep.mubr.msk.bf16.mxu1 %vm7501_vm1, %v9807_v14 }
 0x467   :  { %v712_v50 = vpop.f32.mrb[24].mxu0  ;;  %6599 = vmatprep.subr.bf16.mxu1 %v9807_v14 }
 0x468   :  { %v714_v51 = vpop.f32.mrb[25].mxu0 }
 0x469   :  { %v716_v52 = vpop.f32.mrb[26].mxu0 }
 0x46a   :  { %v7925_v53 = vpack.c.bf16 %v716_v52, %v712_v50  ;;  %v718_v17 = vpop.f32.mrb[27].mxu0 }
 0x46b   :  { %v7927_v54 = vpack.c.bf16 %v718_v17, %v714_v51 }
 0x46d   :  { %9882 = vst [vmem:[#allocation13_spill] sm:$0xff] %v7927_v54  ;;  %v1258_v0 = vsel %vm1018_vm2, %v7927_v54, 0  ;;  %6590 = vmatmul.mubr.msk.bf16.vlgmr.msra.gmra.mrb[32].mxu1 %vm1018_vm2, %v7914_v42 }
 0x46e   :  { %6594 = vmatpush3.bf16.xpose.msra.mxu0 %v1258_v0  ;;  %6601 = vmatprep.mubr.msk.bf16.mxu1 %vm7501_vm1, %v9807_v14 }
 0x46f   :  { %v722_v18 = vpop.f32.mrb[28].mxu0  ;;  %6605 = vmatprep.subr.bf16.mxu0 %v9807_v14 }
 0x470   :  { %v724_v30 = vpop.f32.mrb[29].mxu0 }
 0x471   :  { %v726_v33 = vpop.f32.mrb[30].mxu0 }
 0x472   :  { %v7936_v43 = vpack.c.bf16 %v726_v33, %v722_v18  ;;  %v728_v45 = vpop.f32.mrb[31].mxu0 }
 0x473   :  { %v7938_v48 = vpack.c.bf16 %v728_v45, %v724_v30 }
 0x475   :  { %9883 = vst [vmem:[#allocation14_spill] sm:$0xff] %v7938_v48  ;;  %v1305_v59 = vsel %vm1018_vm2, %v7938_v48, 0  ;;  %6596 = vmatmul.mubr.msk.bf16.vlgmr.msra.gmra.mrb[88].mxu0 %vm1018_vm2, %v7925_v53 }
 0x476   :  { %6600 = vmatpush3.bf16.xpose.msra.mxu1 %v1305_v59  ;;  %6607 = vmatprep.mubr.msk.bf16.mxu0 %vm7501_vm1, %v9807_v14 }
 0x477   :  { %v732_v62 = vpop.f32.mrb[32].mxu0  ;;  %6611 = vmatprep.subr.bf16.mxu1 %v9807_v14 }
 0x478   :  { %v734_v1 = vpop.f32.mrb[33].mxu0 }
 0x479   :  { %v736_v60 = vpop.f32.mrb[34].mxu0 }
 0x47a   :  { %v7947_v2 = vpack.c.bf16 %v736_v60, %v732_v62  ;;  %v738_v4 = vpop.f32.mrb[35].mxu0 }
 0x47b   :  { %v7949_v63 = vpack.c.bf16 %v738_v4, %v734_v1 }
 0x47d   :  { %9884 = vst [vmem:[#allocation15_spill] sm:$0xff] %v7949_v63  ;;  %v1352_v6 = vsel %vm1018_vm2, %v7949_v63, 0  ;;  %6602 = vmatmul.mubr.msk.bf16.vlgmr.msra.gmra.mrb[36].mxu1 %vm1018_vm2, %v7936_v43 }
 0x47e   :  { %6606 = vmatpush3.bf16.xpose.msra.mxu0 %v1352_v6  ;;  %6613 = vmatprep.mubr.msk.bf16.mxu1 %vm7501_vm1, %v9807_v14 }
 0x47f   :  { %v742_v7 = vpop.f32.mrb[36].mxu0  ;;  %6617 = vmatprep.subr.bf16.mxu0 %v9807_v14 }
 0x480   :  { %v744_v10 = vpop.f32.mrb[37].mxu0 }
 0x481   :  { %v746_v13 = vpop.f32.mrb[38].mxu0 }
 0x482   :  { %v7958_v15 = vpack.c.bf16 %v746_v13, %v742_v7  ;;  %v748_v3 = vpop.f32.mrb[39].mxu0 }
 0x483   :  { %v7960_v16 = vpack.c.bf16 %v748_v3, %v744_v10 }
 0x485   :  { %9885 = vst [vmem:[#allocation16_spill] sm:$0xff] %v7960_v16  ;;  %v1399_v19 = vsel %vm1018_vm2, %v7960_v16, 0  ;;  %6608 = vmatmul.mubr.msk.bf16.vlgmr.msra.gmra.mrb[92].mxu0 %vm1018_vm2, %v7947_v2 }
 0x486   :  { %6612 = vmatpush3.bf16.xpose.msra.mxu1 %v1399_v19  ;;  %6619 = vmatprep.mubr.msk.bf16.mxu0 %vm7501_vm1, %v9807_v14 }
 0x487   :  { %v752_v20 = vpop.f32.mrb[40].mxu0  ;;  %6623 = vmatprep.subr.bf16.mxu1 %v9807_v14 }
 0x488   :  { %v754_v23 = vpop.f32.mrb[41].mxu0 }
 0x489   :  { %v756_v24 = vpop.f32.mrb[42].mxu0 }
 0x48a   :  { %v7969_v27 = vpack.c.bf16 %v756_v24, %v752_v20  ;;  %v758_v29 = vpop.f32.mrb[43].mxu0 }
 0x48b   :  { %v7971_v31 = vpack.c.bf16 %v758_v29, %v754_v23 }
 0x48d   :  { %9886 = vst [vmem:[#allocation17_spill] sm:$0xff] %v7971_v31  ;;  %v1446_v32 = vsel %vm1018_vm2, %v7971_v31, 0  ;;  %6614 = vmatmul.mubr.msk.bf16.vlgmr.msra.gmra.mrb[40].mxu1 %vm1018_vm2, %v7958_v15 }
 0x48e   :  { %6618 = vmatpush3.bf16.xpose.msra.mxu0 %v1446_v32  ;;  %6625 = vmatprep.mubr.msk.bf16.mxu1 %vm7501_vm1, %v9807_v14 }
 0x48f   :  { %v762_v34 = vpop.f32.mrb[44].mxu0  ;;  %6629 = vmatprep.subr.bf16.mxu0 %v9807_v14 }
 0x490   :  { %v764_v36 = vpop.f32.mrb[45].mxu0 }
 0x491   :  { %v766_v38 = vpop.f32.mrb[46].mxu0 }
 0x492   :  { %v7980_v39 = vpack.c.bf16 %v766_v38, %v762_v34  ;;  %v768_v40 = vpop.f32.mrb[47].mxu0 }
 0x493   :  { %v7982_v41 = vpack.c.bf16 %v768_v40, %v764_v36 }
 0x495   :  { %9887 = vst [vmem:[#allocation18_spill] sm:$0xff] %v7982_v41  ;;  %v1493_v46 = vsel %vm1018_vm2, %v7982_v41, 0  ;;  %6620 = vmatmul.mubr.msk.bf16.vlgmr.msra.gmra.mrb[96].mxu0 %vm1018_vm2, %v7969_v27 }
 0x496   :  { %6624 = vmatpush3.bf16.xpose.msra.mxu1 %v1493_v46  ;;  %6631 = vmatprep.mubr.msk.bf16.mxu0 %vm7501_vm1, %v9807_v14 }
 0x497   :  { %v772_v49 = vpop.f32.mrb[48].mxu0  ;;  %6635 = vmatprep.subr.bf16.mxu1 %v9807_v14 }
 0x498   :  { %v774_v50 = vpop.f32.mrb[49].mxu0 }
 0x499   :  { %v776_v51 = vpop.f32.mrb[50].mxu0 }
 0x49a   :  { %v7991_v52 = vpack.c.bf16 %v776_v51, %v772_v49  ;;  %v778_v17 = vpop.f32.mrb[51].mxu0 }
 0x49b   :  { %v7993_v0 = vpack.c.bf16 %v778_v17, %v774_v50 }
 0x49d   :  { %9888 = vst [vmem:[#allocation19_spill] sm:$0xff] %v7993_v0  ;;  %v1540_v18 = vsel %vm1018_vm2, %v7993_v0, 0  ;;  %6626 = vmatmul.mubr.msk.bf16.vlgmr.msra.gmra.mrb[44].mxu1 %vm1018_vm2, %v7980_v39 }
 0x49e   :  { %6630 = vmatpush3.bf16.xpose.msra.mxu0 %v1540_v18  ;;  %6637 = vmatprep.mubr.msk.bf16.mxu1 %vm7501_vm1, %v9807_v14 }
 0x49f   :  { %v782_v30 = vpop.f32.mrb[52].mxu0  ;;  %6641 = vmatprep.subr.bf16.mxu0 %v9807_v14 }
 0x4a0   :  { %v784_v33 = vpop.f32.mrb[53].mxu0 }
 0x4a1   :  { %v786_v45 = vpop.f32.mrb[54].mxu0 }
 0x4a2   :  { %v8002_v59 = vpack.c.bf16 %v786_v45, %v782_v30  ;;  %v788_v62 = vpop.f32.mrb[55].mxu0 }
 0x4a3   :  { %v8004_v1 = vpack.c.bf16 %v788_v62, %v784_v33 }
 0x4a4   :  { %9889 = vst [vmem:[#allocation20_spill] sm:$0xff] %v8002_v59 }
 0x4a5   :  { %9890 = vst [vmem:[#allocation21_spill] sm:$0xff] %v8004_v1  ;;  %v1587_v60 = vsel %vm1018_vm2, %v8004_v1, 0  ;;  %6632 = vmatmul.mubr.msk.bf16.vlgmr.msra.gmra.mrb[100].mxu0 %vm1018_vm2, %v7991_v52 }
 0x4a6   :  { %6636 = vmatpush3.bf16.xpose.msra.mxu1 %v1587_v60  ;;  %6643 = vmatprep.mubr.msk.bf16.mxu0 %vm7501_vm1, %v9807_v14 }
 0x4a7   :  { %v792_v4 = vpop.f32.mrb[56].mxu0  ;;  %6647 = vmatprep.subr.bf16.mxu1 %v9807_v14 }
 0x4a8   :  { %v794_v6 = vpop.f32.mrb[57].mxu0 }
 0x4a9   :  { %v796_v7 = vpop.f32.mrb[58].mxu0 }
 0x4aa   :  { %v8013_v10 = vpack.c.bf16 %v796_v7, %v792_v4  ;;  %v798_v13 = vpop.f32.mrb[59].mxu0 }
 0x4ab   :  { %v8015_v3 = vpack.c.bf16 %v798_v13, %v794_v6 }
 0x4ac   :  { %9891 = vst [vmem:[#allocation22_spill] sm:$0xff] %v8013_v10 }
 0x4ad   :  { %9892 = vst [vmem:[#allocation23_spill] sm:$0xff] %v8015_v3  ;;  %v1634_v19 = vsel %vm1018_vm2, %v8015_v3, 0  ;;  %6638 = vmatmul.mubr.msk.bf16.vlgmr.msra.gmra.mrb[48].mxu1 %vm1018_vm2, %v8002_v59 }
 0x4ae   :  { %6642 = vmatpush3.bf16.xpose.msra.mxu0 %v1634_v19  ;;  %6649 = vmatprep.mubr.msk.bf16.mxu1 %vm7501_vm1, %v9807_v14 }
 0x4af   :  { %v802_v20 = vpop.f32.mrb[60].mxu0  ;;  %6653 = vmatprep.subr.bf16.mxu0 %v9807_v14 }
 0x4b0   :  { %v804_v23 = vpop.f32.mrb[61].mxu0 }
 0x4b1   :  { %v806_v24 = vpop.f32.mrb[62].mxu0 }
 0x4b2   :  { %v8024_v29 = vpack.c.bf16 %v806_v24, %v802_v20  ;;  %v808_v32 = vpop.f32.mrb[63].mxu0 }
 0x4b3   :  { %v8026_v34 = vpack.c.bf16 %v808_v32, %v804_v23 }
 0x4b4   :  { %9893 = vst [vmem:[#allocation24_spill] sm:$0xff] %v8024_v29 }
 0x4b5   :  { %9894 = vst [vmem:[#allocation25_spill] sm:$0xff] %v8026_v34  ;;  %v1681_v36 = vsel %vm1018_vm2, %v8026_v34, 0  ;;  %6644 = vmatmul.mubr.msk.bf16.vlgmr.msra.gmra.mrb[104].mxu0 %vm1018_vm2, %v8013_v10 }
 0x4b6   :  { %6648 = vmatpush3.bf16.xpose.msra.mxu1 %v1681_v36  ;;  %6655 = vmatprep.mubr.msk.bf16.mxu0 %vm7501_vm1, %v9807_v14 }
 0x4b7   :  { %v812_v38 = vpop.f32.mrb[64].mxu0  ;;  %6659 = vmatprep.subr.bf16.mxu1 %v9807_v14 }
 0x4b8   :  { %v814_v40 = vpop.f32.mrb[65].mxu0 }
 0x4b9   :  { %v816_v46 = vpop.f32.mrb[66].mxu0 }
 0x4ba   :  { %v8035_v49 = vpack.c.bf16 %v816_v46, %v812_v38  ;;  %v818_v50 = vpop.f32.mrb[67].mxu0 }
 0x4bb   :  { %v8037_v51 = vpack.c.bf16 %v818_v50, %v814_v40 }
 0x4bc   :  { %9895 = vst [vmem:[#allocation26_spill] sm:$0xff] %v8035_v49 }
 0x4bd   :  { %9896 = vst [vmem:[#allocation27_spill] sm:$0xff] %v8037_v51  ;;  %v1728_v17 = vsel %vm1018_vm2, %v8037_v51, 0  ;;  %6650 = vmatmul.mubr.msk.bf16.vlgmr.msra.gmra.mrb[52].mxu1 %vm1018_vm2, %v8024_v29 }
 0x4be   :  { %6654 = vmatpush3.bf16.xpose.msra.mxu0 %v1728_v17  ;;  %6661 = vmatprep.mubr.msk.bf16.mxu1 %vm7501_vm1, %v9807_v14 }
 0x4bf   :  { %v6533_v18 = vpop.f32.mrb[68].mxu0  ;;  %6665 = vmatprep.subr.bf16.mxu0 %v9807_v14 }
 0x4c0   :  { %v855_v30 = vpop.f32.mrb[69].mxu0 }
 0x4c1   :  { %v6534_v33 = vpop.f32.mrb[70].mxu0 }
 0x4c2   :  { %v8046_v45 = vpack.c.bf16 %v6534_v33, %v6533_v18  ;;  %v858_v62 = vpop.f32.mrb[71].mxu0 }
 0x4c3   :  { %v8048_v60 = vpack.c.bf16 %v858_v62, %v855_v30 }
 0x4c4   :  { %9897 = vst [vmem:[#allocation28_spill] sm:$0xff] %v8046_v45 }
 0x4c5   :  { %9898 = vst [vmem:[#allocation29_spill] sm:$0xff] %v8048_v60  ;;  %6656 = vmatmul.mubr.msk.bf16.vlgmr.msra.gmra.mrb[108].mxu0 %vm1018_vm2, %v8035_v49  ;;  %6660 = vmatpush3.bf16.msra.mxu1 %v8048_v60 }
 0x4c6   :  { %6666 = vmatpush3.bf16.msra.mxu0 %v8046_v45  ;;  %6671 = vmatprep.subr.bf16.mxu1 %v9807_v14 }
 0x4c7   :  { %v6537_v4 = vpop.f32.mrb[72].mxu0  ;;  %6667 = vmatprep.mubr.msk.bf16.mxu0 %vm7501_vm1, %v9807_v14  ;;  %6677 = vmatprep.subr.bf16.mxu0 %v9807_v14 }
 0x4c8   :  { %v871_v6 = vpop.f32.mrb[73].mxu0 }
 0x4c9   :  { %v6538_v7 = vpop.f32.mrb[74].mxu0 }
 0x4ca   :  { %v8058_v13 = vpack.c.bf16 %v6538_v7, %v6537_v4  ;;  %v874_v19 = vpop.f32.mrb[75].mxu0 }
 0x4cb   :  { %v8060_v20 = vpack.c.bf16 %v874_v19, %v871_v6 }
 0x4cf   :  { %v6541_v23 = vpop.f32.mrb[76].mxu0 }
 0x4d0   :  { %v887_v24 = vpop.f32.mrb[77].mxu0 }
 0x4d1   :  { %v6542_v32 = vpop.f32.mrb[78].mxu0 }
 0x4d2   :  { %v8062_v36 = vpack.c.bf16 %v6542_v32, %v6541_v23  ;;  %v890_v38 = vpop.f32.mrb[79].mxu0  ;;  %v501_v23 = vld [vmem:[%s9799_s1] sm:$0xff] }
 0x4d3   :  { %v8064_v40 = vpack.c.bf16 %v890_v38, %v887_v24  ;;  %v982_v24 = vsub.f32 1.0, %v501_v23 }
 0x4d5   :  { %v984_v32 = vmul.f32 -1e+09, %v982_v24 }
 0x4d7   :  { %v6545_v46 = vpop.f32.mrb[80].mxu0  ;;  %v1812_v38 = vrot.slane %v984_v32, %v7690_v11 }
 0x4d8   :  { %v903_v50 = vpop.f32.mrb[81].mxu0 }
 0x4d9   :  { %v6546_v17 = vpop.f32.mrb[82].mxu0 }
 0x4da   :  { %v8066_v18 = vpack.c.bf16 %v6546_v17, %v6545_v46  ;;  %v906_v30 = vpop.f32.mrb[83].mxu0  ;;  %v1828_v46 = vrot.slane %v1812_v38, %v7690_v11  ;;  %v1820_v17 = vcombine.high %v1812_v38, %v1812_v38 }
 0x4db   :  { %v8068_v33 = vpack.c.bf16 %v906_v30, %v903_v50 }
 0x4dc   :  { %9899 = vst [vmem:[#allocation30_spill] sm:$0xff] %v8066_v18  ;;  %v8080_v50 = vrot.slane %v1828_v46, %v7703_v21  ;;  %v1842_v23 = vrot.slane %v1820_v17, %v7690_v11  ;;  %v1850_v9 = vcombine.high %v1828_v46, %v1828_v46 }
 0x4dd   :  { %9900 = vst [vmem:[#allocation31_spill] sm:$0xff] %v8068_v33 }
 0x4de   :  { %9903 = vst [vmem:[#allocation34_spill] sm:$0xff] %v8080_v50  ;;  %v1852_v51 = vcombine.high %v1842_v23, %v1842_v23 }
 0x4df   :  { %v6549_v62 = vpop.f32.mrb[84].mxu0 }
 0x4e0   :  { %v919_v4 = vpop.f32.mrb[85].mxu0 }
 0x4e1   :  { %v6550_v6 = vpop.f32.mrb[86].mxu0 }
 0x4e2   :  { %v8070_v7 = vpack.c.bf16 %v6550_v6, %v6549_v62  ;;  %v922_v19 = vpop.f32.mrb[87].mxu0 }
 0x4e3   :  { %v8072_v14 = vpack.c.bf16 %v922_v19, %v919_v4 }
 0x4e4   :  { %9901 = vst [vmem:[#allocation32_spill] sm:$0xff] %v8070_v7 }
 0x4e5   :  { %9902 = vst [vmem:[#allocation33_spill] sm:$0xff] %v8072_v14 }
 0x520   :  { %v1059_v30 = vpop.f32.mrb[16].mxu1 }
 0x521   :  { %v1771_v62 = vmul.f32 0.125, %v1059_v30  ;;  %v6567_v6 = vpop.f32.mrb[17].mxu1  ;;  %v8094_v30 = vrot.slane %v1842_v23, %v7703_v21 }
 0x522   :  { %v1062_v57 = vpop.f32.mrb[18].mxu1 }
 0x523   :  { %v1772_v4 = vmul.f32 0.125, %v1062_v57  ;;  %v6568_v19 = vpop.f32.mrb[19].mxu1  ;;  %v8083_v55 = vadd.f32 %v8080_v50, %v1771_v62  ;;  %9904 = vst [vmem:[#allocation35_spill] sm:$0xff] %v8094_v30 }
 0x525   :  { %v2016_v24 = vsel %vm2015_vm3, %v8083_v55, -inf  ;;  %v8089_v26 = vadd.f32 %v8080_v50, %v1772_v4 }
 0x526   :  { %2017 = vmax.xlane.f32.xlu1 %v2016_v24 }
 0x527   :  { %v2019_v38 = vsel %vm2015_vm3, %v8089_v26, -inf }
 0x528   :  { %2020 = vmax.xlane.f32.xlu0 %v2019_v38  ;;  %v1106_v57 = vpop.f32.mrb[20].mxu1 }
 0x529   :  { %v1773_v6 = vmul.f32 0.125, %v1106_v57  ;;  %v6573_v62 = vpop.f32.mrb[21].mxu1  ;;  %v8107_v57 = vrot.slane %v1850_v9, %v7703_v21 }
 0x52a   :  { %v1109_v19 = vpop.f32.mrb[22].mxu1 }
 0x52b   :  { %v1774_v28 = vmul.f32 0.125, %v1109_v19  ;;  %v6574_v17 = vpop.f32.mrb[23].mxu1  ;;  %v8097_v45 = vadd.f32 %v8094_v30, %v1773_v6  ;;  %9905 = vst [vmem:[#allocation36_spill] sm:$0xff] %v8107_v57 }
 0x52d   :  { %v2022_v4 = vsel %vm2015_vm3, %v8097_v45, -inf  ;;  %v8102_v24 = vadd.f32 %v8094_v30, %v1774_v28  ;;  %v1805_v28 = vcombine.high %v984_v32, %v984_v32 }
 0x52e   :  { %2023 = vmax.xlane.f32.xlu0 %v2022_v4 }
 0x52f   :  { %v2025_v38 = vsel %vm2015_vm3, %v8102_v24, -inf }
 0x530   :  { %2026 = vmax.xlane.f32.xlu1 %v2025_v38  ;;  %v1153_v62 = vpop.f32.mrb[24].mxu1  ;;  %v8120_v38 = vrot.slane %v1852_v51, %v7703_v21 }
 0x531   :  { %v1775_v19 = vmul.f32 0.125, %v1153_v62  ;;  %v6579_v17 = vpop.f32.mrb[25].mxu1  ;;  %v1819_v62 = vrot.slane %v1805_v28, %v7690_v11 }
 0x532   :  { %v1156_v6 = vpop.f32.mrb[26].mxu1  ;;  %9906 = vst [vmem:[#allocation37_spill] sm:$0xff] %v8120_v38 }
 0x533   :  { %v1776_v50 = vmul.f32 0.125, %v1156_v6  ;;  %v6580_v46 = vpop.f32.mrb[27].mxu1  ;;  %v8110_v49 = vadd.f32 %v8107_v57, %v1775_v19 }
 0x535   :  { %v2028_v4 = vsel %vm2015_vm3, %v8110_v49, -inf  ;;  %v8115_v30 = vadd.f32 %v8107_v57, %v1776_v50  ;;  %v1835_v50 = vrot.slane %v1819_v62, %v7690_v11 }
 0x536   :  { %2029 = vmax.xlane.f32.xlu0 %v2028_v4 }
 0x537   :  { %v2031_v9 = vsel %vm2015_vm3, %v8115_v30, -inf  ;;  %v1851_v1 = vcombine.high %v1835_v50, %v1835_v50 }
 0x538   :  { %2032 = vmax.xlane.f32.xlu1 %v2031_v9  ;;  %v1200_v19 = vpop.f32.mrb[28].mxu1  ;;  %v8135_v9 = vrot.slane %v1835_v50, %v7703_v21 }
 0x539   :  { %v1777_v17 = vmul.f32 0.125, %v1200_v19  ;;  %v6585_v23 = vpop.f32.mrb[29].mxu1  ;;  %v1821_v19 = vcombine.high %v1819_v62, %v1819_v62 }
 0x53a   :  { %v1203_v32 = vpop.f32.mrb[30].mxu1  ;;  %9907 = vst [vmem:[#allocation38_spill] sm:$0xff] %v8135_v9 }
 0x53b   :  { %v1778_v6 = vmul.f32 0.125, %v1203_v32  ;;  %v6586_v46 = vpop.f32.mrb[31].mxu1  ;;  %v8124_v12 = vadd.f32 %v8120_v38, %v1777_v17 }
 0x53d   :  { %v2034_v4 = vsel %vm2015_vm3, %v8124_v12, -inf  ;;  %v8130_v51 = vadd.f32 %v8120_v38, %v1778_v6  ;;  %v1849_v6 = vrot.slane %v1821_v19, %v7690_v11 }
 0x53e   :  { %2035 = vmax.xlane.f32.xlu0 %v2034_v4 }
 0x53f   :  { %v2037_v28 = vsel %vm2015_vm3, %v8130_v51, -inf }
 0x540   :  { %2038 = vmax.xlane.f32.xlu1 %v2037_v28  ;;  %v1247_v23 = vpop.f32.mrb[32].mxu1  ;;  %v8149_v28 = vrot.slane %v1849_v6, %v7703_v21 }
 0x541   :  { %v1779_v17 = vmul.f32 0.125, %v1247_v23  ;;  %v6591_v32 = vpop.f32.mrb[33].mxu1 }
 0x542   :  { %v1250_v46 = vpop.f32.mrb[34].mxu1  ;;  %9908 = vst [vmem:[#allocation39_spill] sm:$0xff] %v8149_v28 }
 0x543   :  { %v1780_v57 = vmul.f32 0.125, %v1250_v46  ;;  %v6592_v34 = vpop.f32.mrb[35].mxu1  ;;  %v8138_v3 = vadd.f32 %v8135_v9, %v1779_v17 }
 0x545   :  { %v2040_v4 = vsel %vm2015_vm3, %v8138_v3, -inf  ;;  %v8144_v38 = vadd.f32 %v8135_v9, %v1780_v57  ;;  %v502_v57 = vld [vmem:[%s9799_s1 + $0x8] sm:$0xff]  ;;  %s7505_s1 = smov 64  }
 0x546   :  { %2041 = vmax.xlane.f32.xlu0 %v2040_v4 }
 0x547   :  { %v2043_v62 = vsel %vm2015_vm3, %v8144_v38, -inf }
 0x548   :  { %2044 = vmax.xlane.f32.xlu1 %v2043_v62  ;;  %v1294_v34 = vpop.f32.mrb[88].mxu0 }
 0x549   :  { %v1781_v23 = vmul.f32 0.125, %v1294_v34  ;;  %v6597_v17 = vpop.f32.mrb[89].mxu0  ;;  %v8165_v34 = vrot.slane %v1851_v1, %v7703_v21 }
 0x54a   :  { %v1297_v32 = vpop.f32.mrb[90].mxu0 }
 0x54b   :  { %v1782_v46 = vmul.f32 0.125, %v1297_v32  ;;  %v6598_v19 = vpop.f32.mrb[91].mxu0  ;;  %v8152_v58 = vadd.f32 %v8149_v28, %v1781_v23  ;;  %9909 = vst [vmem:[#allocation40_spill] sm:$0xff] %v8165_v34  ;;  %v983_v23 = vsub.f32 1.0, %v502_v57 }
 0x54d   :  { %v2046_v4 = vsel %vm2015_vm3, %v8152_v58, -inf  ;;  %v8160_v9 = vadd.f32 %v8149_v28, %v1782_v46  ;;  %v1853_v46 = vcombine.high %v1849_v6, %v1849_v6  ;;  %v8170_v28 = vmul.f32 -1e+09, %v983_v23 }
 0x54e   :  { %2047 = vmax.xlane.f32.xlu0 %v2046_v4 }
 0x54f   :  { %v2049_v62 = vsel %vm2015_vm3, %v8160_v9, -inf }
 0x550   :  { %v1341_v17 = vpop.f32.mrb[36].mxu1  ;;  %2050 = vmax.xlane.f32.xlu1 %v2049_v62  ;;  %v8180_v62 = vrot.slane %v1853_v46, %v7703_v21 }
 0x551   :  { %v1783_v50 = vmul.f32 0.125, %v1341_v17  ;;  %v6603_v32 = vpop.f32.mrb[37].mxu1 }
 0x552   :  { %v1344_v19 = vpop.f32.mrb[38].mxu1  ;;  %9910 = vst [vmem:[#allocation41_spill] sm:$0xff] %v8180_v62 }
 0x553   :  { %v1784_v0 = vmul.f32 0.125, %v1344_v19  ;;  %v6604_v61 = vpop.f32.mrb[39].mxu1  ;;  %v8168_v41 = vadd.f32 %v8165_v34, %v1783_v50 }
 0x554   :  { %v1861_v61 = vrot.slane %v8170_v28, %v7690_v11 }
 0x555   :  { %v2052_v4 = vsel %vm2015_vm3, %v8168_v41, -inf  ;;  %v8175_v1 = vadd.f32 %v8165_v34, %v1784_v0 }
 0x556   :  { %2053 = vmax.xlane.f32.xlu0 %v2052_v4  ;;  %v1877_v4 = vrot.slane %v1861_v61, %v7690_v11 }
 0x557   :  { %v2055_v57 = vsel %vm2015_vm3, %v8175_v1, -inf }
 0x558   :  { %2056 = vmax.xlane.f32.xlu1 %v2055_v57  ;;  %v1388_v6 = vpop.f32.mrb[92].mxu0  ;;  %v1899_v48 = vcombine.high %v1877_v4, %v1877_v4 }
 0x559   :  { %v1785_v23 = vmul.f32 0.125, %v1388_v6  ;;  %v6609_v17 = vpop.f32.mrb[93].mxu0  ;;  %v8196_v6 = vrot.slane %v1877_v4, %v7703_v21 }
 0x55a   :  { %v1391_v50 = vpop.f32.mrb[94].mxu0  ;;  %v1869_v17 = vcombine.high %v1861_v61, %v1861_v61 }
 0x55b   :  { %v1786_v32 = vmul.f32 0.125, %v1391_v50  ;;  %v6610_v19 = vpop.f32.mrb[95].mxu0  ;;  %v8185_v0 = vadd.f32 %v8180_v62, %v1785_v23  ;;  %9911 = vst [vmem:[#allocation42_spill] sm:$0xff] %v8196_v6 }
 0x55d   :  { %v2058_v34 = vsel %vm2015_vm3, %v8185_v0, -inf  ;;  %v8191_v46 = vadd.f32 %v8180_v62, %v1786_v32  ;;  %v1891_v32 = vrot.slane %v1869_v17, %v7690_v11 }
 0x55e   :  { %2059 = vmax.xlane.f32.xlu0 %v2058_v34 }
 0x55f   :  { %v2061_v57 = vsel %vm2015_vm3, %v8191_v46, -inf  ;;  %v1901_v54 = vcombine.high %v1891_v32, %v1891_v32 }
 0x560   :  { %v1435_v50 = vpop.f32.mrb[40].mxu1  ;;  %2062 = vmax.xlane.f32.xlu1 %v2061_v57  ;;  %v8210_v57 = vrot.slane %v1891_v32, %v7703_v21 }
 0x561   :  { %v1787_v23 = vmul.f32 0.125, %v1435_v50  ;;  %v6615_v19 = vpop.f32.mrb[41].mxu1 }
 0x562   :  { %v1438_v31 = vpop.f32.mrb[42].mxu1  ;;  %9912 = vst [vmem:[#allocation43_spill] sm:$0xff] %v8210_v57 }
 0x563   :  { %v1788_v7 = vmul.f32 0.125, %v1438_v31  ;;  %v6616_v16 = vpop.f32.mrb[43].mxu1  ;;  %v8199_v63 = vadd.f32 %v8196_v6, %v1787_v23 }
 0x565   :  { %v2064_v34 = vsel %vm2015_vm3, %v8199_v63, -inf  ;;  %v8205_v62 = vadd.f32 %v8196_v6, %v1788_v7 }
 0x566   :  { %2065 = vmax.xlane.f32.xlu0 %v2064_v34 }
 0x567   :  { %v2067_v61 = vsel %vm2015_vm3, %v8205_v62, -inf }
 0x568   :  { %2068 = vmax.xlane.f32.xlu1 %v2067_v61  ;;  %v1482_v16 = vpop.f32.mrb[96].mxu0 }
 0x569   :  { %v1789_v31 = vmul.f32 0.125, %v1482_v16  ;;  %v6621_v50 = vpop.f32.mrb[97].mxu0  ;;  %v8223_v16 = vrot.slane %v1899_v48, %v7703_v21 }
 0x56a   :  { %v1485_v23 = vpop.f32.mrb[98].mxu0 }
 0x56b   :  { %v1790_v19 = vmul.f32 0.125, %v1485_v23  ;;  %v6622_v17 = vpop.f32.mrb[99].mxu0  ;;  %v8213_v14 = vadd.f32 %v8210_v57, %v1789_v31  ;;  %9913 = vst [vmem:[#allocation44_spill] sm:$0xff] %v8223_v16 }
 0x56d   :  { %v2070_v7 = vsel %vm2015_vm3, %v8213_v14, -inf  ;;  %v8218_v34 = vadd.f32 %v8210_v57, %v1790_v19  ;;  %v1854_v19 = vcombine.high %v8170_v28, %v8170_v28 }
 0x56e   :  { %2071 = vmax.xlane.f32.xlu0 %v2070_v7 }
 0x56f   :  { %v2073_v61 = vsel %vm2015_vm3, %v8218_v34, -inf }
 0x570   :  { %v1529_v50 = vpop.f32.mrb[44].mxu1  ;;  %2074 = vmax.xlane.f32.xlu1 %v2073_v61 }
 0x571   :  { %v1791_v23 = vmul.f32 0.125, %v1529_v50  ;;  %v6627_v17 = vpop.f32.mrb[45].mxu1  ;;  %v8238_v50 = vrot.slane %v1901_v54, %v7703_v21 }
 0x572   :  { %v1532_v31 = vpop.f32.mrb[46].mxu1 }
 0x573   :  { %v1792_v6 = vmul.f32 0.125, %v1532_v31  ;;  %v6628_v4 = vpop.f32.mrb[47].mxu1  ;;  %v8226_v60 = vadd.f32 %v8223_v16, %v1791_v23  ;;  %9914 = vst [vmem:[#allocation45_spill] sm:$0xff] %v8238_v50  ;;  %v1868_v23 = vrot.slane %v1854_v19, %v7690_v11 }
 0x575   :  { %v2076_v7 = vsel %vm2015_vm3, %v8226_v60, -inf  ;;  %v8233_v48 = vadd.f32 %v8223_v16, %v1792_v6  ;;  %v1884_v6 = vrot.slane %v1868_v23, %v7690_v11 }
 0x576   :  { %2077 = vmax.xlane.f32.xlu0 %v2076_v7 }
 0x577   :  { %v2079_v61 = vsel %vm2015_vm3, %v8233_v48, -inf  ;;  %v1900_v10 = vcombine.high %v1884_v6, %v1884_v6 }
 0x578   :  { %2080 = vmax.xlane.f32.xlu1 %v2079_v61  ;;  %v1576_v32 = vpop.f32.mrb[100].mxu0  ;;  %v8253_v61 = vrot.slane %v1884_v6, %v7703_v21 }
 0x579   :  { %v1793_v17 = vmul.f32 0.125, %v1576_v32  ;;  %v6633_v31 = vpop.f32.mrb[101].mxu0  ;;  %v1870_v32 = vcombine.high %v1868_v23, %v1868_v23 }
 0x57a   :  { %v1579_v28 = vpop.f32.mrb[102].mxu0  ;;  %9915 = vst [vmem:[#allocation46_spill] sm:$0xff] %v8253_v61 }
 0x57b   :  { %v1794_v4 = vmul.f32 0.125, %v1579_v28  ;;  %v6634_v57 = vpop.f32.mrb[103].mxu0  ;;  %v8242_v18 = vadd.f32 %v8238_v50, %v1793_v17 }
 0x57d   :  { %v2082_v7 = vsel %vm2015_vm3, %v8242_v18, -inf  ;;  %v8248_v54 = vadd.f32 %v8238_v50, %v1794_v4  ;;  %v1898_v4 = vrot.slane %v1870_v32, %v7690_v11 }
 0x57e   :  { %2083 = vmax.xlane.f32.xlu0 %v2082_v7 }
 0x57f   :  { %v2085_v19 = vsel %vm2015_vm3, %v8248_v54, -inf  ;;  %v1902_v33 = vcombine.high %v1898_v4, %v1898_v4 }
 0x580   :  { %v1623_v57 = vpop.f32.mrb[48].mxu1  ;;  %2086 = vmax.xlane.f32.xlu1 %v2085_v19  ;;  %v8267_v19 = vrot.slane %v1898_v4, %v7703_v21 }
 0x581   :  { %v1795_v17 = vmul.f32 0.125, %v1623_v57  ;;  %v6639_v31 = vpop.f32.mrb[49].mxu1 }
 0x582   :  { %v1626_v28 = vpop.f32.mrb[50].mxu1  ;;  %9916 = vst [vmem:[#allocation47_spill] sm:$0xff] %v8267_v19 }
 0x583   :  { %v1796_v16 = vmul.f32 0.125, %v1626_v28  ;;  %v6640_v29 = vpop.f32.mrb[51].mxu1  ;;  %v8256_v47 = vadd.f32 %v8253_v61, %v1795_v17 }
 0x585   :  { %v2088_v7 = vsel %vm2015_vm3, %v8256_v47, -inf  ;;  %v8262_v50 = vadd.f32 %v8253_v61, %v1796_v16 }
 0x586   :  { %2089 = vmax.xlane.f32.xlu0 %v2088_v7 }
 0x587   :  { %v2091_v23 = vsel %vm2015_vm3, %v8262_v50, -inf }
 0x588   :  { %2092 = vmax.xlane.f32.xlu1 %v2091_v23  ;;  %v1670_v29 = vpop.f32.mrb[104].mxu0 }
 0x589   :  { %v1797_v57 = vmul.f32 0.125, %v1670_v29  ;;  %v6645_v17 = vpop.f32.mrb[105].mxu0  ;;  %v8280_v29 = vrot.slane %v1900_v10, %v7703_v21 }
 0x58a   :  { %v1673_v31 = vpop.f32.mrb[106].mxu0 }
 0x58b   :  { %v1798_v28 = vmul.f32 0.125, %v1673_v31  ;;  %v6646_v11 = vpop.f32.mrb[107].mxu0  ;;  %v8270_v32 = vadd.f32 %v8267_v19, %v1797_v57  ;;  %9917 = vst [vmem:[#allocation48_spill] sm:$0xff] %v8280_v29 }
 0x58d   :  { %v2094_v16 = vsel %vm2015_vm3, %v8270_v32, -inf  ;;  %v8275_v7 = vadd.f32 %v8267_v19, %v1798_v28 }
 0x58e   :  { %2095 = vmax.xlane.f32.xlu0 %v2094_v16 }
 0x58f   :  { %v2097_v23 = vsel %vm2015_vm3, %v8275_v7, -inf }
 0x590   :  { %v1717_v17 = vpop.f32.mrb[52].mxu1  ;;  %2098 = vmax.xlane.f32.xlu1 %v2097_v23  ;;  %v8293_v23 = vrot.slane %v1902_v33, %v7703_v21 }
 0x591   :  { %v1799_v31 = vmul.f32 0.125, %v1717_v17  ;;  %v6651_v11 = vpop.f32.mrb[53].mxu1 }
 0x592   :  { %v1720_v57 = vpop.f32.mrb[54].mxu1  ;;  %9918 = vst [vmem:[#allocation49_spill] sm:$0xff] %v8293_v23 }
 0x593   :  { %v1800_v61 = vmul.f32 0.125, %v1720_v57  ;;  %v6652_v6 = vpop.f32.mrb[55].mxu1  ;;  %v8283_v37 = vadd.f32 %v8280_v29, %v1799_v31 }
 0x595   :  { %v2100_v28 = vsel %vm2015_vm3, %v8283_v37, -inf  ;;  %v8288_v16 = vadd.f32 %v8280_v29, %v1800_v61 }
 0x596   :  { %2101 = vmax.xlane.f32.xlu0 %v2100_v28 }
 0x597   :  { %v2103_v10 = vsel %vm2015_vm3, %v8288_v16, -inf }
 0x598   :  { %2104 = vmax.xlane.f32.xlu1 %v2103_v10  ;;  %v1764_v17 = vpop.f32.mrb[108].mxu0 }
 0x599   :  { %v1801_v11 = vmul.f32 0.125, %v1764_v17  ;;  %v6657_v57 = vpop.f32.mrb[109].mxu0 }
 0x59a   :  { %v1767_v31 = vpop.f32.mrb[110].mxu0 }
 0x59b   :  { %v1802_v6 = vmul.f32 0.125, %v1767_v31  ;;  %v6658_v4 = vpop.f32.mrb[111].mxu0  ;;  %v8296_v19 = vadd.f32 %v8293_v23, %v1801_v11 }
 0x59d   :  { %v2106_v61 = vsel %vm2015_vm3, %v8296_v19, -inf  ;;  %v8301_v28 = vadd.f32 %v8293_v23, %v1802_v6 }
 0x59e   :  { %2107 = vmax.xlane.f32.xlu0 %v2106_v61 }
 0x59f   :  { %v2109_v21 = vsel %vm2015_vm3, %v8301_v28, -inf }
 0x5a0   :  { %2110 = vmax.xlane.f32.xlu1 %v2109_v21 }
 0x5b3   :  { %v2018_v33 = vpop.xlane.xlu1 %2017 }
 0x5b4   :  { %v2112_v10 = vsub.f32 %v8083_v55, %v2018_v33 }
 0x5b5   :  { %v2021_v17 = vpop.xlane.xlu0 %2020 }
 0x5b6   :  { %v2144_v57 = vmul.f32 1.442695, %v2112_v10  ;;  %v2113_v31 = vsub.f32 %v8089_v26, %v2021_v17 }
 0x5b8   :  { %7116 = vpow2.f32 %v2144_v57  ;;  %v2146_v11 = vmul.f32 1.442695, %v2113_v31 }
 0x5ba   :  { %7118 = vpow2.f32 %v2146_v11 }
 0x5bb   :  { %v2024_v4 = vpop.xlane.xlu0 %2023 }
 0x5bc   :  { %v2114_v29 = vsub.f32 %v8097_v45, %v2024_v4 }
 0x5bd   :  { %v2027_v6 = vpop.xlane.xlu1 %2026 }
 0x5be   :  { %v2148_v23 = vmul.f32 1.442695, %v2114_v29  ;;  %v2115_v61 = vsub.f32 %v8102_v24, %v2027_v6 }
 0x5c0   :  { %7120 = vpow2.f32 %v2148_v23  ;;  %v2150_v59 = vmul.f32 1.442695, %v2115_v61 }
 0x5c2   :  { %v8309_v21 = vpop.eup %7116  ;;  %7122 = vpow2.f32 %v2150_v59 }
 0x5c3   :  { %v2030_v55 = vpop.xlane.xlu0 %2029  ;;  %v2208_v33 = vsel %vm2015_vm3, %v8309_v21, 0.0 }
 0x5c4   :  { %v8313_v26 = vpop.eup %7118  ;;  %v2116_v10 = vsub.f32 %v8110_v49, %v2030_v55  ;;  %2209 = vadd.xlane.f32.xlu0 %v2208_v33 }
 0x5c5   :  { %v2033_v17 = vpop.xlane.xlu1 %2032  ;;  %v2211_v45 = vsel %vm2015_vm3, %v8313_v26, 0.0 }
 0x5c6   :  { %v2152_v29 = vmul.f32 1.442695, %v2116_v10  ;;  %v2117_v24 = vsub.f32 %v8115_v30, %v2033_v17  ;;  %2212 = vadd.xlane.f32.xlu1 %v2211_v45 }
 0x5c8   :  { %7124 = vpow2.f32 %v2152_v29  ;;  %v2154_v23 = vmul.f32 1.442695, %v2117_v24 }
 0x5ca   :  { %v8319_v59 = vpop.eup %7120  ;;  %7126 = vpow2.f32 %v2154_v23 }
 0x5cb   :  { %v2036_v57 = vpop.xlane.xlu0 %2035  ;;  %v2214_v31 = vsel %vm2015_vm3, %v8319_v59, 0.0 }
 0x5cc   :  { %v8323_v11 = vpop.eup %7122  ;;  %v2118_v49 = vsub.f32 %v8124_v12, %v2036_v57  ;;  %2215 = vadd.xlane.f32.xlu0 %v2214_v31 }
 0x5cd   :  { %v2039_v4 = vpop.xlane.xlu1 %2038  ;;  %v2217_v6 = vsel %vm2015_vm3, %v8323_v11, 0.0 }
 0x5ce   :  { %v2156_v30 = vmul.f32 1.442695, %v2118_v49  ;;  %v2119_v61 = vsub.f32 %v8130_v51, %v2039_v4  ;;  %2218 = vadd.xlane.f32.xlu1 %v2217_v6 }
 0x5d0   :  { %7128 = vpow2.f32 %v2156_v30  ;;  %v2158_v55 = vmul.f32 1.442695, %v2119_v61 }
 0x5d2   :  { %v8329_v33 = vpop.eup %7124  ;;  %7130 = vpow2.f32 %v2158_v55 }
 0x5d3   :  { %v2042_v10 = vpop.xlane.xlu0 %2041  ;;  %v2220_v17 = vsel %vm2015_vm3, %v8329_v33, 0.0 }
 0x5d4   :  { %v8333_v45 = vpop.eup %7126  ;;  %v2120_v12 = vsub.f32 %v8138_v3, %v2042_v10  ;;  %2221 = vadd.xlane.f32.xlu0 %v2220_v17 }
 0x5d5   :  { %v2045_v29 = vpop.xlane.xlu1 %2044  ;;  %v2223_v24 = vsel %vm2015_vm3, %v8333_v45, 0.0 }
 0x5d6   :  { %v2160_v51 = vmul.f32 1.442695, %v2120_v12  ;;  %v2121_v23 = vsub.f32 %v8144_v38, %v2045_v29  ;;  %2224 = vadd.xlane.f32.xlu1 %v2223_v24 }
 0x5d8   :  { %7132 = vpow2.f32 %v2160_v51  ;;  %v2162_v57 = vmul.f32 1.442695, %v2121_v23 }
 0x5da   :  { %v8339_v31 = vpop.eup %7128  ;;  %7134 = vpow2.f32 %v2162_v57 }
 0x5db   :  { %v2048_v49 = vpop.xlane.xlu0 %2047  ;;  %v2226_v4 = vsel %vm2015_vm3, %v8339_v31, 0.0 }
 0x5dc   :  { %v8343_v6 = vpop.eup %7130  ;;  %v2122_v3 = vsub.f32 %v8152_v58, %v2048_v49  ;;  %2227 = vadd.xlane.f32.xlu0 %v2226_v4 }
 0x5dd   :  { %v2051_v30 = vpop.xlane.xlu1 %2050  ;;  %v2229_v61 = vsel %vm2015_vm3, %v8343_v6, 0.0 }
 0x5de   :  { %v2164_v38 = vmul.f32 1.442695, %v2122_v3  ;;  %v2123_v55 = vsub.f32 %v8160_v9, %v2051_v30  ;;  %2230 = vadd.xlane.f32.xlu1 %v2229_v61 }
 0x5e0   :  { %7136 = vpow2.f32 %v2164_v38  ;;  %v2166_v10 = vmul.f32 1.442695, %v2123_v55 }
 0x5e2   :  { %v8349_v17 = vpop.eup %7132  ;;  %7138 = vpow2.f32 %v2166_v10 }
 0x5e3   :  { %v2054_v12 = vpop.xlane.xlu0 %2053  ;;  %v2232_v29 = vsel %vm2015_vm3, %v8349_v17, 0.0 }
 0x5e4   :  { %v8353_v24 = vpop.eup %7134  ;;  %v2124_v58 = vsub.f32 %v8168_v41, %v2054_v12  ;;  %2233 = vadd.xlane.f32.xlu0 %v2232_v29 }
 0x5e5   :  { %v2057_v51 = vpop.xlane.xlu1 %2056  ;;  %v2235_v23 = vsel %vm2015_vm3, %v8353_v24, 0.0 }
 0x5e6   :  { %v2168_v9 = vmul.f32 1.442695, %v2124_v58  ;;  %v2125_v57 = vsub.f32 %v8175_v1, %v2057_v51  ;;  %2236 = vadd.xlane.f32.xlu1 %v2235_v23 }
 0x5e8   :  { %7140 = vpow2.f32 %v2168_v9  ;;  %v2170_v49 = vmul.f32 1.442695, %v2125_v57 }
 0x5ea   :  { %v8359_v4 = vpop.eup %7136  ;;  %7142 = vpow2.f32 %v2170_v49 }
 0x5eb   :  { %v2060_v3 = vpop.xlane.xlu0 %2059  ;;  %v2238_v30 = vsel %vm2015_vm3, %v8359_v4, 0.0 }
 0x5ec   :  { %v8363_v61 = vpop.eup %7138  ;;  %v2126_v41 = vsub.f32 %v8185_v0, %v2060_v3  ;;  %2239 = vadd.xlane.f32.xlu0 %v2238_v30 }
 0x5ed   :  { %v2063_v38 = vpop.xlane.xlu1 %2062  ;;  %v2241_v55 = vsel %vm2015_vm3, %v8363_v61, 0.0 }
 0x5ee   :  { %v2172_v1 = vmul.f32 1.442695, %v2126_v41  ;;  %v2127_v10 = vsub.f32 %v8191_v46, %v2063_v38  ;;  %2242 = vadd.xlane.f32.xlu1 %v2241_v55 }
 0x5f0   :  { %7144 = vpow2.f32 %v2172_v1  ;;  %v2174_v12 = vmul.f32 1.442695, %v2127_v10 }
 0x5f2   :  { %v8369_v29 = vpop.eup %7140  ;;  %7146 = vpow2.f32 %v2174_v12 }
 0x5f3   :  { %v2066_v58 = vpop.xlane.xlu0 %2065  ;;  %v2244_v51 = vsel %vm2015_vm3, %v8369_v29, 0.0 }
 0x5f4   :  { %v8373_v23 = vpop.eup %7142  ;;  %v2128_v0 = vsub.f32 %v8199_v63, %v2066_v58  ;;  %2245 = vadd.xlane.f32.xlu0 %v2244_v51 }
 0x5f5   :  { %v2069_v9 = vpop.xlane.xlu1 %2068  ;;  %v2247_v57 = vsel %vm2015_vm3, %v8373_v23, 0.0 }
 0x5f6   :  { %v2176_v46 = vmul.f32 1.442695, %v2128_v0  ;;  %v2129_v49 = vsub.f32 %v8205_v62, %v2069_v9  ;;  %2248 = vadd.xlane.f32.xlu1 %v2247_v57 }
 0x5f8   :  { %7148 = vpow2.f32 %v2176_v46  ;;  %v2178_v3 = vmul.f32 1.442695, %v2129_v49 }
 0x5fa   :  { %v8379_v30 = vpop.eup %7144  ;;  %7150 = vpow2.f32 %v2178_v3 }
 0x5fb   :  { %v2072_v41 = vpop.xlane.xlu0 %2071  ;;  %v2250_v38 = vsel %vm2015_vm3, %v8379_v30, 0.0 }
 0x5fc   :  { %v8383_v55 = vpop.eup %7146  ;;  %v2130_v63 = vsub.f32 %v8213_v14, %v2072_v41  ;;  %2251 = vadd.xlane.f32.xlu0 %v2250_v38 }
 0x5fd   :  { %v2075_v1 = vpop.xlane.xlu1 %2074  ;;  %v2253_v10 = vsel %vm2015_vm3, %v8383_v55, 0.0 }
 0x5fe   :  { %v2180_v62 = vmul.f32 1.442695, %v2130_v63  ;;  %v2131_v12 = vsub.f32 %v8218_v34, %v2075_v1  ;;  %2254 = vadd.xlane.f32.xlu1 %v2253_v10 }
 0x600   :  { %7152 = vpow2.f32 %v2180_v62  ;;  %v2182_v58 = vmul.f32 1.442695, %v2131_v12 }
 0x602   :  { %v8389_v51 = vpop.eup %7148  ;;  %7154 = vpow2.f32 %v2182_v58 }
 0x603   :  { %v2078_v0 = vpop.xlane.xlu0 %2077  ;;  %v2256_v9 = vsel %vm2015_vm3, %v8389_v51, 0.0 }
 0x604   :  { %v8393_v57 = vpop.eup %7150  ;;  %v2132_v14 = vsub.f32 %v8226_v60, %v2078_v0  ;;  %2257 = vadd.xlane.f32.xlu0 %v2256_v9 }
 0x605   :  { %v2081_v46 = vpop.xlane.xlu1 %2080  ;;  %v2259_v49 = vsel %vm2015_vm3, %v8393_v57, 0.0 }
 0x606   :  { %v2184_v34 = vmul.f32 1.442695, %v2132_v14  ;;  %v2133_v3 = vsub.f32 %v8233_v48, %v2081_v46  ;;  %2260 = vadd.xlane.f32.xlu1 %v2259_v49 }
 0x608   :  { %7156 = vpow2.f32 %v2184_v34  ;;  %v2186_v41 = vmul.f32 1.442695, %v2133_v3 }
 0x60a   :  { %v8399_v38 = vpop.eup %7152  ;;  %7158 = vpow2.f32 %v2186_v41 }
 0x60b   :  { %v2084_v63 = vpop.xlane.xlu0 %2083  ;;  %v2262_v1 = vsel %vm2015_vm3, %v8399_v38, 0.0 }
 0x60c   :  { %v8403_v10 = vpop.eup %7154  ;;  %v2134_v60 = vsub.f32 %v8242_v18, %v2084_v63  ;;  %2263 = vadd.xlane.f32.xlu0 %v2262_v1 }
 0x60d   :  { %v2087_v62 = vpop.xlane.xlu1 %2086  ;;  %v2265_v12 = vsel %vm2015_vm3, %v8403_v10, 0.0 }
 0x60e   :  { %v2188_v48 = vmul.f32 1.442695, %v2134_v60  ;;  %v2135_v58 = vsub.f32 %v8248_v54, %v2087_v62  ;;  %2266 = vadd.xlane.f32.xlu1 %v2265_v12 }
 0x610   :  { %7160 = vpow2.f32 %v2188_v48  ;;  %v2190_v0 = vmul.f32 1.442695, %v2135_v58 }
 0x612   :  { %v8409_v9 = vpop.eup %7156  ;;  %7162 = vpow2.f32 %v2190_v0 }
 0x613   :  { %v2090_v14 = vpop.xlane.xlu0 %2089  ;;  %v2268_v46 = vsel %vm2015_vm3, %v8409_v9, 0.0 }
 0x614   :  { %v8413_v49 = vpop.eup %7158  ;;  %v2136_v18 = vsub.f32 %v8256_v47, %v2090_v14  ;;  %2269 = vadd.xlane.f32.xlu0 %v2268_v46 }
 0x615   :  { %v2093_v34 = vpop.xlane.xlu1 %2092  ;;  %v2271_v3 = vsel %vm2015_vm3, %v8413_v49, 0.0 }
 0x616   :  { %v2192_v54 = vmul.f32 1.442695, %v2136_v18  ;;  %v2137_v41 = vsub.f32 %v8262_v50, %v2093_v34  ;;  %2272 = vadd.xlane.f32.xlu1 %v2271_v3 }
 0x618   :  { %7164 = vpow2.f32 %v2192_v54  ;;  %v2194_v63 = vmul.f32 1.442695, %v2137_v41 }
 0x61a   :  { %v8419_v1 = vpop.eup %7160  ;;  %7166 = vpow2.f32 %v2194_v63 }
 0x61b   :  { %v2096_v60 = vpop.xlane.xlu0 %2095  ;;  %v2274_v62 = vsel %vm2015_vm3, %v8419_v1, 0.0 }
 0x61c   :  { %v8423_v12 = vpop.eup %7162  ;;  %v2138_v47 = vsub.f32 %v8270_v32, %v2096_v60  ;;  %2275 = vadd.xlane.f32.xlu0 %v2274_v62 }
 0x61d   :  { %v2099_v48 = vpop.xlane.xlu1 %2098  ;;  %v2277_v58 = vsel %vm2015_vm3, %v8423_v12, 0.0 }
 0x61e   :  { %v2196_v50 = vmul.f32 1.442695, %v2138_v47  ;;  %v2139_v0 = vsub.f32 %v8275_v7, %v2099_v48  ;;  %2278 = vadd.xlane.f32.xlu1 %v2277_v58 }
 0x620   :  { %7168 = vpow2.f32 %v2196_v50  ;;  %v2198_v14 = vmul.f32 1.442695, %v2139_v0 }
 0x622   :  { %v8429_v46 = vpop.eup %7164  ;;  %7170 = vpow2.f32 %v2198_v14 }
 0x623   :  { %v2102_v18 = vpop.xlane.xlu0 %2101  ;;  %v2280_v34 = vsel %vm2015_vm3, %v8429_v46, 0.0 }
 0x624   :  { %v8433_v3 = vpop.eup %7166  ;;  %v2140_v32 = vsub.f32 %v8283_v37, %v2102_v18  ;;  %2281 = vadd.xlane.f32.xlu0 %v2280_v34 }
 0x625   :  { %v2105_v54 = vpop.xlane.xlu1 %2104  ;;  %v2283_v41 = vsel %vm2015_vm3, %v8433_v3, 0.0 }
 0x626   :  { %v2200_v7 = vmul.f32 1.442695, %v2140_v32  ;;  %v2141_v63 = vsub.f32 %v8288_v16, %v2105_v54  ;;  %2284 = vadd.xlane.f32.xlu1 %v2283_v41 }
 0x628   :  { %7172 = vpow2.f32 %v2200_v7  ;;  %v2202_v60 = vmul.f32 1.442695, %v2141_v63 }
 0x62a   :  { %v8439_v62 = vpop.eup %7168  ;;  %7174 = vpow2.f32 %v2202_v60 }
 0x62b   :  { %v2108_v47 = vpop.xlane.xlu0 %2107  ;;  %v2286_v48 = vsel %vm2015_vm3, %v8439_v62, 0.0 }
 0x62c   :  { %v8443_v58 = vpop.eup %7170  ;;  %v2142_v37 = vsub.f32 %v8296_v19, %v2108_v47  ;;  %2287 = vadd.xlane.f32.xlu0 %v2286_v48 }
 0x62d   :  { %v2289_v50 = vsel %vm2015_vm3, %v8443_v58, 0.0  ;;  %v2111_v54 = vpop.xlane.xlu1 %2110 }
 0x62e   :  { %v2204_v0 = vmul.f32 1.442695, %v2142_v37  ;;  %2290 = vadd.xlane.f32.xlu1 %v2289_v50  ;;  %v2143_v63 = vsub.f32 %v8301_v28, %v2111_v54 }
 0x630   :  { %7176 = vpow2.f32 %v2204_v0  ;;  %v2206_v47 = vmul.f32 1.442695, %v2143_v63  ;;  %v9919_v0 = vmov 0.0  }
 0x632   :  { %v8448_v16 = vpop.eup %7172 }
 0x633   :  { %v2292_v14 = vsel %vm2015_vm3, %v8448_v16, 0.0 }
 0x634   :  { %v8452_v18 = vpop.eup %7174  ;;  %2293 = vadd.xlane.f32.xlu0 %v2292_v14 }
 0x635   :  { %v2295_v34 = vsel %vm2015_vm3, %v8452_v18, 0.0 }
 0x636   :  { %2296 = vadd.xlane.f32.xlu1 %v2295_v34 }
 0x63a   :  { %v8456_v19 = vpop.eup %7176 }
 0x63b   :  { %v2298_v32 = vsel %vm2015_vm3, %v8456_v19, 0.0 }
 0x63c   :  { %2299 = vadd.xlane.f32.xlu0 %v2298_v32 }
 0x647   :  { %3161 = vrot.lane.b32.xlu1 %v7875_v8, %s7505_s1 }
 0x64b   :  { %3105 = vrot.lane.b32.xlu1 %v7862_v44, %s7505_s1 }
 0x651   :  { %v2210_v41 = vpop.xlane.xlu0 %2209 }
 0x652   :  { %7178 = vrcp.f32 %v2210_v41  ;;  %3108 = vrot.lane.b32.xlu0 %v7864_v56, %s7505_s1 }
 0x653   :  { %v2213_v7 = vpop.xlane.xlu1 %2212 }
 0x654   :  { %7180 = vrcp.f32 %v2213_v7 }
 0x656   :  { %3158 = vrot.lane.b32.xlu0 %v7873_v5, %s7505_s1 }
 0x659   :  { %v2216_v60 = vpop.xlane.xlu0 %2215 }
 0x65a   :  { %7182 = vrcp.f32 %v2216_v60  ;;  %3211 = vrot.lane.b32.xlu0 %v7888_v22, %s7505_s1 }
 0x65b   :  { %v2219_v8 = vpop.xlane.xlu1 %2218 }
 0x65c   :  { %v7179_v44 = vpop.eup %7178  ;;  %7184 = vrcp.f32 %v2219_v8 }
 0x65d   :  { %v2336_v56 = vmul.f32 %v7179_v44, %v8309_v21  ;;  %7186 = vpow2.f32 %v2206_v47 }
 0x65e   :  { %v7181_v48 = vpop.eup %7180  ;;  %3264 = vrot.lane.b32.xlu0 %v7903_v35, %s7505_s1 }
 0x65f   :  { %v2337_v37 = vmul.f32 %v7181_v48, %v8313_v26 }
 0x661   :  { %v2222_v5 = vpop.xlane.xlu0 %2221  ;;  %v2368_v28 = vpack.c.bf16 %v2337_v37, %v2336_v56  ;;  %v9920_v56 = vld [vmem:[#allocation20_spill] sm:$0xff] }
 0x662   :  { %7188 = vrcp.f32 %v2222_v5  ;;  %3317 = vrot.lane.b32.xlu0 %v7914_v42, %s7505_s1 }
 0x663   :  { %6662 = vmatmul.mubr.msk.bf16.vlgmr.msra.gmra.mrb[56].mxu1 %vm2015_vm3, %v2368_v28  ;;  %v2225_v22 = vpop.xlane.xlu1 %2224  ;;  %v9921_v28 = vld [vmem:[#allocation31_spill] sm:$0xff] }
 0x664   :  { %v7183_v50 = vpop.eup %7182  ;;  %6672 = vmatpush3.bf16.msra.mxu1 %v8060_v20  ;;  %7190 = vrcp.f32 %v2225_v22  ;;  %6673 = vmatprep.mubr.msk.bf16.mxu1 %vm7501_vm1, %v9919_v0 }
 0x665   :  { %6683 = vmatprep.subr.bf16.mxu1 %v9919_v0  ;;  %v2338_v21 = vmul.f32 %v7183_v50, %v8319_v59  ;;  %v9924_v50 = vld [vmem:[#allocation12_spill] sm:$0xff] }
 0x666   :  { %v7185_v35 = vpop.eup %7184  ;;  %3370 = vrot.lane.b32.xlu0 %v7925_v53, %s7505_s1 }
 0x667   :  { %v2339_v42 = vmul.f32 %v7185_v35, %v8323_v11  ;;  %v8488_v34 = vpop.eup %7186 }
 0x669   :  { %v2228_v26 = vpop.xlane.xlu0 %2227  ;;  %v2369_v14 = vpack.c.bf16 %v2339_v42, %v2338_v21  ;;  %v9925_v42 = vld [vmem:[#allocation24_spill] sm:$0xff] }
 0x66a   :  { %7192 = vrcp.f32 %v2228_v26  ;;  %3423 = vrot.lane.b32.xlu0 %v7936_v43, %s7505_s1  ;;  %v2301_v43 = vsel %vm2015_vm3, %v8488_v34, 0.0 }
 0x66b   :  { %6668 = vmatmul.mubr.msk.bf16.vlgmr.msra.gmra.mrb[112].mxu0 %vm2015_vm3, %v2369_v14  ;;  %v2231_v32 = vpop.xlane.xlu1 %2230 }
 0x66c   :  { %v7189_v54 = vpop.eup %7188  ;;  %6678 = vmatpush3.bf16.msra.mxu0 %v8058_v13  ;;  %7194 = vrcp.f32 %v2231_v32  ;;  %6679 = vmatprep.mubr.msk.bf16.mxu0 %vm7501_vm1, %v9919_v0  ;;  %v9926_v32 = vld [vmem:[#allocation30_spill] sm:$0xff] }
 0x66d   :  { %6689 = vmatprep.subr.bf16.mxu0 %v9919_v0  ;;  %v2340_v59 = vmul.f32 %v7189_v54, %v8329_v33  ;;  %v9928_v54 = vld [vmem:[#allocation29_spill] sm:$0xff] }
 0x66e   :  { %v7191_v53 = vpop.eup %7190  ;;  %3476 = vrot.lane.b32.xlu0 %v7947_v2, %s7505_s1 }
 0x66f   :  { %v2341_v11 = vmul.f32 %v7191_v53, %v8333_v45  ;;  %2302 = vadd.xlane.f32.xlu1 %v2301_v43 }
 0x671   :  { %v2234_v41 = vpop.xlane.xlu0 %2233  ;;  %v2370_v7 = vpack.c.bf16 %v2341_v11, %v2340_v59  ;;  %v9929_v59 = vld [vmem:[#allocation14_spill] sm:$0xff] }
 0x672   :  { %7196 = vrcp.f32 %v2234_v41  ;;  %3529 = vrot.lane.b32.xlu0 %v7958_v15, %s7505_s1 }
 0x673   :  { %6674 = vmatmul.mubr.msk.bf16.vlgmr.msra.gmra.mrb[60].mxu1 %vm2015_vm3, %v2370_v7  ;;  %v2237_v63 = vpop.xlane.xlu1 %2236 }
 0x674   :  { %v7193_v60 = vpop.eup %7192  ;;  %6684 = vmatpush3.bf16.msra.mxu1 %v8064_v40  ;;  %7198 = vrcp.f32 %v2237_v63  ;;  %6685 = vmatprep.mubr.msk.bf16.mxu1 %vm7501_vm1, %v9919_v0 }
 0x675   :  { %6695 = vmatprep.subr.bf16.mxu1 %v9919_v0  ;;  %v2342_v33 = vmul.f32 %v7193_v60, %v8339_v31  ;;  %v9930_v60 = vld [vmem:[#allocation33_spill] sm:$0xff] }
 0x676   :  { %v7195_v2 = vpop.eup %7194  ;;  %3582 = vrot.lane.b32.xlu0 %v7969_v27, %s7505_s1 }
 0x677   :  { %v2343_v15 = vmul.f32 %v7195_v2, %v8343_v6 }
 0x679   :  { %v2240_v45 = vpop.xlane.xlu0 %2239  ;;  %v2371_v8 = vpack.c.bf16 %v2343_v15, %v2342_v33  ;;  %v9932_v33 = vld [vmem:[#allocation16_spill] sm:$0xff] }
 0x67a   :  { %7200 = vrcp.f32 %v2240_v45  ;;  %3635 = vrot.lane.b32.xlu0 %v7980_v39, %s7505_s1 }
 0x67b   :  { %6680 = vmatmul.mubr.msk.bf16.vlgmr.msra.gmra.mrb[116].mxu0 %vm2015_vm3, %v2371_v8  ;;  %v2243_v44 = vpop.xlane.xlu1 %2242 }
 0x67c   :  { %v7197_v47 = vpop.eup %7196  ;;  %6690 = vmatpush3.bf16.msra.mxu0 %v8062_v36  ;;  %7202 = vrcp.f32 %v2243_v44  ;;  %6691 = vmatprep.mubr.msk.bf16.mxu0 %vm7501_vm1, %v9919_v0 }
 0x67d   :  { %6701 = vmatprep.subr.bf16.mxu0 %v9919_v0  ;;  %v2344_v31 = vmul.f32 %v7197_v47, %v8349_v17  ;;  %v9923_v17 = vld [vmem:[#allocation22_spill] sm:$0xff]  ;;  %v9933_v47 = vld [vmem:[#allocation32_spill] sm:$0xff] }
 0x67e   :  { %v7199_v27 = vpop.eup %7198  ;;  %3688 = vrot.lane.b32.xlu0 %v7991_v52, %s7505_s1  ;;  %v9922_v52 = vld [vmem:[#allocation11_spill] sm:$0xff] }
 0x67f   :  { %v2345_v39 = vmul.f32 %v7199_v27, %v8353_v24 }
 0x680   :  { %3214 = vrot.lane.b32.xlu1 %v7890_v25, %s7505_s1 }
 0x681   :  { %v2246_v6 = vpop.xlane.xlu0 %2245  ;;  %v2372_v48 = vpack.c.bf16 %v2345_v39, %v2344_v31  ;;  %v9935_v31 = vld [vmem:[#allocation18_spill] sm:$0xff] }
 0x682   :  { %7204 = vrcp.f32 %v2246_v6  ;;  %3741 = vrot.lane.b32.xlu0 %v9920_v56, %s7505_s1 }
 0x683   :  { %6686 = vmatmul.mubr.msk.bf16.vlgmr.msra.gmra.mrb[64].mxu1 %vm2015_vm3, %v2372_v48  ;;  %v2249_v37 = vpop.xlane.xlu1 %2248 }
 0x684   :  { %v7201_v5 = vpop.eup %7200  ;;  %6696 = vmatpush3.bf16.msra.mxu1 %v9921_v28  ;;  %7206 = vrcp.f32 %v2249_v37  ;;  %3267 = vrot.lane.b32.xlu1 %v9922_v52, %s7505_s1  ;;  %v9936_v37 = vld [vmem:[#allocation6_spill] sm:$0xff]  ;;  %v9938_v52 = vld [vmem:[#allocation21_spill] sm:$0xff] }
 0x685   :  { %6697 = vmatprep.mubr.msk.bf16.mxu1 %vm7501_vm1, %v9919_v0  ;;  %6707 = vmatprep.subr.bf16.mxu1 %v9919_v0  ;;  %v2346_v24 = vmul.f32 %v7201_v5, %v8359_v4  ;;  %v9927_v4 = vld [vmem:[#allocation13_spill] sm:$0xff]  ;;  %v9937_v5 = vld [vmem:[#allocation19_spill] sm:$0xff] }
 0x686   :  { %v7203_v25 = vpop.eup %7202  ;;  %3794 = vrot.lane.b32.xlu0 %v9923_v17, %s7505_s1 }
 0x687   :  { %v2347_v22 = vmul.f32 %v7203_v25, %v8363_v61 }
 0x688   :  { %3320 = vrot.lane.b32.xlu1 %v9924_v50, %s7505_s1  ;;  %v9939_v50 = vld [vmem:[#allocation5_spill] sm:$0xff] }
 0x689   :  { %v2252_v35 = vpop.xlane.xlu0 %2251  ;;  %v2373_v21 = vpack.c.bf16 %v2347_v22, %v2346_v24 }
 0x68a   :  { %7208 = vrcp.f32 %v2252_v35  ;;  %3847 = vrot.lane.b32.xlu0 %v9925_v42, %s7505_s1  ;;  %v9940_v35 = vld [vmem:[#allocation23_spill] sm:$0xff]  ;;  %v9941_v42 = vld [vmem:[#allocation25_spill] sm:$0xff] }
 0x68b   :  { %6692 = vmatmul.mubr.msk.bf16.vlgmr.msra.gmra.mrb[120].mxu0 %vm2015_vm3, %v2373_v21  ;;  %v2255_v26 = vpop.xlane.xlu1 %2254 }
 0x68c   :  { %v7205_v14 = vpop.eup %7204  ;;  %6702 = vmatpush3.bf16.msra.mxu0 %v9926_v32  ;;  %7210 = vrcp.f32 %v2255_v26  ;;  %3373 = vrot.lane.b32.xlu1 %v9927_v4, %s7505_s1 }
 0x68d   :  { %6703 = vmatprep.mubr.msk.bf16.mxu0 %vm7501_vm1, %v9919_v0  ;;  %6713 = vmatprep.subr.bf16.mxu0 %v9919_v0  ;;  %v2348_v53 = vmul.f32 %v7205_v14, %v8369_v29  ;;  %v9931_v29 = vld [vmem:[#allocation15_spill] sm:$0xff] }
 0x68e   :  { %v7207_v61 = vpop.eup %7206  ;;  %4385 = vrot.lane.b32.xlu0 %v9928_v54, %s7505_s1  ;;  %v9942_v54 = vld [vmem:[#allocation8_spill] sm:$0xff] }
 0x68f   :  { %v2349_v43 = vmul.f32 %v7207_v61, %v8373_v23 }
 0x690   :  { %3426 = vrot.lane.b32.xlu1 %v9929_v59, %s7505_s1  ;;  %v9944_v59 = vld [vmem:[#allocation26_spill] sm:$0xff] }
 0x691   :  { %v2258_v11 = vpop.xlane.xlu0 %2257  ;;  %v2374_v41 = vpack.c.bf16 %v2349_v43, %v2348_v53  ;;  %v9943_v53 = vld [vmem:[#allocation27_spill] sm:$0xff] }
 0x692   :  { %7212 = vrcp.f32 %v2258_v11  ;;  %4481 = vrot.lane.b32.xlu0 %v8060_v20, %s7505_s1 }
 0x693   :  { %6698 = vmatmul.mubr.msk.bf16.vlgmr.msra.gmra.mrb[68].mxu1 %vm2015_vm3, %v2374_v41  ;;  %v2261_v7 = vpop.xlane.xlu1 %2260 }
 0x694   :  { %v7209_v63 = vpop.eup %7208  ;;  %6708 = vmatpush3.bf16.msra.mxu1 %v9930_v60  ;;  %7214 = vrcp.f32 %v2261_v7  ;;  %3479 = vrot.lane.b32.xlu1 %v9931_v29, %s7505_s1  ;;  %v9946_v29 = vld [vmem:[#allocation28_spill] sm:$0xff] }
 0x695   :  { %6709 = vmatprep.mubr.msk.bf16.mxu1 %vm7501_vm1, %v9919_v0  ;;  %6719 = vmatprep.subr.bf16.mxu1 %v9919_v0  ;;  %v2350_v20 = vmul.f32 %v7209_v63, %v8379_v30 }
 0x696   :  { %v7211_v23 = vpop.eup %7210  ;;  %4577 = vrot.lane.b32.xlu0 %v8064_v40, %s7505_s1  ;;  %v9934_v40 = vld [vmem:[#allocation17_spill] sm:$0xff] }
 0x697   :  { %v2351_v2 = vmul.f32 %v7211_v23, %v8383_v55 }
 0x698   :  { %3532 = vrot.lane.b32.xlu1 %v9932_v33, %s7505_s1 }
 0x699   :  { %v2264_v15 = vpop.xlane.xlu0 %2263  ;;  %v2375_v45 = vpack.c.bf16 %v2351_v2, %v2350_v20 }
 0x69a   :  { %7216 = vrcp.f32 %v2264_v15  ;;  %4673 = vrot.lane.b32.xlu0 %v9921_v28, %s7505_s1 }
 0x69b   :  { %6704 = vmatmul.mubr.msk.bf16.vlgmr.msra.gmra.mrb[124].mxu0 %vm2015_vm3, %v2375_v45  ;;  %v2267_v8 = vpop.xlane.xlu1 %2266  ;;  %v9947_v45 = vld [vmem:[#allocation10_spill] sm:$0xff] }
 0x69c   :  { %v7213_v44 = vpop.eup %7212  ;;  %6714 = vmatpush3.bf16.msra.mxu0 %v9933_v47  ;;  %7218 = vrcp.f32 %v2267_v8  ;;  %3585 = vrot.lane.b32.xlu1 %v9934_v40, %s7505_s1 }
 0x69d   :  { %6715 = vmatprep.mubr.msk.bf16.mxu0 %vm7501_vm1, %v9919_v0  ;;  %6725 = vmatprep.subr.bf16.mxu0 %v9919_v0  ;;  %v2352_v55 = vmul.f32 %v7213_v44, %v8389_v51 }
 0x69e   :  { %v7215_v30 = vpop.eup %7214  ;;  %4769 = vrot.lane.b32.xlu0 %v9930_v60, %s7505_s1  ;;  %v9945_v60 = vld [vmem:[#allocation7_spill] sm:$0xff] }
 0x69f   :  { %v2353_v27 = vmul.f32 %v7215_v30, %v8393_v57  ;;  %v9948_v30 = vld [vmem:[#allocation9_spill] sm:$0xff] }
 0x6a0   :  { %3638 = vrot.lane.b32.xlu1 %v9935_v31, %s7505_s1 }
 0x6a1   :  { %v2270_v39 = vpop.xlane.xlu0 %2269  ;;  %v2376_v6 = vpack.c.bf16 %v2353_v27, %v2352_v55 }
 0x6a2   :  { %7220 = vrcp.f32 %v2270_v39 }
 0x6a3   :  { %6710 = vmatmul.mubr.msk.bf16.vlgmr.msra.gmra.mrb[72].mxu1 %vm2015_vm3, %v2376_v6  ;;  %v2273_v48 = vpop.xlane.xlu1 %2272 }
 0x6a4   :  { %v7217_v56 = vpop.eup %7216  ;;  %6720 = vmatpush3.bf16.msra.mxu1 %v9936_v37  ;;  %7222 = vrcp.f32 %v2273_v48  ;;  %3691 = vrot.lane.b32.xlu1 %v9937_v5, %s7505_s1 }
 0x6a5   :  { %6721 = vmatprep.mubr.msk.bf16.mxu1 %vm7501_vm1, %v9919_v0  ;;  %6731 = vmatprep.subr.bf16.mxu1 %v9919_v0  ;;  %v2354_v57 = vmul.f32 %v7217_v56, %v8399_v38 }
 0x6a6   :  { %v7219_v51 = vpop.eup %7218 }
 0x6a7   :  { %v2355_v28 = vmul.f32 %v7219_v51, %v8403_v10 }
 0x6a8   :  { %3744 = vrot.lane.b32.xlu1 %v9938_v52, %s7505_s1 }
 0x6a9   :  { %v2276_v25 = vpop.xlane.xlu0 %2275  ;;  %v2377_v17 = vpack.c.bf16 %v2355_v28, %v2354_v57 }
 0x6aa   :  { %7224 = vrcp.f32 %v2276_v25 }
 0x6ab   :  { %6716 = vmatmul.mubr.msk.bf16.vlgmr.msra.gmra.mrb[128].mxu0 %vm2015_vm3, %v2377_v17  ;;  %v2279_v24 = vpop.xlane.xlu1 %2278 }
 0x6ac   :  { %v7221_v22 = vpop.eup %7220  ;;  %6726 = vmatpush3.bf16.msra.mxu0 %v9939_v50  ;;  %7226 = vrcp.f32 %v2279_v24  ;;  %3797 = vrot.lane.b32.xlu1 %v9940_v35, %s7505_s1 }
 0x6ad   :  { %6727 = vmatprep.mubr.msk.bf16.mxu0 %vm7501_vm1, %v9919_v0  ;;  %6737 = vmatprep.subr.bf16.mxu0 %v9919_v0  ;;  %v2356_v10 = vmul.f32 %v7221_v22, %v8409_v9 }
 0x6ae   :  { %v7223_v38 = vpop.eup %7222 }
 0x6af   :  { %v2357_v21 = vmul.f32 %v7223_v38, %v8413_v49 }
 0x6b0   :  { %3850 = vrot.lane.b32.xlu1 %v9941_v42, %s7505_s1 }
 0x6b1   :  { %v2282_v26 = vpop.xlane.xlu0 %2281  ;;  %v2378_v14 = vpack.c.bf16 %v2357_v21, %v2356_v10 }
 0x6b2   :  { %7228 = vrcp.f32 %v2282_v26 }
 0x6b3   :  { %6722 = vmatmul.mubr.msk.bf16.vlgmr.msra.gmra.mrb[76].mxu1 %vm2015_vm3, %v2378_v14  ;;  %v2285_v4 = vpop.xlane.xlu1 %2284 }
 0x6b4   :  { %v7225_v61 = vpop.eup %7224  ;;  %6732 = vmatpush3.bf16.msra.mxu1 %v9942_v54  ;;  %7230 = vrcp.f32 %v2285_v4  ;;  %3903 = vrot.lane.b32.xlu1 %v9943_v53, %s7505_s1 }
 0x6b5   :  { %6733 = vmatprep.mubr.msk.bf16.mxu1 %vm7501_vm1, %v9919_v0  ;;  %6743 = vmatprep.subr.bf16.mxu1 %v9919_v0  ;;  %v2358_v49 = vmul.f32 %v7225_v61, %v8419_v1 }
 0x6b6   :  { %v7227_v9 = vpop.eup %7226 }
 0x6b7   :  { %v2359_v43 = vmul.f32 %v7227_v9, %v8423_v12 }
 0x6b8   :  { %3900 = vrot.lane.b32.xlu1 %v9944_v59, %s7505_s1 }
 0x6b9   :  { %v2288_v11 = vpop.xlane.xlu0 %2287  ;;  %v2379_v41 = vpack.c.bf16 %v2359_v43, %v2358_v49 }
 0x6ba   :  { %7232 = vrcp.f32 %v2288_v11 }
 0x6bb   :  { %6728 = vmatmul.mubr.msk.bf16.vlgmr.msra.gmra.mrb[132].mxu0 %vm2015_vm3, %v2379_v41  ;;  %v2291_v7 = vpop.xlane.xlu1 %2290 }
 0x6bc   :  { %v7229_v63 = vpop.eup %7228  ;;  %6738 = vmatpush3.bf16.msra.mxu0 %v9945_v60  ;;  %7234 = vrcp.f32 %v2291_v7  ;;  %4433 = vrot.lane.b32.xlu1 %v9946_v29, %s7505_s1 }
 0x6bd   :  { %6739 = vmatprep.mubr.msk.bf16.mxu0 %vm7501_vm1, %v9919_v0  ;;  %6749 = vmatprep.subr.bf16.mxu0 %v9919_v0  ;;  %v2360_v12 = vmul.f32 %v7229_v63, %v8429_v46 }
 0x6be   :  { %v7231_v1 = vpop.eup %7230 }
 0x6bf   :  { %v2361_v23 = vmul.f32 %v7231_v1, %v8433_v3 }
 0x6c0   :  { %4529 = vrot.lane.b32.xlu1 %v8058_v13, %s7505_s1 }
 0x6c1   :  { %v2294_v20 = vpop.xlane.xlu0 %2293  ;;  %v2380_v2 = vpack.c.bf16 %v2361_v23, %v2360_v12 }
 0x6c2   :  { %7236 = vrcp.f32 %v2294_v20 }
 0x6c3   :  { %6734 = vmatmul.mubr.msk.bf16.vlgmr.msra.gmra.mrb[80].mxu1 %vm2015_vm3, %v2380_v2  ;;  %v2297_v33 = vpop.xlane.xlu1 %2296 }
 0x6c4   :  { %v7233_v15 = vpop.eup %7232  ;;  %6744 = vmatpush3.bf16.msra.mxu1 %v9947_v45  ;;  %7238 = vrcp.f32 %v2297_v33  ;;  %4625 = vrot.lane.b32.xlu1 %v8062_v36, %s7505_s1 }
 0x6c5   :  { %6745 = vmatprep.mubr.msk.bf16.mxu1 %vm7501_vm1, %v9919_v0  ;;  %6755 = vmatprep.subr.bf16.mxu1 %v9919_v0  ;;  %v2362_v13 = vmul.f32 %v7233_v15, %v8439_v62 }
 0x6c6   :  { %v7235_v46 = vpop.eup %7234 }
 0x6c7   :  { %v2363_v3 = vmul.f32 %v7235_v46, %v8443_v58 }
 0x6c8   :  { %4721 = vrot.lane.b32.xlu1 %v9926_v32, %s7505_s1 }
 0x6c9   :  { %v2381_v8 = vpack.c.bf16 %v2363_v3, %v2362_v13  ;;  %v2300_v44 = vpop.xlane.xlu0 %2299 }
 0x6ca   :  { %7240 = vrcp.f32 %v2300_v44 }
 0x6cb   :  { %6740 = vmatmul.mubr.msk.bf16.vlgmr.msra.gmra.mrb[136].mxu0 %vm2015_vm3, %v2381_v8 }
 0x6cc   :  { %v7237_v40 = vpop.eup %7236  ;;  %6750 = vmatpush3.bf16.msra.mxu0 %v9948_v30  ;;  %4817 = vrot.lane.b32.xlu1 %v9933_v47, %s7505_s1  ;;  %v3162_v47 = vpop.permute.xlu1 %3161 }
 0x6cd   :  { %6751 = vmatprep.mubr.msk.bf16.mxu0 %vm7501_vm1, %v9919_v0  ;;  %6761 = vmatprep.subr.bf16.mxu0 %v9919_v0  ;;  %v2364_v62 = vmul.f32 %v7237_v40, %v8448_v16  ;;  %v3109_v32 = vpop.permute.xlu0 %3108  ;;  %v3167_v38 = vsel %vm1018_vm2, %v3162_v47, 0 }
 0x6ce   :  { %v7239_v36 = vpop.eup %7238  ;;  %v3114_v27 = vsel %vm1018_vm2, %v3109_v32, 0 }
 0x6cf   :  { %v2365_v58 = vmul.f32 %v7239_v36, %v8452_v18 }
 0x6d0   :  { %4865 = vrot.lane.b32.xlu1 %v9936_v37, %s7505_s1  ;;  %v3106_v16 = vpop.permute.xlu1 %3105 }
 0x6d1   :  { %v2382_v55 = vpack.c.bf16 %v2365_v58, %v2364_v62  ;;  %v3159_v18 = vpop.permute.xlu0 %3158 }
 0x6d3   :  { %6746 = vmatmul.mubr.msk.bf16.vlgmr.msra.gmra.mrb[84].mxu1 %vm2015_vm3, %v2382_v55 }
 0x6d4   :  { %6756 = vmatpush3.bf16.xpose.msra.mxu1 %v3114_v27  ;;  %4913 = vrot.lane.b32.xlu1 %v9939_v50, %s7505_s1  ;;  %v7241_v28 = vpop.eup %7240 }
 0x6d5   :  { %6757 = vmatprep.mubr.msk.bf16.mxu1 %vm7501_vm1, %v9919_v0  ;;  %6767 = vmatprep.subr.bf16.mxu1 %v9919_v0  ;;  %v3212_v31 = vpop.permute.xlu0 %3211  ;;  %v2366_v25 = vmul.f32 %v7241_v28, %v8456_v19 }
 0x6d9   :  { %v3265_v39 = vpop.permute.xlu0 %3264 }
 0x6db   :  { %6758 = vmatmul.mubr.msk.bf16.vlgmr.msra.gmra.mrb[88].mxu1 %vm1018_vm2, %v3106_v16 }
 0x6dc   :  { %6769 = vmatprep.mubr.msk.bf16.mxu1 %vm7501_vm1, %v9919_v0 }
 0x6dd   :  { %v3318_v6 = vpop.permute.xlu0 %3317 }
 0x6e1   :  { %v3371_v56 = vpop.permute.xlu0 %3370 }
 0x6e5   :  { %v3424_v51 = vpop.permute.xlu0 %3423 }
 0x6e9   :  { %v3477_v22 = vpop.permute.xlu0 %3476 }
 0x6fc   :  { %v2303_v48 = vpop.xlane.xlu1 %2302 }
 0x6fd   :  { %7242 = vrcp.f32 %v2303_v48 }
 0x700   :  { %v3215_v37 = vpop.permute.xlu1 %3214 }
 0x701   :  { %v3220_v5 = vsel %vm1018_vm2, %v3215_v37, 0 }
 0x702   :  { %6768 = vmatpush3.bf16.xpose.msra.mxu1 %v3220_v5 }
 0x703   :  { %6779 = vmatprep.subr.bf16.mxu1 %v9919_v0 }
 0x704   :  { %v3268_v57 = vpop.permute.xlu1 %3267 }
 0x705   :  { %v3273_v42 = vsel %vm1018_vm2, %v3268_v57, 0 }
 0x707   :  { %v7243_v52 = vpop.eup %7242 }
 0x708   :  { %v2367_v17 = vmul.f32 %v7243_v52, %v8488_v34  ;;  %v3321_v24 = vpop.permute.xlu1 %3320  ;;  %v3530_v34 = vpop.permute.xlu0 %3529 }
 0x709   :  { %v3326_v50 = vsel %vm1018_vm2, %v3321_v24, 0  ;;  %6770 = vmatmul.mubr.msk.bf16.vlgmr.msra.gmra.mrb[92].mxu1 %vm1018_vm2, %v3212_v31 }
 0x70a   :  { %6780 = vmatpush3.bf16.xpose.msra.mxu1 %v3326_v50  ;;  %v2383_v35 = vpack.c.bf16 %v2367_v17, %v2366_v25  ;;  %6781 = vmatprep.mubr.msk.bf16.mxu1 %vm7501_vm1, %v9919_v0 }
 0x70b   :  { %6791 = vmatprep.subr.bf16.mxu1 %v9919_v0 }
 0x70c   :  { %6752 = vmatmul.mubr.msk.bf16.vlgmr.msra.gmra.mrb[140].mxu0 %vm2015_vm3, %v2383_v35  ;;  %v3374_v19 = vpop.permute.xlu1 %3373  ;;  %v3583_v14 = vpop.permute.xlu0 %3582 }
 0x70d   :  { %6762 = vmatpush3.bf16.xpose.msra.mxu0 %v3167_v38  ;;  %6763 = vmatprep.mubr.msk.bf16.mxu0 %vm7501_vm1, %v9919_v0  ;;  %v3379_v9 = vsel %vm1018_vm2, %v3374_v19, 0 }
 0x70e   :  { %6773 = vmatprep.subr.bf16.mxu0 %v9919_v0 }
 0x710   :  { %v3427_v10 = vpop.permute.xlu1 %3426  ;;  %v3636_v53 = vpop.permute.xlu0 %3635 }
 0x711   :  { %v3432_v21 = vsel %vm1018_vm2, %v3427_v10, 0  ;;  %6782 = vmatmul.mubr.msk.bf16.vlgmr.msra.gmra.mrb[96].mxu1 %vm1018_vm2, %v3318_v6 }
 0x712   :  { %6792 = vmatpush3.bf16.xpose.msra.mxu1 %v3432_v21  ;;  %6793 = vmatprep.mubr.msk.bf16.mxu1 %vm7501_vm1, %v9919_v0 }
 0x713   :  { %6803 = vmatprep.subr.bf16.mxu1 %v9919_v0 }
 0x714   :  { %6764 = vmatmul.mubr.msk.bf16.vlgmr.msra.gmra.mrb[144].mxu0 %vm1018_vm2, %v3159_v18  ;;  %v3480_v26 = vpop.permute.xlu1 %3479  ;;  %v3689_v59 = vpop.permute.xlu0 %3688 }
 0x715   :  { %6774 = vmatpush3.bf16.xpose.msra.mxu0 %v3273_v42  ;;  %6775 = vmatprep.mubr.msk.bf16.mxu0 %vm7501_vm1, %v9919_v0  ;;  %v3485_v41 = vsel %vm1018_vm2, %v3480_v26, 0 }
 0x716   :  { %6785 = vmatprep.subr.bf16.mxu0 %v9919_v0 }
 0x718   :  { %v3533_v4 = vpop.permute.xlu1 %3532  ;;  %v3742_v63 = vpop.permute.xlu0 %3741 }
 0x719   :  { %v3538_v61 = vsel %vm1018_vm2, %v3533_v4, 0  ;;  %6794 = vmatmul.mubr.msk.bf16.vlgmr.msra.gmra.mrb[100].mxu1 %vm1018_vm2, %v3424_v51 }
 0x71a   :  { %6804 = vmatpush3.bf16.xpose.msra.mxu1 %v3538_v61  ;;  %6805 = vmatprep.mubr.msk.bf16.mxu1 %vm7501_vm1, %v9919_v0 }
 0x71b   :  { %6815 = vmatprep.subr.bf16.mxu1 %v9919_v0 }
 0x71c   :  { %6776 = vmatmul.mubr.msk.bf16.vlgmr.msra.gmra.mrb[148].mxu0 %vm1018_vm2, %v3265_v39  ;;  %v3586_v49 = vpop.permute.xlu1 %3585  ;;  %v3795_v20 = vpop.permute.xlu0 %3794 }
 0x71d   :  { %6786 = vmatpush3.bf16.xpose.msra.mxu0 %v3379_v9  ;;  %6787 = vmatprep.mubr.msk.bf16.mxu0 %vm7501_vm1, %v9919_v0  ;;  %v3591_v12 = vsel %vm1018_vm2, %v3586_v49, 0 }
 0x71e   :  { %6797 = vmatprep.subr.bf16.mxu0 %v9919_v0 }
 0x720   :  { %v3639_v43 = vpop.permute.xlu1 %3638  ;;  %v3848_v15 = vpop.permute.xlu0 %3847 }
 0x721   :  { %v3644_v11 = vsel %vm1018_vm2, %v3639_v43, 0  ;;  %6806 = vmatmul.mubr.msk.bf16.vlgmr.msra.gmra.mrb[104].mxu1 %vm1018_vm2, %v3530_v34 }
 0x722   :  { %6816 = vmatpush3.bf16.xpose.msra.mxu1 %v3644_v11  ;;  %6817 = vmatprep.mubr.msk.bf16.mxu1 %vm7501_vm1, %v9919_v0 }
 0x723   :  { %6827 = vmatprep.subr.bf16.mxu1 %v9919_v0 }
 0x724   :  { %6788 = vmatmul.mubr.msk.bf16.vlgmr.msra.gmra.mrb[152].mxu0 %vm1018_vm2, %v3371_v56  ;;  %v3692_v7 = vpop.permute.xlu1 %3691  ;;  %v4386_v44 = vpop.permute.xlu0 %4385 }
 0x725   :  { %6798 = vmatpush3.bf16.xpose.msra.mxu0 %v3485_v41  ;;  %6799 = vmatprep.mubr.msk.bf16.mxu0 %vm7501_vm1, %v9919_v0  ;;  %v3697_v46 = vsel %vm1018_vm2, %v3692_v7, 0 }
 0x726   :  { %6809 = vmatprep.subr.bf16.mxu0 %v9919_v0 }
 0x728   :  { %v3745_v29 = vpop.permute.xlu1 %3744 }
 0x729   :  { %v3750_v1 = vsel %vm1018_vm2, %v3745_v29, 0  ;;  %6818 = vmatmul.mubr.msk.bf16.vlgmr.msra.gmra.mrb[108].mxu1 %vm1018_vm2, %v3636_v53 }
 0x72a   :  { %6828 = vmatpush3.bf16.xpose.msra.mxu1 %v3750_v1  ;;  %6829 = vmatprep.mubr.msk.bf16.mxu1 %vm7501_vm1, %v9919_v0 }
 0x72b   :  { %6839 = vmatprep.subr.bf16.mxu1 %v9919_v0 }
 0x72c   :  { %6800 = vmatmul.mubr.msk.bf16.vlgmr.msra.gmra.mrb[156].mxu0 %vm1018_vm2, %v3477_v22  ;;  %v3798_v23 = vpop.permute.xlu1 %3797 }
 0x72d   :  { %6810 = vmatpush3.bf16.xpose.msra.mxu0 %v3591_v12  ;;  %6811 = vmatprep.mubr.msk.bf16.mxu0 %vm7501_vm1, %v9919_v0  ;;  %v3803_v36 = vsel %vm1018_vm2, %v3798_v23, 0 }
 0x72e   :  { %6821 = vmatprep.subr.bf16.mxu0 %v9919_v0 }
 0x730   :  { %v3851_v2 = vpop.permute.xlu1 %3850 }
 0x731   :  { %v3856_v33 = vsel %vm1018_vm2, %v3851_v2, 0  ;;  %6830 = vmatmul.mubr.msk.bf16.vlgmr.msra.gmra.mrb[112].mxu1 %vm1018_vm2, %v3742_v63 }
 0x732   :  { %6840 = vmatpush3.bf16.xpose.msra.mxu1 %v3856_v33  ;;  %6841 = vmatprep.mubr.msk.bf16.mxu1 %vm7501_vm1, %v9919_v0 }
 0x733   :  { %6851 = vmatprep.subr.bf16.mxu1 %v9919_v0 }
 0x734   :  { %6812 = vmatmul.mubr.msk.bf16.vlgmr.msra.gmra.mrb[160].mxu0 %vm1018_vm2, %v3583_v14  ;;  %v3904_v32 = vpop.permute.xlu1 %3903 }
 0x735   :  { %6822 = vmatpush3.bf16.xpose.msra.mxu0 %v3697_v46  ;;  %6823 = vmatprep.mubr.msk.bf16.mxu0 %vm7501_vm1, %v9919_v0  ;;  %v3909_v47 = vsel %vm1018_vm2, %v3904_v32, 0 }
 0x736   :  { %v8724_v13 = vpop.f32.mrb[56].mxu1  ;;  %6833 = vmatprep.subr.bf16.mxu0 %v9919_v0 }
 0x737   :  { %v6663_v3 = vpop.f32.mrb[57].mxu1 }
 0x738   :  { %v8727_v8 = vpop.f32.mrb[58].mxu1  ;;  %v3901_v16 = vpop.permute.xlu1 %3900 }
 0x739   :  { %v6664_v40 = vpop.f32.mrb[59].mxu1  ;;  %6842 = vmatmul.mubr.msk.bf16.vlgmr.msra.gmra.mrb[116].mxu1 %vm1018_vm2, %v3848_v15 }
 0x73a   :  { %6852 = vmatpush3.bf16.msra.mxu1 %v4386_v44  ;;  %6853 = vmatprep.mubr.msk.bf16.mxu1 %vm7501_vm1, %v9919_v0 }
 0x73b   :  { %6863 = vmatprep.subr.bf16.mxu1 %v9919_v0 }
 0x73c   :  { %6824 = vmatmul.mubr.msk.bf16.vlgmr.msra.gmra.mrb[164].mxu0 %vm1018_vm2, %v3689_v59  ;;  %v4434_v48 = vpop.permute.xlu1 %4433 }
 0x73d   :  { %6834 = vmatpush3.bf16.xpose.msra.mxu0 %v3803_v36  ;;  %6835 = vmatprep.mubr.msk.bf16.mxu0 %vm7501_vm1, %v9919_v0 }
 0x73e   :  { %v8737_v62 = vpop.f32.mrb[112].mxu0  ;;  %6845 = vmatprep.subr.bf16.mxu0 %v9919_v0 }
 0x73f   :  { %v6669_v58 = vpop.f32.mrb[113].mxu0 }
 0x740   :  { %v8740_v55 = vpop.f32.mrb[114].mxu0 }
 0x741   :  { %v6670_v27 = vpop.f32.mrb[115].mxu0 }
 0x744   :  { %6836 = vmatmul.mubr.msk.bf16.vlgmr.msra.gmra.mrb[168].mxu0 %vm1018_vm2, %v3795_v20 }
 0x745   :  { %6846 = vmatpush3.bf16.xpose.msra.mxu0 %v3909_v47  ;;  %6847 = vmatprep.mubr.msk.bf16.mxu0 %vm7501_vm1, %v9919_v0 }
 0x746   :  { %v8746_v18 = vpop.f32.mrb[60].mxu1  ;;  %6857 = vmatprep.subr.bf16.mxu0 %v9919_v0 }
 0x747   :  { %9949 = vst [vmem:[#allocation20_spill] sm:$0xff] %v8746_v18  ;;  %v6675_v31 = vpop.f32.mrb[61].mxu1 }
 0x748   :  { %v8749_v39 = vpop.f32.mrb[62].mxu1 }
 0x749   :  { %9950 = vst [vmem:[#allocation31_spill] sm:$0xff] %v8749_v39  ;;  %v6676_v6 = vpop.f32.mrb[63].mxu1 }
 0x74c   :  { %6848 = vmatmul.mubr.msk.bf16.vlgmr.msra.gmra.mrb[172].mxu0 %vm1018_vm2, %v3901_v16 }
 0x74d   :  { %6858 = vmatpush3.bf16.msra.mxu0 %v4434_v48  ;;  %6859 = vmatprep.mubr.msk.bf16.mxu0 %vm7501_vm1, %v9919_v0  ;;  %v9975_v48 = vld [vmem:[#allocation34_spill] sm:$0xff] }
 0x74e   :  { %v8754_v56 = vpop.f32.mrb[116].mxu0  ;;  %6869 = vmatprep.subr.bf16.mxu0 %v9919_v0 }
 0x74f   :  { %9951 = vst [vmem:[#allocation11_spill] sm:$0xff] %v8754_v56  ;;  %v6681_v37 = vpop.f32.mrb[117].mxu0 }
 0x750   :  { %v8757_v5 = vpop.f32.mrb[118].mxu0 }
 0x751   :  { %9952 = vst [vmem:[#allocation22_spill] sm:$0xff] %v8757_v5  ;;  %v6682_v51 = vpop.f32.mrb[119].mxu0 }
 0x756   :  { %v8759_v57 = vpop.f32.mrb[64].mxu1 }
 0x757   :  { %9953 = vst [vmem:[#allocation12_spill] sm:$0xff] %v8759_v57  ;;  %v6687_v28 = vpop.f32.mrb[65].mxu1 }
 0x758   :  { %v8761_v52 = vpop.f32.mrb[66].mxu1 }
 0x759   :  { %9954 = vst [vmem:[#allocation24_spill] sm:$0xff] %v8761_v52  ;;  %v6688_v25 = vpop.f32.mrb[67].mxu1 }
 0x75e   :  { %v8763_v17 = vpop.f32.mrb[120].mxu0 }
 0x75f   :  { %9955 = vst [vmem:[#allocation30_spill] sm:$0xff] %v8763_v17  ;;  %v6693_v24 = vpop.f32.mrb[121].mxu0 }
 0x760   :  { %v8765_v22 = vpop.f32.mrb[122].mxu0 }
 0x761   :  { %9956 = vst [vmem:[#allocation13_spill] sm:$0xff] %v8765_v22  ;;  %v6694_v50 = vpop.f32.mrb[123].mxu0 }
 0x766   :  { %v8767_v35 = vpop.f32.mrb[68].mxu1 }
 0x767   :  { %9957 = vst [vmem:[#allocation29_spill] sm:$0xff] %v8767_v35  ;;  %v6699_v38 = vpop.f32.mrb[69].mxu1 }
 0x768   :  { %v8769_v19 = vpop.f32.mrb[70].mxu1 }
 0x769   :  { %9958 = vst [vmem:[#allocation14_spill] sm:$0xff] %v8769_v19  ;;  %v6700_v34 = vpop.f32.mrb[71].mxu1 }
 0x76e   :  { %v8771_v10 = vpop.f32.mrb[124].mxu0 }
 0x76f   :  { %9959 = vst [vmem:[#allocation33_spill] sm:$0xff] %v8771_v10  ;;  %v6705_v21 = vpop.f32.mrb[125].mxu0 }
 0x770   :  { %v8773_v42 = vpop.f32.mrb[126].mxu0 }
 0x771   :  { %9960 = vst [vmem:[#allocation15_spill] sm:$0xff] %v8773_v42  ;;  %v6706_v26 = vpop.f32.mrb[127].mxu0 }
 0x776   :  { %v8775_v14 = vpop.f32.mrb[72].mxu1 }
 0x777   :  { %9961 = vst [vmem:[#allocation16_spill] sm:$0xff] %v8775_v14  ;;  %v6711_v4 = vpop.f32.mrb[73].mxu1 }
 0x778   :  { %v8777_v61 = vpop.f32.mrb[74].mxu1 }
 0x779   :  { %9962 = vst [vmem:[#allocation32_spill] sm:$0xff] %v8777_v61  ;;  %v6712_v53 = vpop.f32.mrb[75].mxu1 }
 0x77e   :  { %v8779_v9 = vpop.f32.mrb[128].mxu0 }
 0x77f   :  { %9963 = vst [vmem:[#allocation17_spill] sm:$0xff] %v8779_v9  ;;  %v6717_v49 = vpop.f32.mrb[129].mxu0 }
 0x780   :  { %v8781_v43 = vpop.f32.mrb[130].mxu0 }
 0x781   :  { %9964 = vst [vmem:[#allocation18_spill] sm:$0xff] %v8781_v43  ;;  %v6718_v59 = vpop.f32.mrb[131].mxu0 }
 0x782   :  { %v9977_v59 = vld [vmem:[#allocation36_spill] sm:$0xff] }
 0x786   :  { %v8783_v11 = vpop.f32.mrb[76].mxu1 }
 0x787   :  { %9965 = vst [vmem:[#allocation6_spill] sm:$0xff] %v8783_v11  ;;  %v6723_v41 = vpop.f32.mrb[77].mxu1 }
 0x788   :  { %v8785_v7 = vpop.f32.mrb[78].mxu1 }
 0x789   :  { %9966 = vst [vmem:[#allocation19_spill] sm:$0xff] %v8785_v7  ;;  %v6724_v63 = vpop.f32.mrb[79].mxu1 }
 0x78e   :  { %v8787_v29 = vpop.f32.mrb[132].mxu0 }
 0x78f   :  { %9967 = vst [vmem:[#allocation21_spill] sm:$0xff] %v8787_v29  ;;  %v6729_v1 = vpop.f32.mrb[133].mxu0 }
 0x790   :  { %v8789_v12 = vpop.f32.mrb[134].mxu0 }
 0x791   :  { %9968 = vst [vmem:[#allocation5_spill] sm:$0xff] %v8789_v12  ;;  %v6730_v23 = vpop.f32.mrb[135].mxu0 }
 0x796   :  { %v8791_v20 = vpop.f32.mrb[80].mxu1 }
 0x797   :  { %9969 = vst [vmem:[#allocation23_spill] sm:$0xff] %v8791_v20  ;;  %v6735_v2 = vpop.f32.mrb[81].mxu1 }
 0x798   :  { %v8793_v33 = vpop.f32.mrb[82].mxu1 }
 0x799   :  { %9970 = vst [vmem:[#allocation25_spill] sm:$0xff] %v8793_v33  ;;  %v6736_v15 = vpop.f32.mrb[83].mxu1 }
 0x79e   :  { %v8795_v46 = vpop.f32.mrb[136].mxu0 }
 0x79f   :  { %9971 = vst [vmem:[#allocation8_spill] sm:$0xff] %v8795_v46  ;;  %v6741_v3 = vpop.f32.mrb[137].mxu0 }
 0x7a0   :  { %v8797_v44 = vpop.f32.mrb[138].mxu0 }
 0x7a1   :  { %9972 = vst [vmem:[#allocation27_spill] sm:$0xff] %v8797_v44  ;;  %v6742_v40 = vpop.f32.mrb[139].mxu0 }
 0x7a6   :  { %v8799_v36 = vpop.f32.mrb[84].mxu1 }
 0x7a7   :  { %9973 = vst [vmem:[#allocation26_spill] sm:$0xff] %v8799_v36  ;;  %v6747_v58 = vpop.f32.mrb[85].mxu1 }
 0x7a8   :  { %v8801_v32 = vpop.f32.mrb[86].mxu1 }
 0x7a9   :  { %9974 = vst [vmem:[#allocation7_spill] sm:$0xff] %v8801_v32  ;;  %v6748_v27 = vpop.f32.mrb[87].mxu1 }
 0x7ae   :  { %v3150_v47 = vpop.f32.mrb[88].mxu1 }
 0x7af   :  { %v3952_v16 = vmul.f32 0.125, %v3150_v47  ;;  %v6759_v31 = vpop.f32.mrb[89].mxu1 }
 0x7b0   :  { %v3153_v6 = vpop.f32.mrb[90].mxu1 }
 0x7b1   :  { %v8804_v37 = vadd.f32 %v3952_v16, %v9975_v48  ;;  %v3953_v51 = vmul.f32 0.125, %v3153_v6  ;;  %v6760_v28 = vpop.f32.mrb[91].mxu1  ;;  %v9979_v6 = vld [vmem:[#allocation35_spill] sm:$0xff] }
 0x7b3   :  { %v8807_v25 = vadd.f32 %v3953_v51, %v9975_v48  ;;  %v4016_v24 = vsel %vm2015_vm3, %v8804_v37, -inf }
 0x7b4   :  { %4017 = vmax.xlane.f32.xlu0 %v4016_v24 }
 0x7b5   :  { %v4019_v50 = vsel %vm2015_vm3, %v8807_v25, -inf }
 0x7b6   :  { %4020 = vmax.xlane.f32.xlu1 %v4019_v50 }
 0x7dc   :  { %v3256_v38 = vpop.f32.mrb[92].mxu1 }
 0x7dd   :  { %v6771_v34 = vpop.f32.mrb[93].mxu1  ;;  %v3956_v27 = vmul.f32 0.125, %v3256_v38 }
 0x7de   :  { %v3259_v21 = vpop.f32.mrb[94].mxu1 }
 0x7df   :  { %v3957_v26 = vmul.f32 0.125, %v3259_v21  ;;  %v8813_v4 = vpop.f32.mrb[140].mxu0  ;;  %v6772_v53 = vpop.f32.mrb[95].mxu1  ;;  %v8826_v28 = vadd.f32 %v3956_v27, %v9977_v59 }
 0x7e0   :  { %9976 = vst [vmem:[#allocation28_spill] sm:$0xff] %v8813_v4  ;;  %v6753_v49 = vpop.f32.mrb[141].mxu0 }
 0x7e1   :  { %v8816_v41 = vadd.f32 %v3957_v26, %v9977_v59  ;;  %v8818_v63 = vpop.f32.mrb[142].mxu0 }
 0x7e2   :  { %9978 = vst [vmem:[#allocation10_spill] sm:$0xff] %v8818_v63  ;;  %v6754_v1 = vpop.f32.mrb[143].mxu0 }
 0x7e3   :  { %v4031_v23 = vsel %vm2015_vm3, %v8816_v41, -inf }
 0x7e4   :  { %4032 = vmax.xlane.f32.xlu1 %v4031_v23  ;;  %v3362_v2 = vpop.f32.mrb[96].mxu1 }
 0x7e5   :  { %v6783_v15 = vpop.f32.mrb[97].mxu1 }
 0x7e6   :  { %v3365_v3 = vpop.f32.mrb[98].mxu1  ;;  %v4028_v15 = vsel %vm2015_vm3, %v8826_v28, -inf }
 0x7e7   :  { %v3203_v40 = vpop.f32.mrb[144].mxu0  ;;  %v6784_v58 = vpop.f32.mrb[99].mxu1 }
 0x7e8   :  { %v3954_v47 = vmul.f32 0.125, %v3203_v40  ;;  %v6765_v16 = vpop.f32.mrb[145].mxu0  ;;  %v3961_v40 = vmul.f32 0.125, %v3365_v3 }
 0x7e9   :  { %v3206_v31 = vpop.f32.mrb[146].mxu0  ;;  %v9980_v16 = vld [vmem:[#allocation37_spill] sm:$0xff] }
 0x7ea   :  { %v8823_v48 = vadd.f32 %v3954_v47, %v9979_v6  ;;  %v6766_v51 = vpop.f32.mrb[147].mxu0  ;;  %v3955_v24 = vmul.f32 0.125, %v3206_v31  ;;  %v3960_v47 = vmul.f32 0.125, %v3362_v2 }
 0x7ec   :  { %v3468_v50 = vpop.f32.mrb[100].mxu1  ;;  %v4022_v34 = vsel %vm2015_vm3, %v8823_v48, -inf  ;;  %v8831_v49 = vadd.f32 %v3955_v24, %v9979_v6 }
 0x7ed   :  { %v6795_v21 = vpop.f32.mrb[101].mxu1  ;;  %4023 = vmax.xlane.f32.xlu0 %v4022_v34 }
 0x7ee   :  { %v3471_v26 = vpop.f32.mrb[102].mxu1  ;;  %v4025_v6 = vsel %vm2015_vm3, %v8831_v49, -inf  ;;  %v9981_v21 = vld [vmem:[#allocation38_spill] sm:$0xff] }
 0x7ef   :  { %v3309_v53 = vpop.f32.mrb[148].mxu0  ;;  %v6796_v38 = vpop.f32.mrb[103].mxu1 }
 0x7f0   :  { %v3958_v1 = vmul.f32 0.125, %v3309_v53  ;;  %v6777_v23 = vpop.f32.mrb[149].mxu0  ;;  %v8844_v53 = vadd.f32 %v3961_v40, %v9981_v21 }
 0x7f1   :  { %4029 = vmax.xlane.f32.xlu0 %v4028_v15  ;;  %v3312_v59 = vpop.f32.mrb[150].mxu0  ;;  %v8849_v23 = vadd.f32 %v3960_v47, %v9981_v21 }
 0x7f2   :  { %v3959_v58 = vmul.f32 0.125, %v3312_v59  ;;  %v6778_v27 = vpop.f32.mrb[151].mxu0  ;;  %v8836_v31 = vadd.f32 %v3958_v1, %v9980_v16 }
 0x7f4   :  { %v8839_v51 = vadd.f32 %v3959_v58, %v9980_v16  ;;  %v3574_v34 = vpop.f32.mrb[104].mxu1  ;;  %v4034_v58 = vsel %vm2015_vm3, %v8836_v31, -inf  ;;  %v3965_v16 = vmul.f32 0.125, %v3471_v26  ;;  %v9983_v26 = vld [vmem:[#allocation40_spill] sm:$0xff] }
 0x7f5   :  { %v6807_v24 = vpop.f32.mrb[105].mxu1  ;;  %4026 = vmax.xlane.f32.xlu0 %v4025_v6 }
 0x7f6   :  { %v3577_v38 = vpop.f32.mrb[106].mxu1  ;;  %v4037_v3 = vsel %vm2015_vm3, %v8839_v51, -inf  ;;  %v4043_v24 = vsel %vm2015_vm3, %v8844_v53, -inf }
 0x7f7   :  { %v6808_v2 = vpop.f32.mrb[107].mxu1  ;;  %4038 = vmax.xlane.f32.xlu1 %v4037_v3  ;;  %v3415_v1 = vpop.f32.mrb[152].mxu0  ;;  %v9982_v3 = vld [vmem:[#allocation39_spill] sm:$0xff] }
 0x7f8   :  { %v3962_v15 = vmul.f32 0.125, %v3415_v1  ;;  %v6789_v59 = vpop.f32.mrb[153].mxu0  ;;  %v3964_v2 = vmul.f32 0.125, %v3468_v50  ;;  %v4040_v1 = vsel %vm2015_vm3, %v8849_v23, -inf }
 0x7f9   :  { %4035 = vmax.xlane.f32.xlu0 %v4034_v58  ;;  %v3418_v27 = vpop.f32.mrb[154].mxu0  ;;  %v8864_v58 = vadd.f32 %v3965_v16, %v9983_v26 }
 0x7fa   :  { %v3963_v40 = vmul.f32 0.125, %v3418_v27  ;;  %v6790_v6 = vpop.f32.mrb[155].mxu0  ;;  %v8856_v63 = vadd.f32 %v3962_v15, %v9982_v3 }
 0x7fb   :  { %4044 = vmax.xlane.f32.xlu1 %v4043_v24  ;;  %v8869_v24 = vadd.f32 %v3964_v2, %v9983_v26  ;;  %v4055_v36 = vsel %vm2015_vm3, %v8864_v58, -inf }
 0x7fc   :  { %v8859_v47 = vadd.f32 %v3963_v40, %v9982_v3  ;;  %v3680_v21 = vpop.f32.mrb[108].mxu1  ;;  %v4046_v4 = vsel %vm2015_vm3, %v8856_v63, -inf }
 0x7fd   :  { %v6819_v59 = vpop.f32.mrb[109].mxu1  ;;  %4041 = vmax.xlane.f32.xlu0 %v4040_v1 }
 0x7fe   :  { %v3683_v27 = vpop.f32.mrb[110].mxu1  ;;  %v4049_v6 = vsel %vm2015_vm3, %v8859_v47, -inf  ;;  %v3969_v59 = vmul.f32 0.125, %v3577_v38  ;;  %v9985_v38 = vld [vmem:[#allocation42_spill] sm:$0xff] }
 0x7ff   :  { %v6820_v50 = vpop.f32.mrb[111].mxu1  ;;  %4050 = vmax.xlane.f32.xlu1 %v4049_v6  ;;  %v3521_v15 = vpop.f32.mrb[156].mxu0  ;;  %v9984_v6 = vld [vmem:[#allocation41_spill] sm:$0xff] }
 0x800   :  { %v3966_v40 = vmul.f32 0.125, %v3521_v15  ;;  %v6801_v3 = vpop.f32.mrb[157].mxu0  ;;  %v3968_v50 = vmul.f32 0.125, %v3574_v34  ;;  %v4052_v15 = vsel %vm2015_vm3, %v8869_v24, -inf }
 0x801   :  { %4047 = vmax.xlane.f32.xlu0 %v4046_v4  ;;  %v3524_v1 = vpop.f32.mrb[158].mxu0  ;;  %v8884_v3 = vadd.f32 %v3969_v59, %v9985_v38 }
 0x802   :  { %v3967_v16 = vmul.f32 0.125, %v3524_v1  ;;  %v6802_v32 = vpop.f32.mrb[159].mxu0  ;;  %v8876_v44 = vadd.f32 %v3966_v40, %v9984_v6  ;;  %v8889_v1 = vadd.f32 %v3968_v50, %v9985_v38 }
 0x803   :  { %4056 = vmax.xlane.f32.xlu1 %v4055_v36  ;;  %v4067_v20 = vsel %vm2015_vm3, %v8884_v3, -inf }
 0x804   :  { %v8879_v2 = vadd.f32 %v3967_v16, %v9984_v6  ;;  %v3786_v26 = vpop.f32.mrb[112].mxu1  ;;  %v4058_v46 = vsel %vm2015_vm3, %v8876_v44, -inf }
 0x805   :  { %v6831_v4 = vpop.f32.mrb[113].mxu1  ;;  %4053 = vmax.xlane.f32.xlu0 %v4052_v15 }
 0x806   :  { %v3789_v32 = vpop.f32.mrb[114].mxu1  ;;  %v4061_v36 = vsel %vm2015_vm3, %v8879_v2, -inf  ;;  %v3973_v4 = vmul.f32 0.125, %v3683_v27  ;;  %v9987_v27 = vld [vmem:[#allocation44_spill] sm:$0xff] }
 0x807   :  { %v6832_v34 = vpop.f32.mrb[115].mxu1  ;;  %4062 = vmax.xlane.f32.xlu1 %v4061_v36  ;;  %v3627_v40 = vpop.f32.mrb[160].mxu0  ;;  %v9986_v36 = vld [vmem:[#allocation43_spill] sm:$0xff] }
 0x808   :  { %v3970_v16 = vmul.f32 0.125, %v3627_v40  ;;  %v6813_v6 = vpop.f32.mrb[161].mxu0  ;;  %v3972_v34 = vmul.f32 0.125, %v3680_v21  ;;  %v4064_v40 = vsel %vm2015_vm3, %v8889_v1, -inf }
 0x809   :  { %4059 = vmax.xlane.f32.xlu0 %v4058_v46  ;;  %v3630_v15 = vpop.f32.mrb[162].mxu0  ;;  %v8904_v6 = vadd.f32 %v3973_v4, %v9987_v27 }
 0x80a   :  { %v3971_v59 = vmul.f32 0.125, %v3630_v15  ;;  %v6814_v33 = vpop.f32.mrb[163].mxu0  ;;  %v8896_v12 = vadd.f32 %v3970_v16, %v9986_v36  ;;  %v8909_v15 = vadd.f32 %v3972_v34, %v9987_v27 }
 0x80b   :  { %4068 = vmax.xlane.f32.xlu1 %v4067_v20  ;;  %v4079_v11 = vsel %vm2015_vm3, %v8904_v6, -inf }
 0x80c   :  { %v8899_v50 = vadd.f32 %v3971_v59, %v9986_v36  ;;  %v3892_v38 = vpop.f32.mrb[116].mxu1  ;;  %v4070_v29 = vsel %vm2015_vm3, %v8896_v12, -inf  ;;  %v4076_v27 = vsel %vm2015_vm3, %v8909_v15, -inf }
 0x80d   :  { %v6843_v46 = vpop.f32.mrb[117].mxu1  ;;  %4065 = vmax.xlane.f32.xlu0 %v4064_v40  ;;  %v3980_v9 = vmul.f32 0.125, %v3892_v38 }
 0x80e   :  { %v3895_v33 = vpop.f32.mrb[118].mxu1  ;;  %v4073_v20 = vsel %vm2015_vm3, %v8899_v50, -inf  ;;  %v3977_v46 = vmul.f32 0.125, %v3789_v32 }
 0x80f   :  { %v6844_v21 = vpop.f32.mrb[119].mxu1  ;;  %4074 = vmax.xlane.f32.xlu1 %v4073_v20  ;;  %v3733_v16 = vpop.f32.mrb[164].mxu0  ;;  %v9988_v20 = vld [vmem:[#allocation45_spill] sm:$0xff] }
 0x810   :  { %v3974_v59 = vmul.f32 0.125, %v3733_v16  ;;  %v6825_v36 = vpop.f32.mrb[165].mxu0  ;;  %v3976_v21 = vmul.f32 0.125, %v3786_v26 }
 0x811   :  { %4071 = vmax.xlane.f32.xlu0 %v4070_v29  ;;  %v3736_v40 = vpop.f32.mrb[166].mxu0  ;;  %v9989_v29 = vld [vmem:[#allocation46_spill] sm:$0xff] }
 0x812   :  { %v3975_v4 = vmul.f32 0.125, %v3736_v40  ;;  %v6826_v7 = vpop.f32.mrb[167].mxu0  ;;  %v8916_v43 = vadd.f32 %v3974_v59, %v9988_v20  ;;  %v8924_v16 = vadd.f32 %v3977_v46, %v9989_v29 }
 0x813   :  { %4080 = vmax.xlane.f32.xlu1 %v4079_v11  ;;  %v8929_v11 = vadd.f32 %v3976_v21, %v9989_v29 }
 0x814   :  { %v8919_v34 = vadd.f32 %v3975_v4, %v9988_v20  ;;  %v4082_v36 = vsel %vm2015_vm3, %v8916_v43, -inf  ;;  %v3981_v4 = vmul.f32 0.125, %v3895_v33  ;;  %v4091_v46 = vsel %vm2015_vm3, %v8924_v16, -inf }
 0x815   :  { %4077 = vmax.xlane.f32.xlu0 %v4076_v27  ;;  %v4088_v29 = vsel %vm2015_vm3, %v8929_v11, -inf }
 0x816   :  { %v4085_v7 = vsel %vm2015_vm3, %v8919_v34, -inf }
 0x817   :  { %4086 = vmax.xlane.f32.xlu1 %v4085_v7  ;;  %v3839_v32 = vpop.f32.mrb[168].mxu0  ;;  %v9990_v7 = vld [vmem:[#allocation47_spill] sm:$0xff] }
 0x818   :  { %v3978_v26 = vmul.f32 0.125, %v3839_v32  ;;  %v6837_v59 = vpop.f32.mrb[169].mxu0  ;;  %v9991_v32 = vld [vmem:[#allocation48_spill] sm:$0xff] }
 0x819   :  { %4083 = vmax.xlane.f32.xlu0 %v4082_v36  ;;  %v3842_v40 = vpop.f32.mrb[170].mxu0  ;;  %v8944_v59 = vadd.f32 %v3981_v4, %v9991_v32  ;;  %v8949_v38 = vadd.f32 %v3980_v9, %v9991_v32 }
 0x81a   :  { %v3979_v20 = vmul.f32 0.125, %v3842_v40  ;;  %v6838_v27 = vpop.f32.mrb[171].mxu0  ;;  %v8936_v61 = vadd.f32 %v3978_v26, %v9990_v7 }
 0x81b   :  { %4092 = vmax.xlane.f32.xlu1 %v4091_v46  ;;  %v8953_v27 = vpop.permute.xlu1 %4529  ;;  %v4100_v32 = vsel %vm2015_vm3, %v8949_v38, -inf }
 0x81c   :  { %v8939_v21 = vadd.f32 %v3979_v20, %v9990_v7  ;;  %v4094_v20 = vsel %vm2015_vm3, %v8936_v61, -inf }
 0x81d   :  { %4089 = vmax.xlane.f32.xlu0 %v4088_v29  ;;  %v4103_v29 = vsel %vm2015_vm3, %v8944_v59, -inf }
 0x81e   :  { %v4097_v33 = vsel %vm2015_vm3, %v8939_v21, -inf }
 0x81f   :  { %4098 = vmax.xlane.f32.xlu1 %v4097_v33  ;;  %v3945_v36 = vpop.f32.mrb[172].mxu0  ;;  %v9992_v33 = vld [vmem:[#allocation49_spill] sm:$0xff] }
 0x820   :  { %v3982_v26 = vmul.f32 0.125, %v3945_v36  ;;  %v6849_v40 = vpop.f32.mrb[173].mxu0 }
 0x821   :  { %4095 = vmax.xlane.f32.xlu0 %v4094_v20  ;;  %v3948_v46 = vpop.f32.mrb[174].mxu0  ;;  %v8967_v40 = vpop.permute.xlu1 %4625 }
 0x822   :  { %v3983_v7 = vmul.f32 0.125, %v3948_v46  ;;  %v6850_v4 = vpop.f32.mrb[175].mxu0  ;;  %v8958_v14 = vadd.f32 %v3982_v26, %v9992_v33  ;;  %v8973_v26 = vpop.permute.xlu0 %4481 }
 0x823   :  { %4104 = vmax.xlane.f32.xlu1 %v4103_v29 }
 0x824   :  { %v8961_v9 = vadd.f32 %v3983_v7, %v9992_v33  ;;  %v4106_v20 = vsel %vm2015_vm3, %v8958_v14, -inf }
 0x825   :  { %4101 = vmax.xlane.f32.xlu0 %v4100_v32  ;;  %v8971_v46 = vpop.permute.xlu1 %4721 }
 0x826   :  { %v4109_v36 = vsel %vm2015_vm3, %v8961_v9, -inf  ;;  %v8977_v4 = vpop.permute.xlu0 %4577 }
 0x827   :  { %4110 = vmax.xlane.f32.xlu1 %v4109_v36 }
 0x829   :  { %4107 = vmax.xlane.f32.xlu0 %v4106_v20  ;;  %v8975_v7 = vpop.permute.xlu1 %4817 }
 0x82a   :  { %v8983_v33 = vpop.permute.xlu0 %4673 }
 0x82d   :  { %v8981_v29 = vpop.permute.xlu1 %4865 }
 0x82e   :  { %v8989_v36 = vpop.permute.xlu0 %4769 }
 0x831   :  { %v8985_v32 = vpop.permute.xlu1 %4913 }
 0x838   :  { %5009 = vrot.lane.b32.xlu1 %v9945_v60, %s7505_s1 }
 0x83f   :  { %4961 = vrot.lane.b32.xlu0 %v9942_v54, %s7505_s1 }
 0x841   :  { %v4018_v42 = vpop.xlane.xlu0 %4017 }
 0x842   :  { %v4112_v19 = vsub.f32 %v8804_v37, %v4018_v42 }
 0x843   :  { %v4021_v20 = vpop.xlane.xlu1 %4020 }
 0x844   :  { %v4113_v10 = vsub.f32 %v8807_v25, %v4021_v20  ;;  %v4144_v22 = vmul.f32 1.442695, %v4112_v19 }
 0x846   :  { %v4146_v35 = vmul.f32 1.442695, %v4113_v10 }
 0x848   :  { %7244 = vpow2.f32 %v4146_v35 }
 0x849   :  { %7246 = vpow2.f32 %v4144_v22 }
 0x852   :  { %v8993_v60 = vpop.eup %7244 }
 0x853   :  { %v8995_v17 = vpop.eup %7246  ;;  %v4211_v52 = vsel %vm2015_vm3, %v8993_v60, 0.0 }
 0x854   :  { %v4208_v54 = vsel %vm2015_vm3, %v8995_v17, 0.0 }
 0x85c   :  { %4212 = vadd.xlane.f32.xlu1 %v4211_v52 }
 0x85e   :  { %4209 = vadd.xlane.f32.xlu0 %v4208_v54 }
 0x871   :  { %v4033_v10 = vpop.xlane.xlu1 %4032 }
 0x872   :  { %v4117_v35 = vsub.f32 %v8816_v41, %v4033_v10 }
 0x874   :  { %v4154_v56 = vmul.f32 1.442695, %v4117_v35 }
 0x87a   :  { %v4024_v57 = vpop.xlane.xlu0 %4023 }
 0x87b   :  { %v4114_v25 = vsub.f32 %v8823_v48, %v4024_v57 }
 0x87d   :  { %v4148_v42 = vmul.f32 1.442695, %v4114_v25 }
 0x87e   :  { %v4030_v19 = vpop.xlane.xlu0 %4029 }
 0x87f   :  { %7248 = vpow2.f32 %v4148_v42  ;;  %v4116_v22 = vsub.f32 %v8826_v28, %v4030_v19 }
 0x881   :  { %v4152_v37 = vmul.f32 1.442695, %v4116_v22 }
 0x882   :  { %v4027_v20 = vpop.xlane.xlu0 %4026 }
 0x883   :  { %7250 = vpow2.f32 %v4152_v37  ;;  %v4115_v52 = vsub.f32 %v8831_v49, %v4027_v20 }
 0x884   :  { %v4039_v5 = vpop.xlane.xlu1 %4038 }
 0x885   :  { %v4150_v39 = vmul.f32 1.442695, %v4115_v52  ;;  %v4119_v54 = vsub.f32 %v8839_v51, %v4039_v5 }
 0x886   :  { %v4036_v18 = vpop.xlane.xlu0 %4035 }
 0x887   :  { %7252 = vpow2.f32 %v4150_v39  ;;  %v4118_v57 = vsub.f32 %v8836_v31, %v4036_v18  ;;  %v4158_v28 = vmul.f32 1.442695, %v4119_v54 }
 0x888   :  { %v4045_v48 = vpop.xlane.xlu1 %4044  ;;  %7254 = vpow2.f32 %v4154_v56 }
 0x889   :  { %v9007_v25 = vpop.eup %7248  ;;  %v4156_v41 = vmul.f32 1.442695, %v4118_v57  ;;  %v4121_v42 = vsub.f32 %v8844_v53, %v4045_v48 }
 0x88a   :  { %v4042_v10 = vpop.xlane.xlu0 %4041  ;;  %v4214_v49 = vsel %vm2015_vm3, %v9007_v25, 0.0 }
 0x88b   :  { %7256 = vpow2.f32 %v4156_v41  ;;  %v4120_v19 = vsub.f32 %v8849_v23, %v4042_v10  ;;  %4215 = vadd.xlane.f32.xlu0 %v4214_v49  ;;  %v4162_v18 = vmul.f32 1.442695, %v4121_v42 }
 0x88c   :  { %v4051_v5 = vpop.xlane.xlu1 %4050  ;;  %7258 = vpow2.f32 %v4158_v28 }
 0x88d   :  { %v9013_v39 = vpop.eup %7250  ;;  %v4160_v31 = vmul.f32 1.442695, %v4120_v19  ;;  %v4123_v56 = vsub.f32 %v8859_v47, %v4051_v5 }
 0x88e   :  { %v4048_v51 = vpop.xlane.xlu0 %4047  ;;  %v4220_v53 = vsel %vm2015_vm3, %v9013_v39, 0.0 }
 0x88f   :  { %7260 = vpow2.f32 %v4160_v31  ;;  %v4122_v22 = vsub.f32 %v8856_v63, %v4048_v51  ;;  %4221 = vadd.xlane.f32.xlu0 %v4220_v53  ;;  %v4166_v23 = vmul.f32 1.442695, %v4123_v56 }
 0x890   :  { %v4057_v35 = vpop.xlane.xlu1 %4056  ;;  %7262 = vpow2.f32 %v4162_v18 }
 0x891   :  { %v9019_v37 = vpop.eup %7252  ;;  %v4164_v20 = vmul.f32 1.442695, %v4122_v22  ;;  %v4125_v52 = vsub.f32 %v8864_v58, %v4057_v35 }
 0x892   :  { %v4054_v54 = vpop.xlane.xlu0 %4053  ;;  %v4217_v47 = vsel %vm2015_vm3, %v9019_v37, 0.0  ;;  %v9024_v57 = vpop.eup %7254 }
 0x893   :  { %7264 = vpow2.f32 %v4164_v20  ;;  %v4124_v48 = vsub.f32 %v8869_v24, %v4054_v54  ;;  %4218 = vadd.xlane.f32.xlu1 %v4217_v47  ;;  %v4170_v41 = vmul.f32 1.442695, %v4125_v52  ;;  %v4223_v49 = vsel %vm2015_vm3, %v9024_v57, 0.0 }
 0x894   :  { %v4063_v63 = vpop.xlane.xlu1 %4062  ;;  %7266 = vpow2.f32 %v4166_v23 }
 0x895   :  { %v9027_v28 = vpop.eup %7256  ;;  %v4168_v42 = vmul.f32 1.442695, %v4124_v48  ;;  %v4127_v31 = vsub.f32 %v8879_v2, %v4063_v63 }
 0x896   :  { %v4060_v10 = vpop.xlane.xlu0 %4059  ;;  %v4226_v58 = vsel %vm2015_vm3, %v9027_v28, 0.0  ;;  %v9033_v19 = vpop.eup %7258 }
 0x897   :  { %7268 = vpow2.f32 %v4168_v42  ;;  %v4126_v5 = vsub.f32 %v8876_v44, %v4060_v10  ;;  %4227 = vadd.xlane.f32.xlu0 %v4226_v58  ;;  %4224 = vadd.xlane.f32.xlu1 %v4223_v49  ;;  %v4229_v35 = vsel %vm2015_vm3, %v9033_v19, 0.0  ;;  %v4174_v54 = vmul.f32 1.442695, %v4127_v31 }
 0x898   :  { %v4069_v24 = vpop.xlane.xlu1 %4068  ;;  %7270 = vpow2.f32 %v4170_v41 }
 0x899   :  { %v9036_v18 = vpop.eup %7260  ;;  %v4172_v56 = vmul.f32 1.442695, %v4126_v5  ;;  %v4129_v51 = vsub.f32 %v8884_v3, %v4069_v24 }
 0x89a   :  { %v4066_v53 = vpop.xlane.xlu0 %4065  ;;  %v4232_v22 = vsel %vm2015_vm3, %v9036_v18, 0.0  ;;  %v9044_v23 = vpop.eup %7262 }
 0x89b   :  { %7272 = vpow2.f32 %v4172_v56  ;;  %v4178_v44 = vmul.f32 1.442695, %v4129_v51  ;;  %v4128_v20 = vsub.f32 %v8889_v1, %v4066_v53  ;;  %4233 = vadd.xlane.f32.xlu0 %v4232_v22  ;;  %4230 = vadd.xlane.f32.xlu1 %v4229_v35  ;;  %v4235_v63 = vsel %vm2015_vm3, %v9044_v23, 0.0 }
 0x89c   :  { %v4075_v52 = vpop.xlane.xlu1 %4074 }
 0x89d   :  { %v9047_v2 = vpop.eup %7264  ;;  %7274 = vpow2.f32 %v4178_v44  ;;  %v4176_v3 = vmul.f32 1.442695, %v4128_v20  ;;  %v4131_v58 = vsub.f32 %v8899_v50, %v4075_v52 }
 0x89e   :  { %v4072_v47 = vpop.xlane.xlu0 %4071  ;;  %v4238_v48 = vsel %vm2015_vm3, %v9047_v2, 0.0  ;;  %v9053_v41 = vpop.eup %7266 }
 0x89f   :  { %7276 = vpow2.f32 %v4176_v3  ;;  %v4130_v1 = vsub.f32 %v8896_v12, %v4072_v47  ;;  %4239 = vadd.xlane.f32.xlu0 %v4238_v48  ;;  %4236 = vadd.xlane.f32.xlu1 %v4235_v63  ;;  %v4241_v56 = vsel %vm2015_vm3, %v9053_v41, 0.0  ;;  %v4182_v35 = vmul.f32 1.442695, %v4131_v58 }
 0x8a0   :  { %v4081_v42 = vpop.xlane.xlu1 %4080  ;;  %7278 = vpow2.f32 %v4174_v54 }
 0x8a1   :  { %v9056_v10 = vpop.eup %7268  ;;  %v4180_v49 = vmul.f32 1.442695, %v4130_v1  ;;  %v4133_v5 = vsub.f32 %v8904_v6, %v4081_v42 }
 0x8a2   :  { %v4078_v24 = vpop.xlane.xlu0 %4077  ;;  %v4244_v31 = vsel %vm2015_vm3, %v9056_v10, 0.0  ;;  %v9064_v51 = vpop.eup %7270 }
 0x8a3   :  { %7280 = vpow2.f32 %v4180_v49  ;;  %v4186_v12 = vmul.f32 1.442695, %v4133_v5  ;;  %v4132_v53 = vsub.f32 %v8909_v15, %v4078_v24  ;;  %4245 = vadd.xlane.f32.xlu0 %v4244_v31  ;;  %4242 = vadd.xlane.f32.xlu1 %v4241_v56  ;;  %v4247_v52 = vsel %vm2015_vm3, %v9064_v51, 0.0 }
 0x8a4   :  { %v4087_v22 = vpop.xlane.xlu1 %4086 }
 0x8a5   :  { %v9067_v50 = vpop.eup %7272  ;;  %7282 = vpow2.f32 %v4186_v12  ;;  %v4184_v6 = vmul.f32 1.442695, %v4132_v53  ;;  %v4135_v48 = vsub.f32 %v8919_v34, %v4087_v22 }
 0x8a6   :  { %v4084_v44 = vpop.xlane.xlu0 %4083  ;;  %v4250_v20 = vsel %vm2015_vm3, %v9067_v50, 0.0 }
 0x8a7   :  { %v9073_v54 = vpop.eup %7274  ;;  %7284 = vpow2.f32 %v4184_v6  ;;  %v4134_v15 = vsub.f32 %v8916_v43, %v4084_v44  ;;  %4251 = vadd.xlane.f32.xlu0 %v4250_v20  ;;  %4248 = vadd.xlane.f32.xlu1 %v4247_v52  ;;  %v4190_v56 = vmul.f32 1.442695, %v4135_v48 }
 0x8a8   :  { %v4093_v3 = vpop.xlane.xlu1 %4092  ;;  %7286 = vpow2.f32 %v4182_v35  ;;  %v4259_v58 = vsel %vm2015_vm3, %v9073_v54, 0.0 }
 0x8a9   :  { %v9076_v47 = vpop.eup %7276  ;;  %v4188_v63 = vmul.f32 1.442695, %v4134_v15  ;;  %v4137_v1 = vsub.f32 %v8924_v16, %v4093_v3 }
 0x8aa   :  { %v4090_v42 = vpop.xlane.xlu0 %4089  ;;  %v4256_v49 = vsel %vm2015_vm3, %v9076_v47, 0.0  ;;  %v9084_v5 = vpop.eup %7278 }
 0x8ab   :  { %7288 = vpow2.f32 %v4188_v63  ;;  %v4194_v43 = vmul.f32 1.442695, %v4137_v1  ;;  %v4136_v24 = vsub.f32 %v8929_v11, %v4090_v42  ;;  %4260 = vadd.xlane.f32.xlu0 %v4259_v58  ;;  %4257 = vadd.xlane.f32.xlu1 %v4256_v49  ;;  %v4253_v22 = vsel %vm2015_vm3, %v9084_v5, 0.0 }
 0x8ac   :  { %v4099_v31 = vpop.xlane.xlu1 %4098 }
 0x8ad   :  { %v9087_v34 = vpop.eup %7280  ;;  %7290 = vpow2.f32 %v4194_v43  ;;  %v4192_v16 = vmul.f32 1.442695, %v4136_v24  ;;  %v4139_v20 = vsub.f32 %v8939_v21, %v4099_v31 }
 0x8ae   :  { %v4096_v12 = vpop.xlane.xlu0 %4095  ;;  %v4262_v53 = vsel %vm2015_vm3, %v9087_v34, 0.0 }
 0x8af   :  { %v9093_v35 = vpop.eup %7282  ;;  %7292 = vpow2.f32 %v4192_v16  ;;  %v4138_v11 = vsub.f32 %v8936_v61, %v4096_v12  ;;  %4263 = vadd.xlane.f32.xlu0 %v4262_v53  ;;  %4254 = vadd.xlane.f32.xlu1 %v4253_v22  ;;  %v4198_v49 = vmul.f32 1.442695, %v4139_v20 }
 0x8b0   :  { %v4105_v6 = vpop.xlane.xlu1 %4104  ;;  %7294 = vpow2.f32 %v4190_v56  ;;  %v4271_v48 = vsel %vm2015_vm3, %v9093_v35, 0.0 }
 0x8b1   :  { %v9096_v44 = vpop.eup %7284  ;;  %v4196_v52 = vmul.f32 1.442695, %v4138_v11  ;;  %v4141_v15 = vsub.f32 %v8944_v59, %v4105_v6 }
 0x8b2   :  { %v4102_v3 = vpop.xlane.xlu0 %4101  ;;  %v4268_v63 = vsel %vm2015_vm3, %v9096_v44, 0.0  ;;  %v9104_v1 = vpop.eup %7286 }
 0x8b3   :  { %7296 = vpow2.f32 %v4196_v52  ;;  %v4202_v61 = vmul.f32 1.442695, %v4141_v15  ;;  %v4140_v42 = vsub.f32 %v8949_v38, %v4102_v3  ;;  %4272 = vadd.xlane.f32.xlu0 %v4271_v48  ;;  %4269 = vadd.xlane.f32.xlu1 %v4268_v63  ;;  %v4265_v56 = vsel %vm2015_vm3, %v9104_v1, 0.0 }
 0x8b4   :  { %v4111_v58 = vpop.xlane.xlu1 %4110 }
 0x8b5   :  { %v9107_v21 = vpop.eup %7288  ;;  %7298 = vpow2.f32 %v4202_v61  ;;  %v4200_v59 = vmul.f32 1.442695, %v4140_v42  ;;  %v4143_v43 = vsub.f32 %v8961_v9, %v4111_v58 }
 0x8b6   :  { %v4108_v24 = vpop.xlane.xlu0 %4107  ;;  %v4274_v31 = vsel %vm2015_vm3, %v9107_v21, 0.0 }
 0x8b7   :  { %v9114_v16 = vpop.eup %7290  ;;  %7300 = vpow2.f32 %v4200_v59  ;;  %v4142_v38 = vsub.f32 %v8958_v14, %v4108_v24  ;;  %4275 = vadd.xlane.f32.xlu0 %v4274_v31  ;;  %4266 = vadd.xlane.f32.xlu1 %v4265_v56  ;;  %v4206_v53 = vmul.f32 1.442695, %v4143_v43 }
 0x8b8   :  { %7302 = vpow2.f32 %v4198_v49  ;;  %v4283_v9 = vsel %vm2015_vm3, %v9114_v16, 0.0  ;;  %v9155_v24 = vpop.permute.xlu1 %5009 }
 0x8b9   :  { %v9117_v12 = vpop.eup %7292  ;;  %v4204_v22 = vmul.f32 1.442695, %v4142_v38 }
 0x8ba   :  { %v4280_v11 = vsel %vm2015_vm3, %v9117_v12, 0.0  ;;  %v9123_v6 = vpop.eup %7294  ;;  %v9157_v31 = vpop.permute.xlu0 %4961 }
 0x8bb   :  { %7304 = vpow2.f32 %v4204_v22  ;;  %4284 = vadd.xlane.f32.xlu0 %v4283_v9  ;;  %4281 = vadd.xlane.f32.xlu1 %v4280_v11  ;;  %v4277_v52 = vsel %vm2015_vm3, %v9123_v6, 0.0 }
 0x8bc   :  { %7306 = vpow2.f32 %v4206_v53 }
 0x8bd   :  { %v9125_v20 = vpop.eup %7296 }
 0x8be   :  { %v4286_v14 = vsel %vm2015_vm3, %v9125_v20, 0.0 }
 0x8bf   :  { %v9131_v15 = vpop.eup %7298  ;;  %4287 = vadd.xlane.f32.xlu0 %v4286_v14  ;;  %4278 = vadd.xlane.f32.xlu1 %v4277_v52 }
 0x8c0   :  { %v4295_v48 = vsel %vm2015_vm3, %v9131_v15, 0.0 }
 0x8c1   :  { %v9133_v3 = vpop.eup %7300 }
 0x8c2   :  { %v4292_v63 = vsel %vm2015_vm3, %v9133_v3, 0.0  ;;  %v9139_v61 = vpop.eup %7302 }
 0x8c3   :  { %4296 = vadd.xlane.f32.xlu0 %v4295_v48  ;;  %4293 = vadd.xlane.f32.xlu1 %v4292_v63  ;;  %v4289_v49 = vsel %vm2015_vm3, %v9139_v61, 0.0 }
 0x8c5   :  { %v9141_v42 = vpop.eup %7304 }
 0x8c6   :  { %v4298_v58 = vsel %vm2015_vm3, %v9141_v42, 0.0  ;;  %v9147_v59 = vpop.eup %7306 }
 0x8c7   :  { %4299 = vadd.xlane.f32.xlu0 %v4298_v58  ;;  %4290 = vadd.xlane.f32.xlu1 %v4289_v49  ;;  %v4301_v43 = vsel %vm2015_vm3, %v9147_v59, 0.0 }
 0x8cb   :  { %4302 = vadd.xlane.f32.xlu1 %v4301_v43 }
 0x8dc   :  { %5105 = vrot.lane.b32.xlu1 %v9948_v30, %s7505_s1 }
 0x8dd   :  { %5057 = vrot.lane.b32.xlu0 %v9947_v45, %s7505_s1 }
 0x8e9   :  { %v4213_v56 = vpop.xlane.xlu1 %4212 }
 0x8ea   :  { %7308 = vrcp.f32 %v4213_v56 }
 0x8eb   :  { %v4210_v38 = vpop.xlane.xlu0 %4209 }
 0x8ec   :  { %7310 = vrcp.f32 %v4210_v38 }
 0x8f4   :  { %v7309_v53 = vpop.eup %7308 }
 0x8f5   :  { %v4337_v9 = vmul.f32 %v7309_v53, %v8993_v60 }
 0x8f6   :  { %v7311_v22 = vpop.eup %7310 }
 0x8f7   :  { %v4336_v11 = vmul.f32 %v7311_v22, %v8995_v17 }
 0x8f9   :  { %v4368_v14 = vpack.c.bf16 %v4337_v9, %v4336_v11 }
 0x8fb   :  { %6854 = vmatmul.mubr.msk.bf16.vlgmr.msra.gmra.mrb[120].mxu1 %vm2015_vm3, %v4368_v14 }
 0x8fc   :  { %6864 = vmatpush3.bf16.msra.mxu1 %v8973_v26  ;;  %6865 = vmatprep.mubr.msk.bf16.mxu1 %vm7501_vm1, %v9919_v0 }
 0x8fd   :  { %6875 = vmatprep.subr.bf16.mxu1 %v9919_v0 }
 0x918   :  { %v4216_v45 = vpop.xlane.xlu0 %4215 }
 0x919   :  { %7312 = vrcp.f32 %v4216_v45 }
 0x91c   :  { %v4222_v30 = vpop.xlane.xlu0 %4221 }
 0x920   :  { %v4219_v52 = vpop.xlane.xlu1 %4218 }
 0x921   :  { %7314 = vrcp.f32 %v4219_v52 }
 0x922   :  { %7316 = vrcp.f32 %v4222_v30 }
 0x923   :  { %v7313_v58 = vpop.eup %7312 }
 0x924   :  { %v4228_v48 = vpop.xlane.xlu0 %4227  ;;  %v4225_v60 = vpop.xlane.xlu1 %4224  ;;  %v4338_v49 = vmul.f32 %v7313_v58, %v9007_v25 }
 0x925   :  { %7318 = vrcp.f32 %v4225_v60 }
 0x926   :  { %7320 = vrcp.f32 %v4228_v48 }
 0x928   :  { %v4234_v17 = vpop.xlane.xlu0 %4233  ;;  %v4231_v63 = vpop.xlane.xlu1 %4230 }
 0x929   :  { %7322 = vrcp.f32 %v4231_v63 }
 0x92a   :  { %7324 = vrcp.f32 %v4234_v17 }
 0x92b   :  { %v7315_v26 = vpop.eup %7314 }
 0x92c   :  { %v4339_v43 = vmul.f32 %v7315_v26, %v9019_v37  ;;  %v4240_v56 = vpop.xlane.xlu0 %4239  ;;  %v4237_v38 = vpop.xlane.xlu1 %4236 }
 0x92d   :  { %v7317_v53 = vpop.eup %7316  ;;  %7326 = vrcp.f32 %v4237_v38 }
 0x92e   :  { %v4369_v22 = vpack.c.bf16 %v4339_v43, %v4338_v49  ;;  %7328 = vrcp.f32 %v4240_v56  ;;  %v4340_v45 = vmul.f32 %v7317_v53, %v9013_v39 }
 0x92f   :  { %v7319_v9 = vpop.eup %7318 }
 0x930   :  { %v4246_v11 = vpop.xlane.xlu0 %4245  ;;  %6860 = vmatmul.mubr.msk.bf16.vlgmr.msra.gmra.mrb[176].mxu0 %vm2015_vm3, %v4369_v22  ;;  %v4243_v14 = vpop.xlane.xlu1 %4242  ;;  %v4341_v30 = vmul.f32 %v7319_v9, %v9024_v57 }
 0x931   :  { %6870 = vmatpush3.bf16.msra.mxu0 %v8953_v27  ;;  %6871 = vmatprep.mubr.msk.bf16.mxu0 %vm7501_vm1, %v9919_v0  ;;  %v7321_v25 = vpop.eup %7320  ;;  %7330 = vrcp.f32 %v4243_v14 }
 0x932   :  { %6881 = vmatprep.subr.bf16.mxu0 %v9919_v0  ;;  %v4370_v37 = vpack.c.bf16 %v4341_v30, %v4340_v45  ;;  %7332 = vrcp.f32 %v4246_v11  ;;  %v4342_v17 = vmul.f32 %v7321_v25, %v9027_v28 }
 0x933   :  { %v7323_v52 = vpop.eup %7322 }
 0x934   :  { %v4252_v48 = vpop.xlane.xlu0 %4251  ;;  %v4249_v60 = vpop.xlane.xlu1 %4248  ;;  %v4343_v39 = vmul.f32 %v7323_v52, %v9033_v19  ;;  %6866 = vmatmul.mubr.msk.bf16.vlgmr.msra.gmra.mrb[124].mxu1 %vm2015_vm3, %v4370_v37 }
 0x935   :  { %v7325_v57 = vpop.eup %7324  ;;  %6876 = vmatpush3.bf16.msra.mxu1 %v8977_v4  ;;  %7334 = vrcp.f32 %v4249_v60  ;;  %6877 = vmatprep.mubr.msk.bf16.mxu1 %vm7501_vm1, %v9919_v0 }
 0x936   :  { %v4371_v27 = vpack.c.bf16 %v4343_v39, %v4342_v17  ;;  %6887 = vmatprep.subr.bf16.mxu1 %v9919_v0  ;;  %v4344_v49 = vmul.f32 %v7325_v57, %v9036_v18 }
 0x937   :  { %v7327_v63 = vpop.eup %7326 }
 0x938   :  { %v4261_v58 = vpop.xlane.xlu0 %4260  ;;  %v4258_v26 = vpop.xlane.xlu1 %4257  ;;  %v4345_v28 = vmul.f32 %v7327_v63, %v9044_v23  ;;  %6872 = vmatmul.mubr.msk.bf16.vlgmr.msra.gmra.mrb[180].mxu0 %vm2015_vm3, %v4371_v27 }
 0x939   :  { %7336 = vrcp.f32 %v4261_v58  ;;  %v7329_v19 = vpop.eup %7328  ;;  %6882 = vmatpush3.bf16.msra.mxu0 %v8967_v40  ;;  %6883 = vmatprep.mubr.msk.bf16.mxu0 %vm7501_vm1, %v9919_v0 }
 0x93a   :  { %7338 = vrcp.f32 %v4258_v26  ;;  %v4372_v4 = vpack.c.bf16 %v4345_v28, %v4344_v49  ;;  %6893 = vmatprep.subr.bf16.mxu0 %v9919_v0  ;;  %v4346_v18 = vmul.f32 %v7329_v19, %v9047_v2 }
 0x93b   :  { %v7331_v43 = vpop.eup %7330  ;;  %7340 = vrcp.f32 %v4252_v48 }
 0x93c   :  { %v4264_v56 = vpop.xlane.xlu0 %4263  ;;  %v4255_v38 = vpop.xlane.xlu1 %4254  ;;  %v4347_v23 = vmul.f32 %v7331_v43, %v9053_v41  ;;  %6878 = vmatmul.mubr.msk.bf16.vlgmr.msra.gmra.mrb[128].mxu1 %vm2015_vm3, %v4372_v4 }
 0x93d   :  { %v7333_v53 = vpop.eup %7332  ;;  %6888 = vmatpush3.bf16.msra.mxu1 %v8983_v33  ;;  %7342 = vrcp.f32 %v4255_v38  ;;  %6889 = vmatprep.mubr.msk.bf16.mxu1 %vm7501_vm1, %v9919_v0 }
 0x93e   :  { %v4373_v40 = vpack.c.bf16 %v4347_v23, %v4346_v18  ;;  %6899 = vmatprep.subr.bf16.mxu1 %v9919_v0  ;;  %v4348_v14 = vmul.f32 %v7333_v53, %v9056_v10 }
 0x93f   :  { %v7335_v22 = vpop.eup %7334 }
 0x940   :  { %v4273_v9 = vpop.xlane.xlu0 %4272  ;;  %v4270_v11 = vpop.xlane.xlu1 %4269  ;;  %v4349_v2 = vmul.f32 %v7335_v22, %v9064_v51  ;;  %6884 = vmatmul.mubr.msk.bf16.vlgmr.msra.gmra.mrb[184].mxu0 %vm2015_vm3, %v4373_v40 }
 0x941   :  { %7344 = vrcp.f32 %v4273_v9  ;;  %6894 = vmatpush3.bf16.msra.mxu0 %v8971_v46  ;;  %6895 = vmatprep.mubr.msk.bf16.mxu0 %vm7501_vm1, %v9919_v0 }
 0x942   :  { %7346 = vrcp.f32 %v4270_v11  ;;  %v4374_v41 = vpack.c.bf16 %v4349_v2, %v4348_v14  ;;  %6905 = vmatprep.subr.bf16.mxu0 %v9919_v0 }
 0x943   :  { %v7337_v33 = vpop.eup %7336  ;;  %7348 = vrcp.f32 %v4264_v56 }
 0x944   :  { %v7339_v45 = vpop.eup %7338  ;;  %v4276_v30 = vpop.xlane.xlu0 %4275  ;;  %6890 = vmatmul.mubr.msk.bf16.vlgmr.msra.gmra.mrb[132].mxu1 %vm2015_vm3, %v4374_v41  ;;  %v4353_v46 = vmul.f32 %v7337_v33, %v9073_v54 }
 0x945   :  { %v4267_v25 = vpop.xlane.xlu1 %4266  ;;  %v7341_v10 = vpop.eup %7340  ;;  %6900 = vmatpush3.bf16.msra.mxu1 %v8989_v36  ;;  %6901 = vmatprep.mubr.msk.bf16.mxu1 %vm7501_vm1, %v9919_v0  ;;  %v4352_v51 = vmul.f32 %v7339_v45, %v9076_v47 }
 0x946   :  { %7350 = vrcp.f32 %v4267_v25  ;;  %6911 = vmatprep.subr.bf16.mxu1 %v9919_v0  ;;  %v4350_v60 = vmul.f32 %v7341_v10, %v9067_v50 }
 0x947   :  { %v7343_v37 = vpop.eup %7342  ;;  %v4376_v57 = vpack.c.bf16 %v4353_v46, %v4352_v51  ;;  %v7107_v51 = vld [vmem:[%s9800_s10 + $0x18] sm:$0xff]  }
 0x948   :  { %v4285_v52 = vpop.xlane.xlu0 %4284  ;;  %v4351_v17 = vmul.f32 %v7343_v37, %v9084_v5  ;;  %v7108_v37 = vld [vmem:[%s9800_s10 + $0x20] sm:$0xff]  }
 0x949   :  { %v4282_v48 = vpop.xlane.xlu1 %4281  ;;  %7352 = vrcp.f32 %v4285_v52  ;;  %v7109_v52 = vld [vmem:[%s9800_s10 + $0x28] sm:$0xff]  }
 0x94a   :  { %7354 = vrcp.f32 %v4282_v48  ;;  %v4375_v39 = vpack.c.bf16 %v4351_v17, %v4350_v60  ;;  %v7110_v48 = vld [vmem:[%s9800_s10 + $0x30] sm:$0xff]   ;;  %v7111_v60 = vld [vmem:[%s9800_s10 + $0x38] sm:$0xff]  }
 0x94b   :  { %v7345_v36 = vpop.eup %7344  ;;  %7356 = vrcp.f32 %v4276_v30  ;;  %v7105_v30 = vld [vmem:[%s9800_s10 + $0x8] sm:$0xff]  }
 0x94c   :  { %v7347_v27 = vpop.eup %7346  ;;  %v4288_v63 = vpop.xlane.xlu0 %4287  ;;  %6896 = vmatmul.mubr.msk.bf16.vlgmr.msra.gmra.mrb[188].mxu0 %vm2015_vm3, %v4375_v39  ;;  %6902 = vmatmul.mubr.msk.bf16.vlgmr.msra.gmra.mrb[136].mxu1 %vm2015_vm3, %v4376_v57  ;;  %v4357_v50 = vmul.f32 %v7345_v36, %v9093_v35 }
 0x94d   :  { %v4279_v54 = vpop.xlane.xlu1 %4278  ;;  %v7349_v47 = vpop.eup %7348  ;;  %6906 = vmatpush3.bf16.msra.mxu0 %v8975_v7  ;;  %6912 = vmatpush3.bf16.msra.mxu1 %v8981_v29  ;;  %v4356_v5 = vmul.f32 %v7347_v27, %v9096_v44 }
 0x94e   :  { %7358 = vrcp.f32 %v4279_v54  ;;  %6907 = vmatprep.mubr.msk.bf16.mxu0 %vm7501_vm1, %v9919_v0  ;;  %6913 = vmatprep.mubr.msk.bf16.mxu1 %vm7501_vm1, %v9919_v0  ;;  %v4354_v7 = vmul.f32 %v7349_v47, %v9087_v34 }
 0x94f   :  { %6917 = vmatprep.subr.bf16.mxu0 %v9919_v0  ;;  %6923 = vmatprep.subr.bf16.mxu1 %v9919_v0  ;;  %v4378_v28 = vpack.c.bf16 %v4357_v50, %v4356_v5 }
 0x950   :  { %v7351_v58 = vpop.eup %7350  ;;  %v4297_v26 = vpop.xlane.xlu0 %4296 }
 0x951   :  { %v4294_v49 = vpop.xlane.xlu1 %4293  ;;  %v4355_v29 = vmul.f32 %v7351_v58, %v9104_v1  ;;  %7360 = vrcp.f32 %v4297_v26 }
 0x952   :  { %7362 = vrcp.f32 %v4294_v49 }
 0x953   :  { %v7353_v35 = vpop.eup %7352  ;;  %v4377_v44 = vpack.c.bf16 %v4355_v29, %v4354_v7  ;;  %7364 = vrcp.f32 %v4288_v63 }
 0x954   :  { %v7355_v19 = vpop.eup %7354  ;;  %6914 = vmatmul.mubr.msk.bf16.vlgmr.msra.gmra.mrb[140].mxu1 %vm2015_vm3, %v4378_v28  ;;  %v4361_v34 = vmul.f32 %v7353_v35, %v9114_v16  ;;  %v4300_v56 = vpop.xlane.xlu0 %4299 }
 0x955   :  { %v4291_v4 = vpop.xlane.xlu1 %4290  ;;  %6908 = vmatmul.mubr.msk.bf16.vlgmr.msra.gmra.mrb[192].mxu0 %vm2015_vm3, %v4377_v44  ;;  %v7357_v43 = vpop.eup %7356  ;;  %6924 = vmatpush3.bf16.msra.mxu1 %v9157_v31  ;;  %v4360_v1 = vmul.f32 %v7355_v19, %v9117_v12 }
 0x956   :  { %6918 = vmatpush3.bf16.msra.mxu0 %v8985_v32  ;;  %7366 = vrcp.f32 %v4291_v4  ;;  %6919 = vmatprep.mubr.msk.bf16.mxu0 %vm7501_vm1, %v9919_v0  ;;  %v4358_v32 = vmul.f32 %v7357_v43, %v9107_v21 }
 0x957   :  { %6925 = vmatprep.mubr.msk.bf16.mxu1 %vm7501_vm1, %v9919_v0  ;;  %6929 = vmatprep.subr.bf16.mxu0 %v9919_v0  ;;  %v4380_v23 = vpack.c.bf16 %v4361_v34, %v4360_v1 }
 0x958   :  { %v7359_v38 = vpop.eup %7358  ;;  %6935 = vmatprep.subr.bf16.mxu1 %v9919_v0  ;;  %v5058_v40 = vpop.permute.xlu0 %5057 }
 0x959   :  { %v4303_v18 = vpop.xlane.xlu1 %4302  ;;  %v4359_v31 = vmul.f32 %v7359_v38, %v9123_v6 }
 0x95a   :  { %7368 = vrcp.f32 %v4303_v18 }
 0x95b   :  { %v7361_v16 = vpop.eup %7360  ;;  %v4379_v12 = vpack.c.bf16 %v4359_v31, %v4358_v32  ;;  %7370 = vrcp.f32 %v4300_v56 }
 0x95c   :  { %v7363_v53 = vpop.eup %7362  ;;  %6926 = vmatmul.mubr.msk.bf16.vlgmr.msra.gmra.mrb[144].mxu1 %vm2015_vm3, %v4380_v23  ;;  %v4365_v9 = vmul.f32 %v7361_v16, %v9131_v15 }
 0x95d   :  { %6920 = vmatmul.mubr.msk.bf16.vlgmr.msra.gmra.mrb[196].mxu0 %vm2015_vm3, %v4379_v12  ;;  %v7365_v22 = vpop.eup %7364  ;;  %6936 = vmatpush3.bf16.msra.mxu1 %v5058_v40  ;;  %v4364_v21 = vmul.f32 %v7363_v53, %v9133_v3  ;;  %v5106_v41 = vpop.permute.xlu1 %5105 }
 0x95e   :  { %6930 = vmatpush3.bf16.msra.mxu0 %v9155_v24  ;;  %6931 = vmatprep.mubr.msk.bf16.mxu0 %vm7501_vm1, %v9919_v0  ;;  %v4362_v11 = vmul.f32 %v7365_v22, %v9125_v20 }
 0x95f   :  { %6937 = vmatprep.mubr.msk.bf16.mxu1 %vm7501_vm1, %v9919_v0  ;;  %6941 = vmatprep.subr.bf16.mxu0 %v9919_v0  ;;  %v4382_v24 = vpack.c.bf16 %v4365_v9, %v4364_v21 }
 0x960   :  { %v7367_v6 = vpop.eup %7366 }
 0x961   :  { %v4363_v14 = vmul.f32 %v7367_v6, %v9139_v61  ;;  %v7104_v61 = vld [vmem:[%s9800_s10] sm:$0xff]  }
 0x962   :  { %6947 = vmatprep.subr.bf16.mxu1 %v7104_v61 }
 0x963   :  { %v4381_v2 = vpack.c.bf16 %v4363_v14, %v4362_v11 }
 0x964   :  { %v7369_v33 = vpop.eup %7368  ;;  %6938 = vmatmul.mubr.msk.bf16.vlgmr.msra.gmra.mrb[148].mxu1 %vm2015_vm3, %v4382_v24 }
 0x965   :  { %6932 = vmatmul.mubr.msk.bf16.vlgmr.msra.gmra.mrb[200].mxu0 %vm2015_vm3, %v4381_v2  ;;  %v7371_v15 = vpop.eup %7370  ;;  %v4367_v3 = vmul.f32 %v7369_v33, %v9147_v59  ;;  %6948 = vmatpush3.bf16.msra.mxu1 %v7104_v61 }
 0x966   :  { %6942 = vmatpush3.bf16.msra.mxu0 %v5106_v41  ;;  %6943 = vmatprep.mubr.msk.bf16.mxu0 %vm7501_vm1, %v9919_v0  ;;  %v4366_v45 = vmul.f32 %v7371_v15, %v9141_v42  ;;  %v7106_v42 = vld [vmem:[%s9800_s10 + $0x10] sm:$0xff]  }
 0x967   :  { %6949 = vmatprep.subr.bf16.mxu1 %v7105_v30 }
 0x968   :  { %v4383_v20 = vpack.c.bf16 %v4367_v3, %v4366_v45 }
 0x969   :  { %6950 = vmatpush3.bf16.msra.mxu1 %v7105_v30 }
 0x96a   :  { %6951 = vmatprep.subr.bf16.mxu1 %v7106_v42 }
 0x96d   :  { %6944 = vmatmul.mubr.msk.bf16.vlgmr.msra.gmra.mrb[204].mxu0 %vm2015_vm3, %v4383_v20  ;;  %6952 = vmatpush3.bf16.msra.mxu1 %v7106_v42 }
 0x96e   :  { %6953 = vmatprep.subr.bf16.mxu1 %v7107_v51 }
 0x971   :  { %6954 = vmatpush3.bf16.msra.mxu1 %v7107_v51 }
 0x972   :  { %6955 = vmatprep.subr.bf16.mxu1 %v7108_v37 }
 0x975   :  { %6956 = vmatpush3.bf16.msra.mxu1 %v7108_v37 }
 0x976   :  { %6957 = vmatprep.subr.bf16.mxu1 %v7109_v52 }
 0x979   :  { %6958 = vmatpush3.bf16.msra.mxu1 %v7109_v52 }
 0x97a   :  { %6959 = vmatprep.subr.bf16.mxu1 %v7110_v48 }
 0x97d   :  { %6960 = vmatpush3.bf16.msra.mxu1 %v7110_v48 }
 0x97e   :  { %6961 = vmatprep.subr.bf16.mxu1 %v7111_v60 }
 0x981   :  { %6962 = vmatpush3.bf16.msra.mxu1 %v7111_v60 }
 0x9ce   :  { %v4425_v25 = vpop.f32.mrb[120].mxu1 }
 0x9cf   :  { %v6855_v10 = vpop.f32.mrb[121].mxu1 }
 0x9d0   :  { %v4428_v0 = vpop.f32.mrb[122].mxu1 }
 0x9d1   :  { %v7005_v59 = vpack.i.bf16 %v4428_v0, %v4425_v25  ;;  %v6856_v46 = vpop.f32.mrb[123].mxu1 }
 0x9d3   :  { %7006 = vrot.lane.b32.xlu0 %v7005_v59, %s7505_s1 }
 0xa03   :  { %v4473_v17 = vpop.f32.mrb[176].mxu0 }
 0xa04   :  { %v6861_v36 = vpop.f32.mrb[177].mxu0 }
 0xa05   :  { %v4476_v39 = vpop.f32.mrb[178].mxu0 }
 0xa06   :  { %v7010_v57 = vpack.i.bf16 %v4476_v39, %v4473_v17  ;;  %v6862_v27 = vpop.f32.mrb[179].mxu0 }
 0xa07   :  { %v4521_v63 = vpop.f32.mrb[124].mxu1 }
 0xa08   :  { %7011 = vrot.lane.b32.xlu1 %v7010_v57, %s7505_s1  ;;  %v6867_v54 = vpop.f32.mrb[125].mxu1 }
 0xa09   :  { %v4524_v47 = vpop.f32.mrb[126].mxu1 }
 0xa0a   :  { %v7015_v50 = vpack.i.bf16 %v4524_v47, %v4521_v63  ;;  %v6868_v5 = vpop.f32.mrb[127].mxu1 }
 0xa0b   :  { %v4569_v58 = vpop.f32.mrb[180].mxu0 }
 0xa0c   :  { %7016 = vrot.lane.b32.xlu0 %v7015_v50, %s7505_s1  ;;  %v6873_v26 = vpop.f32.mrb[181].mxu0 }
 0xa0d   :  { %v4572_v49 = vpop.f32.mrb[182].mxu0 }
 0xa0e   :  { %v7020_v7 = vpack.i.bf16 %v4572_v49, %v4569_v58  ;;  %v6874_v29 = vpop.f32.mrb[183].mxu0 }
 0xa0f   :  { %v4617_v35 = vpop.f32.mrb[128].mxu1 }
 0xa10   :  { %v6879_v44 = vpop.f32.mrb[129].mxu1  ;;  %7021 = vrot.lane.b32.xlu1 %v7020_v7, %s7505_s1 }
 0xa11   :  { %v4620_v28 = vpop.f32.mrb[130].mxu1 }
 0xa12   :  { %v7025_v19 = vpack.i.bf16 %v4620_v28, %v4617_v35  ;;  %v6880_v4 = vpop.f32.mrb[131].mxu1 }
 0xa13   :  { %v4665_v43 = vpop.f32.mrb[184].mxu0 }
 0xa14   :  { %7026 = vrot.lane.b32.xlu0 %v7025_v19, %s7505_s1  ;;  %v6885_v34 = vpop.f32.mrb[185].mxu0 }
 0xa15   :  { %v4668_v1 = vpop.f32.mrb[186].mxu0 }
 0xa16   :  { %v7030_v56 = vpack.i.bf16 %v4668_v1, %v4665_v43  ;;  %v6886_v38 = vpop.f32.mrb[187].mxu0 }
 0xa17   :  { %v4713_v18 = vpop.f32.mrb[132].mxu1 }
 0xa18   :  { %v6891_v32 = vpop.f32.mrb[133].mxu1  ;;  %7031 = vrot.lane.b32.xlu1 %v7030_v56, %s7505_s1 }
 0xa19   :  { %v4716_v31 = vpop.f32.mrb[134].mxu1 }
 0xa1a   :  { %v7035_v16 = vpack.i.bf16 %v4716_v31, %v4713_v18  ;;  %v6892_v12 = vpop.f32.mrb[135].mxu1 }
 0xa1c   :  { %7036 = vrot.lane.b32.xlu0 %v7035_v16, %s7505_s1 }
 0xa1f   :  { %v4761_v23 = vpop.f32.mrb[188].mxu0  ;;  %v4809_v53 = vpop.f32.mrb[136].mxu1 }
 0xa20   :  { %v6897_v40 = vpop.f32.mrb[189].mxu0  ;;  %v6903_v22 = vpop.f32.mrb[137].mxu1 }
 0xa21   :  { %v4764_v9 = vpop.f32.mrb[190].mxu0  ;;  %v4812_v21 = vpop.f32.mrb[138].mxu1 }
 0xa22   :  { %v7040_v6 = vpack.i.bf16 %v4764_v9, %v4761_v23  ;;  %v7045_v11 = vpack.i.bf16 %v4812_v21, %v4809_v53  ;;  %v6898_v14 = vpop.f32.mrb[191].mxu0  ;;  %v6904_v2 = vpop.f32.mrb[139].mxu1 }
 0xa24   :  { %7046 = vrot.lane.b32.xlu0 %v7045_v11, %s7505_s1  ;;  %7041 = vrot.lane.b32.xlu1 %v7040_v6, %s7505_s1 }
 0xa27   :  { %v4905_v33 = vpop.f32.mrb[140].mxu1 }
 0xa28   :  { %v4857_v24 = vpop.f32.mrb[192].mxu0  ;;  %v6915_v15 = vpop.f32.mrb[141].mxu1 }
 0xa29   :  { %v6909_v41 = vpop.f32.mrb[193].mxu0  ;;  %v4908_v45 = vpop.f32.mrb[142].mxu1 }
 0xa2a   :  { %v4860_v3 = vpop.f32.mrb[194].mxu0  ;;  %v7055_v61 = vpack.i.bf16 %v4908_v45, %v4905_v33  ;;  %v6916_v25 = vpop.f32.mrb[143].mxu1  ;;  %v9997_v41 = vld [vmem:[#allocation12_spill] sm:$0xff] }
 0xa2b   :  { %v7050_v20 = vpack.i.bf16 %v4860_v3, %v4857_v24  ;;  %v6910_v30 = vpop.f32.mrb[195].mxu0  ;;  %v9998_v3 = vld [vmem:[#allocation24_spill] sm:$0xff] }
 0xa2c   :  { %7056 = vrot.lane.b32.xlu0 %v7055_v61, %s7505_s1 }
 0xa2d   :  { %7051 = vrot.lane.b32.xlu1 %v7050_v20, %s7505_s1 }
 0xa2f   :  { %v5001_v0 = vpop.f32.mrb[144].mxu1 }
 0xa30   :  { %v4953_v10 = vpop.f32.mrb[196].mxu0  ;;  %v6927_v59 = vpop.f32.mrb[145].mxu1 }
 0xa31   :  { %v6921_v42 = vpop.f32.mrb[197].mxu0  ;;  %v5004_v51 = vpop.f32.mrb[146].mxu1 }
 0xa32   :  { %v4956_v46 = vpop.f32.mrb[198].mxu0  ;;  %v7065_v52 = vpack.i.bf16 %v5004_v51, %v5001_v0  ;;  %v6928_v60 = vpop.f32.mrb[147].mxu1  ;;  %v10000_v42 = vld [vmem:[#allocation13_spill] sm:$0xff] }
 0xa33   :  { %v7060_v37 = vpack.i.bf16 %v4956_v46, %v4953_v10  ;;  %v6922_v48 = vpop.f32.mrb[199].mxu0  ;;  %v9999_v10 = vld [vmem:[#allocation30_spill] sm:$0xff] }
 0xa34   :  { %7066 = vrot.lane.b32.xlu0 %v7065_v52, %s7505_s1  ;;  %v10001_v48 = vld [vmem:[#allocation29_spill] sm:$0xff] }
 0xa35   :  { %7061 = vrot.lane.b32.xlu1 %v7060_v37, %s7505_s1 }
 0xa37   :  { %v5097_v36 = vpop.f32.mrb[148].mxu1 }
 0xa38   :  { %v5049_v17 = vpop.f32.mrb[200].mxu0  ;;  %v6939_v57 = vpop.f32.mrb[149].mxu1 }
 0xa39   :  { %v6933_v39 = vpop.f32.mrb[201].mxu0  ;;  %v5100_v63 = vpop.f32.mrb[150].mxu1 }
 0xa3a   :  { %v5052_v27 = vpop.f32.mrb[202].mxu0  ;;  %v7075_v47 = vpack.i.bf16 %v5100_v63, %v5097_v36  ;;  %v6940_v5 = vpop.f32.mrb[151].mxu1 }
 0xa3b   :  { %v7070_v54 = vpack.i.bf16 %v5052_v27, %v5049_v17  ;;  %v6934_v50 = vpop.f32.mrb[203].mxu0  ;;  %v10002_v17 = vld [vmem:[#allocation14_spill] sm:$0xff]  ;;  %v10003_v5 = vld [vmem:[#allocation33_spill] sm:$0xff] }
 0xa3c   :  { %7076 = vrot.lane.b32.xlu0 %v7075_v47, %s7505_s1 }
 0xa3d   :  { %7071 = vrot.lane.b32.xlu1 %v7070_v54, %s7505_s1 }
 0xa40   :  { %v5145_v58 = vpop.f32.mrb[204].mxu0 }
 0xa41   :  { %v6945_v26 = vpop.f32.mrb[205].mxu0 }
 0xa42   :  { %v5148_v49 = vpop.f32.mrb[206].mxu0  ;;  %v10004_v26 = vld [vmem:[#allocation15_spill] sm:$0xff] }
 0xa43   :  { %v7080_v7 = vpack.i.bf16 %v5148_v49, %v5145_v58  ;;  %v6946_v29 = vpop.f32.mrb[207].mxu0 }
 0xa45   :  { %7081 = vrot.lane.b32.xlu1 %v7080_v7, %s7505_s1  ;;  %v7007_v35 = vpop.permute.xlu0 %7006  ;;  %v10005_v7 = vld [vmem:[#allocation16_spill] sm:$0xff] }
 0xa46   :  { %v7009_v44 = vunpack.i.h.bf16 %v7007_v35  ;;  %v7008_v28 = vunpack.i.l.bf16 %v7007_v35  ;;  %v10006_v35 = vld [vmem:[#allocation32_spill] sm:$0xff] }
 0xa48   :  { %v5280_v19 = vsel %vm1018_vm2, %v8724_v13, %v7008_v28  ;;  %v5281_v4 = vsel %vm1018_vm2, %v8727_v8, %v7009_v44  ;;  %v9993_v13 = vld [vmem:[#allocation20_spill] sm:$0xff]  ;;  %v9994_v8 = vld [vmem:[#allocation31_spill] sm:$0xff] }
 0xa49   :  { %v5312_v43 = vpack.c.bf16 %v5281_v4, %v5280_v19 }
 0xa4b   :  { %6963 = vmatprep.mubr.bf16.mxu1 %v5312_v43 }
 0xa7a   :  { %v7012_v34 = vpop.permute.xlu1 %7011 }
 0xa7b   :  { %v7014_v1 = vunpack.i.h.bf16 %v7012_v34  ;;  %v7013_v56 = vunpack.i.l.bf16 %v7012_v34 }
 0xa7d   :  { %v5283_v38 = vsel %vm1018_vm2, %v8740_v55, %v7014_v1  ;;  %v5282_v18 = vsel %vm1018_vm2, %v8737_v62, %v7013_v56  ;;  %v9995_v55 = vld [vmem:[#allocation11_spill] sm:$0xff]  ;;  %v9996_v62 = vld [vmem:[#allocation22_spill] sm:$0xff] }
 0xa7e   :  { %v5313_v32 = vpack.c.bf16 %v5283_v38, %v5282_v18  ;;  %v7017_v31 = vpop.permute.xlu0 %7016  ;;  %v10007_v18 = vld [vmem:[#allocation17_spill] sm:$0xff] }
 0xa7f   :  { %v7019_v16 = vunpack.i.h.bf16 %v7017_v31  ;;  %v7018_v12 = vunpack.i.l.bf16 %v7017_v31  ;;  %v10008_v31 = vld [vmem:[#allocation18_spill] sm:$0xff] }
 0xa80   :  { %6964 = vmatmul.mubr.bf16.vlgmr.msra.gmra.mrb[152].mxu1 %v5313_v32 }
 0xa81   :  { %v5284_v23 = vsel %vm1018_vm2, %v9993_v13, %v7018_v12  ;;  %v5285_v53 = vsel %vm1018_vm2, %v9994_v8, %v7019_v16  ;;  %v10009_v12 = vld [vmem:[#allocation6_spill] sm:$0xff] }
 0xa82   :  { %v7022_v40 = vpop.permute.xlu1 %7021  ;;  %v5314_v22 = vpack.c.bf16 %v5285_v53, %v5284_v23  ;;  %v10010_v23 = vld [vmem:[#allocation19_spill] sm:$0xff] }
 0xa83   :  { %v7024_v9 = vunpack.i.h.bf16 %v7022_v40  ;;  %v7023_v21 = vunpack.i.l.bf16 %v7022_v40 }
 0xa84   :  { %6967 = vmatprep.mubr.bf16.mxu1 %v5314_v22 }
 0xa85   :  { %v5286_v6 = vsel %vm1018_vm2, %v9995_v55, %v7023_v21  ;;  %v5287_v11 = vsel %vm1018_vm2, %v9996_v62, %v7024_v9 }
 0xa86   :  { %v7027_v14 = vpop.permute.xlu0 %7026  ;;  %v5315_v2 = vpack.c.bf16 %v5287_v11, %v5286_v6  ;;  %v10011_v11 = vld [vmem:[#allocation21_spill] sm:$0xff] }
 0xa87   :  { %v7029_v24 = vunpack.i.h.bf16 %v7027_v14  ;;  %v7028_v33 = vunpack.i.l.bf16 %v7027_v14 }
 0xa88   :  { %6968 = vmatmul.mubr.bf16.gmra.mrb[156].mxu1 %v5315_v2  ;;  %v10012_v2 = vld [vmem:[#allocation5_spill] sm:$0xff] }
 0xa89   :  { %v5288_v15 = vsel %vm1018_vm2, %v9997_v41, %v7028_v33  ;;  %v5289_v45 = vsel %vm1018_vm2, %v9998_v3, %v7029_v24  ;;  %v10013_v33 = vld [vmem:[#allocation23_spill] sm:$0xff] }
 0xa8a   :  { %v7032_v20 = vpop.permute.xlu1 %7031  ;;  %v5316_v61 = vpack.c.bf16 %v5289_v45, %v5288_v15  ;;  %v10014_v15 = vld [vmem:[#allocation25_spill] sm:$0xff] }
 0xa8b   :  { %v7034_v30 = vunpack.i.h.bf16 %v7032_v20  ;;  %v7033_v25 = vunpack.i.l.bf16 %v7032_v20 }
 0xa8c   :  { %6971 = vmatprep.mubr.bf16.mxu1 %v5316_v61 }
 0xa8d   :  { %v5290_v0 = vsel %vm1018_vm2, %v9999_v10, %v7033_v25  ;;  %v5291_v59 = vsel %vm1018_vm2, %v10000_v42, %v7034_v30 }
 0xa8e   :  { %v7037_v46 = vpop.permute.xlu0 %7036  ;;  %v5317_v51 = vpack.c.bf16 %v5291_v59, %v5290_v0  ;;  %v10015_v59 = vld [vmem:[#allocation8_spill] sm:$0xff] }
 0xa8f   :  { %v7039_v37 = vunpack.i.h.bf16 %v7037_v46  ;;  %v7038_v52 = vunpack.i.l.bf16 %v7037_v46 }
 0xa90   :  { %6972 = vmatmul.mubr.bf16.gmra.mrb[160].mxu1 %v5317_v51  ;;  %v10016_v51 = vld [vmem:[#allocation27_spill] sm:$0xff] }
 0xa91   :  { %v5292_v60 = vsel %vm1018_vm2, %v10001_v48, %v7038_v52  ;;  %v5293_v36 = vsel %vm1018_vm2, %v10002_v17, %v7039_v37  ;;  %v10017_v52 = vld [vmem:[#allocation26_spill] sm:$0xff] }
 0xa92   :  { %v5318_v39 = vpack.c.bf16 %v5293_v36, %v5292_v60  ;;  %v10018_v60 = vld [vmem:[#allocation7_spill] sm:$0xff] }
 0xa94   :  { %6975 = vmatprep.mubr.bf16.mxu1 %v5318_v39 }
 0xa96   :  { %v7047_v57 = vpop.permute.xlu0 %7046  ;;  %v7042_v27 = vpop.permute.xlu1 %7041 }
 0xa97   :  { %v7049_v63 = vunpack.i.h.bf16 %v7047_v57  ;;  %v7048_v54 = vunpack.i.l.bf16 %v7047_v57  ;;  %v7044_v47 = vunpack.i.h.bf16 %v7042_v27  ;;  %v7043_v50 = vunpack.i.l.bf16 %v7042_v27 }
 0xa99   :  { %v5294_v58 = vsel %vm1018_vm2, %v10003_v5, %v7043_v50  ;;  %v5295_v49 = vsel %vm1018_vm2, %v10004_v26, %v7044_v47  ;;  %v5296_v29 = vsel %vm1018_vm2, %v10005_v7, %v7048_v54  ;;  %v5297_v44 = vsel %vm1018_vm2, %v10006_v35, %v7049_v63  ;;  %v10019_v54 = vld [vmem:[#allocation28_spill] sm:$0xff]  ;;  %v10020_v50 = vld [vmem:[#allocation10_spill] sm:$0xff] }
 0xa9a   :  { %v5319_v28 = vpack.c.bf16 %v5295_v49, %v5294_v58  ;;  %v5320_v19 = vpack.c.bf16 %v5297_v44, %v5296_v29  ;;  %v21_v26 = vstv %s9801_s13  ;;  %v9369_v49 = vld [vmem:[%s9802_s11] ss:$0 sm:$0xff] }
 0xa9b   :  { %22 = vst [vmem:[#allocation2] sm:$0x1] %v21_v26  ;;  %v9374_v7 = vld [vmem:[%s9803_s12] ss:$0 sm:$0xff] }
 0xa9c   :  { %6976 = vmatmul.mubr.bf16.gmra.mrb[164].mxu1 %v5319_v28 }
 0xa9d   :  { %6979 = vmatprep.mubr.bf16.mxu1 %v5320_v19 }
 0xa9e   :  { %v7057_v4 = vpop.permute.xlu0 %7056 }
 0xa9f   :  { %v7052_v43 = vpop.permute.xlu1 %7051  ;;  %v7059_v34 = vunpack.i.h.bf16 %v7057_v4  ;;  %v7058_v1 = vunpack.i.l.bf16 %v7057_v4 }
 0xaa0   :  { %v7054_v56 = vunpack.i.h.bf16 %v7052_v43  ;;  %v7053_v38 = vunpack.i.l.bf16 %v7052_v43 }
 0xaa1   :  { %v5300_v13 = vsel %vm1018_vm2, %v10009_v12, %v7058_v1  ;;  %v5301_v8 = vsel %vm1018_vm2, %v10010_v23, %v7059_v34 }
 0xaa2   :  { %v5298_v32 = vsel %vm1018_vm2, %v10007_v18, %v7053_v38  ;;  %v5299_v16 = vsel %vm1018_vm2, %v10008_v31, %v7054_v56  ;;  %v5322_v40 = vpack.c.bf16 %v5301_v8, %v5300_v13 }
 0xaa3   :  { %v5321_v53 = vpack.c.bf16 %v5299_v16, %v5298_v32 }
 0xaa5   :  { %6980 = vmatmul.mubr.bf16.gmra.mrb[168].mxu1 %v5321_v53 }
 0xaa6   :  { %6983 = vmatprep.mubr.bf16.mxu1 %v5322_v40  ;;  %v7067_v22 = vpop.permute.xlu0 %7066 }
 0xaa7   :  { %v7062_v9 = vpop.permute.xlu1 %7061  ;;  %v7069_v21 = vunpack.i.h.bf16 %v7067_v22  ;;  %v7068_v55 = vunpack.i.l.bf16 %v7067_v22 }
 0xaa8   :  { %v7064_v6 = vunpack.i.h.bf16 %v7062_v9  ;;  %v7063_v62 = vunpack.i.l.bf16 %v7062_v9 }
 0xaa9   :  { %v5304_v41 = vsel %vm1018_vm2, %v10013_v33, %v7068_v55  ;;  %v5305_v3 = vsel %vm1018_vm2, %v10014_v15, %v7069_v21 }
 0xaaa   :  { %v5302_v14 = vsel %vm1018_vm2, %v10011_v11, %v7063_v62  ;;  %v5303_v24 = vsel %vm1018_vm2, %v10012_v2, %v7064_v6  ;;  %v5324_v20 = vpack.c.bf16 %v5305_v3, %v5304_v41 }
 0xaab   :  { %v5323_v45 = vpack.c.bf16 %v5303_v24, %v5302_v14 }
 0xaad   :  { %6984 = vmatmul.mubr.bf16.gmra.mrb[172].mxu1 %v5323_v45 }
 0xaae   :  { %6987 = vmatprep.mubr.bf16.mxu1 %v5324_v20  ;;  %v7077_v61 = vpop.permute.xlu0 %7076 }
 0xaaf   :  { %v7072_v30 = vpop.permute.xlu1 %7071  ;;  %v7079_v25 = vunpack.i.h.bf16 %v7077_v61  ;;  %v7078_v10 = vunpack.i.l.bf16 %v7077_v61 }
 0xab0   :  { %v7074_v0 = vunpack.i.h.bf16 %v7072_v30  ;;  %v7073_v42 = vunpack.i.l.bf16 %v7072_v30 }
 0xab1   :  { %v5308_v48 = vsel %vm1018_vm2, %v10017_v52, %v7078_v10  ;;  %v5309_v17 = vsel %vm1018_vm2, %v10018_v60, %v7079_v25 }
 0xab2   :  { %v5306_v46 = vsel %vm1018_vm2, %v10015_v59, %v7073_v42  ;;  %v5307_v37 = vsel %vm1018_vm2, %v10016_v51, %v7074_v0  ;;  %v5326_v39 = vpack.c.bf16 %v5309_v17, %v5308_v48 }
 0xab3   :  { %v5325_v36 = vpack.c.bf16 %v5307_v37, %v5306_v46 }
 0xab5   :  { %6988 = vmatmul.mubr.bf16.gmra.mrb[176].mxu1 %v5325_v36 }
 0xab6   :  { %6991 = vmatprep.mubr.bf16.mxu1 %v5326_v39 }
 0xab7   :  { %v7082_v57 = vpop.permute.xlu1 %7081 }
 0xab8   :  { %v7084_v27 = vunpack.i.h.bf16 %v7082_v57  ;;  %v7083_v63 = vunpack.i.l.bf16 %v7082_v57 }
 0xaba   :  { %v5310_v47 = vsel %vm1018_vm2, %v10019_v54, %v7083_v63  ;;  %v5311_v5 = vsel %vm1018_vm2, %v10020_v50, %v7084_v27 }
 0xabb   :  { %v5327_v58 = vpack.c.bf16 %v5311_v5, %v5310_v47 }
 0xabd   :  { %6992 = vmatmul.mubr.bf16.gmra.mrb[180].mxu1 %v5327_v58 }
 0xb53   :  { %v6965_v29 = vpop.f32.mrb[152].mxu1 }
 0xb54   :  { %v5425_v35 = vadd.f32 %v6965_v29, %v9369_v49  ;;  %v5416_v44 = vpop.f32.mrb[153].mxu1 }
 0xb55   :  { %v5417_v28 = vadd.f32 %v9369_v49, %v5416_v44  ;;  %v6966_v19 = vpop.f32.mrb[154].mxu1 }
 0xb56   :  { %v5551_v4 = vmul.f32 %v9374_v7, %v5425_v35  ;;  %6117 = vst.msk [vmem:[%s9804_s14 + $0x10] sm:$0xff] %vm54_vm0, %v5425_v35  ;;  %v5428_v43 = vadd.f32 %v6966_v19, %v9369_v49  ;;  %v5419_v34 = vpop.f32.mrb[155].mxu1 }
 0xb57   :  { %6115 = vst.msk [vmem:[%s9804_s14] sm:$0xff] %vm54_vm0, %v5417_v28  ;;  %v5420_v1 = vadd.f32 %v9369_v49, %v5419_v34  ;;  %v5549_v56 = vmul.f32 %v9374_v7, %v5417_v28 }
 0xb58   :  { %6118 = vst.msk [vmem:[%s9804_s14 + $0x18] sm:$0xff] %vm54_vm0, %v5428_v43  ;;  %v5587_v38 = vsel %vm54_vm0, %v5551_v4, 0.0  ;;  %v5552_v31 = vmul.f32 %v9374_v7, %v5428_v43 }
 0xb59   :  { %v5550_v18 = vmul.f32 %v9374_v7, %v5420_v1  ;;  %6116 = vst.msk [vmem:[%s9804_s14 + $0x8] sm:$0xff] %vm54_vm0, %v5420_v1  ;;  %5588 = vadd.xlane.f32.xlu0 %v5587_v38  ;;  %v5581_v12 = vsel %vm54_vm0, %v5549_v56, 0.0 }
 0xb5a   :  { %v5590_v55 = vsel %vm54_vm0, %v5552_v31, 0.0 }
 0xb5b   :  { %v5584_v32 = vsel %vm54_vm0, %v5550_v18, 0.0  ;;  %v6969_v16 = vpop.f32.mrb[156].mxu1 }
 0xb5c   :  { %5585 = vadd.xlane.f32.xlu1 %v5584_v32  ;;  %v5441_v13 = vadd.f32 %v6969_v16, %v9369_v49  ;;  %v5432_v23 = vpop.f32.mrb[157].mxu1 }
 0xb5d   :  { %5582 = vadd.xlane.f32.xlu0 %v5581_v12  ;;  %v5433_v8 = vadd.f32 %v9369_v49, %v5432_v23  ;;  %v6970_v53 = vpop.f32.mrb[158].mxu1 }
 0xb5e   :  { %6121 = vst.msk [vmem:[%s9804_s14 + $0x30] sm:$0xff] %vm54_vm0, %v5441_v13  ;;  %v5444_v40 = vadd.f32 %v6970_v53, %v9369_v49  ;;  %v5435_v22 = vpop.f32.mrb[159].mxu1  ;;  %v5555_v9 = vmul.f32 %v9374_v7, %v5441_v13 }
 0xb5f   :  { %6119 = vst.msk [vmem:[%s9804_s14 + $0x20] sm:$0xff] %vm54_vm0, %v5433_v8  ;;  %v5436_v21 = vadd.f32 %v9369_v49, %v5435_v22  ;;  %v5553_v14 = vmul.f32 %v9374_v7, %v5433_v8 }
 0xb60   :  { %v5556_v6 = vmul.f32 %v9374_v7, %v5444_v40  ;;  %6122 = vst.msk [vmem:[%s9804_s14 + $0x38] sm:$0xff] %vm54_vm0, %v5444_v40  ;;  %v5599_v24 = vsel %vm54_vm0, %v5555_v9, 0.0 }
 0xb61   :  { %5591 = vadd.xlane.f32.xlu0 %v5590_v55  ;;  %6120 = vst.msk [vmem:[%s9804_s14 + $0x28] sm:$0xff] %vm54_vm0, %v5436_v21  ;;  %v5554_v62 = vmul.f32 %v9374_v7, %v5436_v21  ;;  %v5593_v10 = vsel %vm54_vm0, %v5553_v14, 0.0 }
 0xb62   :  { %v5602_v11 = vsel %vm54_vm0, %v5556_v6, 0.0 }
 0xb63   :  { %v6973_v2 = vpop.f32.mrb[160].mxu1  ;;  %5603 = vadd.xlane.f32.xlu1 %v5602_v11  ;;  %v5596_v61 = vsel %vm54_vm0, %v5554_v62, 0.0 }
 0xb64   :  { %v5457_v33 = vadd.f32 %v6973_v2, %v9369_v49  ;;  %v5448_v41 = vpop.f32.mrb[161].mxu1 }
 0xb65   :  { %5600 = vadd.xlane.f32.xlu0 %v5599_v24  ;;  %v5449_v15 = vadd.f32 %v9369_v49, %v5448_v41  ;;  %v6974_v3 = vpop.f32.mrb[162].mxu1 }
 0xb66   :  { %6125 = vst.msk [vmem:[%s9804_s14 + $0x50] sm:$0xff] %vm54_vm0, %v5457_v33  ;;  %v5460_v45 = vadd.f32 %v6974_v3, %v9369_v49  ;;  %v5451_v20 = vpop.f32.mrb[163].mxu1  ;;  %v5559_v30 = vmul.f32 %v9374_v7, %v5457_v33 }
 0xb67   :  { %6123 = vst.msk [vmem:[%s9804_s14 + $0x40] sm:$0xff] %vm54_vm0, %v5449_v15  ;;  %v5452_v25 = vadd.f32 %v9369_v49, %v5451_v20  ;;  %5597 = vadd.xlane.f32.xlu1 %v5596_v61  ;;  %v5557_v46 = vmul.f32 %v9374_v7, %v5449_v15 }
 0xb68   :  { %v5560_v0 = vmul.f32 %v9374_v7, %v5460_v45  ;;  %6126 = vst.msk [vmem:[%s9804_s14 + $0x58] sm:$0xff] %vm54_vm0, %v5460_v45  ;;  %v5611_v51 = vsel %vm54_vm0, %v5559_v30, 0.0 }
 0xb69   :  { %5594 = vadd.xlane.f32.xlu0 %v5593_v10  ;;  %6124 = vst.msk [vmem:[%s9804_s14 + $0x48] sm:$0xff] %vm54_vm0, %v5452_v25  ;;  %v5558_v42 = vmul.f32 %v9374_v7, %v5452_v25  ;;  %v5605_v48 = vsel %vm54_vm0, %v5557_v46, 0.0 }
 0xb6a   :  { %v5614_v59 = vsel %vm54_vm0, %v5560_v0, 0.0 }
 0xb6b   :  { %5615 = vadd.xlane.f32.xlu1 %v5614_v59  ;;  %v5608_v37 = vsel %vm54_vm0, %v5558_v42, 0.0 }
 0xb6d   :  { %5612 = vadd.xlane.f32.xlu0 %v5611_v51 }
 0xb6f   :  { %v6977_v52 = vpop.f32.mrb[164].mxu1  ;;  %5609 = vadd.xlane.f32.xlu1 %v5608_v37 }
 0xb70   :  { %v5473_v60 = vadd.f32 %v6977_v52, %v9369_v49  ;;  %v5464_v17 = vpop.f32.mrb[165].mxu1 }
 0xb71   :  { %5606 = vadd.xlane.f32.xlu0 %v5605_v48  ;;  %v5465_v36 = vadd.f32 %v9369_v49, %v5464_v17  ;;  %v6978_v39 = vpop.f32.mrb[166].mxu1 }
 0xb72   :  { %v5563_v57 = vmul.f32 %v9374_v7, %v5473_v60  ;;  %6129 = vst.msk [vmem:[%s9804_s14 + $0x70] sm:$0xff] %vm54_vm0, %v5473_v60  ;;  %v5476_v27 = vadd.f32 %v6978_v39, %v9369_v49  ;;  %v5467_v63 = vpop.f32.mrb[167].mxu1 }
 0xb73   :  { %6127 = vst.msk [vmem:[%s9804_s14 + $0x60] sm:$0xff] %vm54_vm0, %v5465_v36  ;;  %v5468_v54 = vadd.f32 %v9369_v49, %v5467_v63  ;;  %v5561_v47 = vmul.f32 %v9374_v7, %v5465_v36 }
 0xb74   :  { %v5564_v50 = vmul.f32 %v9374_v7, %v5476_v27  ;;  %6130 = vst.msk [vmem:[%s9804_s14 + $0x78] sm:$0xff] %vm54_vm0, %v5476_v27  ;;  %v5623_v5 = vsel %vm54_vm0, %v5563_v57, 0.0 }
 0xb75   :  { %6128 = vst.msk [vmem:[%s9804_s14 + $0x68] sm:$0xff] %vm54_vm0, %v5468_v54  ;;  %5624 = vadd.xlane.f32.xlu0 %v5623_v5  ;;  %v5562_v58 = vmul.f32 %v9374_v7, %v5468_v54  ;;  %v5617_v28 = vsel %vm54_vm0, %v5561_v47, 0.0 }
 0xb76   :  { %v5626_v26 = vsel %vm54_vm0, %v5564_v50, 0.0 }
 0xb77   :  { %5627 = vadd.xlane.f32.xlu1 %v5626_v26  ;;  %v5620_v56 = vsel %vm54_vm0, %v5562_v58, 0.0 }
 0xb78   :  { %v6981_v29 = vpop.f32.mrb[168].mxu1 }
 0xb79   :  { %v5489_v35 = vadd.f32 %v6981_v29, %v9369_v49  ;;  %v5480_v44 = vpop.f32.mrb[169].mxu1  ;;  %5618 = vadd.xlane.f32.xlu0 %v5617_v28  ;;  %v6284_v28 = vld [vmem:[#allocation2] ss:$0 sm:$0xff] }
 0xb7a   :  { %v5481_v19 = vadd.f32 %v9369_v49, %v5480_v44  ;;  %v6982_v4 = vpop.f32.mrb[170].mxu1 }
 0xb7b   :  { %v5567_v43 = vmul.f32 %v9374_v7, %v5489_v35  ;;  %6133 = vst.msk [vmem:[%s9804_s14 + $0x90] sm:$0xff] %vm54_vm0, %v5489_v35  ;;  %v5492_v34 = vadd.f32 %v6982_v4, %v9369_v49  ;;  %v5483_v1 = vpop.f32.mrb[171].mxu1  ;;  %5621 = vadd.xlane.f32.xlu1 %v5620_v56 }
 0xb7c   :  { %6131 = vst.msk [vmem:[%s9804_s14 + $0x80] sm:$0xff] %vm54_vm0, %v5481_v19  ;;  %v5484_v38 = vadd.f32 %v9369_v49, %v5483_v1  ;;  %v5565_v18 = vmul.f32 %v9374_v7, %v5481_v19 }
 0xb7d   :  { %v5568_v32 = vmul.f32 %v9374_v7, %v5492_v34  ;;  %6134 = vst.msk [vmem:[%s9804_s14 + $0x98] sm:$0xff] %vm54_vm0, %v5492_v34  ;;  %v5635_v31 = vsel %vm54_vm0, %v5567_v43, 0.0 }
 0xb7e   :  { %6132 = vst.msk [vmem:[%s9804_s14 + $0x88] sm:$0xff] %vm54_vm0, %v5484_v38  ;;  %5636 = vadd.xlane.f32.xlu0 %v5635_v31  ;;  %v5566_v16 = vmul.f32 %v9374_v7, %v5484_v38  ;;  %v5629_v53 = vsel %vm54_vm0, %v5565_v18, 0.0 }
 0xb7f   :  { %v5638_v12 = vsel %vm54_vm0, %v5568_v32, 0.0 }
 0xb80   :  { %v6985_v13 = vpop.f32.mrb[172].mxu1  ;;  %5639 = vadd.xlane.f32.xlu1 %v5638_v12  ;;  %v5632_v6 = vsel %vm54_vm0, %v5566_v16, 0.0 }
 0xb81   :  { %v5505_v23 = vadd.f32 %v6985_v13, %v9369_v49  ;;  %v5496_v8 = vpop.f32.mrb[173].mxu1 }
 0xb82   :  { %v5497_v40 = vadd.f32 %v9369_v49, %v5496_v8  ;;  %5630 = vadd.xlane.f32.xlu0 %v5629_v53  ;;  %v6986_v22 = vpop.f32.mrb[174].mxu1 }
 0xb83   :  { %v5571_v9 = vmul.f32 %v9374_v7, %v5505_v23  ;;  %6137 = vst.msk [vmem:[%s9804_s14 + $0xb0] sm:$0xff] %vm54_vm0, %v5505_v23  ;;  %v5508_v21 = vadd.f32 %v6986_v22, %v9369_v49  ;;  %v5499_v55 = vpop.f32.mrb[175].mxu1 }
 0xb84   :  { %6135 = vst.msk [vmem:[%s9804_s14 + $0xa0] sm:$0xff] %vm54_vm0, %v5497_v40  ;;  %v5500_v62 = vadd.f32 %v9369_v49, %v5499_v55  ;;  %5633 = vadd.xlane.f32.xlu1 %v5632_v6  ;;  %v5569_v11 = vmul.f32 %v9374_v7, %v5497_v40 }
 0xb85   :  { %v5572_v14 = vmul.f32 %v9374_v7, %v5508_v21  ;;  %6138 = vst.msk [vmem:[%s9804_s14 + $0xb8] sm:$0xff] %vm54_vm0, %v5508_v21  ;;  %v5647_v2 = vsel %vm54_vm0, %v5571_v9, 0.0 }
 0xb86   :  { %6136 = vst.msk [vmem:[%s9804_s14 + $0xa8] sm:$0xff] %vm54_vm0, %v5500_v62  ;;  %5648 = vadd.xlane.f32.xlu0 %v5647_v2  ;;  %v5570_v24 = vmul.f32 %v9374_v7, %v5500_v62  ;;  %v5641_v45 = vsel %vm54_vm0, %v5569_v11, 0.0 }
 0xb87   :  { %v5650_v33 = vsel %vm54_vm0, %v5572_v14, 0.0 }
 0xb88   :  { %v6989_v41 = vpop.f32.mrb[176].mxu1  ;;  %5651 = vadd.xlane.f32.xlu1 %v5650_v33  ;;  %v5644_v0 = vsel %vm54_vm0, %v5570_v24, 0.0 }
 0xb89   :  { %v5521_v15 = vadd.f32 %v6989_v41, %v9369_v49  ;;  %v5512_v3 = vpop.f32.mrb[177].mxu1 }
 0xb8a   :  { %v5513_v20 = vadd.f32 %v9369_v49, %v5512_v3  ;;  %5642 = vadd.xlane.f32.xlu0 %v5641_v45  ;;  %v6990_v61 = vpop.f32.mrb[178].mxu1 }
 0xb8b   :  { %v5575_v30 = vmul.f32 %v9374_v7, %v5521_v15  ;;  %6141 = vst.msk [vmem:[%s9804_s14 + $0xd0] sm:$0xff] %vm54_vm0, %v5521_v15  ;;  %v5524_v25 = vadd.f32 %v6990_v61, %v9369_v49  ;;  %v5515_v10 = vpop.f32.mrb[179].mxu1 }
 0xb8c   :  { %6139 = vst.msk [vmem:[%s9804_s14 + $0xc0] sm:$0xff] %vm54_vm0, %v5513_v20  ;;  %v5516_v42 = vadd.f32 %v9369_v49, %v5515_v10  ;;  %5645 = vadd.xlane.f32.xlu1 %v5644_v0  ;;  %v5573_v59 = vmul.f32 %v9374_v7, %v5513_v20 }
 0xb8d   :  { %v5576_v46 = vmul.f32 %v9374_v7, %v5524_v25  ;;  %6142 = vst.msk [vmem:[%s9804_s14 + $0xd8] sm:$0xff] %vm54_vm0, %v5524_v25  ;;  %v5659_v51 = vsel %vm54_vm0, %v5575_v30, 0.0 }
 0xb8e   :  { %6140 = vst.msk [vmem:[%s9804_s14 + $0xc8] sm:$0xff] %vm54_vm0, %v5516_v42  ;;  %5660 = vadd.xlane.f32.xlu0 %v5659_v51  ;;  %v5574_v37 = vmul.f32 %v9374_v7, %v5516_v42  ;;  %v5653_v36 = vsel %vm54_vm0, %v5573_v59, 0.0 }
 0xb8f   :  { %v5662_v52 = vsel %vm54_vm0, %v5576_v46, 0.0 }
 0xb90   :  { %5663 = vadd.xlane.f32.xlu1 %v5662_v52  ;;  %v6993_v48 = vpop.f32.mrb[180].mxu1  ;;  %v5656_v47 = vsel %vm54_vm0, %v5574_v37, 0.0 }
 0xb91   :  { %v5537_v60 = vadd.f32 %v6993_v48, %v9369_v49  ;;  %v5528_v17 = vpop.f32.mrb[181].mxu1 }
 0xb92   :  { %v5529_v39 = vadd.f32 %v9369_v49, %v5528_v17  ;;  %5654 = vadd.xlane.f32.xlu0 %v5653_v36  ;;  %v6994_v57 = vpop.f32.mrb[182].mxu1 }
 0xb93   :  { %v5579_v27 = vmul.f32 %v9374_v7, %v5537_v60  ;;  %6145 = vst.msk [vmem:[%s9804_s14 + $0xf0] sm:$0xff] %vm54_vm0, %v5537_v60  ;;  %v5540_v63 = vadd.f32 %v6994_v57, %v9369_v49  ;;  %v5531_v54 = vpop.f32.mrb[183].mxu1 }
 0xb94   :  { %v5577_v50 = vmul.f32 %v9374_v7, %v5529_v39  ;;  %6143 = vst.msk [vmem:[%s9804_s14 + $0xe0] sm:$0xff] %vm54_vm0, %v5529_v39  ;;  %v5532_v5 = vadd.f32 %v9369_v49, %v5531_v54  ;;  %5657 = vadd.xlane.f32.xlu1 %v5656_v47 }
 0xb95   :  { %v5580_v58 = vmul.f32 %v9374_v7, %v5540_v63  ;;  %6146 = vst.msk [vmem:[%s9804_s14 + $0xf8] sm:$0xff] %vm54_vm0, %v5540_v63  ;;  %v5671_v26 = vsel %vm54_vm0, %v5579_v27, 0.0 }
 0xb96   :  { %v5578_v29 = vmul.f32 %v9374_v7, %v5532_v5  ;;  %6144 = vst.msk [vmem:[%s9804_s14 + $0xe8] sm:$0xff] %vm54_vm0, %v5532_v5  ;;  %5672 = vadd.xlane.f32.xlu0 %v5671_v26  ;;  %v5665_v35 = vsel %vm54_vm0, %v5577_v50, 0.0 }
 0xb97   :  { %v5674_v44 = vsel %vm54_vm0, %v5580_v58, 0.0 }
 0xb98   :  { %v5668_v49 = vsel %vm54_vm0, %v5578_v29, 0.0 }
 0xb99   :  { %5669 = vadd.xlane.f32.xlu1 %v5668_v49 }
 0xb9a   :  { %5666 = vadd.xlane.f32.xlu0 %v5665_v35 }
 0xb9d   :  { %5675 = vadd.xlane.f32.xlu1 %v5674_v44 }
 0xbb0   :  { %5683 = vperm.xlu0 %7085, %v6284_v28  }
 0xbe6   :  { %v5589_v19 = vpop.xlane.xlu0 %5588 }
 0xbe9   :  { %v5586_v38 = vpop.xlane.xlu1 %5585 }
 0xbea   :  { %v5583_v4 = vpop.xlane.xlu0 %5582 }
 0xbee   :  { %v5592_v7 = vpop.xlane.xlu0 %5591 }
 0xbf0   :  { %v5604_v32 = vpop.xlane.xlu1 %5603 }
 0xbf2   :  { %v5601_v43 = vpop.xlane.xlu0 %5600 }
 0xbf4   :  { %v5598_v16 = vpop.xlane.xlu1 %5597 }
 0xbf6   :  { %v5595_v34 = vpop.xlane.xlu0 %5594 }
 0xbf8   :  { %v5616_v23 = vpop.xlane.xlu1 %5615 }
 0xbfa   :  { %v5613_v1 = vpop.xlane.xlu0 %5612 }
 0xbfc   :  { %v5610_v53 = vpop.xlane.xlu1 %5609 }
 0xbfe   :  { %v5607_v56 = vpop.xlane.xlu0 %5606 }
 0xc02   :  { %v5625_v18 = vpop.xlane.xlu0 %5624 }
 0xc04   :  { %v5628_v22 = vpop.xlane.xlu1 %5627 }
 0xc06   :  { %v5619_v31 = vpop.xlane.xlu0 %5618 }
 0xc08   :  { %v5622_v21 = vpop.xlane.xlu1 %5621 }
 0xc0b   :  { %v5637_v12 = vpop.xlane.xlu0 %5636 }
 0xc0d   :  { %v5640_v6 = vpop.xlane.xlu1 %5639 }
 0xc0f   :  { %v5631_v13 = vpop.xlane.xlu0 %5630 }
 0xc11   :  { %v5634_v11 = vpop.xlane.xlu1 %5633 }
 0xc13   :  { %v9600_v8 = vpop.xlane.xlu0 %5648 }
 0xc15   :  { %v9614_v24 = vpop.xlane.xlu1 %5651 }
 0xc17   :  { %v9602_v40 = vpop.xlane.xlu0 %5642 }
 0xc19   :  { %v5646_v61 = vpop.xlane.xlu1 %5645 }
 0xc1b   :  { %v9604_v9 = vpop.xlane.xlu0 %5660 }
 0xc1d   :  { %v5664_v39 = vpop.xlane.xlu1 %5663 }
 0xc1f   :  { %v9606_v55 = vpop.xlane.xlu0 %5654 }
 0xc21   :  { %v5658_v28 = vpop.xlane.xlu1 %5657 }
 0xc23   :  { %v9608_v62 = vpop.xlane.xlu0 %5672 }
 0xc27   :  { %v9610_v14 = vpop.xlane.xlu0 %5666 }
 0xc2f   :  { %v9612_v2 = vpop.permute.xlu0 %5683 }
 0xc30   :  { %v5686_v33 = vadd.f32 %v9612_v2, %v5583_v4  ;;  %v5687_v41 = vadd.f32 %v9612_v2, %v5586_v38  ;;  %v5688_v15 = vadd.f32 %v9612_v2, %v5589_v19  ;;  %v5689_v3 = vadd.f32 %v9612_v2, %v5592_v7 }
 0xc31   :  { %v5690_v45 = vadd.f32 %v9612_v2, %v5595_v34  ;;  %v5691_v20 = vadd.f32 %v9612_v2, %v5598_v16  ;;  %v5692_v30 = vadd.f32 %v9612_v2, %v5601_v43  ;;  %v5693_v42 = vadd.f32 %v9612_v2, %v5604_v32 }
 0xc32   :  { %v6285_v25 = vmul.f32 -1.442695, %v5686_v33  ;;  %v6286_v10 = vmul.f32 -1.442695, %v5687_v41  ;;  %v6287_v0 = vmul.f32 -1.442695, %v5688_v15  ;;  %v5694_v46 = vadd.f32 %v9612_v2, %v5607_v56 }
 0xc33   :  { %v6288_v59 = vmul.f32 -1.442695, %v5689_v3  ;;  %v6289_v51 = vmul.f32 -1.442695, %v5690_v45  ;;  %v5695_v37 = vadd.f32 %v9612_v2, %v5610_v53  ;;  %v6290_v52 = vmul.f32 -1.442695, %v5691_v20 }
 0xc34   :  { %7372 = vpow2.f32 %v6285_v25  ;;  %v5696_v48 = vadd.f32 %v9612_v2, %v5613_v1  ;;  %v6291_v60 = vmul.f32 -1.442695, %v5692_v30  ;;  %v5697_v17 = vadd.f32 %v9612_v2, %v5616_v23 }
 0xc35   :  { %7374 = vpow2.f32 %v6286_v10  ;;  %v6292_v36 = vmul.f32 -1.442695, %v5693_v42  ;;  %v5698_v57 = vadd.f32 %v9612_v2, %v5619_v31  ;;  %v6293_v27 = vmul.f32 -1.442695, %v5694_v46 }
 0xc36   :  { %7376 = vpow2.f32 %v6287_v0  ;;  %v5699_v63 = vadd.f32 %v9612_v2, %v5622_v21  ;;  %v6294_v54 = vmul.f32 -1.442695, %v5695_v37  ;;  %v5700_v47 = vadd.f32 %v9612_v2, %v5625_v18  ;;  %v5670_v21 = vpop.xlane.xlu1 %5669 }
 0xc37   :  { %7378 = vpow2.f32 %v6288_v59  ;;  %v6295_v50 = vmul.f32 -1.442695, %v5696_v48  ;;  %v5701_v5 = vadd.f32 %v9612_v2, %v5628_v22  ;;  %v6296_v58 = vmul.f32 -1.442695, %v5697_v17 }
 0xc38   :  { %7380 = vpow2.f32 %v6289_v51  ;;  %v5702_v26 = vadd.f32 %v9612_v2, %v5631_v13  ;;  %v6297_v29 = vmul.f32 -1.442695, %v5698_v57  ;;  %v5703_v49 = vadd.f32 %v9612_v2, %v5634_v11 }
 0xc39   :  { %7382 = vpow2.f32 %v6290_v52  ;;  %v6298_v35 = vmul.f32 -1.442695, %v5699_v63  ;;  %v5704_v19 = vadd.f32 %v9612_v2, %v5637_v12  ;;  %v6299_v4 = vmul.f32 -1.442695, %v5700_v47 }
 0xc3a   :  { %7384 = vpow2.f32 %v6291_v60  ;;  %v5705_v43 = vadd.f32 %v9612_v2, %v5640_v6  ;;  %v6300_v34 = vmul.f32 -1.442695, %v5701_v5  ;;  %v5706_v56 = vadd.f32 %v9612_v2, %v9602_v40 }
 0xc3b   :  { %7386 = vpow2.f32 %v6292_v36  ;;  %v6301_v38 = vmul.f32 -1.442695, %v5702_v26  ;;  %v5707_v32 = vadd.f32 %v9612_v2, %v5646_v61  ;;  %v6302_v31 = vmul.f32 -1.442695, %v5703_v49 }
 0xc3c   :  { %7388 = vpow2.f32 %v6293_v27  ;;  %v5708_v12 = vadd.f32 %v9612_v2, %v9600_v8  ;;  %v6303_v13 = vmul.f32 -1.442695, %v5704_v19  ;;  %v5709_v53 = vadd.f32 %v9612_v2, %v9614_v24 }
 0xc3d   :  { %7390 = vpow2.f32 %v6294_v54  ;;  %v6304_v40 = vmul.f32 -1.442695, %v5705_v43  ;;  %v5710_v6 = vadd.f32 %v9612_v2, %v9606_v55  ;;  %v6305_v11 = vmul.f32 -1.442695, %v5706_v56 }
 0xc3e   :  { %v9634_v44 = vpop.eup %7372  ;;  %7392 = vpow2.f32 %v6295_v50  ;;  %v5711_v8 = vadd.f32 %v9612_v2, %v5658_v28  ;;  %v6306_v41 = vmul.f32 -1.442695, %v5707_v32  ;;  %v5712_v3 = vadd.f32 %v9612_v2, %v9604_v9  ;;  %v5676_v9 = vpop.xlane.xlu1 %5675 }
 0xc3f   :  { %v9637_v7 = vpop.eup %7374  ;;  %7394 = vpow2.f32 %v6296_v58  ;;  %v6307_v24 = vmul.f32 -1.442695, %v5708_v12  ;;  %v5713_v20 = vadd.f32 %v9612_v2, %v5664_v39  ;;  %v6308_v61 = vmul.f32 -1.442695, %v5709_v53 }
 0xc40   :  { %v9640_v1 = vpop.eup %7376  ;;  %7396 = vpow2.f32 %v6297_v29  ;;  %v5714_v55 = vadd.f32 %v9612_v2, %v9610_v14  ;;  %v6309_v25 = vmul.f32 -1.442695, %v5710_v6  ;;  %v5715_v0 = vadd.f32 %v9612_v2, %v5670_v21  ;;  %v10021_v6 = vld [vmem:[#allocation3_spill] sm:$0xff] }
 0xc41   :  { %v9644_v18 = vpop.eup %7378  ;;  %7398 = vpow2.f32 %v6298_v35  ;;  %v6310_v42 = vmul.f32 -1.442695, %v5711_v8  ;;  %v5716_v46 = vadd.f32 %v9612_v2, %v9608_v62  ;;  %v6311_v51 = vmul.f32 -1.442695, %v5712_v3 }
 0xc42   :  { %v9647_v16 = vpop.eup %7380  ;;  %7400 = vpow2.f32 %v6299_v4  ;;  %v5717_v52 = vadd.f32 %v9612_v2, %v5676_v9  ;;  %v6312_v48 = vmul.f32 -1.442695, %v5713_v20  ;;  %v6313_v60 = vmul.f32 -1.442695, %v5714_v55 }
 0xc43   :  { %v9651_v23 = vpop.eup %7382  ;;  %7402 = vpow2.f32 %v6300_v34  ;;  %v6314_v36 = vmul.f32 -1.442695, %v5715_v0  ;;  %v6315_v57 = vmul.f32 -1.442695, %v5716_v46  ;;  %v5814_v54 = vadd.f32 1.0, %v9634_v44 }
 0xc44   :  { %v9655_v22 = vpop.eup %7384  ;;  %7404 = vpow2.f32 %v6301_v38  ;;  %v6316_v63 = vmul.f32 -1.442695, %v5717_v52  ;;  %v5815_v2 = vadd.f32 1.0, %v9637_v7  ;;  %v5816_v5 = vadd.f32 1.0, %v9640_v1 }
 0xc45   :  { %v7387_v33 = vpop.eup %7386  ;;  %7406 = vpow2.f32 %v6302_v31  ;;  %v5817_v26 = vadd.f32 1.0, %v9644_v18  ;;  %v5818_v49 = vadd.f32 1.0, %v9647_v16  ;;  %v5819_v44 = vadd.f32 1.0, %v9651_v23 }
 0xc46   :  { %v7389_v15 = vpop.eup %7388  ;;  %7408 = vpow2.f32 %v6303_v13  ;;  %v5820_v19 = vadd.f32 1.0, %v9655_v22  ;;  %v5821_v7 = vadd.f32 1.0, %v7387_v33 }
 0xc47   :  { %v7391_v45 = vpop.eup %7390  ;;  %7410 = vpow2.f32 %v6304_v40  ;;  %v5822_v34 = vadd.f32 1.0, %v7389_v15 }
 0xc48   :  { %v7393_v30 = vpop.eup %7392  ;;  %7412 = vpow2.f32 %v6305_v11  ;;  %v5823_v56 = vadd.f32 1.0, %v7391_v45 }
 0xc49   :  { %v7395_v10 = vpop.eup %7394  ;;  %7414 = vpow2.f32 %v6306_v41  ;;  %v5824_v18 = vadd.f32 1.0, %v7393_v30  ;;  %v10022_v41 = vld [vmem:[#allocation4_spill] sm:$0xff] }
 0xc4a   :  { %v7397_v59 = vpop.eup %7396  ;;  %7416 = vpow2.f32 %v6307_v24  ;;  %v5825_v31 = vadd.f32 1.0, %v7395_v10 }
 0xc4b   :  { %v7399_v37 = vpop.eup %7398  ;;  %7418 = vpow2.f32 %v6308_v61  ;;  %v5826_v12 = vadd.f32 1.0, %v7397_v59 }
 0xc4c   :  { %v7401_v14 = vpop.eup %7400  ;;  %7420 = vpow2.f32 %v6309_v25  ;;  %v5827_v23 = vadd.f32 1.0, %v7399_v37 }
 0xc4d   :  { %v7403_v17 = vpop.eup %7402  ;;  %7422 = vpow2.f32 %v6310_v42  ;;  %v5828_v40 = vadd.f32 1.0, %v7401_v14 }
 0xc4e   :  { %v7405_v39 = vpop.eup %7404  ;;  %7424 = vpow2.f32 %v6311_v51  ;;  %v5829_v21 = vadd.f32 1.0, %v7403_v17 }
 0xc4f   :  { %v7407_v27 = vpop.eup %7406  ;;  %7426 = vpow2.f32 %v6312_v48  ;;  %v5830_v8 = vadd.f32 1.0, %v7405_v39 }
 0xc50   :  { %v7409_v62 = vpop.eup %7408  ;;  %7428 = vpow2.f32 %v6313_v60  ;;  %v5831_v24 = vadd.f32 1.0, %v7407_v27 }
 0xc51   :  { %v9670_v47 = vpop.eup %7410  ;;  %7430 = vpow2.f32 %v6314_v36  ;;  %v5832_v61 = vadd.f32 1.0, %v7409_v62 }
 0xc52   :  { %v9673_v50 = vpop.eup %7412  ;;  %7432 = vpow2.f32 %v6315_v57  ;;  %v5833_v10 = vadd.f32 1.0, %v9670_v47 }
 0xc53   :  { %v9676_v58 = vpop.eup %7414  ;;  %7434 = vpow2.f32 %v6316_v63  ;;  %v5834_v59 = vadd.f32 1.0, %v9673_v50 }
 0xc54   :  { %v9679_v29 = vpop.eup %7416  ;;  %7436 = vrcp.f32 %v5814_v54  ;;  %v5835_v37 = vadd.f32 1.0, %v9676_v58 }
 0xc55   :  { %v9682_v35 = vpop.eup %7418  ;;  %7438 = vrcp.f32 %v5815_v2  ;;  %v5836_v60 = vadd.f32 1.0, %v9679_v29 }
 0xc56   :  { %v9685_v28 = vpop.eup %7420  ;;  %7440 = vrcp.f32 %v5816_v5  ;;  %v5837_v57 = vadd.f32 1.0, %v9682_v35 }
 0xc57   :  { %v9688_v4 = vpop.eup %7422  ;;  %7442 = vrcp.f32 %v5817_v26  ;;  %v5838_v54 = vadd.f32 1.0, %v9685_v28 }
 0xc58   :  { %v9690_v43 = vpop.eup %7424  ;;  %7444 = vrcp.f32 %v5818_v49  ;;  %v5839_v5 = vadd.f32 1.0, %v9688_v4 }
 0xc59   :  { %v9692_v1 = vpop.eup %7426  ;;  %7446 = vrcp.f32 %v5819_v44  ;;  %v5840_v49 = vadd.f32 1.0, %v9690_v43 }
 0xc5a   :  { %v9694_v38 = vpop.eup %7428  ;;  %7448 = vrcp.f32 %v5820_v19  ;;  %v5841_v19 = vadd.f32 1.0, %v9692_v1 }
 0xc5b   :  { %v9696_v32 = vpop.eup %7430  ;;  %7450 = vrcp.f32 %v5821_v7 }
 0xc5c   :  { %v9698_v16 = vpop.eup %7432  ;;  %7452 = vrcp.f32 %v5822_v34 }
 0xc5d   :  { %v9700_v13 = vpop.eup %7434  ;;  %7454 = vrcp.f32 %v5823_v56  ;;  %v5842_v56 = vadd.f32 1.0, %v9694_v38 }
 0xc5e   :  { %v7437_v53 = vpop.eup %7436  ;;  %7456 = vrcp.f32 %v5824_v18 }
 0xc5f   :  { %v7439_v22 = vpop.eup %7438  ;;  %7458 = vrcp.f32 %v5825_v31  ;;  %v5947_v11 = vrot.slane %v7437_v53, %v10021_v6 }
 0xc60   :  { %v7441_v33 = vpop.eup %7440  ;;  %7460 = vrcp.f32 %v5826_v12  ;;  %v5952_v15 = vrot.slane %v7439_v22, %v10022_v41  ;;  %v5843_v12 = vadd.f32 1.0, %v9696_v32  ;;  %v5845_v32 = vadd.f32 1.0, %v9700_v13 }
 0xc61   :  { %v7443_v3 = vpop.eup %7442  ;;  %7462 = vrcp.f32 %v5827_v23  ;;  %v5958_v45 = vrot.slane %v7441_v33, %v10021_v6 }
 0xc62   :  { %v7445_v20 = vpop.eup %7444  ;;  %7464 = vrcp.f32 %v5828_v40  ;;  %v5954_v30 = vsel %vm5953_vm4, %v5952_v15, %v5947_v11  ;;  %v5962_v55 = vrot.slane %v7443_v3, %v10022_v41  ;;  %v5844_v40 = vadd.f32 1.0, %v9698_v16  ;;  %v503_v11 = vld [vmem:[%s9805_s2] sm:$0xff] }
 0xc63   :  { %v7447_v25 = vpop.eup %7446  ;;  %7466 = vrcp.f32 %v5829_v21  ;;  %v5967_v0 = vrot.slane %v7445_v20, %v10021_v6 }
 0xc64   :  { %v7449_v42 = vpop.eup %7448  ;;  %7468 = vrcp.f32 %v5830_v8  ;;  %v5963_v9 = vsel %vm5953_vm4, %v5962_v55, %v5958_v45  ;;  %v5971_v46 = vrot.slane %v7447_v25, %v10022_v41 }
 0xc65   :  { %v7451_v51 = vpop.eup %7450  ;;  %7470 = vrcp.f32 %v5831_v24  ;;  %v5976_v52 = vrot.slane %v7449_v42, %v10021_v6  ;;  %v6091_v48 = vsel %vm6090_vm5, %v5963_v9, %v5954_v30 }
 0xc66   :  { %v7453_v14 = vpop.eup %7452  ;;  %7472 = vrcp.f32 %v5832_v61  ;;  %v5972_v17 = vsel %vm5953_vm4, %v5971_v46, %v5967_v0  ;;  %v5980_v36 = vrot.slane %v7451_v51, %v10022_v41 }
 0xc67   :  { %v7455_v39 = vpop.eup %7454  ;;  %7474 = vrcp.f32 %v5833_v10  ;;  %v5985_v27 = vrot.slane %v7453_v14, %v10021_v6  ;;  %v6093_v63 = vsel %vm6092_vm6, %v5972_v17, %v6091_v48 }
 0xc68   :  { %v7457_v62 = vpop.eup %7456  ;;  %7476 = vrcp.f32 %v5834_v59  ;;  %v5981_v47 = vsel %vm5953_vm4, %v5980_v36, %v5976_v52  ;;  %v5989_v2 = vrot.slane %v7455_v39, %v10022_v41 }
 0xc69   :  { %v7459_v50 = vpop.eup %7458  ;;  %7478 = vrcp.f32 %v5835_v37  ;;  %v5994_v58 = vrot.slane %v7457_v62, %v10021_v6  ;;  %v6095_v26 = vsel %vm6094_vm7, %v5981_v47, %v6093_v63 }
 0xc6a   :  { %v7461_v29 = vpop.eup %7460  ;;  %7480 = vrcp.f32 %v5836_v60  ;;  %v5990_v35 = vsel %vm5953_vm4, %v5989_v2, %v5985_v27  ;;  %v5998_v44 = vrot.slane %v7459_v50, %v10022_v41 }
 0xc6b   :  { %v7463_v28 = vpop.eup %7462  ;;  %7482 = vrcp.f32 %v5837_v57  ;;  %v6003_v7 = vrot.slane %v7461_v29, %v10021_v6  ;;  %v6097_v4 = vsel %vm6096_vm8, %v5990_v35, %v6095_v26 }
 0xc6c   :  { %v7465_v34 = vpop.eup %7464  ;;  %7484 = vrcp.f32 %v5838_v54  ;;  %v5999_v18 = vsel %vm5953_vm4, %v5998_v44, %v5994_v58  ;;  %v6007_v43 = vrot.slane %v7463_v28, %v10022_v41 }
 0xc6d   :  { %v7467_v31 = vpop.eup %7466  ;;  %7486 = vrcp.f32 %v5839_v5  ;;  %v6012_v23 = vrot.slane %v7465_v34, %v10021_v6  ;;  %v6099_v1 = vsel %vm6098_vm9, %v5999_v18, %v6097_v4 }
 0xc6e   :  { %v7469_v53 = vpop.eup %7468  ;;  %7488 = vrcp.f32 %v5840_v49  ;;  %v6008_v22 = vsel %vm5953_vm4, %v6007_v43, %v6003_v7  ;;  %v6016_v38 = vrot.slane %v7467_v31, %v10022_v41 }
 0xc6f   :  { %v7471_v21 = vpop.eup %7470  ;;  %7490 = vrcp.f32 %v5841_v19  ;;  %v6021_v33 = vrot.slane %v7469_v53, %v10021_v6  ;;  %v6101_v8 = vsel %vm6100_vm10, %v6008_v22, %v6099_v1 }
 0xc70   :  { %v7473_v15 = vpop.eup %7472  ;;  %7492 = vrcp.f32 %v5842_v56  ;;  %v6017_v16 = vsel %vm5953_vm4, %v6016_v38, %v6012_v23  ;;  %v6025_v3 = vrot.slane %v7471_v21, %v10022_v41 }
 0xc71   :  { %v7475_v24 = vpop.eup %7474  ;;  %7494 = vrcp.f32 %v5843_v12  ;;  %v6030_v45 = vrot.slane %v7473_v15, %v10021_v6  ;;  %v6103_v20 = vsel %vm6102_vm11, %v6017_v16, %v6101_v8 }
 0xc72   :  { %v7477_v61 = vpop.eup %7476  ;;  %7496 = vrcp.f32 %v5844_v40  ;;  %v6026_v13 = vsel %vm5953_vm4, %v6025_v3, %v6021_v33  ;;  %v6034_v30 = vrot.slane %v7475_v24, %v10022_v41  ;;  %v6113_v55 = vadd.f32 %v6103_v20, %v503_v11 }
 0xc73   :  { %v7479_v25 = vpop.eup %7478  ;;  %7498 = vrcp.f32 %v5845_v32  ;;  %v6039_v10 = vrot.slane %v7477_v61, %v10021_v6 }
 0xc74   :  { %v7481_v0 = vpop.eup %7480  ;;  %v6035_v42 = vsel %vm5953_vm4, %v6034_v30, %v6030_v45  ;;  %v6043_v59 = vrot.slane %v7479_v25, %v10022_v41  ;;  %6147 = vst.msk [vmem:[%s9806_s15] sm:$0xff] %vm2015_vm3, %v6113_v55 }
 0xc75   :  { %v7483_v9 = vpop.eup %7482  ;;  %v6048_v46 = vrot.slane %v7481_v0, %v10021_v6  ;;  %v6104_v51 = vsel %vm6090_vm5, %v6035_v42, %v6026_v13 }
 0xc76   :  { %v7485_v37 = vpop.eup %7484  ;;  %v6044_v52 = vsel %vm5953_vm4, %v6043_v59, %v6039_v10  ;;  %v6052_v48 = vrot.slane %v7483_v9, %v10022_v41 }
 0xc77   :  { %v7487_v14 = vpop.eup %7486  ;;  %v6057_v60 = vrot.slane %v7485_v37, %v10021_v6  ;;  %v6105_v17 = vsel %vm6092_vm6, %v6044_v52, %v6104_v51 }
 0xc78   :  { %v7489_v36 = vpop.eup %7488  ;;  %v6053_v39 = vsel %vm5953_vm4, %v6052_v48, %v6048_v46  ;;  %v6061_v57 = vrot.slane %v7487_v14, %v10022_v41 }
 0xc79   :  { %v7491_v27 = vpop.eup %7490  ;;  %v6066_v63 = vrot.slane %v7489_v36, %v10021_v6  ;;  %v6106_v62 = vsel %vm6094_vm7, %v6053_v39, %v6105_v17 }
 0xc7a   :  { %v7493_v54 = vpop.eup %7492  ;;  %v6062_v47 = vsel %vm5953_vm4, %v6061_v57, %v6057_v60  ;;  %v6070_v2 = vrot.slane %v7491_v27, %v10022_v41 }
 0xc7b   :  { %v7495_v50 = vpop.eup %7494  ;;  %v6075_v5 = vrot.slane %v7493_v54, %v10021_v6  ;;  %v6107_v58 = vsel %vm6096_vm8, %v6062_v47, %v6106_v62  ;;  %v504_v4 = vld [vmem:[%s9805_s2 + $0x8] sm:$0xff] }
 0xc7c   :  { %v7497_v26 = vpop.eup %7496  ;;  %v6071_v29 = vsel %vm5953_vm4, %v6070_v2, %v6066_v63  ;;  %v6079_v49 = vrot.slane %v7495_v50, %v10022_v41 }
 0xc7d   :  { %v7499_v35 = vpop.eup %7498  ;;  %v6084_v44 = vrot.slane %v7497_v26, %v10021_v6  ;;  %v6108_v28 = vsel %vm6098_vm9, %v6071_v29, %v6107_v58 }
 0xc7e   :  { %v6080_v19 = vsel %vm5953_vm4, %v6079_v49, %v6075_v5  ;;  %v6088_v7 = vrot.slane %v7499_v35, %v10022_v41 }
 0xc7f   :  { %v6109_v34 = vsel %vm6100_vm10, %v6080_v19, %v6108_v28 }
 0xc80   :  { %v6089_v56 = vsel %vm5953_vm4, %v6088_v7, %v6084_v44 }
 0xc81   :  { %v6110_v18 = vsel %vm6102_vm11, %v6089_v56, %v6109_v34 }
 0xc82   :  { %v6114_v43 = vadd.f32 %v6110_v18, %v504_v4 }
 0xc84   :  { %6148 = vst.msk [vmem:[%s9806_s15 + $0x8] sm:$0xff] %vm2015_vm3, %v6114_v43 }

</bundles_post_ra>
